<compile_context>
chip_gen: v7x
topology: tpu7x:2x2x1
jax: 0.10.0
libtpu: 0.0.40
codegen_flags: <defaults>
</compile_context>

<pallas_src>
import jax
import jax.numpy as jnp
import numpy as np
from jax.experimental import pallas as pl
from jax.experimental.pallas import tpu as pltpu

# 3x3 taps as (dh, dw) offsets relative to the output pixel, tap index t = kh*3+kw.
_TAPS = tuple((kh - 1, kw - 1) for kh in range(3) for kw in range(3))


def _tap_masks(H, W, nch):
    """(9, nch, H*W) f32 masks: 1 where the tap's source pixel lies inside the image."""
    hw = H * W
    r = np.arange(hw) // W
    c = np.arange(hw) % W
    m = np.zeros((9, 1, hw), np.float32)
    for t, (dh, dw) in enumerate(_TAPS):
        valid = (r + dh >= 0) & (r + dh < H) & (c + dw >= 0) & (c + dw < W)
        m[t, 0, :] = valid.astype(np.float32)
    # Pre-broadcast over channels (lane+sublane dense -> no in-kernel broadcasts).
    return np.ascontiguousarray(np.broadcast_to(m, (9, nch, hw)))


def _make_convblock_kernel(H, W, cin):
    hw = H * W
    ccat = 4 * cin

    def kernel(x_ref, wm_ref, bm_ref, wf_ref, bf_ref, mask_ref,
               o_ref, tap9_ref, tapf_ref, cat_ref):

        def fill_taps(tref, x, nch):
            # Fused roll -> mask -> store, one tap at a time (keeps ~4-6 vregs live).
            # tref row block [t*nch, (t+1)*nch) holds x shifted by tap t, zeroed
            # outside the image (the mask kills the lane-rotation wraparound).
            for t, (dh, dw) in enumerate(_TAPS):
                off = dh * W + dw
                if off == 0:
                    tref[t * nch:(t + 1) * nch, :] = x
                else:
                    rolled = pltpu.roll(x, (-off) % hw, axis=1)
                    tref[t * nch:(t + 1) * nch, :] = rolled * mask_ref[t, 0:nch, :]

        # -------- chain of 9x (3x3 conv + bias + ReLU), fully VMEM-resident -----
        h = x_ref[0]                                          # (cin, hw), lane-dense
        for l in range(9):
            fill_taps(tap9_ref, h, cin)
            # One MXU matmul per layer: (Cout, 9*Cin) x (9*Cin, hw) -> (Cout, hw).
            acc = jnp.dot(wm_ref[l], tap9_ref[...],
                          preferred_element_type=jnp.float32,
                          precision=jax.lax.Precision.HIGHEST)
            h = jnp.maximum(acc + bm_ref[l], 0.0)             # fused bias + ReLU
            if l in (2, 4, 6, 8):                             # save conv3/5/7/9
                k = (l - 2) // 2
                cat_ref[k * cin:(k + 1) * cin, :] = h

        # torch.cat([conv3, conv5, conv7, conv9], dim=1) lives in cat_ref; the
        # post-concat ReLU is a no-op (inputs already >= 0).
        fill_taps(tapf_ref, cat_ref[...], ccat)
        # Final conv: single (1, 9*4*Cin) x (9*4*Cin, hw) matmul (no XLU reductions).
        accf = jnp.dot(wf_ref[...], tapf_ref[...],
                       preferred_element_type=jnp.float32,
                       precision=jax.lax.Precision.HIGHEST)
        o_ref[0] = jnp.maximum(accf + bf_ref[...], 0.0)       # final bias + ReLU

    return kernel


def _convblock_pallas(x, wm, bm, wf, bf, masks, H, W):
    """x: (N, C, H*W) f32. Returns (N, 1, H*W) f32."""
    N, cin, hw = x.shape
    ccat = 4 * cin
    kernel = _make_convblock_kernel(H, W, cin)

    flops = N * (2 * 9 * cin * (9 * cin) * hw + 2 * (9 * ccat) * hw)
    bytes_accessed = 4 * (N * cin * hw + N * hw + wm.size + bm.size
                          + wf.size + bf.size + masks.size)

    return pl.pallas_call(
        kernel,
        out_shape=jax.ShapeDtypeStruct((N, 1, hw), jnp.float32),
        grid=(N,),
        in_specs=[
            pl.BlockSpec((1, cin, hw), lambda n: (n, 0, 0)),      # activations
            pl.BlockSpec(wm.shape, lambda n: (0, 0, 0)),          # 9 conv weights
            pl.BlockSpec(bm.shape, lambda n: (0, 0, 0)),          # 9 conv biases
            pl.BlockSpec(wf.shape, lambda n: (0, 0)),             # final conv weight
            pl.BlockSpec(bf.shape, lambda n: (0, 0)),             # final conv bias
            pl.BlockSpec(masks.shape, lambda n: (0, 0, 0)),       # 9 border masks
        ],
        out_specs=pl.BlockSpec((1, 1, hw), lambda n: (n, 0, 0)),  # lane-dense output
        scratch_shapes=[
            pltpu.VMEM((9 * cin, hw), jnp.float32),               # per-layer tap stack
            pltpu.VMEM((9 * ccat, hw), jnp.float32),              # final-conv tap stack
            pltpu.VMEM((ccat, hw), jnp.float32),                  # concat buffer
        ],
        compiler_params=pltpu.CompilerParams(
            dimension_semantics=("parallel",)),
        cost_estimate=pl.CostEstimate(
            flops=flops, transcendentals=0, bytes_accessed=bytes_accessed),
    )(x, wm, bm, wf, bf, masks)


def init_params(key, num_filters):
    """Deterministic synthetic parameters (shapes match the nn.Conv2d layers, HWIO)."""
    params = {}
    keys = jax.random.split(key, 20)
    for i in range(9):
        kw, kb = keys[2 * i], keys[2 * i + 1]
        params[f"w{i + 1}"] = 0.1 * jax.random.normal(
            kw, (3, 3, num_filters, num_filters), dtype=jnp.float32)
        params[f"b{i + 1}"] = 0.1 * jax.random.normal(
            kb, (num_filters,), dtype=jnp.float32)
    params["w_final"] = 0.1 * jax.random.normal(
        keys[18], (3, 3, num_filters * 4, 1), dtype=jnp.float32)
    params["b_final"] = 0.1 * jax.random.normal(
        keys[19], (1,), dtype=jnp.float32)
    return params


@jax.jit
def convolution_block_forward(params, volume_nchw):
    """Matches PyTorch ConvolutionBlock.forward. volume: (N, C, H, W) -> (N, 1, H, W)."""
    N, C, H, W = volume_nchw.shape
    hw = H * W
    ccat = 4 * C
    x = volume_nchw.reshape(N, C, hw)                     # NCHW -> (N, C, H*W), free

    # Lane-dense weight packing: HWIO (3,3,Cin,Cout) -> (Cout, 9*Cin) per layer,
    # column index j = t*Cin + ci with t = kh*3 + kw (matches the tap-stack rows).
    wm = jnp.stack([
        jnp.transpose(params[f"w{i}"].reshape(9, C, C), (2, 0, 1)).reshape(C, 9 * C)
        for i in range(1, 10)])                           # (9, Cout, 9*Cin)
    # Biases pre-broadcast to lane-dense (Cout, hw) slabs (plain VPU add in-kernel).
    bm = jnp.stack([
        jnp.broadcast_to(params[f"b{i}"][:, None], (C, hw)) for i in range(1, 10)])
    wf = jnp.transpose(params["w_final"].reshape(9, ccat, 1),
                       (2, 0, 1)).reshape(1, 9 * ccat)    # (1, 9*4*Cin)
    bf = jnp.broadcast_to(params["b_final"][:, None], (1, hw))
    masks = jnp.asarray(_tap_masks(H, W, ccat))           # (9, 4*Cin, hw)

    out = _convblock_pallas(x, wm, bm, wf, bf, masks, H, W)   # (N, 1, hw)
    return out.reshape(N, 1, H, W)


@jax.jit
def _reference_forward(params, volume_nchw):
    """Pure-JAX reference (lax.conv, NCHW, full f32 precision)."""
    prec = jax.lax.Precision.HIGHEST

    def conv(x, w, b):
        w_oihw = jnp.transpose(w, (3, 2, 0, 1))           # HWIO -> OIHW
        y = jax.lax.conv_general_dilated(
            x, w_oihw, window_strides=(1, 1), padding=((1, 1), (1, 1)),
            dimension_numbers=("NCHW", "OIHW", "NCHW"), precision=prec)
        return jnp.maximum(y + b[None, :, None, None], 0.0)

    h = volume_nchw
    convs = []
    for i in range(1, 10):
        h = conv(h, params[f"w{i}"], params[f"b{i}"])
        convs.append(h)
    fv = jnp.maximum(
        jnp.concatenate([convs[2], convs[4], convs[6], convs[8]], axis=1), 0.0)
    return conv(fv, params["w_final"], params["b_final"])


if __name__ == "__main__":
    num_filters = 4
    N, H, W = 2, 16, 16

    key = jax.random.PRNGKey(0)
    k_params, k_input = jax.random.split(key)
    params = init_params(k_params, num_filters)
    volume = jax.random.normal(k_input, (N, num_filters, H, W), dtype=jnp.float32)

    out = convolution_block_forward(params, volume)
    out = jax.block_until_ready(out)
    assert out.shape == (N, 1, H, W), out.shape

    ref = jax.block_until_ready(_reference_forward(params, volume))
    max_err = float(jnp.max(jnp.abs(out - ref)))
    assert jnp.allclose(out, ref, atol=1e-3, rtol=1e-3), f"max abs diff = {max_err}"

    print("KERNEL_OK")
</pallas_src>

<mosaic_0001>
module attributes {stable_mosaic.version = 11 : i64} {
  func.func @kernel(%arg0: i32, %arg1: memref<1x4x256xf32, #tpu.memory_space<vmem>>, %arg2: memref<9x4x36xf32, #tpu.memory_space<vmem>>, %arg3: memref<9x4x256xf32, #tpu.memory_space<vmem>>, %arg4: memref<1x144xf32, #tpu.memory_space<vmem>>, %arg5: memref<1x256xf32, #tpu.memory_space<vmem>>, %arg6: memref<9x16x256xf32, #tpu.memory_space<vmem>>, %arg7: memref<1x1x256xf32, #tpu.memory_space<vmem>>, %arg8: memref<36x256xf32, #tpu.memory_space<vmem>>, %arg9: memref<144x256xf32, #tpu.memory_space<vmem>>, %arg10: memref<16x256xf32, #tpu.memory_space<vmem>>) attributes {dimension_semantics = [#tpu.dimension_semantics<parallel>], iteration_bounds = array<i64: 2>, scalar_prefetch = 0 : i64, scratch_operands = 3 : i64, tpu.core_type = #tpu.core_type<tc>, window_params = [{transform_indices = @transform_0, window_bounds = array<i64: 1, 4, 256>}, {pipeline_mode = #tpu.pipeline_mode<synchronous>, transform_indices = @transform_1, window_bounds = array<i64: 9, 4, 36>}, {pipeline_mode = #tpu.pipeline_mode<synchronous>, transform_indices = @transform_2, window_bounds = array<i64: 9, 4, 256>}, {pipeline_mode = #tpu.pipeline_mode<synchronous>, transform_indices = @transform_3, window_bounds = array<i64: 1, 144>}, {pipeline_mode = #tpu.pipeline_mode<synchronous>, transform_indices = @transform_4, window_bounds = array<i64: 1, 256>}, {pipeline_mode = #tpu.pipeline_mode<synchronous>, transform_indices = @transform_5, window_bounds = array<i64: 9, 16, 256>}, {transform_indices = @transform_6, window_bounds = array<i64: 1, 1, 256>}]} {
    %c0 = arith.constant 0 : index
    %c0_0 = arith.constant 0 : index
    %c0_1 = arith.constant 0 : index
    %0 = vector.load %arg1[%c0, %c0_0, %c0_1] : memref<1x4x256xf32, #tpu.memory_space<vmem>>, vector<1x4x256xf32>
    %1 = vector.shape_cast %0 : vector<1x4x256xf32> to vector<4x256xf32>
    %c17_i32 = arith.constant 17 : i32
    %2 = tpu.dynamic_rotate %1 by %c17_i32 dim 1 : vector<4x256xf32>, i32 -> vector<4x256xf32>
    %c0_2 = arith.constant 0 : index
    %c0_3 = arith.constant 0 : index
    %c0_4 = arith.constant 0 : index
    %3 = vector.load %arg6[%c0_2, %c0_3, %c0_4] : memref<9x16x256xf32, #tpu.memory_space<vmem>>, vector<1x4x256xf32>
    %4 = vector.shape_cast %3 : vector<1x4x256xf32> to vector<4x256xf32>
    %5 = arith.mulf %2, %4 : vector<4x256xf32>
    %c0_5 = arith.constant 0 : index
    %c0_6 = arith.constant 0 : index
    %6 = vector.load %arg8[%c0_5, %c0_6] : memref<36x256xf32, #tpu.memory_space<vmem>>, vector<4x256xf32>
    tpu.vector_store %arg8[%c0_5, %c0_6], %5 {strides = array<i32>} : memref<36x256xf32, #tpu.memory_space<vmem>>, vector<4x256xf32>,
    %c16_i32 = arith.constant 16 : i32
    %7 = tpu.dynamic_rotate %1 by %c16_i32 dim 1 : vector<4x256xf32>, i32 -> vector<4x256xf32>
    %c1 = arith.constant 1 : index
    %c0_7 = arith.constant 0 : index
    %c0_8 = arith.constant 0 : index
    %8 = vector.load %arg6[%c1, %c0_7, %c0_8] : memref<9x16x256xf32, #tpu.memory_space<vmem>>, vector<1x4x256xf32>
    %9 = vector.shape_cast %8 : vector<1x4x256xf32> to vector<4x256xf32>
    %10 = arith.mulf %7, %9 : vector<4x256xf32>
    %c4 = arith.constant 4 : index
    %c0_9 = arith.constant 0 : index
    %11 = vector.load %arg8[%c4, %c0_9] : memref<36x256xf32, #tpu.memory_space<vmem>>, vector<4x256xf32>
    tpu.vector_store %arg8[%c4, %c0_9], %10 {strides = array<i32>} : memref<36x256xf32, #tpu.memory_space<vmem>>, vector<4x256xf32>,
    %c15_i32 = arith.constant 15 : i32
    %12 = tpu.dynamic_rotate %1 by %c15_i32 dim 1 : vector<4x256xf32>, i32 -> vector<4x256xf32>
    %c2 = arith.constant 2 : index
    %c0_10 = arith.constant 0 : index
    %c0_11 = arith.constant 0 : index
    %13 = vector.load %arg6[%c2, %c0_10, %c0_11] : memref<9x16x256xf32, #tpu.memory_space<vmem>>, vector<1x4x256xf32>
    %14 = vector.shape_cast %13 : vector<1x4x256xf32> to vector<4x256xf32>
    %15 = arith.mulf %12, %14 : vector<4x256xf32>
    %c8 = arith.constant 8 : index
    %c0_12 = arith.constant 0 : index
    %16 = vector.load %arg8[%c8, %c0_12] : memref<36x256xf32, #tpu.memory_space<vmem>>, vector<4x256xf32>
    tpu.vector_store %arg8[%c8, %c0_12], %15 {strides = array<i32>} : memref<36x256xf32, #tpu.memory_space<vmem>>, vector<4x256xf32>,
    %c1_i32 = arith.constant 1 : i32
    %17 = tpu.dynamic_rotate %1 by %c1_i32 dim 1 : vector<4x256xf32>, i32 -> vector<4x256xf32>
    %c3 = arith.constant 3 : index
    %c0_13 = arith.constant 0 : index
    %c0_14 = arith.constant 0 : index
    %18 = vector.load %arg6[%c3, %c0_13, %c0_14] : memref<9x16x256xf32, #tpu.memory_space<vmem>>, vector<1x4x256xf32>
    %19 = vector.shape_cast %18 : vector<1x4x256xf32> to vector<4x256xf32>
    %20 = arith.mulf %17, %19 : vector<4x256xf32>
    %c12 = arith.constant 12 : index
    %c0_15 = arith.constant 0 : index
    %21 = vector.load %arg8[%c12, %c0_15] : memref<36x256xf32, #tpu.memory_space<vmem>>, vector<4x256xf32>
    tpu.vector_store %arg8[%c12, %c0_15], %20 {strides = array<i32>} : memref<36x256xf32, #tpu.memory_space<vmem>>, vector<4x256xf32>,
    %c16 = arith.constant 16 : index
    %c0_16 = arith.constant 0 : index
    %22 = vector.load %arg8[%c16, %c0_16] : memref<36x256xf32, #tpu.memory_space<vmem>>, vector<4x256xf32>
    tpu.vector_store %arg8[%c16, %c0_16], %1 {strides = array<i32>} : memref<36x256xf32, #tpu.memory_space<vmem>>, vector<4x256xf32>,
    %c255_i32 = arith.constant 255 : i32
    %23 = tpu.dynamic_rotate %1 by %c255_i32 dim 1 : vector<4x256xf32>, i32 -> vector<4x256xf32>
    %c5 = arith.constant 5 : index
    %c0_17 = arith.constant 0 : index
    %c0_18 = arith.constant 0 : index
    %24 = vector.load %arg6[%c5, %c0_17, %c0_18] : memref<9x16x256xf32, #tpu.memory_space<vmem>>, vector<1x4x256xf32>
    %25 = vector.shape_cast %24 : vector<1x4x256xf32> to vector<4x256xf32>
    %26 = arith.mulf %23, %25 : vector<4x256xf32>
    %c20 = arith.constant 20 : index
    %c0_19 = arith.constant 0 : index
    %27 = vector.load %arg8[%c20, %c0_19] : memref<36x256xf32, #tpu.memory_space<vmem>>, vector<4x256xf32>
    tpu.vector_store %arg8[%c20, %c0_19], %26 {strides = array<i32>} : memref<36x256xf32, #tpu.memory_space<vmem>>, vector<4x256xf32>,
    %c241_i32 = arith.constant 241 : i32
    %28 = tpu.dynamic_rotate %1 by %c241_i32 dim 1 : vector<4x256xf32>, i32 -> vector<4x256xf32>
    %c6 = arith.constant 6 : index
    %c0_20 = arith.constant 0 : index
    %c0_21 = arith.constant 0 : index
    %29 = vector.load %arg6[%c6, %c0_20, %c0_21] : memref<9x16x256xf32, #tpu.memory_space<vmem>>, vector<1x4x256xf32>
    %30 = vector.shape_cast %29 : vector<1x4x256xf32> to vector<4x256xf32>
    %31 = arith.mulf %28, %30 : vector<4x256xf32>
    %c24 = arith.constant 24 : index
    %c0_22 = arith.constant 0 : index
    %32 = vector.load %arg8[%c24, %c0_22] : memref<36x256xf32, #tpu.memory_space<vmem>>, vector<4x256xf32>
    tpu.vector_store %arg8[%c24, %c0_22], %31 {strides = array<i32>} : memref<36x256xf32, #tpu.memory_space<vmem>>, vector<4x256xf32>,
    %c240_i32 = arith.constant 240 : i32
    %33 = tpu.dynamic_rotate %1 by %c240_i32 dim 1 : vector<4x256xf32>, i32 -> vector<4x256xf32>
    %c7 = arith.constant 7 : index
    %c0_23 = arith.constant 0 : index
    %c0_24 = arith.constant 0 : index
    %34 = vector.load %arg6[%c7, %c0_23, %c0_24] : memref<9x16x256xf32, #tpu.memory_space<vmem>>, vector<1x4x256xf32>
    %35 = vector.shape_cast %34 : vector<1x4x256xf32> to vector<4x256xf32>
    %36 = arith.mulf %33, %35 : vector<4x256xf32>
    %c28 = arith.constant 28 : index
    %c0_25 = arith.constant 0 : index
    %37 = vector.load %arg8[%c28, %c0_25] : memref<36x256xf32, #tpu.memory_space<vmem>>, vector<4x256xf32>
    tpu.vector_store %arg8[%c28, %c0_25], %36 {strides = array<i32>} : memref<36x256xf32, #tpu.memory_space<vmem>>, vector<4x256xf32>,
    %c239_i32 = arith.constant 239 : i32
    %38 = tpu.dynamic_rotate %1 by %c239_i32 dim 1 : vector<4x256xf32>, i32 -> vector<4x256xf32>
    %c8_26 = arith.constant 8 : index
    %c0_27 = arith.constant 0 : index
    %c0_28 = arith.constant 0 : index
    %39 = vector.load %arg6[%c8_26, %c0_27, %c0_28] : memref<9x16x256xf32, #tpu.memory_space<vmem>>, vector<1x4x256xf32>
    %40 = vector.shape_cast %39 : vector<1x4x256xf32> to vector<4x256xf32>
    %41 = arith.mulf %38, %40 : vector<4x256xf32>
    %c32 = arith.constant 32 : index
    %c0_29 = arith.constant 0 : index
    %42 = vector.load %arg8[%c32, %c0_29] : memref<36x256xf32, #tpu.memory_space<vmem>>, vector<4x256xf32>
    tpu.vector_store %arg8[%c32, %c0_29], %41 {strides = array<i32>} : memref<36x256xf32, #tpu.memory_space<vmem>>, vector<4x256xf32>,
    %c0_30 = arith.constant 0 : index
    %c0_31 = arith.constant 0 : index
    %c0_32 = arith.constant 0 : index
    %43 = vector.load %arg2[%c0_30, %c0_31, %c0_32] : memref<9x4x36xf32, #tpu.memory_space<vmem>>, vector<1x4x36xf32>
    %44 = vector.shape_cast %43 : vector<1x4x36xf32> to vector<4x36xf32>
    %c0_33 = arith.constant 0 : index
    %c0_34 = arith.constant 0 : index
    %45 = vector.load %arg8[%c0_33, %c0_34] : memref<36x256xf32, #tpu.memory_space<vmem>>, vector<36x256xf32>
    %cst = arith.constant dense<0.000000e+00> : vector<4x256xf32>
    %46 = tpu.matmul %44, %45, %cst {dimension_numbers = #tpu.dot_dimension_numbers<[1], [0], [0], [1], [0, 0, 1, 1], [], []>, precision = #tpu.contract_precision<fp32>} : vector<4x36xf32>, vector<36x256xf32>, vector<4x256xf32> -> vector<4x256xf32>
    %c0_35 = arith.constant 0 : index
    %c0_36 = arith.constant 0 : index
    %c0_37 = arith.constant 0 : index
    %47 = vector.load %arg3[%c0_35, %c0_36, %c0_37] : memref<9x4x256xf32, #tpu.memory_space<vmem>>, vector<1x4x256xf32>
    %48 = vector.shape_cast %47 : vector<1x4x256xf32> to vector<4x256xf32>
    %49 = arith.addf %46, %48 : vector<4x256xf32>
    %cst_38 = arith.constant 0.000000e+00 : f32
    %50 = vector.broadcast %cst_38 : f32 to vector<4x256xf32>
    %51 = arith.maximumf %49, %50 : vector<4x256xf32>
    %c17_i32_39 = arith.constant 17 : i32
    %52 = tpu.dynamic_rotate %51 by %c17_i32_39 dim 1 : vector<4x256xf32>, i32 -> vector<4x256xf32>
    %c0_40 = arith.constant 0 : index
    %c0_41 = arith.constant 0 : index
    %c0_42 = arith.constant 0 : index
    %53 = vector.load %arg6[%c0_40, %c0_41, %c0_42] : memref<9x16x256xf32, #tpu.memory_space<vmem>>, vector<1x4x256xf32>
    %54 = vector.shape_cast %53 : vector<1x4x256xf32> to vector<4x256xf32>
    %55 = arith.mulf %52, %54 : vector<4x256xf32>
    %c0_43 = arith.constant 0 : index
    %c0_44 = arith.constant 0 : index
    %56 = vector.load %arg8[%c0_43, %c0_44] : memref<36x256xf32, #tpu.memory_space<vmem>>, vector<4x256xf32>
    tpu.vector_store %arg8[%c0_43, %c0_44], %55 {strides = array<i32>} : memref<36x256xf32, #tpu.memory_space<vmem>>, vector<4x256xf32>,
    %c16_i32_45 = arith.constant 16 : i32
    %57 = tpu.dynamic_rotate %51 by %c16_i32_45 dim 1 : vector<4x256xf32>, i32 -> vector<4x256xf32>
    %c1_46 = arith.constant 1 : index
    %c0_47 = arith.constant 0 : index
    %c0_48 = arith.constant 0 : index
    %58 = vector.load %arg6[%c1_46, %c0_47, %c0_48] : memref<9x16x256xf32, #tpu.memory_space<vmem>>, vector<1x4x256xf32>
    %59 = vector.shape_cast %58 : vector<1x4x256xf32> to vector<4x256xf32>
    %60 = arith.mulf %57, %59 : vector<4x256xf32>
    %c4_49 = arith.constant 4 : index
    %c0_50 = arith.constant 0 : index
    %61 = vector.load %arg8[%c4_49, %c0_50] : memref<36x256xf32, #tpu.memory_space<vmem>>, vector<4x256xf32>
    tpu.vector_store %arg8[%c4_49, %c0_50], %60 {strides = array<i32>} : memref<36x256xf32, #tpu.memory_space<vmem>>, vector<4x256xf32>,
    %c15_i32_51 = arith.constant 15 : i32
    %62 = tpu.dynamic_rotate %51 by %c15_i32_51 dim 1 : vector<4x256xf32>, i32 -> vector<4x256xf32>
    %c2_52 = arith.constant 2 : index
    %c0_53 = arith.constant 0 : index
    %c0_54 = arith.constant 0 : index
    %63 = vector.load %arg6[%c2_52, %c0_53, %c0_54] : memref<9x16x256xf32, #tpu.memory_space<vmem>>, vector<1x4x256xf32>
    %64 = vector.shape_cast %63 : vector<1x4x256xf32> to vector<4x256xf32>
    %65 = arith.mulf %62, %64 : vector<4x256xf32>
    %c8_55 = arith.constant 8 : index
    %c0_56 = arith.constant 0 : index
    %66 = vector.load %arg8[%c8_55, %c0_56] : memref<36x256xf32, #tpu.memory_space<vmem>>, vector<4x256xf32>
    tpu.vector_store %arg8[%c8_55, %c0_56], %65 {strides = array<i32>} : memref<36x256xf32, #tpu.memory_space<vmem>>, vector<4x256xf32>,
    %c1_i32_57 = arith.constant 1 : i32
    %67 = tpu.dynamic_rotate %51 by %c1_i32_57 dim 1 : vector<4x256xf32>, i32 -> vector<4x256xf32>
    %c3_58 = arith.constant 3 : index
    %c0_59 = arith.constant 0 : index
    %c0_60 = arith.constant 0 : index
    %68 = vector.load %arg6[%c3_58, %c0_59, %c0_60] : memref<9x16x256xf32, #tpu.memory_space<vmem>>, vector<1x4x256xf32>
    %69 = vector.shape_cast %68 : vector<1x4x256xf32> to vector<4x256xf32>
    %70 = arith.mulf %67, %69 : vector<4x256xf32>
    %c12_61 = arith.constant 12 : index
    %c0_62 = arith.constant 0 : index
    %71 = vector.load %arg8[%c12_61, %c0_62] : memref<36x256xf32, #tpu.memory_space<vmem>>, vector<4x256xf32>
    tpu.vector_store %arg8[%c12_61, %c0_62], %70 {strides = array<i32>} : memref<36x256xf32, #tpu.memory_space<vmem>>, vector<4x256xf32>,
    %c16_63 = arith.constant 16 : index
    %c0_64 = arith.constant 0 : index
    %72 = vector.load %arg8[%c16_63, %c0_64] : memref<36x256xf32, #tpu.memory_space<vmem>>, vector<4x256xf32>
    tpu.vector_store %arg8[%c16_63, %c0_64], %51 {strides = array<i32>} : memref<36x256xf32, #tpu.memory_space<vmem>>, vector<4x256xf32>,
    %c255_i32_65 = arith.constant 255 : i32
    %73 = tpu.dynamic_rotate %51 by %c255_i32_65 dim 1 : vector<4x256xf32>, i32 -> vector<4x256xf32>
    %c5_66 = arith.constant 5 : index
    %c0_67 = arith.constant 0 : index
    %c0_68 = arith.constant 0 : index
    %74 = vector.load %arg6[%c5_66, %c0_67, %c0_68] : memref<9x16x256xf32, #tpu.memory_space<vmem>>, vector<1x4x256xf32>
    %75 = vector.shape_cast %74 : vector<1x4x256xf32> to vector<4x256xf32>
    %76 = arith.mulf %73, %75 : vector<4x256xf32>
    %c20_69 = arith.constant 20 : index
    %c0_70 = arith.constant 0 : index
    %77 = vector.load %arg8[%c20_69, %c0_70] : memref<36x256xf32, #tpu.memory_space<vmem>>, vector<4x256xf32>
    tpu.vector_store %arg8[%c20_69, %c0_70], %76 {strides = array<i32>} : memref<36x256xf32, #tpu.memory_space<vmem>>, vector<4x256xf32>,
    %c241_i32_71 = arith.constant 241 : i32
    %78 = tpu.dynamic_rotate %51 by %c241_i32_71 dim 1 : vector<4x256xf32>, i32 -> vector<4x256xf32>
    %c6_72 = arith.constant 6 : index
    %c0_73 = arith.constant 0 : index
    %c0_74 = arith.constant 0 : index
    %79 = vector.load %arg6[%c6_72, %c0_73, %c0_74] : memref<9x16x256xf32, #tpu.memory_space<vmem>>, vector<1x4x256xf32>
    %80 = vector.shape_cast %79 : vector<1x4x256xf32> to vector<4x256xf32>
    %81 = arith.mulf %78, %80 : vector<4x256xf32>
    %c24_75 = arith.constant 24 : index
    %c0_76 = arith.constant 0 : index
    %82 = vector.load %arg8[%c24_75, %c0_76] : memref<36x256xf32, #tpu.memory_space<vmem>>, vector<4x256xf32>
    tpu.vector_store %arg8[%c24_75, %c0_76], %81 {strides = array<i32>} : memref<36x256xf32, #tpu.memory_space<vmem>>, vector<4x256xf32>,
    %c240_i32_77 = arith.constant 240 : i32
    %83 = tpu.dynamic_rotate %51 by %c240_i32_77 dim 1 : vector<4x256xf32>, i32 -> vector<4x256xf32>
    %c7_78 = arith.constant 7 : index
    %c0_79 = arith.constant 0 : index
    %c0_80 = arith.constant 0 : index
    %84 = vector.load %arg6[%c7_78, %c0_79, %c0_80] : memref<9x16x256xf32, #tpu.memory_space<vmem>>, vector<1x4x256xf32>
    %85 = vector.shape_cast %84 : vector<1x4x256xf32> to vector<4x256xf32>
    %86 = arith.mulf %83, %85 : vector<4x256xf32>
    %c28_81 = arith.constant 28 : index
    %c0_82 = arith.constant 0 : index
    %87 = vector.load %arg8[%c28_81, %c0_82] : memref<36x256xf32, #tpu.memory_space<vmem>>, vector<4x256xf32>
    tpu.vector_store %arg8[%c28_81, %c0_82], %86 {strides = array<i32>} : memref<36x256xf32, #tpu.memory_space<vmem>>, vector<4x256xf32>,
    %c239_i32_83 = arith.constant 239 : i32
    %88 = tpu.dynamic_rotate %51 by %c239_i32_83 dim 1 : vector<4x256xf32>, i32 -> vector<4x256xf32>
    %c8_84 = arith.constant 8 : index
    %c0_85 = arith.constant 0 : index
    %c0_86 = arith.constant 0 : index
    %89 = vector.load %arg6[%c8_84, %c0_85, %c0_86] : memref<9x16x256xf32, #tpu.memory_space<vmem>>, vector<1x4x256xf32>
    %90 = vector.shape_cast %89 : vector<1x4x256xf32> to vector<4x256xf32>
    %91 = arith.mulf %88, %90 : vector<4x256xf32>
    %c32_87 = arith.constant 32 : index
    %c0_88 = arith.constant 0 : index
    %92 = vector.load %arg8[%c32_87, %c0_88] : memref<36x256xf32, #tpu.memory_space<vmem>>, vector<4x256xf32>
    tpu.vector_store %arg8[%c32_87, %c0_88], %91 {strides = array<i32>} : memref<36x256xf32, #tpu.memory_space<vmem>>, vector<4x256xf32>,
    %c1_89 = arith.constant 1 : index
    %c0_90 = arith.constant 0 : index
    %c0_91 = arith.constant 0 : index
    %93 = vector.load %arg2[%c1_89, %c0_90, %c0_91] : memref<9x4x36xf32, #tpu.memory_space<vmem>>, vector<1x4x36xf32>
    %94 = vector.shape_cast %93 : vector<1x4x36xf32> to vector<4x36xf32>
    %c0_92 = arith.constant 0 : index
    %c0_93 = arith.constant 0 : index
    %95 = vector.load %arg8[%c0_92, %c0_93] : memref<36x256xf32, #tpu.memory_space<vmem>>, vector<36x256xf32>
    %cst_94 = arith.constant dense<0.000000e+00> : vector<4x256xf32>
    %96 = tpu.matmul %94, %95, %cst_94 {dimension_numbers = #tpu.dot_dimension_numbers<[1], [0], [0], [1], [0, 0, 1, 1], [], []>, precision = #tpu.contract_precision<fp32>} : vector<4x36xf32>, vector<36x256xf32>, vector<4x256xf32> -> vector<4x256xf32>
    %c1_95 = arith.constant 1 : index
    %c0_96 = arith.constant 0 : index
    %c0_97 = arith.constant 0 : index
    %97 = vector.load %arg3[%c1_95, %c0_96, %c0_97] : memref<9x4x256xf32, #tpu.memory_space<vmem>>, vector<1x4x256xf32>
    %98 = vector.shape_cast %97 : vector<1x4x256xf32> to vector<4x256xf32>
    %99 = arith.addf %96, %98 : vector<4x256xf32>
    %cst_98 = arith.constant 0.000000e+00 : f32
    %100 = vector.broadcast %cst_98 : f32 to vector<4x256xf32>
    %101 = arith.maximumf %99, %100 : vector<4x256xf32>
    %c17_i32_99 = arith.constant 17 : i32
    %102 = tpu.dynamic_rotate %101 by %c17_i32_99 dim 1 : vector<4x256xf32>, i32 -> vector<4x256xf32>
    %c0_100 = arith.constant 0 : index
    %c0_101 = arith.constant 0 : index
    %c0_102 = arith.constant 0 : index
    %103 = vector.load %arg6[%c0_100, %c0_101, %c0_102] : memref<9x16x256xf32, #tpu.memory_space<vmem>>, vector<1x4x256xf32>
    %104 = vector.shape_cast %103 : vector<1x4x256xf32> to vector<4x256xf32>
    %105 = arith.mulf %102, %104 : vector<4x256xf32>
    %c0_103 = arith.constant 0 : index
    %c0_104 = arith.constant 0 : index
    %106 = vector.load %arg8[%c0_103, %c0_104] : memref<36x256xf32, #tpu.memory_space<vmem>>, vector<4x256xf32>
    tpu.vector_store %arg8[%c0_103, %c0_104], %105 {strides = array<i32>} : memref<36x256xf32, #tpu.memory_space<vmem>>, vector<4x256xf32>,
    %c16_i32_105 = arith.constant 16 : i32
    %107 = tpu.dynamic_rotate %101 by %c16_i32_105 dim 1 : vector<4x256xf32>, i32 -> vector<4x256xf32>
    %c1_106 = arith.constant 1 : index
    %c0_107 = arith.constant 0 : index
    %c0_108 = arith.constant 0 : index
    %108 = vector.load %arg6[%c1_106, %c0_107, %c0_108] : memref<9x16x256xf32, #tpu.memory_space<vmem>>, vector<1x4x256xf32>
    %109 = vector.shape_cast %108 : vector<1x4x256xf32> to vector<4x256xf32>
    %110 = arith.mulf %107, %109 : vector<4x256xf32>
    %c4_109 = arith.constant 4 : index
    %c0_110 = arith.constant 0 : index
    %111 = vector.load %arg8[%c4_109, %c0_110] : memref<36x256xf32, #tpu.memory_space<vmem>>, vector<4x256xf32>
    tpu.vector_store %arg8[%c4_109, %c0_110], %110 {strides = array<i32>} : memref<36x256xf32, #tpu.memory_space<vmem>>, vector<4x256xf32>,
    %c15_i32_111 = arith.constant 15 : i32
    %112 = tpu.dynamic_rotate %101 by %c15_i32_111 dim 1 : vector<4x256xf32>, i32 -> vector<4x256xf32>
    %c2_112 = arith.constant 2 : index
    %c0_113 = arith.constant 0 : index
    %c0_114 = arith.constant 0 : index
    %113 = vector.load %arg6[%c2_112, %c0_113, %c0_114] : memref<9x16x256xf32, #tpu.memory_space<vmem>>, vector<1x4x256xf32>
    %114 = vector.shape_cast %113 : vector<1x4x256xf32> to vector<4x256xf32>
    %115 = arith.mulf %112, %114 : vector<4x256xf32>
    %c8_115 = arith.constant 8 : index
    %c0_116 = arith.constant 0 : index
    %116 = vector.load %arg8[%c8_115, %c0_116] : memref<36x256xf32, #tpu.memory_space<vmem>>, vector<4x256xf32>
    tpu.vector_store %arg8[%c8_115, %c0_116], %115 {strides = array<i32>} : memref<36x256xf32, #tpu.memory_space<vmem>>, vector<4x256xf32>,
    %c1_i32_117 = arith.constant 1 : i32
    %117 = tpu.dynamic_rotate %101 by %c1_i32_117 dim 1 : vector<4x256xf32>, i32 -> vector<4x256xf32>
    %c3_118 = arith.constant 3 : index
    %c0_119 = arith.constant 0 : index
    %c0_120 = arith.constant 0 : index
    %118 = vector.load %arg6[%c3_118, %c0_119, %c0_120] : memref<9x16x256xf32, #tpu.memory_space<vmem>>, vector<1x4x256xf32>
    %119 = vector.shape_cast %118 : vector<1x4x256xf32> to vector<4x256xf32>
    %120 = arith.mulf %117, %119 : vector<4x256xf32>
    %c12_121 = arith.constant 12 : index
    %c0_122 = arith.constant 0 : index
    %121 = vector.load %arg8[%c12_121, %c0_122] : memref<36x256xf32, #tpu.memory_space<vmem>>, vector<4x256xf32>
    tpu.vector_store %arg8[%c12_121, %c0_122], %120 {strides = array<i32>} : memref<36x256xf32, #tpu.memory_space<vmem>>, vector<4x256xf32>,
    %c16_123 = arith.constant 16 : index
    %c0_124 = arith.constant 0 : index
    %122 = vector.load %arg8[%c16_123, %c0_124] : memref<36x256xf32, #tpu.memory_space<vmem>>, vector<4x256xf32>
    tpu.vector_store %arg8[%c16_123, %c0_124], %101 {strides = array<i32>} : memref<36x256xf32, #tpu.memory_space<vmem>>, vector<4x256xf32>,
    %c255_i32_125 = arith.constant 255 : i32
    %123 = tpu.dynamic_rotate %101 by %c255_i32_125 dim 1 : vector<4x256xf32>, i32 -> vector<4x256xf32>
    %c5_126 = arith.constant 5 : index
    %c0_127 = arith.constant 0 : index
    %c0_128 = arith.constant 0 : index
    %124 = vector.load %arg6[%c5_126, %c0_127, %c0_128] : memref<9x16x256xf32, #tpu.memory_space<vmem>>, vector<1x4x256xf32>
    %125 = vector.shape_cast %124 : vector<1x4x256xf32> to vector<4x256xf32>
    %126 = arith.mulf %123, %125 : vector<4x256xf32>
    %c20_129 = arith.constant 20 : index
    %c0_130 = arith.constant 0 : index
    %127 = vector.load %arg8[%c20_129, %c0_130] : memref<36x256xf32, #tpu.memory_space<vmem>>, vector<4x256xf32>
    tpu.vector_store %arg8[%c20_129, %c0_130], %126 {strides = array<i32>} : memref<36x256xf32, #tpu.memory_space<vmem>>, vector<4x256xf32>,
    %c241_i32_131 = arith.constant 241 : i32
    %128 = tpu.dynamic_rotate %101 by %c241_i32_131 dim 1 : vector<4x256xf32>, i32 -> vector<4x256xf32>
    %c6_132 = arith.constant 6 : index
    %c0_133 = arith.constant 0 : index
    %c0_134 = arith.constant 0 : index
    %129 = vector.load %arg6[%c6_132, %c0_133, %c0_134] : memref<9x16x256xf32, #tpu.memory_space<vmem>>, vector<1x4x256xf32>
    %130 = vector.shape_cast %129 : vector<1x4x256xf32> to vector<4x256xf32>
    %131 = arith.mulf %128, %130 : vector<4x256xf32>
    %c24_135 = arith.constant 24 : index
    %c0_136 = arith.constant 0 : index
    %132 = vector.load %arg8[%c24_135, %c0_136] : memref<36x256xf32, #tpu.memory_space<vmem>>, vector<4x256xf32>
    tpu.vector_store %arg8[%c24_135, %c0_136], %131 {strides = array<i32>} : memref<36x256xf32, #tpu.memory_space<vmem>>, vector<4x256xf32>,
    %c240_i32_137 = arith.constant 240 : i32
    %133 = tpu.dynamic_rotate %101 by %c240_i32_137 dim 1 : vector<4x256xf32>, i32 -> vector<4x256xf32>
    %c7_138 = arith.constant 7 : index
    %c0_139 = arith.constant 0 : index
    %c0_140 = arith.constant 0 : index
    %134 = vector.load %arg6[%c7_138, %c0_139, %c0_140] : memref<9x16x256xf32, #tpu.memory_space<vmem>>, vector<1x4x256xf32>
    %135 = vector.shape_cast %134 : vector<1x4x256xf32> to vector<4x256xf32>
    %136 = arith.mulf %133, %135 : vector<4x256xf32>
    %c28_141 = arith.constant 28 : index
    %c0_142 = arith.constant 0 : index
    %137 = vector.load %arg8[%c28_141, %c0_142] : memref<36x256xf32, #tpu.memory_space<vmem>>, vector<4x256xf32>
    tpu.vector_store %arg8[%c28_141, %c0_142], %136 {strides = array<i32>} : memref<36x256xf32, #tpu.memory_space<vmem>>, vector<4x256xf32>,
    %c239_i32_143 = arith.constant 239 : i32
    %138 = tpu.dynamic_rotate %101 by %c239_i32_143 dim 1 : vector<4x256xf32>, i32 -> vector<4x256xf32>
    %c8_144 = arith.constant 8 : index
    %c0_145 = arith.constant 0 : index
    %c0_146 = arith.constant 0 : index
    %139 = vector.load %arg6[%c8_144, %c0_145, %c0_146] : memref<9x16x256xf32, #tpu.memory_space<vmem>>, vector<1x4x256xf32>
    %140 = vector.shape_cast %139 : vector<1x4x256xf32> to vector<4x256xf32>
    %141 = arith.mulf %138, %140 : vector<4x256xf32>
    %c32_147 = arith.constant 32 : index
    %c0_148 = arith.constant 0 : index
    %142 = vector.load %arg8[%c32_147, %c0_148] : memref<36x256xf32, #tpu.memory_space<vmem>>, vector<4x256xf32>
    tpu.vector_store %arg8[%c32_147, %c0_148], %141 {strides = array<i32>} : memref<36x256xf32, #tpu.memory_space<vmem>>, vector<4x256xf32>,
    %c2_149 = arith.constant 2 : index
    %c0_150 = arith.constant 0 : index
    %c0_151 = arith.constant 0 : index
    %143 = vector.load %arg2[%c2_149, %c0_150, %c0_151] : memref<9x4x36xf32, #tpu.memory_space<vmem>>, vector<1x4x36xf32>
    %144 = vector.shape_cast %143 : vector<1x4x36xf32> to vector<4x36xf32>
    %c0_152 = arith.constant 0 : index
    %c0_153 = arith.constant 0 : index
    %145 = vector.load %arg8[%c0_152, %c0_153] : memref<36x256xf32, #tpu.memory_space<vmem>>, vector<36x256xf32>
    %cst_154 = arith.constant dense<0.000000e+00> : vector<4x256xf32>
    %146 = tpu.matmul %144, %145, %cst_154 {dimension_numbers = #tpu.dot_dimension_numbers<[1], [0], [0], [1], [0, 0, 1, 1], [], []>, precision = #tpu.contract_precision<fp32>} : vector<4x36xf32>, vector<36x256xf32>, vector<4x256xf32> -> vector<4x256xf32>
    %c2_155 = arith.constant 2 : index
    %c0_156 = arith.constant 0 : index
    %c0_157 = arith.constant 0 : index
    %147 = vector.load %arg3[%c2_155, %c0_156, %c0_157] : memref<9x4x256xf32, #tpu.memory_space<vmem>>, vector<1x4x256xf32>
    %148 = vector.shape_cast %147 : vector<1x4x256xf32> to vector<4x256xf32>
    %149 = arith.addf %146, %148 : vector<4x256xf32>
    %cst_158 = arith.constant 0.000000e+00 : f32
    %150 = vector.broadcast %cst_158 : f32 to vector<4x256xf32>
    %151 = arith.maximumf %149, %150 : vector<4x256xf32>
    %c0_159 = arith.constant 0 : index
    %c0_160 = arith.constant 0 : index
    %152 = vector.load %arg10[%c0_159, %c0_160] : memref<16x256xf32, #tpu.memory_space<vmem>>, vector<4x256xf32>
    tpu.vector_store %arg10[%c0_159, %c0_160], %151 {strides = array<i32>} : memref<16x256xf32, #tpu.memory_space<vmem>>, vector<4x256xf32>,
    %c17_i32_161 = arith.constant 17 : i32
    %153 = tpu.dynamic_rotate %151 by %c17_i32_161 dim 1 : vector<4x256xf32>, i32 -> vector<4x256xf32>
    %c0_162 = arith.constant 0 : index
    %c0_163 = arith.constant 0 : index
    %c0_164 = arith.constant 0 : index
    %154 = vector.load %arg6[%c0_162, %c0_163, %c0_164] : memref<9x16x256xf32, #tpu.memory_space<vmem>>, vector<1x4x256xf32>
    %155 = vector.shape_cast %154 : vector<1x4x256xf32> to vector<4x256xf32>
    %156 = arith.mulf %153, %155 : vector<4x256xf32>
    %c0_165 = arith.constant 0 : index
    %c0_166 = arith.constant 0 : index
    %157 = vector.load %arg8[%c0_165, %c0_166] : memref<36x256xf32, #tpu.memory_space<vmem>>, vector<4x256xf32>
    tpu.vector_store %arg8[%c0_165, %c0_166], %156 {strides = array<i32>} : memref<36x256xf32, #tpu.memory_space<vmem>>, vector<4x256xf32>,
    %c16_i32_167 = arith.constant 16 : i32
    %158 = tpu.dynamic_rotate %151 by %c16_i32_167 dim 1 : vector<4x256xf32>, i32 -> vector<4x256xf32>
    %c1_168 = arith.constant 1 : index
    %c0_169 = arith.constant 0 : index
    %c0_170 = arith.constant 0 : index
    %159 = vector.load %arg6[%c1_168, %c0_169, %c0_170] : memref<9x16x256xf32, #tpu.memory_space<vmem>>, vector<1x4x256xf32>
    %160 = vector.shape_cast %159 : vector<1x4x256xf32> to vector<4x256xf32>
    %161 = arith.mulf %158, %160 : vector<4x256xf32>
    %c4_171 = arith.constant 4 : index
    %c0_172 = arith.constant 0 : index
    %162 = vector.load %arg8[%c4_171, %c0_172] : memref<36x256xf32, #tpu.memory_space<vmem>>, vector<4x256xf32>
    tpu.vector_store %arg8[%c4_171, %c0_172], %161 {strides = array<i32>} : memref<36x256xf32, #tpu.memory_space<vmem>>, vector<4x256xf32>,
    %c15_i32_173 = arith.constant 15 : i32
    %163 = tpu.dynamic_rotate %151 by %c15_i32_173 dim 1 : vector<4x256xf32>, i32 -> vector<4x256xf32>
    %c2_174 = arith.constant 2 : index
    %c0_175 = arith.constant 0 : index
    %c0_176 = arith.constant 0 : index
    %164 = vector.load %arg6[%c2_174, %c0_175, %c0_176] : memref<9x16x256xf32, #tpu.memory_space<vmem>>, vector<1x4x256xf32>
    %165 = vector.shape_cast %164 : vector<1x4x256xf32> to vector<4x256xf32>
    %166 = arith.mulf %163, %165 : vector<4x256xf32>
    %c8_177 = arith.constant 8 : index
    %c0_178 = arith.constant 0 : index
    %167 = vector.load %arg8[%c8_177, %c0_178] : memref<36x256xf32, #tpu.memory_space<vmem>>, vector<4x256xf32>
    tpu.vector_store %arg8[%c8_177, %c0_178], %166 {strides = array<i32>} : memref<36x256xf32, #tpu.memory_space<vmem>>, vector<4x256xf32>,
    %c1_i32_179 = arith.constant 1 : i32
    %168 = tpu.dynamic_rotate %151 by %c1_i32_179 dim 1 : vector<4x256xf32>, i32 -> vector<4x256xf32>
    %c3_180 = arith.constant 3 : index
    %c0_181 = arith.constant 0 : index
    %c0_182 = arith.constant 0 : index
    %169 = vector.load %arg6[%c3_180, %c0_181, %c0_182] : memref<9x16x256xf32, #tpu.memory_space<vmem>>, vector<1x4x256xf32>
    %170 = vector.shape_cast %169 : vector<1x4x256xf32> to vector<4x256xf32>
    %171 = arith.mulf %168, %170 : vector<4x256xf32>
    %c12_183 = arith.constant 12 : index
    %c0_184 = arith.constant 0 : index
    %172 = vector.load %arg8[%c12_183, %c0_184] : memref<36x256xf32, #tpu.memory_space<vmem>>, vector<4x256xf32>
    tpu.vector_store %arg8[%c12_183, %c0_184], %171 {strides = array<i32>} : memref<36x256xf32, #tpu.memory_space<vmem>>, vector<4x256xf32>,
    %c16_185 = arith.constant 16 : index
    %c0_186 = arith.constant 0 : index
    %173 = vector.load %arg8[%c16_185, %c0_186] : memref<36x256xf32, #tpu.memory_space<vmem>>, vector<4x256xf32>
    tpu.vector_store %arg8[%c16_185, %c0_186], %151 {strides = array<i32>} : memref<36x256xf32, #tpu.memory_space<vmem>>, vector<4x256xf32>,
    %c255_i32_187 = arith.constant 255 : i32
    %174 = tpu.dynamic_rotate %151 by %c255_i32_187 dim 1 : vector<4x256xf32>, i32 -> vector<4x256xf32>
    %c5_188 = arith.constant 5 : index
    %c0_189 = arith.constant 0 : index
    %c0_190 = arith.constant 0 : index
    %175 = vector.load %arg6[%c5_188, %c0_189, %c0_190] : memref<9x16x256xf32, #tpu.memory_space<vmem>>, vector<1x4x256xf32>
    %176 = vector.shape_cast %175 : vector<1x4x256xf32> to vector<4x256xf32>
    %177 = arith.mulf %174, %176 : vector<4x256xf32>
    %c20_191 = arith.constant 20 : index
    %c0_192 = arith.constant 0 : index
    %178 = vector.load %arg8[%c20_191, %c0_192] : memref<36x256xf32, #tpu.memory_space<vmem>>, vector<4x256xf32>
    tpu.vector_store %arg8[%c20_191, %c0_192], %177 {strides = array<i32>} : memref<36x256xf32, #tpu.memory_space<vmem>>, vector<4x256xf32>,
    %c241_i32_193 = arith.constant 241 : i32
    %179 = tpu.dynamic_rotate %151 by %c241_i32_193 dim 1 : vector<4x256xf32>, i32 -> vector<4x256xf32>
    %c6_194 = arith.constant 6 : index
    %c0_195 = arith.constant 0 : index
    %c0_196 = arith.constant 0 : index
    %180 = vector.load %arg6[%c6_194, %c0_195, %c0_196] : memref<9x16x256xf32, #tpu.memory_space<vmem>>, vector<1x4x256xf32>
    %181 = vector.shape_cast %180 : vector<1x4x256xf32> to vector<4x256xf32>
    %182 = arith.mulf %179, %181 : vector<4x256xf32>
    %c24_197 = arith.constant 24 : index
    %c0_198 = arith.constant 0 : index
    %183 = vector.load %arg8[%c24_197, %c0_198] : memref<36x256xf32, #tpu.memory_space<vmem>>, vector<4x256xf32>
    tpu.vector_store %arg8[%c24_197, %c0_198], %182 {strides = array<i32>} : memref<36x256xf32, #tpu.memory_space<vmem>>, vector<4x256xf32>,
    %c240_i32_199 = arith.constant 240 : i32
    %184 = tpu.dynamic_rotate %151 by %c240_i32_199 dim 1 : vector<4x256xf32>, i32 -> vector<4x256xf32>
    %c7_200 = arith.constant 7 : index
    %c0_201 = arith.constant 0 : index
    %c0_202 = arith.constant 0 : index
    %185 = vector.load %arg6[%c7_200, %c0_201, %c0_202] : memref<9x16x256xf32, #tpu.memory_space<vmem>>, vector<1x4x256xf32>
    %186 = vector.shape_cast %185 : vector<1x4x256xf32> to vector<4x256xf32>
    %187 = arith.mulf %184, %186 : vector<4x256xf32>
    %c28_203 = arith.constant 28 : index
    %c0_204 = arith.constant 0 : index
    %188 = vector.load %arg8[%c28_203, %c0_204] : memref<36x256xf32, #tpu.memory_space<vmem>>, vector<4x256xf32>
    tpu.vector_store %arg8[%c28_203, %c0_204], %187 {strides = array<i32>} : memref<36x256xf32, #tpu.memory_space<vmem>>, vector<4x256xf32>,
    %c239_i32_205 = arith.constant 239 : i32
    %189 = tpu.dynamic_rotate %151 by %c239_i32_205 dim 1 : vector<4x256xf32>, i32 -> vector<4x256xf32>
    %c8_206 = arith.constant 8 : index
    %c0_207 = arith.constant 0 : index
    %c0_208 = arith.constant 0 : index
    %190 = vector.load %arg6[%c8_206, %c0_207, %c0_208] : memref<9x16x256xf32, #tpu.memory_space<vmem>>, vector<1x4x256xf32>
    %191 = vector.shape_cast %190 : vector<1x4x256xf32> to vector<4x256xf32>
    %192 = arith.mulf %189, %191 : vector<4x256xf32>
    %c32_209 = arith.constant 32 : index
    %c0_210 = arith.constant 0 : index
    %193 = vector.load %arg8[%c32_209, %c0_210] : memref<36x256xf32, #tpu.memory_space<vmem>>, vector<4x256xf32>
    tpu.vector_store %arg8[%c32_209, %c0_210], %192 {strides = array<i32>} : memref<36x256xf32, #tpu.memory_space<vmem>>, vector<4x256xf32>,
    %c3_211 = arith.constant 3 : index
    %c0_212 = arith.constant 0 : index
    %c0_213 = arith.constant 0 : index
    %194 = vector.load %arg2[%c3_211, %c0_212, %c0_213] : memref<9x4x36xf32, #tpu.memory_space<vmem>>, vector<1x4x36xf32>
    %195 = vector.shape_cast %194 : vector<1x4x36xf32> to vector<4x36xf32>
    %c0_214 = arith.constant 0 : index
    %c0_215 = arith.constant 0 : index
    %196 = vector.load %arg8[%c0_214, %c0_215] : memref<36x256xf32, #tpu.memory_space<vmem>>, vector<36x256xf32>
    %cst_216 = arith.constant dense<0.000000e+00> : vector<4x256xf32>
    %197 = tpu.matmul %195, %196, %cst_216 {dimension_numbers = #tpu.dot_dimension_numbers<[1], [0], [0], [1], [0, 0, 1, 1], [], []>, precision = #tpu.contract_precision<fp32>} : vector<4x36xf32>, vector<36x256xf32>, vector<4x256xf32> -> vector<4x256xf32>
    %c3_217 = arith.constant 3 : index
    %c0_218 = arith.constant 0 : index
    %c0_219 = arith.constant 0 : index
    %198 = vector.load %arg3[%c3_217, %c0_218, %c0_219] : memref<9x4x256xf32, #tpu.memory_space<vmem>>, vector<1x4x256xf32>
    %199 = vector.shape_cast %198 : vector<1x4x256xf32> to vector<4x256xf32>
    %200 = arith.addf %197, %199 : vector<4x256xf32>
    %cst_220 = arith.constant 0.000000e+00 : f32
    %201 = vector.broadcast %cst_220 : f32 to vector<4x256xf32>
    %202 = arith.maximumf %200, %201 : vector<4x256xf32>
    %c17_i32_221 = arith.constant 17 : i32
    %203 = tpu.dynamic_rotate %202 by %c17_i32_221 dim 1 : vector<4x256xf32>, i32 -> vector<4x256xf32>
    %c0_222 = arith.constant 0 : index
    %c0_223 = arith.constant 0 : index
    %c0_224 = arith.constant 0 : index
    %204 = vector.load %arg6[%c0_222, %c0_223, %c0_224] : memref<9x16x256xf32, #tpu.memory_space<vmem>>, vector<1x4x256xf32>
    %205 = vector.shape_cast %204 : vector<1x4x256xf32> to vector<4x256xf32>
    %206 = arith.mulf %203, %205 : vector<4x256xf32>
    %c0_225 = arith.constant 0 : index
    %c0_226 = arith.constant 0 : index
    %207 = vector.load %arg8[%c0_225, %c0_226] : memref<36x256xf32, #tpu.memory_space<vmem>>, vector<4x256xf32>
    tpu.vector_store %arg8[%c0_225, %c0_226], %206 {strides = array<i32>} : memref<36x256xf32, #tpu.memory_space<vmem>>, vector<4x256xf32>,
    %c16_i32_227 = arith.constant 16 : i32
    %208 = tpu.dynamic_rotate %202 by %c16_i32_227 dim 1 : vector<4x256xf32>, i32 -> vector<4x256xf32>
    %c1_228 = arith.constant 1 : index
    %c0_229 = arith.constant 0 : index
    %c0_230 = arith.constant 0 : index
    %209 = vector.load %arg6[%c1_228, %c0_229, %c0_230] : memref<9x16x256xf32, #tpu.memory_space<vmem>>, vector<1x4x256xf32>
    %210 = vector.shape_cast %209 : vector<1x4x256xf32> to vector<4x256xf32>
    %211 = arith.mulf %208, %210 : vector<4x256xf32>
    %c4_231 = arith.constant 4 : index
    %c0_232 = arith.constant 0 : index
    %212 = vector.load %arg8[%c4_231, %c0_232] : memref<36x256xf32, #tpu.memory_space<vmem>>, vector<4x256xf32>
    tpu.vector_store %arg8[%c4_231, %c0_232], %211 {strides = array<i32>} : memref<36x256xf32, #tpu.memory_space<vmem>>, vector<4x256xf32>,
    %c15_i32_233 = arith.constant 15 : i32
    %213 = tpu.dynamic_rotate %202 by %c15_i32_233 dim 1 : vector<4x256xf32>, i32 -> vector<4x256xf32>
    %c2_234 = arith.constant 2 : index
    %c0_235 = arith.constant 0 : index
    %c0_236 = arith.constant 0 : index
    %214 = vector.load %arg6[%c2_234, %c0_235, %c0_236] : memref<9x16x256xf32, #tpu.memory_space<vmem>>, vector<1x4x256xf32>
    %215 = vector.shape_cast %214 : vector<1x4x256xf32> to vector<4x256xf32>
    %216 = arith.mulf %213, %215 : vector<4x256xf32>
    %c8_237 = arith.constant 8 : index
    %c0_238 = arith.constant 0 : index
    %217 = vector.load %arg8[%c8_237, %c0_238] : memref<36x256xf32, #tpu.memory_space<vmem>>, vector<4x256xf32>
    tpu.vector_store %arg8[%c8_237, %c0_238], %216 {strides = array<i32>} : memref<36x256xf32, #tpu.memory_space<vmem>>, vector<4x256xf32>,
    %c1_i32_239 = arith.constant 1 : i32
    %218 = tpu.dynamic_rotate %202 by %c1_i32_239 dim 1 : vector<4x256xf32>, i32 -> vector<4x256xf32>
    %c3_240 = arith.constant 3 : index
    %c0_241 = arith.constant 0 : index
    %c0_242 = arith.constant 0 : index
    %219 = vector.load %arg6[%c3_240, %c0_241, %c0_242] : memref<9x16x256xf32, #tpu.memory_space<vmem>>, vector<1x4x256xf32>
    %220 = vector.shape_cast %219 : vector<1x4x256xf32> to vector<4x256xf32>
    %221 = arith.mulf %218, %220 : vector<4x256xf32>
    %c12_243 = arith.constant 12 : index
    %c0_244 = arith.constant 0 : index
    %222 = vector.load %arg8[%c12_243, %c0_244] : memref<36x256xf32, #tpu.memory_space<vmem>>, vector<4x256xf32>
    tpu.vector_store %arg8[%c12_243, %c0_244], %221 {strides = array<i32>} : memref<36x256xf32, #tpu.memory_space<vmem>>, vector<4x256xf32>,
    %c16_245 = arith.constant 16 : index
    %c0_246 = arith.constant 0 : index
    %223 = vector.load %arg8[%c16_245, %c0_246] : memref<36x256xf32, #tpu.memory_space<vmem>>, vector<4x256xf32>
    tpu.vector_store %arg8[%c16_245, %c0_246], %202 {strides = array<i32>} : memref<36x256xf32, #tpu.memory_space<vmem>>, vector<4x256xf32>,
    %c255_i32_247 = arith.constant 255 : i32
    %224 = tpu.dynamic_rotate %202 by %c255_i32_247 dim 1 : vector<4x256xf32>, i32 -> vector<4x256xf32>
    %c5_248 = arith.constant 5 : index
    %c0_249 = arith.constant 0 : index
    %c0_250 = arith.constant 0 : index
    %225 = vector.load %arg6[%c5_248, %c0_249, %c0_250] : memref<9x16x256xf32, #tpu.memory_space<vmem>>, vector<1x4x256xf32>
    %226 = vector.shape_cast %225 : vector<1x4x256xf32> to vector<4x256xf32>
    %227 = arith.mulf %224, %226 : vector<4x256xf32>
    %c20_251 = arith.constant 20 : index
    %c0_252 = arith.constant 0 : index
    %228 = vector.load %arg8[%c20_251, %c0_252] : memref<36x256xf32, #tpu.memory_space<vmem>>, vector<4x256xf32>
    tpu.vector_store %arg8[%c20_251, %c0_252], %227 {strides = array<i32>} : memref<36x256xf32, #tpu.memory_space<vmem>>, vector<4x256xf32>,
    %c241_i32_253 = arith.constant 241 : i32
    %229 = tpu.dynamic_rotate %202 by %c241_i32_253 dim 1 : vector<4x256xf32>, i32 -> vector<4x256xf32>
    %c6_254 = arith.constant 6 : index
    %c0_255 = arith.constant 0 : index
    %c0_256 = arith.constant 0 : index
    %230 = vector.load %arg6[%c6_254, %c0_255, %c0_256] : memref<9x16x256xf32, #tpu.memory_space<vmem>>, vector<1x4x256xf32>
    %231 = vector.shape_cast %230 : vector<1x4x256xf32> to vector<4x256xf32>
    %232 = arith.mulf %229, %231 : vector<4x256xf32>
    %c24_257 = arith.constant 24 : index
    %c0_258 = arith.constant 0 : index
    %233 = vector.load %arg8[%c24_257, %c0_258] : memref<36x256xf32, #tpu.memory_space<vmem>>, vector<4x256xf32>
    tpu.vector_store %arg8[%c24_257, %c0_258], %232 {strides = array<i32>} : memref<36x256xf32, #tpu.memory_space<vmem>>, vector<4x256xf32>,
    %c240_i32_259 = arith.constant 240 : i32
    %234 = tpu.dynamic_rotate %202 by %c240_i32_259 dim 1 : vector<4x256xf32>, i32 -> vector<4x256xf32>
    %c7_260 = arith.constant 7 : index
    %c0_261 = arith.constant 0 : index
    %c0_262 = arith.constant 0 : index
    %235 = vector.load %arg6[%c7_260, %c0_261, %c0_262] : memref<9x16x256xf32, #tpu.memory_space<vmem>>, vector<1x4x256xf32>
    %236 = vector.shape_cast %235 : vector<1x4x256xf32> to vector<4x256xf32>
    %237 = arith.mulf %234, %236 : vector<4x256xf32>
    %c28_263 = arith.constant 28 : index
    %c0_264 = arith.constant 0 : index
    %238 = vector.load %arg8[%c28_263, %c0_264] : memref<36x256xf32, #tpu.memory_space<vmem>>, vector<4x256xf32>
    tpu.vector_store %arg8[%c28_263, %c0_264], %237 {strides = array<i32>} : memref<36x256xf32, #tpu.memory_space<vmem>>, vector<4x256xf32>,
    %c239_i32_265 = arith.constant 239 : i32
    %239 = tpu.dynamic_rotate %202 by %c239_i32_265 dim 1 : vector<4x256xf32>, i32 -> vector<4x256xf32>
    %c8_266 = arith.constant 8 : index
    %c0_267 = arith.constant 0 : index
    %c0_268 = arith.constant 0 : index
    %240 = vector.load %arg6[%c8_266, %c0_267, %c0_268] : memref<9x16x256xf32, #tpu.memory_space<vmem>>, vector<1x4x256xf32>
    %241 = vector.shape_cast %240 : vector<1x4x256xf32> to vector<4x256xf32>
    %242 = arith.mulf %239, %241 : vector<4x256xf32>
    %c32_269 = arith.constant 32 : index
    %c0_270 = arith.constant 0 : index
    %243 = vector.load %arg8[%c32_269, %c0_270] : memref<36x256xf32, #tpu.memory_space<vmem>>, vector<4x256xf32>
    tpu.vector_store %arg8[%c32_269, %c0_270], %242 {strides = array<i32>} : memref<36x256xf32, #tpu.memory_space<vmem>>, vector<4x256xf32>,
    %c4_271 = arith.constant 4 : index
    %c0_272 = arith.constant 0 : index
    %c0_273 = arith.constant 0 : index
    %244 = vector.load %arg2[%c4_271, %c0_272, %c0_273] : memref<9x4x36xf32, #tpu.memory_space<vmem>>, vector<1x4x36xf32>
    %245 = vector.shape_cast %244 : vector<1x4x36xf32> to vector<4x36xf32>
    %c0_274 = arith.constant 0 : index
    %c0_275 = arith.constant 0 : index
    %246 = vector.load %arg8[%c0_274, %c0_275] : memref<36x256xf32, #tpu.memory_space<vmem>>, vector<36x256xf32>
    %cst_276 = arith.constant dense<0.000000e+00> : vector<4x256xf32>
    %247 = tpu.matmul %245, %246, %cst_276 {dimension_numbers = #tpu.dot_dimension_numbers<[1], [0], [0], [1], [0, 0, 1, 1], [], []>, precision = #tpu.contract_precision<fp32>} : vector<4x36xf32>, vector<36x256xf32>, vector<4x256xf32> -> vector<4x256xf32>
    %c4_277 = arith.constant 4 : index
    %c0_278 = arith.constant 0 : index
    %c0_279 = arith.constant 0 : index
    %248 = vector.load %arg3[%c4_277, %c0_278, %c0_279] : memref<9x4x256xf32, #tpu.memory_space<vmem>>, vector<1x4x256xf32>
    %249 = vector.shape_cast %248 : vector<1x4x256xf32> to vector<4x256xf32>
    %250 = arith.addf %247, %249 : vector<4x256xf32>
    %cst_280 = arith.constant 0.000000e+00 : f32
    %251 = vector.broadcast %cst_280 : f32 to vector<4x256xf32>
    %252 = arith.maximumf %250, %251 : vector<4x256xf32>
    %c4_281 = arith.constant 4 : index
    %c0_282 = arith.constant 0 : index
    %253 = vector.load %arg10[%c4_281, %c0_282] : memref<16x256xf32, #tpu.memory_space<vmem>>, vector<4x256xf32>
    tpu.vector_store %arg10[%c4_281, %c0_282], %252 {strides = array<i32>} : memref<16x256xf32, #tpu.memory_space<vmem>>, vector<4x256xf32>,
    %c17_i32_283 = arith.constant 17 : i32
    %254 = tpu.dynamic_rotate %252 by %c17_i32_283 dim 1 : vector<4x256xf32>, i32 -> vector<4x256xf32>
    %c0_284 = arith.constant 0 : index
    %c0_285 = arith.constant 0 : index
    %c0_286 = arith.constant 0 : index
    %255 = vector.load %arg6[%c0_284, %c0_285, %c0_286] : memref<9x16x256xf32, #tpu.memory_space<vmem>>, vector<1x4x256xf32>
    %256 = vector.shape_cast %255 : vector<1x4x256xf32> to vector<4x256xf32>
    %257 = arith.mulf %254, %256 : vector<4x256xf32>
    %c0_287 = arith.constant 0 : index
    %c0_288 = arith.constant 0 : index
    %258 = vector.load %arg8[%c0_287, %c0_288] : memref<36x256xf32, #tpu.memory_space<vmem>>, vector<4x256xf32>
    tpu.vector_store %arg8[%c0_287, %c0_288], %257 {strides = array<i32>} : memref<36x256xf32, #tpu.memory_space<vmem>>, vector<4x256xf32>,
    %c16_i32_289 = arith.constant 16 : i32
    %259 = tpu.dynamic_rotate %252 by %c16_i32_289 dim 1 : vector<4x256xf32>, i32 -> vector<4x256xf32>
    %c1_290 = arith.constant 1 : index
    %c0_291 = arith.constant 0 : index
    %c0_292 = arith.constant 0 : index
    %260 = vector.load %arg6[%c1_290, %c0_291, %c0_292] : memref<9x16x256xf32, #tpu.memory_space<vmem>>, vector<1x4x256xf32>
    %261 = vector.shape_cast %260 : vector<1x4x256xf32> to vector<4x256xf32>
    %262 = arith.mulf %259, %261 : vector<4x256xf32>
    %c4_293 = arith.constant 4 : index
    %c0_294 = arith.constant 0 : index
    %263 = vector.load %arg8[%c4_293, %c0_294] : memref<36x256xf32, #tpu.memory_space<vmem>>, vector<4x256xf32>
    tpu.vector_store %arg8[%c4_293, %c0_294], %262 {strides = array<i32>} : memref<36x256xf32, #tpu.memory_space<vmem>>, vector<4x256xf32>,
    %c15_i32_295 = arith.constant 15 : i32
    %264 = tpu.dynamic_rotate %252 by %c15_i32_295 dim 1 : vector<4x256xf32>, i32 -> vector<4x256xf32>
    %c2_296 = arith.constant 2 : index
    %c0_297 = arith.constant 0 : index
    %c0_298 = arith.constant 0 : index
    %265 = vector.load %arg6[%c2_296, %c0_297, %c0_298] : memref<9x16x256xf32, #tpu.memory_space<vmem>>, vector<1x4x256xf32>
    %266 = vector.shape_cast %265 : vector<1x4x256xf32> to vector<4x256xf32>
    %267 = arith.mulf %264, %266 : vector<4x256xf32>
    %c8_299 = arith.constant 8 : index
    %c0_300 = arith.constant 0 : index
    %268 = vector.load %arg8[%c8_299, %c0_300] : memref<36x256xf32, #tpu.memory_space<vmem>>, vector<4x256xf32>
    tpu.vector_store %arg8[%c8_299, %c0_300], %267 {strides = array<i32>} : memref<36x256xf32, #tpu.memory_space<vmem>>, vector<4x256xf32>,
    %c1_i32_301 = arith.constant 1 : i32
    %269 = tpu.dynamic_rotate %252 by %c1_i32_301 dim 1 : vector<4x256xf32>, i32 -> vector<4x256xf32>
    %c3_302 = arith.constant 3 : index
    %c0_303 = arith.constant 0 : index
    %c0_304 = arith.constant 0 : index
    %270 = vector.load %arg6[%c3_302, %c0_303, %c0_304] : memref<9x16x256xf32, #tpu.memory_space<vmem>>, vector<1x4x256xf32>
    %271 = vector.shape_cast %270 : vector<1x4x256xf32> to vector<4x256xf32>
    %272 = arith.mulf %269, %271 : vector<4x256xf32>
    %c12_305 = arith.constant 12 : index
    %c0_306 = arith.constant 0 : index
    %273 = vector.load %arg8[%c12_305, %c0_306] : memref<36x256xf32, #tpu.memory_space<vmem>>, vector<4x256xf32>
    tpu.vector_store %arg8[%c12_305, %c0_306], %272 {strides = array<i32>} : memref<36x256xf32, #tpu.memory_space<vmem>>, vector<4x256xf32>,
    %c16_307 = arith.constant 16 : index
    %c0_308 = arith.constant 0 : index
    %274 = vector.load %arg8[%c16_307, %c0_308] : memref<36x256xf32, #tpu.memory_space<vmem>>, vector<4x256xf32>
    tpu.vector_store %arg8[%c16_307, %c0_308], %252 {strides = array<i32>} : memref<36x256xf32, #tpu.memory_space<vmem>>, vector<4x256xf32>,
    %c255_i32_309 = arith.constant 255 : i32
    %275 = tpu.dynamic_rotate %252 by %c255_i32_309 dim 1 : vector<4x256xf32>, i32 -> vector<4x256xf32>
    %c5_310 = arith.constant 5 : index
    %c0_311 = arith.constant 0 : index
    %c0_312 = arith.constant 0 : index
    %276 = vector.load %arg6[%c5_310, %c0_311, %c0_312] : memref<9x16x256xf32, #tpu.memory_space<vmem>>, vector<1x4x256xf32>
    %277 = vector.shape_cast %276 : vector<1x4x256xf32> to vector<4x256xf32>
    %278 = arith.mulf %275, %277 : vector<4x256xf32>
    %c20_313 = arith.constant 20 : index
    %c0_314 = arith.constant 0 : index
    %279 = vector.load %arg8[%c20_313, %c0_314] : memref<36x256xf32, #tpu.memory_space<vmem>>, vector<4x256xf32>
    tpu.vector_store %arg8[%c20_313, %c0_314], %278 {strides = array<i32>} : memref<36x256xf32, #tpu.memory_space<vmem>>, vector<4x256xf32>,
    %c241_i32_315 = arith.constant 241 : i32
    %280 = tpu.dynamic_rotate %252 by %c241_i32_315 dim 1 : vector<4x256xf32>, i32 -> vector<4x256xf32>
    %c6_316 = arith.constant 6 : index
    %c0_317 = arith.constant 0 : index
    %c0_318 = arith.constant 0 : index
    %281 = vector.load %arg6[%c6_316, %c0_317, %c0_318] : memref<9x16x256xf32, #tpu.memory_space<vmem>>, vector<1x4x256xf32>
    %282 = vector.shape_cast %281 : vector<1x4x256xf32> to vector<4x256xf32>
    %283 = arith.mulf %280, %282 : vector<4x256xf32>
    %c24_319 = arith.constant 24 : index
    %c0_320 = arith.constant 0 : index
    %284 = vector.load %arg8[%c24_319, %c0_320] : memref<36x256xf32, #tpu.memory_space<vmem>>, vector<4x256xf32>
    tpu.vector_store %arg8[%c24_319, %c0_320], %283 {strides = array<i32>} : memref<36x256xf32, #tpu.memory_space<vmem>>, vector<4x256xf32>,
    %c240_i32_321 = arith.constant 240 : i32
    %285 = tpu.dynamic_rotate %252 by %c240_i32_321 dim 1 : vector<4x256xf32>, i32 -> vector<4x256xf32>
    %c7_322 = arith.constant 7 : index
    %c0_323 = arith.constant 0 : index
    %c0_324 = arith.constant 0 : index
    %286 = vector.load %arg6[%c7_322, %c0_323, %c0_324] : memref<9x16x256xf32, #tpu.memory_space<vmem>>, vector<1x4x256xf32>
    %287 = vector.shape_cast %286 : vector<1x4x256xf32> to vector<4x256xf32>
    %288 = arith.mulf %285, %287 : vector<4x256xf32>
    %c28_325 = arith.constant 28 : index
    %c0_326 = arith.constant 0 : index
    %289 = vector.load %arg8[%c28_325, %c0_326] : memref<36x256xf32, #tpu.memory_space<vmem>>, vector<4x256xf32>
    tpu.vector_store %arg8[%c28_325, %c0_326], %288 {strides = array<i32>} : memref<36x256xf32, #tpu.memory_space<vmem>>, vector<4x256xf32>,
    %c239_i32_327 = arith.constant 239 : i32
    %290 = tpu.dynamic_rotate %252 by %c239_i32_327 dim 1 : vector<4x256xf32>, i32 -> vector<4x256xf32>
    %c8_328 = arith.constant 8 : index
    %c0_329 = arith.constant 0 : index
    %c0_330 = arith.constant 0 : index
    %291 = vector.load %arg6[%c8_328, %c0_329, %c0_330] : memref<9x16x256xf32, #tpu.memory_space<vmem>>, vector<1x4x256xf32>
    %292 = vector.shape_cast %291 : vector<1x4x256xf32> to vector<4x256xf32>
    %293 = arith.mulf %290, %292 : vector<4x256xf32>
    %c32_331 = arith.constant 32 : index
    %c0_332 = arith.constant 0 : index
    %294 = vector.load %arg8[%c32_331, %c0_332] : memref<36x256xf32, #tpu.memory_space<vmem>>, vector<4x256xf32>
    tpu.vector_store %arg8[%c32_331, %c0_332], %293 {strides = array<i32>} : memref<36x256xf32, #tpu.memory_space<vmem>>, vector<4x256xf32>,
    %c5_333 = arith.constant 5 : index
    %c0_334 = arith.constant 0 : index
    %c0_335 = arith.constant 0 : index
    %295 = vector.load %arg2[%c5_333, %c0_334, %c0_335] : memref<9x4x36xf32, #tpu.memory_space<vmem>>, vector<1x4x36xf32>
    %296 = vector.shape_cast %295 : vector<1x4x36xf32> to vector<4x36xf32>
    %c0_336 = arith.constant 0 : index
    %c0_337 = arith.constant 0 : index
    %297 = vector.load %arg8[%c0_336, %c0_337] : memref<36x256xf32, #tpu.memory_space<vmem>>, vector<36x256xf32>
    %cst_338 = arith.constant dense<0.000000e+00> : vector<4x256xf32>
    %298 = tpu.matmul %296, %297, %cst_338 {dimension_numbers = #tpu.dot_dimension_numbers<[1], [0], [0], [1], [0, 0, 1, 1], [], []>, precision = #tpu.contract_precision<fp32>} : vector<4x36xf32>, vector<36x256xf32>, vector<4x256xf32> -> vector<4x256xf32>
    %c5_339 = arith.constant 5 : index
    %c0_340 = arith.constant 0 : index
    %c0_341 = arith.constant 0 : index
    %299 = vector.load %arg3[%c5_339, %c0_340, %c0_341] : memref<9x4x256xf32, #tpu.memory_space<vmem>>, vector<1x4x256xf32>
    %300 = vector.shape_cast %299 : vector<1x4x256xf32> to vector<4x256xf32>
    %301 = arith.addf %298, %300 : vector<4x256xf32>
    %cst_342 = arith.constant 0.000000e+00 : f32
    %302 = vector.broadcast %cst_342 : f32 to vector<4x256xf32>
    %303 = arith.maximumf %301, %302 : vector<4x256xf32>
    %c17_i32_343 = arith.constant 17 : i32
    %304 = tpu.dynamic_rotate %303 by %c17_i32_343 dim 1 : vector<4x256xf32>, i32 -> vector<4x256xf32>
    %c0_344 = arith.constant 0 : index
    %c0_345 = arith.constant 0 : index
    %c0_346 = arith.constant 0 : index
    %305 = vector.load %arg6[%c0_344, %c0_345, %c0_346] : memref<9x16x256xf32, #tpu.memory_space<vmem>>, vector<1x4x256xf32>
    %306 = vector.shape_cast %305 : vector<1x4x256xf32> to vector<4x256xf32>
    %307 = arith.mulf %304, %306 : vector<4x256xf32>
    %c0_347 = arith.constant 0 : index
    %c0_348 = arith.constant 0 : index
    %308 = vector.load %arg8[%c0_347, %c0_348] : memref<36x256xf32, #tpu.memory_space<vmem>>, vector<4x256xf32>
    tpu.vector_store %arg8[%c0_347, %c0_348], %307 {strides = array<i32>} : memref<36x256xf32, #tpu.memory_space<vmem>>, vector<4x256xf32>,
    %c16_i32_349 = arith.constant 16 : i32
    %309 = tpu.dynamic_rotate %303 by %c16_i32_349 dim 1 : vector<4x256xf32>, i32 -> vector<4x256xf32>
    %c1_350 = arith.constant 1 : index
    %c0_351 = arith.constant 0 : index
    %c0_352 = arith.constant 0 : index
    %310 = vector.load %arg6[%c1_350, %c0_351, %c0_352] : memref<9x16x256xf32, #tpu.memory_space<vmem>>, vector<1x4x256xf32>
    %311 = vector.shape_cast %310 : vector<1x4x256xf32> to vector<4x256xf32>
    %312 = arith.mulf %309, %311 : vector<4x256xf32>
    %c4_353 = arith.constant 4 : index
    %c0_354 = arith.constant 0 : index
    %313 = vector.load %arg8[%c4_353, %c0_354] : memref<36x256xf32, #tpu.memory_space<vmem>>, vector<4x256xf32>
    tpu.vector_store %arg8[%c4_353, %c0_354], %312 {strides = array<i32>} : memref<36x256xf32, #tpu.memory_space<vmem>>, vector<4x256xf32>,
    %c15_i32_355 = arith.constant 15 : i32
    %314 = tpu.dynamic_rotate %303 by %c15_i32_355 dim 1 : vector<4x256xf32>, i32 -> vector<4x256xf32>
    %c2_356 = arith.constant 2 : index
    %c0_357 = arith.constant 0 : index
    %c0_358 = arith.constant 0 : index
    %315 = vector.load %arg6[%c2_356, %c0_357, %c0_358] : memref<9x16x256xf32, #tpu.memory_space<vmem>>, vector<1x4x256xf32>
    %316 = vector.shape_cast %315 : vector<1x4x256xf32> to vector<4x256xf32>
    %317 = arith.mulf %314, %316 : vector<4x256xf32>
    %c8_359 = arith.constant 8 : index
    %c0_360 = arith.constant 0 : index
    %318 = vector.load %arg8[%c8_359, %c0_360] : memref<36x256xf32, #tpu.memory_space<vmem>>, vector<4x256xf32>
    tpu.vector_store %arg8[%c8_359, %c0_360], %317 {strides = array<i32>} : memref<36x256xf32, #tpu.memory_space<vmem>>, vector<4x256xf32>,
    %c1_i32_361 = arith.constant 1 : i32
    %319 = tpu.dynamic_rotate %303 by %c1_i32_361 dim 1 : vector<4x256xf32>, i32 -> vector<4x256xf32>
    %c3_362 = arith.constant 3 : index
    %c0_363 = arith.constant 0 : index
    %c0_364 = arith.constant 0 : index
    %320 = vector.load %arg6[%c3_362, %c0_363, %c0_364] : memref<9x16x256xf32, #tpu.memory_space<vmem>>, vector<1x4x256xf32>
    %321 = vector.shape_cast %320 : vector<1x4x256xf32> to vector<4x256xf32>
    %322 = arith.mulf %319, %321 : vector<4x256xf32>
    %c12_365 = arith.constant 12 : index
    %c0_366 = arith.constant 0 : index
    %323 = vector.load %arg8[%c12_365, %c0_366] : memref<36x256xf32, #tpu.memory_space<vmem>>, vector<4x256xf32>
    tpu.vector_store %arg8[%c12_365, %c0_366], %322 {strides = array<i32>} : memref<36x256xf32, #tpu.memory_space<vmem>>, vector<4x256xf32>,
    %c16_367 = arith.constant 16 : index
    %c0_368 = arith.constant 0 : index
    %324 = vector.load %arg8[%c16_367, %c0_368] : memref<36x256xf32, #tpu.memory_space<vmem>>, vector<4x256xf32>
    tpu.vector_store %arg8[%c16_367, %c0_368], %303 {strides = array<i32>} : memref<36x256xf32, #tpu.memory_space<vmem>>, vector<4x256xf32>,
    %c255_i32_369 = arith.constant 255 : i32
    %325 = tpu.dynamic_rotate %303 by %c255_i32_369 dim 1 : vector<4x256xf32>, i32 -> vector<4x256xf32>
    %c5_370 = arith.constant 5 : index
    %c0_371 = arith.constant 0 : index
    %c0_372 = arith.constant 0 : index
    %326 = vector.load %arg6[%c5_370, %c0_371, %c0_372] : memref<9x16x256xf32, #tpu.memory_space<vmem>>, vector<1x4x256xf32>
    %327 = vector.shape_cast %326 : vector<1x4x256xf32> to vector<4x256xf32>
    %328 = arith.mulf %325, %327 : vector<4x256xf32>
    %c20_373 = arith.constant 20 : index
    %c0_374 = arith.constant 0 : index
    %329 = vector.load %arg8[%c20_373, %c0_374] : memref<36x256xf32, #tpu.memory_space<vmem>>, vector<4x256xf32>
    tpu.vector_store %arg8[%c20_373, %c0_374], %328 {strides = array<i32>} : memref<36x256xf32, #tpu.memory_space<vmem>>, vector<4x256xf32>,
    %c241_i32_375 = arith.constant 241 : i32
    %330 = tpu.dynamic_rotate %303 by %c241_i32_375 dim 1 : vector<4x256xf32>, i32 -> vector<4x256xf32>
    %c6_376 = arith.constant 6 : index
    %c0_377 = arith.constant 0 : index
    %c0_378 = arith.constant 0 : index
    %331 = vector.load %arg6[%c6_376, %c0_377, %c0_378] : memref<9x16x256xf32, #tpu.memory_space<vmem>>, vector<1x4x256xf32>
    %332 = vector.shape_cast %331 : vector<1x4x256xf32> to vector<4x256xf32>
    %333 = arith.mulf %330, %332 : vector<4x256xf32>
    %c24_379 = arith.constant 24 : index
    %c0_380 = arith.constant 0 : index
    %334 = vector.load %arg8[%c24_379, %c0_380] : memref<36x256xf32, #tpu.memory_space<vmem>>, vector<4x256xf32>
    tpu.vector_store %arg8[%c24_379, %c0_380], %333 {strides = array<i32>} : memref<36x256xf32, #tpu.memory_space<vmem>>, vector<4x256xf32>,
    %c240_i32_381 = arith.constant 240 : i32
    %335 = tpu.dynamic_rotate %303 by %c240_i32_381 dim 1 : vector<4x256xf32>, i32 -> vector<4x256xf32>
    %c7_382 = arith.constant 7 : index
    %c0_383 = arith.constant 0 : index
    %c0_384 = arith.constant 0 : index
    %336 = vector.load %arg6[%c7_382, %c0_383, %c0_384] : memref<9x16x256xf32, #tpu.memory_space<vmem>>, vector<1x4x256xf32>
    %337 = vector.shape_cast %336 : vector<1x4x256xf32> to vector<4x256xf32>
    %338 = arith.mulf %335, %337 : vector<4x256xf32>
    %c28_385 = arith.constant 28 : index
    %c0_386 = arith.constant 0 : index
    %339 = vector.load %arg8[%c28_385, %c0_386] : memref<36x256xf32, #tpu.memory_space<vmem>>, vector<4x256xf32>
    tpu.vector_store %arg8[%c28_385, %c0_386], %338 {strides = array<i32>} : memref<36x256xf32, #tpu.memory_space<vmem>>, vector<4x256xf32>,
    %c239_i32_387 = arith.constant 239 : i32
    %340 = tpu.dynamic_rotate %303 by %c239_i32_387 dim 1 : vector<4x256xf32>, i32 -> vector<4x256xf32>
    %c8_388 = arith.constant 8 : index
    %c0_389 = arith.constant 0 : index
    %c0_390 = arith.constant 0 : index
    %341 = vector.load %arg6[%c8_388, %c0_389, %c0_390] : memref<9x16x256xf32, #tpu.memory_space<vmem>>, vector<1x4x256xf32>
    %342 = vector.shape_cast %341 : vector<1x4x256xf32> to vector<4x256xf32>
    %343 = arith.mulf %340, %342 : vector<4x256xf32>
    %c32_391 = arith.constant 32 : index
    %c0_392 = arith.constant 0 : index
    %344 = vector.load %arg8[%c32_391, %c0_392] : memref<36x256xf32, #tpu.memory_space<vmem>>, vector<4x256xf32>
    tpu.vector_store %arg8[%c32_391, %c0_392], %343 {strides = array<i32>} : memref<36x256xf32, #tpu.memory_space<vmem>>, vector<4x256xf32>,
    %c6_393 = arith.constant 6 : index
    %c0_394 = arith.constant 0 : index
    %c0_395 = arith.constant 0 : index
    %345 = vector.load %arg2[%c6_393, %c0_394, %c0_395] : memref<9x4x36xf32, #tpu.memory_space<vmem>>, vector<1x4x36xf32>
    %346 = vector.shape_cast %345 : vector<1x4x36xf32> to vector<4x36xf32>
    %c0_396 = arith.constant 0 : index
    %c0_397 = arith.constant 0 : index
    %347 = vector.load %arg8[%c0_396, %c0_397] : memref<36x256xf32, #tpu.memory_space<vmem>>, vector<36x256xf32>
    %cst_398 = arith.constant dense<0.000000e+00> : vector<4x256xf32>
    %348 = tpu.matmul %346, %347, %cst_398 {dimension_numbers = #tpu.dot_dimension_numbers<[1], [0], [0], [1], [0, 0, 1, 1], [], []>, precision = #tpu.contract_precision<fp32>} : vector<4x36xf32>, vector<36x256xf32>, vector<4x256xf32> -> vector<4x256xf32>
    %c6_399 = arith.constant 6 : index
    %c0_400 = arith.constant 0 : index
    %c0_401 = arith.constant 0 : index
    %349 = vector.load %arg3[%c6_399, %c0_400, %c0_401] : memref<9x4x256xf32, #tpu.memory_space<vmem>>, vector<1x4x256xf32>
    %350 = vector.shape_cast %349 : vector<1x4x256xf32> to vector<4x256xf32>
    %351 = arith.addf %348, %350 : vector<4x256xf32>
    %cst_402 = arith.constant 0.000000e+00 : f32
    %352 = vector.broadcast %cst_402 : f32 to vector<4x256xf32>
    %353 = arith.maximumf %351, %352 : vector<4x256xf32>
    %c8_403 = arith.constant 8 : index
    %c0_404 = arith.constant 0 : index
    %354 = vector.load %arg10[%c8_403, %c0_404] : memref<16x256xf32, #tpu.memory_space<vmem>>, vector<4x256xf32>
    tpu.vector_store %arg10[%c8_403, %c0_404], %353 {strides = array<i32>} : memref<16x256xf32, #tpu.memory_space<vmem>>, vector<4x256xf32>,
    %c17_i32_405 = arith.constant 17 : i32
    %355 = tpu.dynamic_rotate %353 by %c17_i32_405 dim 1 : vector<4x256xf32>, i32 -> vector<4x256xf32>
    %c0_406 = arith.constant 0 : index
    %c0_407 = arith.constant 0 : index
    %c0_408 = arith.constant 0 : index
    %356 = vector.load %arg6[%c0_406, %c0_407, %c0_408] : memref<9x16x256xf32, #tpu.memory_space<vmem>>, vector<1x4x256xf32>
    %357 = vector.shape_cast %356 : vector<1x4x256xf32> to vector<4x256xf32>
    %358 = arith.mulf %355, %357 : vector<4x256xf32>
    %c0_409 = arith.constant 0 : index
    %c0_410 = arith.constant 0 : index
    %359 = vector.load %arg8[%c0_409, %c0_410] : memref<36x256xf32, #tpu.memory_space<vmem>>, vector<4x256xf32>
    tpu.vector_store %arg8[%c0_409, %c0_410], %358 {strides = array<i32>} : memref<36x256xf32, #tpu.memory_space<vmem>>, vector<4x256xf32>,
    %c16_i32_411 = arith.constant 16 : i32
    %360 = tpu.dynamic_rotate %353 by %c16_i32_411 dim 1 : vector<4x256xf32>, i32 -> vector<4x256xf32>
    %c1_412 = arith.constant 1 : index
    %c0_413 = arith.constant 0 : index
    %c0_414 = arith.constant 0 : index
    %361 = vector.load %arg6[%c1_412, %c0_413, %c0_414] : memref<9x16x256xf32, #tpu.memory_space<vmem>>, vector<1x4x256xf32>
    %362 = vector.shape_cast %361 : vector<1x4x256xf32> to vector<4x256xf32>
    %363 = arith.mulf %360, %362 : vector<4x256xf32>
    %c4_415 = arith.constant 4 : index
    %c0_416 = arith.constant 0 : index
    %364 = vector.load %arg8[%c4_415, %c0_416] : memref<36x256xf32, #tpu.memory_space<vmem>>, vector<4x256xf32>
    tpu.vector_store %arg8[%c4_415, %c0_416], %363 {strides = array<i32>} : memref<36x256xf32, #tpu.memory_space<vmem>>, vector<4x256xf32>,
    %c15_i32_417 = arith.constant 15 : i32
    %365 = tpu.dynamic_rotate %353 by %c15_i32_417 dim 1 : vector<4x256xf32>, i32 -> vector<4x256xf32>
    %c2_418 = arith.constant 2 : index
    %c0_419 = arith.constant 0 : index
    %c0_420 = arith.constant 0 : index
    %366 = vector.load %arg6[%c2_418, %c0_419, %c0_420] : memref<9x16x256xf32, #tpu.memory_space<vmem>>, vector<1x4x256xf32>
    %367 = vector.shape_cast %366 : vector<1x4x256xf32> to vector<4x256xf32>
    %368 = arith.mulf %365, %367 : vector<4x256xf32>
    %c8_421 = arith.constant 8 : index
    %c0_422 = arith.constant 0 : index
    %369 = vector.load %arg8[%c8_421, %c0_422] : memref<36x256xf32, #tpu.memory_space<vmem>>, vector<4x256xf32>
    tpu.vector_store %arg8[%c8_421, %c0_422], %368 {strides = array<i32>} : memref<36x256xf32, #tpu.memory_space<vmem>>, vector<4x256xf32>,
    %c1_i32_423 = arith.constant 1 : i32
    %370 = tpu.dynamic_rotate %353 by %c1_i32_423 dim 1 : vector<4x256xf32>, i32 -> vector<4x256xf32>
    %c3_424 = arith.constant 3 : index
    %c0_425 = arith.constant 0 : index
    %c0_426 = arith.constant 0 : index
    %371 = vector.load %arg6[%c3_424, %c0_425, %c0_426] : memref<9x16x256xf32, #tpu.memory_space<vmem>>, vector<1x4x256xf32>
    %372 = vector.shape_cast %371 : vector<1x4x256xf32> to vector<4x256xf32>
    %373 = arith.mulf %370, %372 : vector<4x256xf32>
    %c12_427 = arith.constant 12 : index
    %c0_428 = arith.constant 0 : index
    %374 = vector.load %arg8[%c12_427, %c0_428] : memref<36x256xf32, #tpu.memory_space<vmem>>, vector<4x256xf32>
    tpu.vector_store %arg8[%c12_427, %c0_428], %373 {strides = array<i32>} : memref<36x256xf32, #tpu.memory_space<vmem>>, vector<4x256xf32>,
    %c16_429 = arith.constant 16 : index
    %c0_430 = arith.constant 0 : index
    %375 = vector.load %arg8[%c16_429, %c0_430] : memref<36x256xf32, #tpu.memory_space<vmem>>, vector<4x256xf32>
    tpu.vector_store %arg8[%c16_429, %c0_430], %353 {strides = array<i32>} : memref<36x256xf32, #tpu.memory_space<vmem>>, vector<4x256xf32>,
    %c255_i32_431 = arith.constant 255 : i32
    %376 = tpu.dynamic_rotate %353 by %c255_i32_431 dim 1 : vector<4x256xf32>, i32 -> vector<4x256xf32>
    %c5_432 = arith.constant 5 : index
    %c0_433 = arith.constant 0 : index
    %c0_434 = arith.constant 0 : index
    %377 = vector.load %arg6[%c5_432, %c0_433, %c0_434] : memref<9x16x256xf32, #tpu.memory_space<vmem>>, vector<1x4x256xf32>
    %378 = vector.shape_cast %377 : vector<1x4x256xf32> to vector<4x256xf32>
    %379 = arith.mulf %376, %378 : vector<4x256xf32>
    %c20_435 = arith.constant 20 : index
    %c0_436 = arith.constant 0 : index
    %380 = vector.load %arg8[%c20_435, %c0_436] : memref<36x256xf32, #tpu.memory_space<vmem>>, vector<4x256xf32>
    tpu.vector_store %arg8[%c20_435, %c0_436], %379 {strides = array<i32>} : memref<36x256xf32, #tpu.memory_space<vmem>>, vector<4x256xf32>,
    %c241_i32_437 = arith.constant 241 : i32
    %381 = tpu.dynamic_rotate %353 by %c241_i32_437 dim 1 : vector<4x256xf32>, i32 -> vector<4x256xf32>
    %c6_438 = arith.constant 6 : index
    %c0_439 = arith.constant 0 : index
    %c0_440 = arith.constant 0 : index
    %382 = vector.load %arg6[%c6_438, %c0_439, %c0_440] : memref<9x16x256xf32, #tpu.memory_space<vmem>>, vector<1x4x256xf32>
    %383 = vector.shape_cast %382 : vector<1x4x256xf32> to vector<4x256xf32>
    %384 = arith.mulf %381, %383 : vector<4x256xf32>
    %c24_441 = arith.constant 24 : index
    %c0_442 = arith.constant 0 : index
    %385 = vector.load %arg8[%c24_441, %c0_442] : memref<36x256xf32, #tpu.memory_space<vmem>>, vector<4x256xf32>
    tpu.vector_store %arg8[%c24_441, %c0_442], %384 {strides = array<i32>} : memref<36x256xf32, #tpu.memory_space<vmem>>, vector<4x256xf32>,
    %c240_i32_443 = arith.constant 240 : i32
    %386 = tpu.dynamic_rotate %353 by %c240_i32_443 dim 1 : vector<4x256xf32>, i32 -> vector<4x256xf32>
    %c7_444 = arith.constant 7 : index
    %c0_445 = arith.constant 0 : index
    %c0_446 = arith.constant 0 : index
    %387 = vector.load %arg6[%c7_444, %c0_445, %c0_446] : memref<9x16x256xf32, #tpu.memory_space<vmem>>, vector<1x4x256xf32>
    %388 = vector.shape_cast %387 : vector<1x4x256xf32> to vector<4x256xf32>
    %389 = arith.mulf %386, %388 : vector<4x256xf32>
    %c28_447 = arith.constant 28 : index
    %c0_448 = arith.constant 0 : index
    %390 = vector.load %arg8[%c28_447, %c0_448] : memref<36x256xf32, #tpu.memory_space<vmem>>, vector<4x256xf32>
    tpu.vector_store %arg8[%c28_447, %c0_448], %389 {strides = array<i32>} : memref<36x256xf32, #tpu.memory_space<vmem>>, vector<4x256xf32>,
    %c239_i32_449 = arith.constant 239 : i32
    %391 = tpu.dynamic_rotate %353 by %c239_i32_449 dim 1 : vector<4x256xf32>, i32 -> vector<4x256xf32>
    %c8_450 = arith.constant 8 : index
    %c0_451 = arith.constant 0 : index
    %c0_452 = arith.constant 0 : index
    %392 = vector.load %arg6[%c8_450, %c0_451, %c0_452] : memref<9x16x256xf32, #tpu.memory_space<vmem>>, vector<1x4x256xf32>
    %393 = vector.shape_cast %392 : vector<1x4x256xf32> to vector<4x256xf32>
    %394 = arith.mulf %391, %393 : vector<4x256xf32>
    %c32_453 = arith.constant 32 : index
    %c0_454 = arith.constant 0 : index
    %395 = vector.load %arg8[%c32_453, %c0_454] : memref<36x256xf32, #tpu.memory_space<vmem>>, vector<4x256xf32>
    tpu.vector_store %arg8[%c32_453, %c0_454], %394 {strides = array<i32>} : memref<36x256xf32, #tpu.memory_space<vmem>>, vector<4x256xf32>,
    %c7_455 = arith.constant 7 : index
    %c0_456 = arith.constant 0 : index
    %c0_457 = arith.constant 0 : index
    %396 = vector.load %arg2[%c7_455, %c0_456, %c0_457] : memref<9x4x36xf32, #tpu.memory_space<vmem>>, vector<1x4x36xf32>
    %397 = vector.shape_cast %396 : vector<1x4x36xf32> to vector<4x36xf32>
    %c0_458 = arith.constant 0 : index
    %c0_459 = arith.constant 0 : index
    %398 = vector.load %arg8[%c0_458, %c0_459] : memref<36x256xf32, #tpu.memory_space<vmem>>, vector<36x256xf32>
    %cst_460 = arith.constant dense<0.000000e+00> : vector<4x256xf32>
    %399 = tpu.matmul %397, %398, %cst_460 {dimension_numbers = #tpu.dot_dimension_numbers<[1], [0], [0], [1], [0, 0, 1, 1], [], []>, precision = #tpu.contract_precision<fp32>} : vector<4x36xf32>, vector<36x256xf32>, vector<4x256xf32> -> vector<4x256xf32>
    %c7_461 = arith.constant 7 : index
    %c0_462 = arith.constant 0 : index
    %c0_463 = arith.constant 0 : index
    %400 = vector.load %arg3[%c7_461, %c0_462, %c0_463] : memref<9x4x256xf32, #tpu.memory_space<vmem>>, vector<1x4x256xf32>
    %401 = vector.shape_cast %400 : vector<1x4x256xf32> to vector<4x256xf32>
    %402 = arith.addf %399, %401 : vector<4x256xf32>
    %cst_464 = arith.constant 0.000000e+00 : f32
    %403 = vector.broadcast %cst_464 : f32 to vector<4x256xf32>
    %404 = arith.maximumf %402, %403 : vector<4x256xf32>
    %c17_i32_465 = arith.constant 17 : i32
    %405 = tpu.dynamic_rotate %404 by %c17_i32_465 dim 1 : vector<4x256xf32>, i32 -> vector<4x256xf32>
    %c0_466 = arith.constant 0 : index
    %c0_467 = arith.constant 0 : index
    %c0_468 = arith.constant 0 : index
    %406 = vector.load %arg6[%c0_466, %c0_467, %c0_468] : memref<9x16x256xf32, #tpu.memory_space<vmem>>, vector<1x4x256xf32>
    %407 = vector.shape_cast %406 : vector<1x4x256xf32> to vector<4x256xf32>
    %408 = arith.mulf %405, %407 : vector<4x256xf32>
    %c0_469 = arith.constant 0 : index
    %c0_470 = arith.constant 0 : index
    %409 = vector.load %arg8[%c0_469, %c0_470] : memref<36x256xf32, #tpu.memory_space<vmem>>, vector<4x256xf32>
    tpu.vector_store %arg8[%c0_469, %c0_470], %408 {strides = array<i32>} : memref<36x256xf32, #tpu.memory_space<vmem>>, vector<4x256xf32>,
    %c16_i32_471 = arith.constant 16 : i32
    %410 = tpu.dynamic_rotate %404 by %c16_i32_471 dim 1 : vector<4x256xf32>, i32 -> vector<4x256xf32>
    %c1_472 = arith.constant 1 : index
    %c0_473 = arith.constant 0 : index
    %c0_474 = arith.constant 0 : index
    %411 = vector.load %arg6[%c1_472, %c0_473, %c0_474] : memref<9x16x256xf32, #tpu.memory_space<vmem>>, vector<1x4x256xf32>
    %412 = vector.shape_cast %411 : vector<1x4x256xf32> to vector<4x256xf32>
    %413 = arith.mulf %410, %412 : vector<4x256xf32>
    %c4_475 = arith.constant 4 : index
    %c0_476 = arith.constant 0 : index
    %414 = vector.load %arg8[%c4_475, %c0_476] : memref<36x256xf32, #tpu.memory_space<vmem>>, vector<4x256xf32>
    tpu.vector_store %arg8[%c4_475, %c0_476], %413 {strides = array<i32>} : memref<36x256xf32, #tpu.memory_space<vmem>>, vector<4x256xf32>,
    %c15_i32_477 = arith.constant 15 : i32
    %415 = tpu.dynamic_rotate %404 by %c15_i32_477 dim 1 : vector<4x256xf32>, i32 -> vector<4x256xf32>
    %c2_478 = arith.constant 2 : index
    %c0_479 = arith.constant 0 : index
    %c0_480 = arith.constant 0 : index
    %416 = vector.load %arg6[%c2_478, %c0_479, %c0_480] : memref<9x16x256xf32, #tpu.memory_space<vmem>>, vector<1x4x256xf32>
    %417 = vector.shape_cast %416 : vector<1x4x256xf32> to vector<4x256xf32>
    %418 = arith.mulf %415, %417 : vector<4x256xf32>
    %c8_481 = arith.constant 8 : index
    %c0_482 = arith.constant 0 : index
    %419 = vector.load %arg8[%c8_481, %c0_482] : memref<36x256xf32, #tpu.memory_space<vmem>>, vector<4x256xf32>
    tpu.vector_store %arg8[%c8_481, %c0_482], %418 {strides = array<i32>} : memref<36x256xf32, #tpu.memory_space<vmem>>, vector<4x256xf32>,
    %c1_i32_483 = arith.constant 1 : i32
    %420 = tpu.dynamic_rotate %404 by %c1_i32_483 dim 1 : vector<4x256xf32>, i32 -> vector<4x256xf32>
    %c3_484 = arith.constant 3 : index
    %c0_485 = arith.constant 0 : index
    %c0_486 = arith.constant 0 : index
    %421 = vector.load %arg6[%c3_484, %c0_485, %c0_486] : memref<9x16x256xf32, #tpu.memory_space<vmem>>, vector<1x4x256xf32>
    %422 = vector.shape_cast %421 : vector<1x4x256xf32> to vector<4x256xf32>
    %423 = arith.mulf %420, %422 : vector<4x256xf32>
    %c12_487 = arith.constant 12 : index
    %c0_488 = arith.constant 0 : index
    %424 = vector.load %arg8[%c12_487, %c0_488] : memref<36x256xf32, #tpu.memory_space<vmem>>, vector<4x256xf32>
    tpu.vector_store %arg8[%c12_487, %c0_488], %423 {strides = array<i32>} : memref<36x256xf32, #tpu.memory_space<vmem>>, vector<4x256xf32>,
    %c16_489 = arith.constant 16 : index
    %c0_490 = arith.constant 0 : index
    %425 = vector.load %arg8[%c16_489, %c0_490] : memref<36x256xf32, #tpu.memory_space<vmem>>, vector<4x256xf32>
    tpu.vector_store %arg8[%c16_489, %c0_490], %404 {strides = array<i32>} : memref<36x256xf32, #tpu.memory_space<vmem>>, vector<4x256xf32>,
    %c255_i32_491 = arith.constant 255 : i32
    %426 = tpu.dynamic_rotate %404 by %c255_i32_491 dim 1 : vector<4x256xf32>, i32 -> vector<4x256xf32>
    %c5_492 = arith.constant 5 : index
    %c0_493 = arith.constant 0 : index
    %c0_494 = arith.constant 0 : index
    %427 = vector.load %arg6[%c5_492, %c0_493, %c0_494] : memref<9x16x256xf32, #tpu.memory_space<vmem>>, vector<1x4x256xf32>
    %428 = vector.shape_cast %427 : vector<1x4x256xf32> to vector<4x256xf32>
    %429 = arith.mulf %426, %428 : vector<4x256xf32>
    %c20_495 = arith.constant 20 : index
    %c0_496 = arith.constant 0 : index
    %430 = vector.load %arg8[%c20_495, %c0_496] : memref<36x256xf32, #tpu.memory_space<vmem>>, vector<4x256xf32>
    tpu.vector_store %arg8[%c20_495, %c0_496], %429 {strides = array<i32>} : memref<36x256xf32, #tpu.memory_space<vmem>>, vector<4x256xf32>,
    %c241_i32_497 = arith.constant 241 : i32
    %431 = tpu.dynamic_rotate %404 by %c241_i32_497 dim 1 : vector<4x256xf32>, i32 -> vector<4x256xf32>
    %c6_498 = arith.constant 6 : index
    %c0_499 = arith.constant 0 : index
    %c0_500 = arith.constant 0 : index
    %432 = vector.load %arg6[%c6_498, %c0_499, %c0_500] : memref<9x16x256xf32, #tpu.memory_space<vmem>>, vector<1x4x256xf32>
    %433 = vector.shape_cast %432 : vector<1x4x256xf32> to vector<4x256xf32>
    %434 = arith.mulf %431, %433 : vector<4x256xf32>
    %c24_501 = arith.constant 24 : index
    %c0_502 = arith.constant 0 : index
    %435 = vector.load %arg8[%c24_501, %c0_502] : memref<36x256xf32, #tpu.memory_space<vmem>>, vector<4x256xf32>
    tpu.vector_store %arg8[%c24_501, %c0_502], %434 {strides = array<i32>} : memref<36x256xf32, #tpu.memory_space<vmem>>, vector<4x256xf32>,
    %c240_i32_503 = arith.constant 240 : i32
    %436 = tpu.dynamic_rotate %404 by %c240_i32_503 dim 1 : vector<4x256xf32>, i32 -> vector<4x256xf32>
    %c7_504 = arith.constant 7 : index
    %c0_505 = arith.constant 0 : index
    %c0_506 = arith.constant 0 : index
    %437 = vector.load %arg6[%c7_504, %c0_505, %c0_506] : memref<9x16x256xf32, #tpu.memory_space<vmem>>, vector<1x4x256xf32>
    %438 = vector.shape_cast %437 : vector<1x4x256xf32> to vector<4x256xf32>
    %439 = arith.mulf %436, %438 : vector<4x256xf32>
    %c28_507 = arith.constant 28 : index
    %c0_508 = arith.constant 0 : index
    %440 = vector.load %arg8[%c28_507, %c0_508] : memref<36x256xf32, #tpu.memory_space<vmem>>, vector<4x256xf32>
    tpu.vector_store %arg8[%c28_507, %c0_508], %439 {strides = array<i32>} : memref<36x256xf32, #tpu.memory_space<vmem>>, vector<4x256xf32>,
    %c239_i32_509 = arith.constant 239 : i32
    %441 = tpu.dynamic_rotate %404 by %c239_i32_509 dim 1 : vector<4x256xf32>, i32 -> vector<4x256xf32>
    %c8_510 = arith.constant 8 : index
    %c0_511 = arith.constant 0 : index
    %c0_512 = arith.constant 0 : index
    %442 = vector.load %arg6[%c8_510, %c0_511, %c0_512] : memref<9x16x256xf32, #tpu.memory_space<vmem>>, vector<1x4x256xf32>
    %443 = vector.shape_cast %442 : vector<1x4x256xf32> to vector<4x256xf32>
    %444 = arith.mulf %441, %443 : vector<4x256xf32>
    %c32_513 = arith.constant 32 : index
    %c0_514 = arith.constant 0 : index
    %445 = vector.load %arg8[%c32_513, %c0_514] : memref<36x256xf32, #tpu.memory_space<vmem>>, vector<4x256xf32>
    tpu.vector_store %arg8[%c32_513, %c0_514], %444 {strides = array<i32>} : memref<36x256xf32, #tpu.memory_space<vmem>>, vector<4x256xf32>,
    %c8_515 = arith.constant 8 : index
    %c0_516 = arith.constant 0 : index
    %c0_517 = arith.constant 0 : index
    %446 = vector.load %arg2[%c8_515, %c0_516, %c0_517] : memref<9x4x36xf32, #tpu.memory_space<vmem>>, vector<1x4x36xf32>
    %447 = vector.shape_cast %446 : vector<1x4x36xf32> to vector<4x36xf32>
    %c0_518 = arith.constant 0 : index
    %c0_519 = arith.constant 0 : index
    %448 = vector.load %arg8[%c0_518, %c0_519] : memref<36x256xf32, #tpu.memory_space<vmem>>, vector<36x256xf32>
    %cst_520 = arith.constant dense<0.000000e+00> : vector<4x256xf32>
    %449 = tpu.matmul %447, %448, %cst_520 {dimension_numbers = #tpu.dot_dimension_numbers<[1], [0], [0], [1], [0, 0, 1, 1], [], []>, precision = #tpu.contract_precision<fp32>} : vector<4x36xf32>, vector<36x256xf32>, vector<4x256xf32> -> vector<4x256xf32>
    %c8_521 = arith.constant 8 : index
    %c0_522 = arith.constant 0 : index
    %c0_523 = arith.constant 0 : index
    %450 = vector.load %arg3[%c8_521, %c0_522, %c0_523] : memref<9x4x256xf32, #tpu.memory_space<vmem>>, vector<1x4x256xf32>
    %451 = vector.shape_cast %450 : vector<1x4x256xf32> to vector<4x256xf32>
    %452 = arith.addf %449, %451 : vector<4x256xf32>
    %cst_524 = arith.constant 0.000000e+00 : f32
    %453 = vector.broadcast %cst_524 : f32 to vector<4x256xf32>
    %454 = arith.maximumf %452, %453 : vector<4x256xf32>
    %c12_525 = arith.constant 12 : index
    %c0_526 = arith.constant 0 : index
    %455 = vector.load %arg10[%c12_525, %c0_526] : memref<16x256xf32, #tpu.memory_space<vmem>>, vector<4x256xf32>
    tpu.vector_store %arg10[%c12_525, %c0_526], %454 {strides = array<i32>} : memref<16x256xf32, #tpu.memory_space<vmem>>, vector<4x256xf32>,
    %c0_527 = arith.constant 0 : index
    %c0_528 = arith.constant 0 : index
    %456 = vector.load %arg10[%c0_527, %c0_528] : memref<16x256xf32, #tpu.memory_space<vmem>>, vector<16x256xf32>
    %c17_i32_529 = arith.constant 17 : i32
    %457 = tpu.dynamic_rotate %456 by %c17_i32_529 dim 1 : vector<16x256xf32>, i32 -> vector<16x256xf32>
    %c0_530 = arith.constant 0 : index
    %c0_531 = arith.constant 0 : index
    %c0_532 = arith.constant 0 : index
    %458 = vector.load %arg6[%c0_530, %c0_531, %c0_532] : memref<9x16x256xf32, #tpu.memory_space<vmem>>, vector<1x16x256xf32>
    %459 = vector.shape_cast %458 : vector<1x16x256xf32> to vector<16x256xf32>
    %460 = arith.mulf %457, %459 : vector<16x256xf32>
    %c0_533 = arith.constant 0 : index
    %c0_534 = arith.constant 0 : index
    %461 = vector.load %arg9[%c0_533, %c0_534] : memref<144x256xf32, #tpu.memory_space<vmem>>, vector<16x256xf32>
    tpu.vector_store %arg9[%c0_533, %c0_534], %460 {strides = array<i32>} : memref<144x256xf32, #tpu.memory_space<vmem>>, vector<16x256xf32>,
    %c16_i32_535 = arith.constant 16 : i32
    %462 = tpu.dynamic_rotate %456 by %c16_i32_535 dim 1 : vector<16x256xf32>, i32 -> vector<16x256xf32>
    %c1_536 = arith.constant 1 : index
    %c0_537 = arith.constant 0 : index
    %c0_538 = arith.constant 0 : index
    %463 = vector.load %arg6[%c1_536, %c0_537, %c0_538] : memref<9x16x256xf32, #tpu.memory_space<vmem>>, vector<1x16x256xf32>
    %464 = vector.shape_cast %463 : vector<1x16x256xf32> to vector<16x256xf32>
    %465 = arith.mulf %462, %464 : vector<16x256xf32>
    %c16_539 = arith.constant 16 : index
    %c0_540 = arith.constant 0 : index
    %466 = vector.load %arg9[%c16_539, %c0_540] : memref<144x256xf32, #tpu.memory_space<vmem>>, vector<16x256xf32>
    tpu.vector_store %arg9[%c16_539, %c0_540], %465 {strides = array<i32>} : memref<144x256xf32, #tpu.memory_space<vmem>>, vector<16x256xf32>,
    %c15_i32_541 = arith.constant 15 : i32
    %467 = tpu.dynamic_rotate %456 by %c15_i32_541 dim 1 : vector<16x256xf32>, i32 -> vector<16x256xf32>
    %c2_542 = arith.constant 2 : index
    %c0_543 = arith.constant 0 : index
    %c0_544 = arith.constant 0 : index
    %468 = vector.load %arg6[%c2_542, %c0_543, %c0_544] : memref<9x16x256xf32, #tpu.memory_space<vmem>>, vector<1x16x256xf32>
    %469 = vector.shape_cast %468 : vector<1x16x256xf32> to vector<16x256xf32>
    %470 = arith.mulf %467, %469 : vector<16x256xf32>
    %c32_545 = arith.constant 32 : index
    %c0_546 = arith.constant 0 : index
    %471 = vector.load %arg9[%c32_545, %c0_546] : memref<144x256xf32, #tpu.memory_space<vmem>>, vector<16x256xf32>
    tpu.vector_store %arg9[%c32_545, %c0_546], %470 {strides = array<i32>} : memref<144x256xf32, #tpu.memory_space<vmem>>, vector<16x256xf32>,
    %c1_i32_547 = arith.constant 1 : i32
    %472 = tpu.dynamic_rotate %456 by %c1_i32_547 dim 1 : vector<16x256xf32>, i32 -> vector<16x256xf32>
    %c3_548 = arith.constant 3 : index
    %c0_549 = arith.constant 0 : index
    %c0_550 = arith.constant 0 : index
    %473 = vector.load %arg6[%c3_548, %c0_549, %c0_550] : memref<9x16x256xf32, #tpu.memory_space<vmem>>, vector<1x16x256xf32>
    %474 = vector.shape_cast %473 : vector<1x16x256xf32> to vector<16x256xf32>
    %475 = arith.mulf %472, %474 : vector<16x256xf32>
    %c48 = arith.constant 48 : index
    %c0_551 = arith.constant 0 : index
    %476 = vector.load %arg9[%c48, %c0_551] : memref<144x256xf32, #tpu.memory_space<vmem>>, vector<16x256xf32>
    tpu.vector_store %arg9[%c48, %c0_551], %475 {strides = array<i32>} : memref<144x256xf32, #tpu.memory_space<vmem>>, vector<16x256xf32>,
    %c64 = arith.constant 64 : index
    %c0_552 = arith.constant 0 : index
    %477 = vector.load %arg9[%c64, %c0_552] : memref<144x256xf32, #tpu.memory_space<vmem>>, vector<16x256xf32>
    tpu.vector_store %arg9[%c64, %c0_552], %456 {strides = array<i32>} : memref<144x256xf32, #tpu.memory_space<vmem>>, vector<16x256xf32>,
    %c255_i32_553 = arith.constant 255 : i32
    %478 = tpu.dynamic_rotate %456 by %c255_i32_553 dim 1 : vector<16x256xf32>, i32 -> vector<16x256xf32>
    %c5_554 = arith.constant 5 : index
    %c0_555 = arith.constant 0 : index
    %c0_556 = arith.constant 0 : index
    %479 = vector.load %arg6[%c5_554, %c0_555, %c0_556] : memref<9x16x256xf32, #tpu.memory_space<vmem>>, vector<1x16x256xf32>
    %480 = vector.shape_cast %479 : vector<1x16x256xf32> to vector<16x256xf32>
    %481 = arith.mulf %478, %480 : vector<16x256xf32>
    %c80 = arith.constant 80 : index
    %c0_557 = arith.constant 0 : index
    %482 = vector.load %arg9[%c80, %c0_557] : memref<144x256xf32, #tpu.memory_space<vmem>>, vector<16x256xf32>
    tpu.vector_store %arg9[%c80, %c0_557], %481 {strides = array<i32>} : memref<144x256xf32, #tpu.memory_space<vmem>>, vector<16x256xf32>,
    %c241_i32_558 = arith.constant 241 : i32
    %483 = tpu.dynamic_rotate %456 by %c241_i32_558 dim 1 : vector<16x256xf32>, i32 -> vector<16x256xf32>
    %c6_559 = arith.constant 6 : index
    %c0_560 = arith.constant 0 : index
    %c0_561 = arith.constant 0 : index
    %484 = vector.load %arg6[%c6_559, %c0_560, %c0_561] : memref<9x16x256xf32, #tpu.memory_space<vmem>>, vector<1x16x256xf32>
    %485 = vector.shape_cast %484 : vector<1x16x256xf32> to vector<16x256xf32>
    %486 = arith.mulf %483, %485 : vector<16x256xf32>
    %c96 = arith.constant 96 : index
    %c0_562 = arith.constant 0 : index
    %487 = vector.load %arg9[%c96, %c0_562] : memref<144x256xf32, #tpu.memory_space<vmem>>, vector<16x256xf32>
    tpu.vector_store %arg9[%c96, %c0_562], %486 {strides = array<i32>} : memref<144x256xf32, #tpu.memory_space<vmem>>, vector<16x256xf32>,
    %c240_i32_563 = arith.constant 240 : i32
    %488 = tpu.dynamic_rotate %456 by %c240_i32_563 dim 1 : vector<16x256xf32>, i32 -> vector<16x256xf32>
    %c7_564 = arith.constant 7 : index
    %c0_565 = arith.constant 0 : index
    %c0_566 = arith.constant 0 : index
    %489 = vector.load %arg6[%c7_564, %c0_565, %c0_566] : memref<9x16x256xf32, #tpu.memory_space<vmem>>, vector<1x16x256xf32>
    %490 = vector.shape_cast %489 : vector<1x16x256xf32> to vector<16x256xf32>
    %491 = arith.mulf %488, %490 : vector<16x256xf32>
    %c112 = arith.constant 112 : index
    %c0_567 = arith.constant 0 : index
    %492 = vector.load %arg9[%c112, %c0_567] : memref<144x256xf32, #tpu.memory_space<vmem>>, vector<16x256xf32>
    tpu.vector_store %arg9[%c112, %c0_567], %491 {strides = array<i32>} : memref<144x256xf32, #tpu.memory_space<vmem>>, vector<16x256xf32>,
    %c239_i32_568 = arith.constant 239 : i32
    %493 = tpu.dynamic_rotate %456 by %c239_i32_568 dim 1 : vector<16x256xf32>, i32 -> vector<16x256xf32>
    %c8_569 = arith.constant 8 : index
    %c0_570 = arith.constant 0 : index
    %c0_571 = arith.constant 0 : index
    %494 = vector.load %arg6[%c8_569, %c0_570, %c0_571] : memref<9x16x256xf32, #tpu.memory_space<vmem>>, vector<1x16x256xf32>
    %495 = vector.shape_cast %494 : vector<1x16x256xf32> to vector<16x256xf32>
    %496 = arith.mulf %493, %495 : vector<16x256xf32>
    %c128 = arith.constant 128 : index
    %c0_572 = arith.constant 0 : index
    %497 = vector.load %arg9[%c128, %c0_572] : memref<144x256xf32, #tpu.memory_space<vmem>>, vector<16x256xf32>
    tpu.vector_store %arg9[%c128, %c0_572], %496 {strides = array<i32>} : memref<144x256xf32, #tpu.memory_space<vmem>>, vector<16x256xf32>,
    %c0_573 = arith.constant 0 : index
    %c0_574 = arith.constant 0 : index
    %498 = vector.load %arg4[%c0_573, %c0_574] : memref<1x144xf32, #tpu.memory_space<vmem>>, vector<1x144xf32>
    %c0_575 = arith.constant 0 : index
    %c0_576 = arith.constant 0 : index
    %499 = vector.load %arg9[%c0_575, %c0_576] : memref<144x256xf32, #tpu.memory_space<vmem>>, vector<144x256xf32>
    %cst_577 = arith.constant dense<0.000000e+00> : vector<1x256xf32>
    %500 = tpu.matmul %498, %499, %cst_577 {dimension_numbers = #tpu.dot_dimension_numbers<[1], [0], [0], [1], [0, 0, 1, 1], [], []>, precision = #tpu.contract_precision<fp32>} : vector<1x144xf32>, vector<144x256xf32>, vector<1x256xf32> -> vector<1x256xf32>
    %c0_578 = arith.constant 0 : index
    %c0_579 = arith.constant 0 : index
    %501 = vector.load %arg5[%c0_578, %c0_579] : memref<1x256xf32, #tpu.memory_space<vmem>>, vector<1x256xf32>
    %502 = arith.addf %500, %501 : vector<1x256xf32>
    %cst_580 = arith.constant 0.000000e+00 : f32
    %503 = vector.broadcast %cst_580 : f32 to vector<1x256xf32>
    %504 = arith.maximumf %502, %503 : vector<1x256xf32>
    %c0_581 = arith.constant 0 : index
    %c0_582 = arith.constant 0 : index
    %c0_583 = arith.constant 0 : index
    %505 = vector.load %arg7[%c0_581, %c0_582, %c0_583] : memref<1x1x256xf32, #tpu.memory_space<vmem>>, vector<1x1x256xf32>
    %506 = vector.shape_cast %505 : vector<1x1x256xf32> to vector<1x256xf32>
    %507 = vector.shape_cast %504 : vector<1x256xf32> to vector<1x1x256xf32>
    tpu.vector_store %arg7[%c0_581, %c0_582, %c0_583], %507 {strides = array<i32>} : memref<1x1x256xf32, #tpu.memory_space<vmem>>, vector<1x1x256xf32>,
    return
  }
  func.func @transform_0(%arg0: i32) -> (i32, i32, i32) {
    %c0_i32 = arith.constant 0 : i32
    %c0_i32_0 = arith.constant 0 : i32
    %c0_i32_1 = arith.constant 0 : i32
    return %arg0, %c0_i32, %c0_i32_0 : i32, i32, i32
  }
  func.func @transform_1(%arg0: i32) -> (i32, i32, i32) {
    %c0_i32 = arith.constant 0 : i32
    %c0_i32_0 = arith.constant 0 : i32
    %c0_i32_1 = arith.constant 0 : i32
    %c0_i32_2 = arith.constant 0 : i32
    return %c0_i32, %c0_i32_0, %c0_i32_1 : i32, i32, i32
  }
  func.func @transform_2(%arg0: i32) -> (i32, i32, i32) {
    %c0_i32 = arith.constant 0 : i32
    %c0_i32_0 = arith.constant 0 : i32
    %c0_i32_1 = arith.constant 0 : i32
    %c0_i32_2 = arith.constant 0 : i32
    return %c0_i32, %c0_i32_0, %c0_i32_1 : i32, i32, i32
  }
  func.func @transform_3(%arg0: i32) -> (i32, i32) {
    %c0_i32 = arith.constant 0 : i32
    %c0_i32_0 = arith.constant 0 : i32
    %c0_i32_1 = arith.constant 0 : i32
    return %c0_i32, %c0_i32_0 : i32, i32
  }
  func.func @transform_4(%arg0: i32) -> (i32, i32) {
    %c0_i32 = arith.constant 0 : i32
    %c0_i32_0 = arith.constant 0 : i32
    %c0_i32_1 = arith.constant 0 : i32
    return %c0_i32, %c0_i32_0 : i32, i32
  }
  func.func @transform_5(%arg0: i32) -> (i32, i32, i32) {
    %c0_i32 = arith.constant 0 : i32
    %c0_i32_0 = arith.constant 0 : i32
    %c0_i32_1 = arith.constant 0 : i32
    %c0_i32_2 = arith.constant 0 : i32
    return %c0_i32, %c0_i32_0, %c0_i32_1 : i32, i32, i32
  }
  func.func @transform_6(%arg0: i32) -> (i32, i32, i32) {
    %c0_i32 = arith.constant 0 : i32
    %c0_i32_0 = arith.constant 0 : i32
    %c0_i32_1 = arith.constant 0 : i32
    return %arg0, %c0_i32, %c0_i32_0 : i32, i32, i32
  }
}

</mosaic_0001>

<bundles_post_ra>
// kernel: convolution_block_forward.1
= control target key start
LH: loop header
LB: loop body
LE: loop exit
PB: predicated region body
PF: predicated region fallthrough
CT: control target
= control target key end

     0   :  { %s9052_s21 = smov 0   ;;  %s12006_s0 = inlined_call_operand.vmem [shape: f32[2,4,256], index: 0, kind: input, shape index: {}]   ;;  %s12007_s1 = inlined_call_operand.vmem [shape: f32[9,4,36], index: 1, kind: input, shape index: {}]   ;;  %s12008_s2 = inlined_call_operand.vmem [shape: f32[9,4,256], index: 2, kind: input, shape index: {}]   ;;  %s12009_s3 = inlined_call_operand.vmem [shape: f32[1,144], index: 3, kind: input, shape index: {}]   ;;  %s12010_s4 = inlined_call_operand.vmem [shape: f32[1,256], index: 4, kind: input, shape index: {}]   ;;  %s12011_s5 = inlined_call_operand.vmem [shape: f32[9,16,256], index: 5, kind: input, shape index: {}]   ;;  %s12012_s6 = inlined_call_operand.vmem [shape: f32[2,1,256], index: 6, kind: output, shape index: {}]  }
   0x1 LB: > { %s8022_s22 = sadd.s32 4294967295, %s9005_s21   ;;  %p8026_p0 = scmp.ge.s32.totalorder %s9005_s21, 1  ;;  %s9005_s21 = sphi %s9052_s21, %s16_s21  }
   0x2   : > { %p212_p1 = scmp.lt.s32.totalorder %s9005_s21, 3 }
   0x4   : > { %p213_p2 = pnand %p8026_p0, %p212_p1 }
   0x6   : > { %216 = sbr.rel (%p213_p2) target bundleno = 4394 (0x112a), region = 44 }
   0xd   : > { %p241_p3 = scmp.lt.s32.totalorder %s8022_s22, 1  ;;  %s9007_s27 = smov 1   ;;  %v9015_v2 = vmov 0.0   ;;  %v12013_v3 = vlaneseq  ;;  %v8034_v7 = vld [vmem:[%s12011_s5 + $0x60] sm:$0xf]  ;;  %vm408_vm5 = vcmask 293888  }
   0xe   : > { %s9008_s28 = smov 16   ;;  %s9009_s29 = smov 17   ;;  %493 = vmatprep.mubr.f32.mxu0 %v9015_v2  ;;  %1338 = vmatprep.mubr.f32.mxu1 %v9015_v2  ;;  %v8035_v8 = vld [vmem:[%s12011_s5 + $0x68] sm:$0xf]  ;;  %v263_v15 = vld [vmem:[%s12011_s5] sm:$0xf] }
   0xf   : > { %s12187_s22 = smov (!%p241_p3, %s8022_s22), 1  ;;  %s9010_s30 = smov 15   ;;  %v9085_v4 = vand.u32 127, %v12013_v3  ;;  %v264_v16 = vld [vmem:[%s12011_s5 + $0x8] sm:$0xf]  ;;  %vm412_vm9 = vcmask 1043456  }
  0x10   : > { %s8202_s23 = sshll.u32 %s12187_s22, 3  ;;  %s9011_s7 = smov 127   ;;  %v8030_v17 = vld [vmem:[%s12011_s5 + $0x20] sm:$0xf]  ;;  %v8031_v18 = vld [vmem:[%s12011_s5 + $0x28] sm:$0xf] }
  0x11   : > { %s245_s26 = scalar_lea.vmem %s12006_s0, %s8202_s23  ;;  %s9012_s8 = smov 112   ;;  %vm307_vm0 = vcmp.lt.s32.totalorder %v9085_v4, 1  ;;  %vm260_vm1 = vcmp.lt.s32.totalorder %v9085_v4, 17  ;;  %vm273_vm2 = vcmp.lt.s32.totalorder %v9085_v4, 16  ;;  %vm293_vm3 = vcmp.lt.s32.totalorder %v9085_v4, 15 }
  0x12   : > { %v250_v0 = vld [vmem:[%s245_s26] sm:$0xff]  ;;  %s9013_s9 = smov 113   ;;  %s9014_s10 = smov 111   ;;  %v8033_v32 = vld [vmem:[%s12011_s5 + $0x48] sm:$0xf]  ;;  %vm329_vm4 = vcmp.lt.s32.totalorder %v9085_v4, 127 }
  0x13   : > { %303 = vrot.lane.b32.xlu1 %v250_v0, %s9007_s27  ;;  %323 = vst [vmem:[#allocation2 + $0x20] sm:$0xf] %v250_v0  ;;  %269 = vrot.lane.b32.xlu0 %v250_v0, %s9008_s28  ;;  %v252_v1 = vcombine.high %v250_v0, %v250_v0  ;;  %v8032_v31 = vld [vmem:[%s12011_s5 + $0x40] sm:$0xf]  ;;  %v8037_v42 = vld [vmem:[%s12011_s5 + $0xa8] sm:$0xf] }
  0x14   : > { %v8036_v41 = vld [vmem:[%s12011_s5 + $0xa0] sm:$0xf]  ;;  %vm363_vm6 = vcmp.lt.s32.totalorder %v9085_v4, 112  ;;  %v8041_v51 = vld [vmem:[%s12011_s5 + $0xe8] sm:$0xf]  ;;  %vm349_vm7 = vcmp.lt.s32.totalorder %v9085_v4, 113 }
  0x15   : > { %324 = vst [vmem:[#allocation2 + $0x28] sm:$0xf] %v252_v1  ;;  %v393_v47 = vld [vmem:[%s12007_s1] sm:$0xf]  ;;  %vm383_vm8 = vcmp.lt.s32.totalorder %v9085_v4, 111  ;;  %vm7021_vm10 = vcmask 130048  }
  0x16   : > { %v8040_v50 = vld [vmem:[%s12011_s5 + $0xe0] sm:$0xf]  ;;  %v410_v56 = vsel %vm408_vm5, %v393_v47, 0 }
  0x17   : > { %254 = vrot.lane.b32.xlu0 %v250_v0, %s9009_s29  ;;  %305 = vrot.lane.b32.xlu1 %v252_v1, %s9007_s27  ;;  %v8038_v63 = vld [vmem:[%s12011_s5 + $0xc0] sm:$0xf] }
  0x1b   : > { %256 = vrot.lane.b32.xlu1 %v252_v1, %s9009_s29  ;;  %271 = vrot.lane.b32.xlu0 %v252_v1, %s9008_s28 }
  0x1f   : > { %291 = vrot.lane.b32.xlu1 %v252_v1, %s9010_s30  ;;  %289 = vrot.lane.b32.xlu0 %v250_v0, %s9010_s30 }
  0x23   : > { %327 = vrot.lane.b32.xlu1 %v252_v1, %s9011_s7  ;;  %325 = vrot.lane.b32.xlu0 %v250_v0, %s9011_s7 }
  0x27   : > { %361 = vrot.lane.b32.xlu1 %v252_v1, %s9012_s8  ;;  %359 = vrot.lane.b32.xlu0 %v250_v0, %s9012_s8 }
  0x2b   : > { %347 = vrot.lane.b32.xlu1 %v252_v1, %s9013_s9  ;;  %345 = vrot.lane.b32.xlu0 %v250_v0, %s9013_s9 }
  0x2f   : > { %381 = vrot.lane.b32.xlu1 %v252_v1, %s9014_s10  ;;  %379 = vrot.lane.b32.xlu0 %v250_v0, %s9014_s10 }
  0x85   : > { %v304_v5 = vpop.permute.xlu1 %303  ;;  %v270_v6 = vpop.permute.xlu0 %269 }
  0x89   : > { %v255_v9 = vpop.permute.xlu0 %254  ;;  %v306_v10 = vpop.permute.xlu1 %305 }
  0x8a   : > { %v308_v11 = vsel %vm307_vm0, %v304_v5, %v306_v10  ;;  %v309_v12 = vsel %vm307_vm0, %v306_v10, %v304_v5  ;;  %v8039_v5 = vld [vmem:[%s12011_s5 + $0xc8] sm:$0xf] }
  0x8b   : > { %v313_v13 = vmul.f32 %v8034_v7, %v309_v12  ;;  %v314_v14 = vmul.f32 %v8035_v8, %v308_v11 }
  0x8d   : > { %v317_v19 = vrot.slane %v313_v13, 4  ;;  %v318_v20 = vrot.slane %v314_v14, 4  ;;  %v257_v21 = vpop.permute.xlu1 %256  ;;  %v272_v22 = vpop.permute.xlu0 %271 }
  0x8e   : > { %v261_v23 = vsel %vm260_vm1, %v255_v9, %v257_v21  ;;  %v262_v24 = vsel %vm260_vm1, %v257_v21, %v255_v9  ;;  %v274_v25 = vsel %vm273_vm2, %v270_v6, %v272_v22  ;;  %v275_v26 = vsel %vm273_vm2, %v272_v22, %v270_v6  ;;  %v8042_v21 = vld [vmem:[%s12011_s5 + $0x100] sm:$0xf]  ;;  %v8043_v22 = vld [vmem:[%s12011_s5 + $0x108] sm:$0xf] }
  0x8f   : > { %321 = vst [vmem:[#allocation2 + $0x10] sm:$0xf0] %v317_v19  ;;  %322 = vst [vmem:[#allocation2 + $0x18] sm:$0xf0] %v318_v20  ;;  %v265_v27 = vmul.f32 %v263_v15, %v262_v24  ;;  %v266_v28 = vmul.f32 %v264_v16, %v261_v23  ;;  %v279_v29 = vmul.f32 %v8030_v17, %v275_v26  ;;  %v9164_v6 = vand.u32 4294901760, %v410_v56 }
  0x90   : > { %v280_v30 = vmul.f32 %v8031_v18, %v274_v25 }
  0x91   : > { %267 = vst [vmem:[#allocation2] sm:$0xf] %v265_v27  ;;  %268 = vst [vmem:[#allocation2 + $0x8] sm:$0xf] %v266_v28  ;;  %v283_v33 = vrot.slane %v279_v29, 4  ;;  %v292_v35 = vpop.permute.xlu1 %291  ;;  %v290_v36 = vpop.permute.xlu0 %289  ;;  %v9185_v26 = vsub.f32 %v410_v56, %v9164_v6 }
  0x92   : > { %v284_v34 = vrot.slane %v280_v30, 4  ;;  %v294_v37 = vsel %vm293_vm3, %v290_v36, %v292_v35  ;;  %v295_v38 = vsel %vm293_vm3, %v292_v35, %v290_v36 }
  0x93   : > { %287 = vst [vmem:[#allocation2] sm:$0xf0] %v283_v33  ;;  %v299_v39 = vmul.f32 %v8032_v31, %v295_v38  ;;  %v300_v40 = vmul.f32 %v8033_v32, %v294_v37 }
  0x94   : > { %288 = vst [vmem:[#allocation2 + $0x8] sm:$0xf0] %v284_v34 }
  0x95   : > { %301 = vst [vmem:[#allocation2 + $0x10] sm:$0xf] %v299_v39  ;;  %302 = vst [vmem:[#allocation2 + $0x18] sm:$0xf] %v300_v40  ;;  %v328_v43 = vpop.permute.xlu1 %327  ;;  %v326_v44 = vpop.permute.xlu0 %325 }
  0x96   : > { %v330_v45 = vsel %vm329_vm4, %v326_v44, %v328_v43  ;;  %v331_v46 = vsel %vm329_vm4, %v328_v43, %v326_v44 }
  0x97   : > { %v335_v48 = vmul.f32 %v8036_v41, %v330_v45  ;;  %v336_v49 = vmul.f32 %v8037_v42, %v331_v46  ;;  %v496_v41 = vand.u32 4294901760, %v9185_v26 }
  0x99   : > { %v339_v52 = vrot.slane %v335_v48, 4  ;;  %v340_v53 = vrot.slane %v336_v49, 4  ;;  %v362_v54 = vpop.permute.xlu1 %361  ;;  %v360_v55 = vpop.permute.xlu0 %359 }
  0x9a   : > { %v364_v58 = vsel %vm363_vm6, %v360_v55, %v362_v54  ;;  %v365_v59 = vsel %vm363_vm6, %v362_v54, %v360_v55  ;;  %v394_v60 = vld [vmem:[#allocation2] sm:$0xff] }
  0x9b   : > { %v395_v57 = vld [vmem:[#allocation2 + $0x8] sm:$0xff]  ;;  %343 = vst [vmem:[#allocation2 + $0x20] sm:$0xf0] %v339_v52  ;;  %344 = vst [vmem:[#allocation2 + $0x28] sm:$0xf0] %v340_v53  ;;  %v369_v61 = vmul.f32 %v8040_v50, %v364_v58  ;;  %v370_v62 = vmul.f32 %v8041_v51, %v365_v59  ;;  %v421_v15 = vand.u32 4294901760, %v394_v60  ;;  %v497_v52 = vsub.f32 %v9185_v26, %v496_v41 }
  0x9c   : > { %v396_v0 = vld [vmem:[#allocation2 + $0x10] sm:$0xff]  ;;  %v397_v1 = vld [vmem:[#allocation2 + $0x18] sm:$0xff]  ;;  %v419_v11 = vand.u32 4294901760, %v395_v57 }
  0x9d   : > { %v373_v7 = vrot.slane %v369_v61, 4  ;;  %v374_v8 = vrot.slane %v370_v62, 4  ;;  %v348_v9 = vpop.permute.xlu1 %347  ;;  %v346_v10 = vpop.permute.xlu0 %345  ;;  %v423_v12 = vand.u32 4294901760, %v397_v1  ;;  %v425_v16 = vand.u32 4294901760, %v396_v0 }
  0x9e   : > { %v350_v13 = vsel %vm349_vm7, %v346_v10, %v348_v9  ;;  %v351_v14 = vsel %vm349_vm7, %v348_v9, %v346_v10  ;;  %v9187_v29 = vsub.f32 %v395_v57, %v419_v11  ;;  %v9196_v36 = vsub.f32 %v394_v60, %v421_v15 }
  0x9f   : > { %377 = vst [vmem:[#allocation2 + $0x30] sm:$0xf0] %v373_v7  ;;  %378 = vst [vmem:[#allocation2 + $0x38] sm:$0xf0] %v374_v8  ;;  %v355_v17 = vmul.f32 %v8038_v63, %v350_v13  ;;  %v356_v18 = vmul.f32 %v8039_v5, %v351_v14  ;;  %v9170_v19 = vpack.c.bf16 %v423_v12, %v419_v11 }
  0xa0   : > { %v9173_v20 = vsub.f32 %v397_v1, %v423_v12  ;;  %v9181_v23 = vpack.c.bf16 %v425_v16, %v421_v15  ;;  %v9194_v32 = vsub.f32 %v396_v0, %v425_v16  ;;  %v507_v40 = vand.u32 4294901760, %v9187_v29 }
  0xa1   : > { %357 = vst [vmem:[#allocation2 + $0x30] sm:$0xf] %v355_v17  ;;  %358 = vst [vmem:[#allocation2 + $0x38] sm:$0xf] %v356_v18  ;;  %v382_v24 = vpop.permute.xlu1 %381  ;;  %8204 = vmatprep.subr.bf16.mxu0 %v9170_v19  ;;  %v380_v25 = vpop.permute.xlu0 %379  ;;  %v513_v47 = vand.u32 4294901760, %v9196_v36  ;;  %v498_v12 = vand.u32 4294901760, %v497_v52 }
  0xa2   : > { %v398_v27 = vld [vmem:[#allocation2 + $0x20] sm:$0xff]  ;;  %v399_v28 = vld [vmem:[#allocation2 + $0x28] sm:$0xff]  ;;  %v384_v30 = vsel %vm383_vm8, %v380_v25, %v382_v24  ;;  %v385_v31 = vsel %vm383_vm8, %v382_v24, %v380_v25  ;;  %8206 = vmatpush1.bf16.msra.mxu0 %v9181_v23  ;;  %v519_v38 = vand.u32 4294901760, %v9173_v20  ;;  %v525_v42 = vand.u32 4294901760, %v9194_v32 }
  0xa3   : > { %v389_v33 = vmul.f32 %v8042_v21, %v384_v30  ;;  %v390_v34 = vmul.f32 %v8043_v22, %v385_v31  ;;  %v427_v35 = vand.u32 4294901760, %v399_v28  ;;  %v429_v37 = vand.u32 4294901760, %v398_v27 }
  0xa4   : > { %v520_v46 = vsub.f32 %v9173_v20, %v519_v38  ;;  %v508_v51 = vsub.f32 %v9187_v29, %v507_v40  ;;  %v526_v53 = vsub.f32 %v9194_v32, %v525_v42  ;;  %v514_v61 = vsub.f32 %v9196_v36, %v513_v47 }
  0xa5   : > { %391 = vst [vmem:[#allocation2 + $0x40] sm:$0xf] %v389_v33  ;;  %392 = vst [vmem:[#allocation2 + $0x48] sm:$0xf] %v390_v34  ;;  %v9199_v39 = vsub.f32 %v399_v28, %v427_v35  ;;  %v9204_v45 = vsub.f32 %v398_v27, %v429_v37  ;;  %v8235_v52 = vpack.c.bf16 %v519_v38, %v507_v40  ;;  %v8044_v40 = vld [vmem:[%s12011_s5 + $0x20] sm:$0xf] }
  0xa6   : > { %v521_v60 = vand.u32 4294901760, %v520_v46  ;;  %v527_v10 = vand.u32 4294901760, %v526_v53  ;;  %v509_v11 = vand.u32 4294901760, %v508_v51  ;;  %v515_v16 = vand.u32 4294901760, %v514_v61 }
  0xa7   : > { %v531_v48 = vand.u32 4294901760, %v9199_v39  ;;  %v537_v63 = vand.u32 4294901760, %v9204_v45  ;;  %v8219_v46 = vpack.c.bf16 %v9173_v20, %v9187_v29  ;;  %v8237_v53 = vpack.c.bf16 %v525_v42, %v513_v47 }
  0xa8   : > { %v400_v43 = vld [vmem:[#allocation2 + $0x30] sm:$0xff]  ;;  %v401_v44 = vld [vmem:[#allocation2 + $0x38] sm:$0xff]  ;;  %v8211_v21 = vpack.c.bf16 %v521_v60, %v509_v11  ;;  %v8213_v25 = vpack.c.bf16 %v527_v10, %v515_v16 }
  0xa9   : > { %v431_v49 = vand.u32 4294901760, %v401_v44  ;;  %v433_v50 = vand.u32 4294901760, %v400_v43  ;;  %v532_v62 = vsub.f32 %v9199_v39, %v531_v48  ;;  %v538_v17 = vsub.f32 %v9204_v45, %v537_v63 }
  0xab   : > { %v9220_v54 = vpack.c.bf16 %v431_v49, %v427_v35  ;;  %v9222_v55 = vsub.f32 %v401_v44, %v431_v49  ;;  %v9224_v56 = vpack.c.bf16 %v433_v50, %v429_v37  ;;  %v9226_v57 = vsub.f32 %v400_v43, %v433_v50 }
  0xac   : > { %v403_v58 = vld [vmem:[#allocation2 + $0x48] sm:$0xf]  ;;  %v402_v59 = vld [vmem:[#allocation2 + $0x40] sm:$0xf]  ;;  %v533_v22 = vand.u32 4294901760, %v532_v62  ;;  %v539_v33 = vand.u32 4294901760, %v538_v17  ;;  %v8221_v49 = vpack.c.bf16 %v9194_v32, %v9196_v36 }
  0xad   : > { %8208 = vmatprep.subr.bf16.mxu0 %v9220_v54  ;;  %v417_v0 = vsel %vm412_vm9, %v403_v58, 0  ;;  %v414_v1 = vsel %vm412_vm9, %v402_v59, 0  ;;  %v543_v5 = vand.u32 4294901760, %v9222_v55  ;;  %v549_v7 = vand.u32 4294901760, %v9226_v57  ;;  %v8049_v58 = vld [vmem:[%s12011_s5 + $0x68] sm:$0xf] }
  0xae   : > { %8210 = vmatpush1.bf16.msra.mxu0 %v9224_v56  ;;  %v9241_v8 = vand.u32 4294901760, %v417_v0  ;;  %v9243_v9 = vand.u32 4294901760, %v414_v1  ;;  %v8223_v50 = vpack.c.bf16 %v9222_v55, %v9199_v39  ;;  %v8225_v51 = vpack.c.bf16 %v9226_v57, %v9204_v45  ;;  %v8046_v17 = vld [vmem:[%s12011_s5 + $0x40] sm:$0xf] }
  0xaf   : > { %v544_v13 = vsub.f32 %v9222_v55, %v543_v5  ;;  %v550_v14 = vsub.f32 %v9226_v57, %v549_v7  ;;  %v8239_v55 = vpack.c.bf16 %v543_v5, %v531_v48  ;;  %v8241_v20 = vpack.c.bf16 %v549_v7, %v537_v63  ;;  %v8048_v57 = vld [vmem:[%s12011_s5 + $0x60] sm:$0xf] }
  0xb0   : > { %436 = vmatprep.subr.mxu0 %v9241_v8  ;;  %v560_v15 = vsub.f32 %v414_v1, %v9243_v9  ;;  %v554_v18 = vsub.f32 %v417_v0, %v9241_v8  ;;  %v996_v7 = vld [vmem:[%s12011_s5] sm:$0xf] }
  0xb1   : > { %v545_v24 = vand.u32 4294901760, %v544_v13  ;;  %v551_v27 = vand.u32 4294901760, %v550_v14 }
  0xb2   : > { %438 = vmatpush1.msra.mxu0 %v9243_v9  ;;  %v555_v28 = vand.u32 4294901760, %v554_v18  ;;  %v561_v30 = vand.u32 4294901760, %v560_v15 }
  0xb3   : > { %8212 = vmatprep.subr.bf16.mxu0 %v8211_v21  ;;  %499 = vmatmul.mubr.f32.vlgmr.msra.gmra.mrb[0].mxu0 %v498_v12  ;;  %v8215_v31 = vpack.c.bf16 %v545_v24, %v533_v22  ;;  %v8217_v35 = vpack.c.bf16 %v551_v27, %v539_v33 }
  0xb4   : > { %8214 = vmatpush1.bf16.msra.mxu0 %v8213_v25  ;;  %v556_v34 = vsub.f32 %v554_v18, %v555_v28  ;;  %619 = vmatprep.mubr.f32.mxu0 %v9015_v2  ;;  %v562_v43 = vsub.f32 %v560_v15, %v561_v30 }
  0xb5   : > { %8216 = vmatprep.subr.bf16.mxu0 %v8215_v31  ;;  %v8051_v31 = vld [vmem:[%s12011_s5 + $0xa8] sm:$0xf] }
  0xb6   : > { %v557_v37 = vand.u32 4294901760, %v556_v34  ;;  %v563_v44 = vand.u32 4294901760, %v562_v43 }
  0xb8   : > { %8218 = vmatpush1.bf16.msra.mxu0 %v8217_v35 }
  0xb9   : > { %558 = vmatprep.subr.mxu0 %v557_v37 }
  0xbc   : > { %564 = vmatpush1.msra.mxu0 %v563_v44  ;;  %v8054_v44 = vld [vmem:[%s12011_s5 + $0xe0] sm:$0xf] }
  0xbd   : > { %8220 = vmatprep.subr.bf16.mxu0 %v8219_v46  ;;  %621 = vmatmul.mubr.f32.vlgmr.msra.gmra.mrb[0].mxu0 %v9164_v6 }
  0xbe   : > { %8222 = vmatpush1.bf16.msra.mxu0 %v8221_v49  ;;  %711 = vmatprep.mubr.f32.mxu0 %v9015_v2 }
  0xbf   : > { %8224 = vmatprep.subr.bf16.mxu0 %v8223_v50 }
  0xc2   : > { %8226 = vmatpush1.bf16.msra.mxu0 %v8225_v51  ;;  %v8055_v51 = vld [vmem:[%s12011_s5 + $0xe8] sm:$0xf] }
  0xc3   : > { %653 = vmatprep.subr.mxu0 %v554_v18  ;;  %v8047_v18 = vld [vmem:[%s12011_s5 + $0x48] sm:$0xf] }
  0xc6   : > { %656 = vmatpush1.msra.mxu0 %v560_v15 }
  0xc7   : > { %8228 = vmatprep.subr.bf16.mxu0 %v9170_v19  ;;  %714 = vmatmul.mubr.f32.vlgmr.msra.gmra.mrb[0].mxu0 %v9185_v26 }
  0xc8   : > { %8230 = vmatpush1.bf16.msra.mxu0 %v9181_v23  ;;  %794 = vmatprep.mubr.f32.mxu0 %v9015_v2 }
  0xc9   : > { %8232 = vmatprep.subr.bf16.mxu0 %v9220_v54 }
  0xcc   : > { %8234 = vmatpush1.bf16.msra.mxu0 %v9224_v56 }
  0xcd   : > { %737 = vmatprep.subr.mxu0 %v9241_v8 }
  0xd0   : > { %739 = vmatpush1.msra.mxu0 %v9243_v9 }
  0xd1   : > { %8236 = vmatprep.subr.bf16.mxu0 %v8235_v52  ;;  %798 = vmatmul.mubr.f32.vlgmr.msra.gmra.mrb[0].mxu0 %v496_v41  ;;  %v8045_v41 = vld [vmem:[%s12011_s5 + $0x28] sm:$0xf] }
  0xd2   : > { %8238 = vmatpush1.bf16.msra.mxu0 %v8237_v53  ;;  %898 = vmatprep.mubr.f32.mxu0 %v9015_v2 }
  0xd3   : > { %8240 = vmatprep.subr.bf16.mxu0 %v8239_v55 }
  0xd6   : > { %8242 = vmatpush1.bf16.msra.mxu0 %v8241_v20 }
  0xd7   : > { %839 = vmatprep.subr.mxu0 %v555_v28 }
  0xda   : > { %843 = vmatpush1.msra.mxu0 %v561_v30  ;;  %v8050_v30 = vld [vmem:[%s12011_s5 + $0xa0] sm:$0xf] }
  0xdb   : > { %8244 = vmatprep.subr.bf16.mxu0 %v9170_v19  ;;  %900 = vmatmul.mubr.f32.vlgmr.msra.gmra.mrb[0].mxu0 %v9164_v6  ;;  %v404_v19 = vld [vmem:[%s12008_s2] sm:$0xff] }
  0xdc   : > { %8246 = vmatpush1.bf16.msra.mxu0 %v9181_v23  ;;  %980 = vmatprep.mubr.f32.mxu0 %v9015_v2  ;;  %v406_v26 = vcombine.high %v404_v19, %v404_v19 }
  0xdd   : > { %8248 = vmatprep.subr.bf16.mxu0 %v9220_v54 }
  0xe0   : > { %8250 = vmatpush1.bf16.msra.mxu0 %v9224_v56 }
  0xe1   : > { %923 = vmatprep.subr.mxu0 %v9241_v8  ;;  %v997_v8 = vld [vmem:[%s12011_s5 + $0x8] sm:$0xf] }
  0xe4   : > { %925 = vmatpush1.msra.mxu0 %v9243_v9 }
  0xe5   : > { %982 = vmatmul.mubr.f32.vlgmr.msra.gmra.mrb[0].mxu0 %v9164_v6 }
  0xe6   : > { %1212 = vmatprep.mubr.f32.mxu0 %v9015_v2 }
 0x1b8   : > { %v983_v23 = vpop.f32.mrb[0].mxu0 }
 0x1b9   : > { %v8851_v29 = vadd.f32 %v983_v23, %v404_v19  ;;  %v985_v32 = vpop.f32.mrb[1].mxu0 }
 0x1ba   : > { %v8852_v36 = vadd.f32 %v985_v32, %v406_v26  ;;  %v8058_v26 = vld [vmem:[%s12007_s1 + $0x4] sm:$0xf] }
 0x1bb   : > { %v988_v38 = vmax.f32 %v8851_v29, 0.0 }
 0x1bc   : > { %v989_v39 = vmax.f32 %v8852_v36, 0.0 }
 0x1bd   : > { %1050 = vst [vmem:[#allocation2 + $0x20] sm:$0xf] %v988_v38  ;;  %1002 = vrot.lane.b32.xlu0 %v988_v38, %s9008_s28 }
 0x1be   : > { %1051 = vst [vmem:[#allocation2 + $0x28] sm:$0xf] %v989_v39  ;;  %1004 = vrot.lane.b32.xlu1 %v989_v39, %s9008_s28 }
 0x1c1   : > { %1032 = vrot.lane.b32.xlu0 %v988_v38, %s9007_s27 }
 0x1c2   : > { %1034 = vrot.lane.b32.xlu1 %v989_v39, %s9007_s27 }
 0x1c5   : > { %990 = vrot.lane.b32.xlu0 %v988_v38, %s9009_s29 }
 0x1c6   : > { %992 = vrot.lane.b32.xlu1 %v989_v39, %s9009_s29 }
 0x1c9   : > { %1020 = vrot.lane.b32.xlu0 %v988_v38, %s9010_s30 }
 0x1ca   : > { %1022 = vrot.lane.b32.xlu1 %v989_v39, %s9010_s30 }
 0x1cd   : > { %1052 = vrot.lane.b32.xlu0 %v988_v38, %s9011_s7 }
 0x1ce   : > { %1054 = vrot.lane.b32.xlu1 %v989_v39, %s9011_s7 }
 0x1d1   : > { %1082 = vrot.lane.b32.xlu0 %v988_v38, %s9012_s8 }
 0x1d2   : > { %1084 = vrot.lane.b32.xlu1 %v989_v39, %s9012_s8 }
 0x1d5   : > { %1070 = vrot.lane.b32.xlu0 %v988_v38, %s9013_s9 }
 0x1d6   : > { %1072 = vrot.lane.b32.xlu1 %v989_v39, %s9013_s9 }
 0x1d9   : > { %1100 = vrot.lane.b32.xlu0 %v988_v38, %s9014_s10  ;;  %v8052_v38 = vld [vmem:[%s12011_s5 + $0xc0] sm:$0xf] }
 0x1da   : > { %1102 = vrot.lane.b32.xlu1 %v989_v39, %s9014_s10 }
 0x22f   : > { %v1003_v6 = vpop.permute.xlu0 %1002 }
 0x230   : > { %v1005_v42 = vpop.permute.xlu1 %1004 }
 0x231   : > { %v1006_v45 = vsel %vm273_vm2, %v1003_v6, %v1005_v42  ;;  %v1007_v47 = vsel %vm273_vm2, %v1005_v42, %v1003_v6 }
 0x232   : > { %v1010_v48 = vmul.f32 %v8044_v40, %v1007_v47  ;;  %v1011_v54 = vmul.f32 %v8045_v41, %v1006_v45  ;;  %v8053_v45 = vld [vmem:[%s12011_s5 + $0xc8] sm:$0xf]  ;;  %v1130_v47 = vsel %vm408_vm5, %v8058_v26, 0 }
 0x233   : > { %v1033_v56 = vpop.permute.xlu0 %1032 }
 0x234   : > { %v1014_v59 = vrot.slane %v1010_v48, 4  ;;  %v1015_v60 = vrot.slane %v1011_v54, 4  ;;  %v1035_v61 = vpop.permute.xlu1 %1034 }
 0x235   : > { %v1036_v62 = vsel %vm307_vm0, %v1033_v56, %v1035_v61  ;;  %v1037_v63 = vsel %vm307_vm0, %v1035_v61, %v1033_v56 }
 0x236   : > { %1018 = vst [vmem:[#allocation2] sm:$0xf0] %v1014_v59  ;;  %1019 = vst [vmem:[#allocation2 + $0x8] sm:$0xf0] %v1015_v60  ;;  %v1040_v0 = vmul.f32 %v8048_v57, %v1037_v63  ;;  %v1041_v1 = vmul.f32 %v8049_v58, %v1036_v62 }
 0x237   : > { %v991_v5 = vpop.permute.xlu0 %990 }
 0x238   : > { %v1044_v9 = vrot.slane %v1040_v0, 4  ;;  %v1045_v10 = vrot.slane %v1041_v1, 4  ;;  %v993_v11 = vpop.permute.xlu1 %992 }
 0x239   : > { %v994_v12 = vsel %vm260_vm1, %v991_v5, %v993_v11  ;;  %v995_v13 = vsel %vm260_vm1, %v993_v11, %v991_v5 }
 0x23a   : > { %1048 = vst [vmem:[#allocation2 + $0x10] sm:$0xf0] %v1044_v9  ;;  %1049 = vst [vmem:[#allocation2 + $0x18] sm:$0xf0] %v1045_v10  ;;  %v998_v14 = vmul.f32 %v996_v7, %v995_v13  ;;  %v999_v15 = vmul.f32 %v997_v8, %v994_v12  ;;  %v8056_v8 = vld [vmem:[%s12011_s5 + $0x100] sm:$0xf] }
 0x23b   : > { %v1021_v16 = vpop.permute.xlu0 %1020  ;;  %v8057_v9 = vld [vmem:[%s12011_s5 + $0x108] sm:$0xf]  ;;  %v9416_v13 = vand.u32 4294901760, %v1130_v47 }
 0x23c   : > { %1000 = vst [vmem:[#allocation2] sm:$0xf] %v998_v14  ;;  %1001 = vst [vmem:[#allocation2 + $0x8] sm:$0xf] %v999_v15  ;;  %v1023_v21 = vpop.permute.xlu1 %1022 }
 0x23d   : > { %v1024_v22 = vsel %vm293_vm3, %v1021_v16, %v1023_v21  ;;  %v1025_v24 = vsel %vm293_vm3, %v1023_v21, %v1021_v16 }
 0x23e   : > { %v1028_v25 = vmul.f32 %v8046_v17, %v1025_v24  ;;  %v1029_v27 = vmul.f32 %v8047_v18, %v1024_v22 }
 0x23f   : > { %v1053_v28 = vpop.permute.xlu0 %1052 }
 0x240   : > { %1030 = vst [vmem:[#allocation2 + $0x10] sm:$0xf] %v1028_v25  ;;  %1031 = vst [vmem:[#allocation2 + $0x18] sm:$0xf] %v1029_v27  ;;  %v1055_v33 = vpop.permute.xlu1 %1054 }
 0x241   : > { %v1056_v34 = vsel %vm329_vm4, %v1053_v28, %v1055_v33  ;;  %v1057_v35 = vsel %vm329_vm4, %v1055_v33, %v1053_v28 }
 0x242   : > { %v1060_v37 = vmul.f32 %v8050_v30, %v1056_v34  ;;  %v1061_v43 = vmul.f32 %v8051_v31, %v1057_v35  ;;  %v9438_v34 = vsub.f32 %v1130_v47, %v9416_v13 }
 0x243   : > { %v1114_v46 = vld [vmem:[#allocation2] sm:$0xff]  ;;  %v1115_v49 = vld [vmem:[#allocation2 + $0x8] sm:$0xff]  ;;  %v1083_v50 = vpop.permute.xlu0 %1082 }
 0x244   : > { %v1064_v52 = vrot.slane %v1060_v37, 4  ;;  %v1065_v53 = vrot.slane %v1061_v43, 4  ;;  %v1085_v55 = vpop.permute.xlu1 %1084  ;;  %v1138_v20 = vand.u32 4294901760, %v1115_v49  ;;  %v1140_v19 = vand.u32 4294901760, %v1114_v46 }
 0x245   : > { %v1086_v23 = vsel %vm363_vm6, %v1083_v50, %v1085_v55  ;;  %v1087_v29 = vsel %vm363_vm6, %v1085_v55, %v1083_v50 }
 0x246   : > { %1068 = vst [vmem:[#allocation2 + $0x20] sm:$0xf0] %v1064_v52  ;;  %1069 = vst [vmem:[#allocation2 + $0x28] sm:$0xf0] %v1065_v53  ;;  %v1090_v32 = vmul.f32 %v8054_v44, %v1086_v23  ;;  %v1091_v36 = vmul.f32 %v8055_v51, %v1087_v29  ;;  %v9387_v39 = vsub.f32 %v1115_v49, %v1138_v20 }
 0x247   : > { %v9389_v6 = vsub.f32 %v1114_v46, %v1140_v19  ;;  %v1116_v40 = vld [vmem:[#allocation2 + $0x10] sm:$0xff]  ;;  %v1117_v41 = vld [vmem:[#allocation2 + $0x18] sm:$0xff]  ;;  %v1071_v42 = vpop.permute.xlu0 %1070 }
 0x248   : > { %v1094_v48 = vrot.slane %v1090_v32, 4  ;;  %v1095_v54 = vrot.slane %v1091_v36, 4  ;;  %v1073_v56 = vpop.permute.xlu1 %1072  ;;  %v1142_v57 = vand.u32 4294901760, %v1117_v41  ;;  %v1144_v58 = vand.u32 4294901760, %v1116_v40 }
 0x249   : > { %v1074_v59 = vsel %vm349_vm7, %v1071_v42, %v1073_v56  ;;  %v1075_v60 = vsel %vm349_vm7, %v1073_v56, %v1071_v42  ;;  %v1226_v61 = vand.u32 4294901760, %v9387_v39  ;;  %v1232_v62 = vand.u32 4294901760, %v9389_v6 }
 0x24a   : > { %1098 = vst [vmem:[#allocation2 + $0x30] sm:$0xf0] %v1094_v48  ;;  %1099 = vst [vmem:[#allocation2 + $0x38] sm:$0xf0] %v1095_v54  ;;  %v1078_v63 = vmul.f32 %v8052_v38, %v1074_v59  ;;  %v1079_v0 = vmul.f32 %v8053_v45, %v1075_v60  ;;  %v9401_v1 = vpack.c.bf16 %v1142_v57, %v1138_v20  ;;  %v1215_v20 = vand.u32 4294901760, %v9438_v34 }
 0x24b   : > { %v9403_v5 = vpack.c.bf16 %v1144_v58, %v1140_v19  ;;  %v1101_v7 = vpop.permute.xlu0 %1100  ;;  %v9411_v10 = vsub.f32 %v1117_v41, %v1142_v57  ;;  %v9413_v11 = vsub.f32 %v1116_v40, %v1144_v58  ;;  %v1227_v18 = vsub.f32 %v9387_v39, %v1226_v61 }
 0x24c   : > { %1080 = vst [vmem:[#allocation2 + $0x30] sm:$0xf] %v1078_v63  ;;  %1081 = vst [vmem:[#allocation2 + $0x38] sm:$0xf] %v1079_v0  ;;  %v1103_v12 = vpop.permute.xlu1 %1102  ;;  %8252 = vmatprep.subr.bf16.mxu0 %v9401_v1  ;;  %v1233_v25 = vsub.f32 %v9389_v6, %v1232_v62  ;;  %v1216_v29 = vsub.f32 %v9438_v34, %v1215_v20 }
 0x24d   : > { %v1118_v14 = vld [vmem:[#allocation2 + $0x20] sm:$0xff]  ;;  %v1119_v15 = vld [vmem:[#allocation2 + $0x28] sm:$0xff]  ;;  %v1104_v16 = vsel %vm383_vm8, %v1101_v7, %v1103_v12  ;;  %v1105_v17 = vsel %vm383_vm8, %v1103_v12, %v1101_v7  ;;  %8254 = vmatpush1.bf16.msra.mxu0 %v9403_v5  ;;  %v1238_v21 = vand.u32 4294901760, %v9411_v10  ;;  %v1244_v27 = vand.u32 4294901760, %v9413_v11 }
 0x24e   : > { %v1108_v22 = vmul.f32 %v8056_v8, %v1104_v16  ;;  %v1109_v24 = vmul.f32 %v8057_v9, %v1105_v17  ;;  %v1146_v30 = vand.u32 4294901760, %v1119_v15  ;;  %v1148_v31 = vand.u32 4294901760, %v1118_v14 }
 0x24f   : > { %v1239_v28 = vsub.f32 %v9411_v10, %v1238_v21  ;;  %v1245_v33 = vsub.f32 %v9413_v11, %v1244_v27  ;;  %v1228_v35 = vand.u32 4294901760, %v1227_v18  ;;  %v1234_v46 = vand.u32 4294901760, %v1233_v25 }
 0x250   : > { %1110 = vst [vmem:[#allocation2 + $0x40] sm:$0xf] %v1108_v22  ;;  %1111 = vst [vmem:[#allocation2 + $0x48] sm:$0xf] %v1109_v24  ;;  %v9440_v43 = vsub.f32 %v1119_v15, %v1146_v30  ;;  %v9442_v44 = vsub.f32 %v1118_v14, %v1148_v31  ;;  %v1217_v0 = vand.u32 4294901760, %v1216_v29 }
 0x251   : > { %v1240_v37 = vand.u32 4294901760, %v1239_v28  ;;  %v1246_v49 = vand.u32 4294901760, %v1245_v33  ;;  %v8269_v33 = vpack.c.bf16 %v9413_v11, %v9389_v6  ;;  %v8064_v29 = vld [vmem:[%s12011_s5 + $0x60] sm:$0xf] }
 0x252   : > { %v1250_v53 = vand.u32 4294901760, %v9440_v43  ;;  %v1256_v55 = vand.u32 4294901760, %v9442_v44 }
 0x253   : > { %v1120_v50 = vld [vmem:[#allocation2 + $0x30] sm:$0xff]  ;;  %v1121_v51 = vld [vmem:[#allocation2 + $0x38] sm:$0xff]  ;;  %v8259_v52 = vpack.c.bf16 %v1240_v37, %v1228_v35  ;;  %v8261_v19 = vpack.c.bf16 %v1246_v49, %v1234_v46  ;;  %v8283_v46 = vpack.c.bf16 %v1238_v21, %v1226_v61  ;;  %v8285_v49 = vpack.c.bf16 %v1244_v27, %v1232_v62  ;;  %v8059_v62 = vld [vmem:[%s12008_s2 + $0x8] sm:$0xff] }
 0x254   : > { %v1150_v26 = vand.u32 4294901760, %v1121_v51  ;;  %v1152_v23 = vand.u32 4294901760, %v1120_v50  ;;  %v1251_v45 = vsub.f32 %v9440_v43, %v1250_v53  ;;  %v1257_v47 = vsub.f32 %v9442_v44, %v1256_v55 }
 0x255   : > { %8260 = vmatprep.subr.bf16.mxu1 %v8259_v52  ;;  %v8061_v52 = vld [vmem:[%s12011_s5 + $0x28] sm:$0xf] }
 0x256   : > { %8262 = vmatpush1.bf16.msra.mxu1 %v8261_v19  ;;  %v9450_v32 = vpack.c.bf16 %v1150_v26, %v1146_v30  ;;  %v9452_v36 = vsub.f32 %v1121_v51, %v1150_v26  ;;  %v9454_v38 = vpack.c.bf16 %v1152_v23, %v1148_v31  ;;  %v9456_v40 = vsub.f32 %v1120_v50, %v1152_v23  ;;  %v8060_v51 = vld [vmem:[%s12011_s5 + $0x20] sm:$0xf] }
 0x257   : > { %v1123_v41 = vld [vmem:[#allocation2 + $0x48] sm:$0xf]  ;;  %v1122_v42 = vld [vmem:[#allocation2 + $0x40] sm:$0xf]  ;;  %v1252_v9 = vand.u32 4294901760, %v1251_v45  ;;  %v1258_v14 = vand.u32 4294901760, %v1257_v47  ;;  %v8267_v31 = vpack.c.bf16 %v9411_v10, %v9387_v39 }
 0x258   : > { %8256 = vmatprep.subr.bf16.mxu0 %v9450_v32  ;;  %v1136_v48 = vsel %vm412_vm9, %v1123_v41, 0  ;;  %v1133_v54 = vsel %vm412_vm9, %v1122_v42, 0  ;;  %v1262_v56 = vand.u32 4294901760, %v9452_v36  ;;  %v1268_v57 = vand.u32 4294901760, %v9456_v40 }
 0x259   : > { %8258 = vmatpush1.bf16.msra.mxu0 %v9454_v38  ;;  %v9470_v58 = vand.u32 4294901760, %v1136_v48  ;;  %v9472_v59 = vand.u32 4294901760, %v1133_v54  ;;  %v8271_v35 = vpack.c.bf16 %v9452_v36, %v9440_v43  ;;  %v8273_v37 = vpack.c.bf16 %v9456_v40, %v9442_v44 }
 0x25a   : > { %v1263_v60 = vsub.f32 %v9452_v36, %v1262_v56  ;;  %v1269_v63 = vsub.f32 %v9456_v40, %v1268_v57  ;;  %v8287_v50 = vpack.c.bf16 %v1262_v56, %v1250_v53  ;;  %v8289_v39 = vpack.c.bf16 %v1268_v57, %v1256_v55  ;;  %v1716_v56 = vld [vmem:[%s12011_s5 + $0x8] sm:$0xf] }
 0x25b   : > { %1155 = vmatprep.subr.mxu0 %v9470_v58  ;;  %v1273_v7 = vsub.f32 %v1136_v48, %v9470_v58  ;;  %v1279_v8 = vsub.f32 %v1133_v54, %v9472_v59  ;;  %v1715_v54 = vld [vmem:[%s12011_s5] sm:$0xf] }
 0x25c   : > { %v1264_v12 = vand.u32 4294901760, %v1263_v60  ;;  %v1270_v15 = vand.u32 4294901760, %v1269_v63 }
 0x25d   : > { %1157 = vmatpush1.msra.mxu0 %v9472_v59  ;;  %v1274_v16 = vand.u32 4294901760, %v1273_v7  ;;  %v1280_v17 = vand.u32 4294901760, %v1279_v8 }
 0x25e   : > { %v8263_v18 = vpack.c.bf16 %v1264_v12, %v1252_v9  ;;  %v8265_v22 = vpack.c.bf16 %v1270_v15, %v1258_v14  ;;  %1218 = vmatmul.mubr.f32.vlgmr.msra.gmra.mrb[2].mxu0 %v1217_v0  ;;  %v8062_v9 = vld [vmem:[%s12011_s5 + $0x40] sm:$0xf]  ;;  %v8063_v12 = vld [vmem:[%s12011_s5 + $0x48] sm:$0xf] }
 0x25f   : > { %v1275_v24 = vsub.f32 %v1273_v7, %v1274_v16  ;;  %v1281_v25 = vsub.f32 %v1279_v8, %v1280_v17  ;;  %1931 = vmatprep.mubr.f32.mxu0 %v9015_v2 }
 0x260   : > { %8264 = vmatprep.subr.bf16.mxu1 %v8263_v18 }
 0x261   : > { %8266 = vmatpush1.bf16.msra.mxu1 %v8265_v22  ;;  %v1276_v28 = vand.u32 4294901760, %v1275_v24  ;;  %v1282_v30 = vand.u32 4294901760, %v1281_v25  ;;  %v8066_v24 = vld [vmem:[%s12011_s5 + $0xa0] sm:$0xf]  ;;  %v8067_v25 = vld [vmem:[%s12011_s5 + $0xa8] sm:$0xf] }
 0x263   : > { %1277 = vmatprep.subr.mxu1 %v1276_v28 }
 0x265   : > { %1283 = vmatpush1.msra.mxu1 %v1282_v30 }
 0x266   : > { %8268 = vmatprep.subr.bf16.mxu1 %v8267_v31  ;;  %1340 = vmatmul.mubr.f32.vlgmr.msra.gmra.mrb[0].mxu1 %v9416_v13 }
 0x267   : > { %8270 = vmatpush1.bf16.msra.mxu1 %v8269_v33  ;;  %1430 = vmatprep.mubr.f32.mxu1 %v9015_v2  ;;  %v8074_v33 = vld [vmem:[%s12007_s1 + $0x8] sm:$0xf] }
 0x268   : > { %8272 = vmatprep.subr.bf16.mxu1 %v8271_v35 }
 0x26b   : > { %8274 = vmatpush1.bf16.msra.mxu1 %v8273_v37 }
 0x26c   : > { %1372 = vmatprep.subr.mxu1 %v1273_v7 }
 0x26f   : > { %1375 = vmatpush1.msra.mxu1 %v1279_v8 }
 0x270   : > { %8276 = vmatprep.subr.bf16.mxu1 %v9401_v1  ;;  %1433 = vmatmul.mubr.f32.vlgmr.msra.gmra.mrb[0].mxu1 %v9438_v34 }
 0x271   : > { %8278 = vmatpush1.bf16.msra.mxu1 %v9403_v5  ;;  %1513 = vmatprep.mubr.f32.mxu1 %v9015_v2 }
 0x272   : > { %8280 = vmatprep.subr.bf16.mxu1 %v9450_v32 }
 0x275   : > { %8282 = vmatpush1.bf16.msra.mxu1 %v9454_v38 }
 0x276   : > { %1456 = vmatprep.subr.mxu1 %v9470_v58 }
 0x279   : > { %1458 = vmatpush1.msra.mxu1 %v9472_v59 }
 0x27a   : > { %8284 = vmatprep.subr.bf16.mxu1 %v8283_v46  ;;  %1517 = vmatmul.mubr.f32.vlgmr.msra.gmra.mrb[0].mxu1 %v1215_v20 }
 0x27b   : > { %8286 = vmatpush1.bf16.msra.mxu1 %v8285_v49  ;;  %1617 = vmatprep.mubr.f32.mxu1 %v9015_v2  ;;  %v8070_v49 = vld [vmem:[%s12011_s5 + $0xe0] sm:$0xf] }
 0x27c   : > { %8288 = vmatprep.subr.bf16.mxu1 %v8287_v50  ;;  %v8071_v50 = vld [vmem:[%s12011_s5 + $0xe8] sm:$0xf] }
 0x27f   : > { %8290 = vmatpush1.bf16.msra.mxu1 %v8289_v39 }
 0x280   : > { %1558 = vmatprep.subr.mxu1 %v1274_v16 }
 0x283   : > { %1562 = vmatpush1.msra.mxu1 %v1280_v17 }
 0x284   : > { %8292 = vmatprep.subr.bf16.mxu1 %v9401_v1  ;;  %1619 = vmatmul.mubr.f32.vlgmr.msra.gmra.mrb[0].mxu1 %v9416_v13  ;;  %v1127_v1 = vcombine.high %v8059_v62, %v8059_v62 }
 0x285   : > { %8294 = vmatpush1.bf16.msra.mxu1 %v9403_v5  ;;  %1699 = vmatprep.mubr.f32.mxu1 %v9015_v2 }
 0x286   : > { %8296 = vmatprep.subr.bf16.mxu1 %v9450_v32  ;;  %v8065_v32 = vld [vmem:[%s12011_s5 + $0x68] sm:$0xf] }
 0x289   : > { %8298 = vmatpush1.bf16.msra.mxu1 %v9454_v38 }
 0x28a   : > { %1642 = vmatprep.subr.mxu1 %v9470_v58 }
 0x28d   : > { %1644 = vmatpush1.msra.mxu1 %v9472_v59 }
 0x28e   : > { %1701 = vmatmul.mubr.f32.vlgmr.msra.gmra.mrb[0].mxu1 %v9416_v13 }
 0x28f   : > { %2652 = vmatprep.mubr.f32.mxu1 %v9015_v2 }
 0x331   : > { %v1219_v6 = vpop.f32.mrb[2].mxu0 }
 0x332   : > { %v1221_v61 = vpop.f32.mrb[3].mxu0  ;;  %v1220_v5 = vadd.f32 %v8059_v62, %v1219_v6 }
 0x333   : > { %v1222_v10 = vadd.f32 %v1221_v61, %v1127_v1  ;;  %v1849_v1 = vsel %vm408_vm5, %v8074_v33, 0 }
 0x361   : > { %v1702_v11 = vpop.f32.mrb[0].mxu1 }
 0x362   : > { %v8854_v21 = vadd.f32 %v1702_v11, %v1220_v5  ;;  %v1704_v27 = vpop.f32.mrb[1].mxu1 }
 0x363   : > { %v8856_v34 = vadd.f32 %v1704_v27, %v1222_v10 }
 0x364   : > { %v1707_v43 = vmax.f32 %v8854_v21, 0.0 }
 0x365   : > { %v1708_v44 = vmax.f32 %v8856_v34, 0.0  ;;  %v8068_v34 = vld [vmem:[%s12011_s5 + $0xc0] sm:$0xf] }
 0x366   : > { %1769 = vst [vmem:[#allocation2 + $0x20] sm:$0xf] %v1707_v43  ;;  %1721 = vrot.lane.b32.xlu0 %v1707_v43, %s9008_s28 }
 0x367   : > { %1770 = vst [vmem:[#allocation2 + $0x28] sm:$0xf] %v1708_v44  ;;  %1723 = vrot.lane.b32.xlu1 %v1708_v44, %s9008_s28 }
 0x36a   : > { %1751 = vrot.lane.b32.xlu0 %v1707_v43, %s9007_s27 }
 0x36b   : > { %1753 = vrot.lane.b32.xlu1 %v1708_v44, %s9007_s27 }
 0x36e   : > { %1709 = vrot.lane.b32.xlu0 %v1707_v43, %s9009_s29 }
 0x36f   : > { %1711 = vrot.lane.b32.xlu1 %v1708_v44, %s9009_s29 }
 0x372   : > { %1739 = vrot.lane.b32.xlu0 %v1707_v43, %s9010_s30 }
 0x373   : > { %1741 = vrot.lane.b32.xlu1 %v1708_v44, %s9010_s30 }
 0x376   : > { %1771 = vrot.lane.b32.xlu0 %v1707_v43, %s9011_s7 }
 0x377   : > { %1773 = vrot.lane.b32.xlu1 %v1708_v44, %s9011_s7 }
 0x37a   : > { %1801 = vrot.lane.b32.xlu0 %v1707_v43, %s9012_s8 }
 0x37b   : > { %1803 = vrot.lane.b32.xlu1 %v1708_v44, %s9012_s8 }
 0x37e   : > { %1789 = vrot.lane.b32.xlu0 %v1707_v43, %s9013_s9 }
 0x37f   : > { %1791 = vrot.lane.b32.xlu1 %v1708_v44, %s9013_s9 }
 0x382   : > { %1819 = vrot.lane.b32.xlu0 %v1707_v43, %s9014_s10 }
 0x383   : > { %1821 = vrot.lane.b32.xlu1 %v1708_v44, %s9014_s10 }
 0x3d8   : > { %v1722_v13 = vpop.permute.xlu0 %1721 }
 0x3d9   : > { %v1724_v53 = vpop.permute.xlu1 %1723 }
 0x3da   : > { %v1725_v55 = vsel %vm273_vm2, %v1722_v13, %v1724_v53  ;;  %v1726_v20 = vsel %vm273_vm2, %v1724_v53, %v1722_v13  ;;  %v9613_v53 = vand.u32 4294901760, %v1849_v1 }
 0x3db   : > { %v1729_v19 = vmul.f32 %v8060_v51, %v1726_v20  ;;  %v1730_v26 = vmul.f32 %v8061_v52, %v1725_v55  ;;  %v8069_v51 = vld [vmem:[%s12011_s5 + $0xc8] sm:$0xf] }
 0x3dc   : > { %v1752_v23 = vpop.permute.xlu0 %1751 }
 0x3dd   : > { %v1733_v36 = vrot.slane %v1729_v19, 4  ;;  %v1734_v38 = vrot.slane %v1730_v26, 4  ;;  %v1754_v40 = vpop.permute.xlu1 %1753 }
 0x3de   : > { %v1755_v41 = vsel %vm307_vm0, %v1752_v23, %v1754_v40  ;;  %v1756_v42 = vsel %vm307_vm0, %v1754_v40, %v1752_v23 }
 0x3df   : > { %1737 = vst [vmem:[#allocation2] sm:$0xf0] %v1733_v36  ;;  %1738 = vst [vmem:[#allocation2 + $0x8] sm:$0xf0] %v1734_v38  ;;  %v1759_v45 = vmul.f32 %v8064_v29, %v1756_v42  ;;  %v1760_v47 = vmul.f32 %v8065_v32, %v1755_v41 }
 0x3e0   : > { %v1710_v48 = vpop.permute.xlu0 %1709 }
 0x3e1   : > { %v1763_v57 = vrot.slane %v1759_v45, 4  ;;  %v1764_v58 = vrot.slane %v1760_v47, 4  ;;  %v1712_v59 = vpop.permute.xlu1 %1711  ;;  %v8072_v45 = vld [vmem:[%s12011_s5 + $0x100] sm:$0xf]  ;;  %v8073_v47 = vld [vmem:[%s12011_s5 + $0x108] sm:$0xf] }
 0x3e2   : > { %v1713_v60 = vsel %vm260_vm1, %v1710_v48, %v1712_v59  ;;  %v1714_v63 = vsel %vm260_vm1, %v1712_v59, %v1710_v48 }
 0x3e3   : > { %1767 = vst [vmem:[#allocation2 + $0x10] sm:$0xf0] %v1763_v57  ;;  %1768 = vst [vmem:[#allocation2 + $0x18] sm:$0xf0] %v1764_v58  ;;  %v1717_v0 = vmul.f32 %v1715_v54, %v1714_v63  ;;  %v1718_v7 = vmul.f32 %v1716_v56, %v1713_v60  ;;  %v9633_v57 = vsub.f32 %v1849_v1, %v9613_v53 }
 0x3e4   : > { %v1740_v8 = vpop.permute.xlu0 %1739 }
 0x3e5   : > { %1719 = vst [vmem:[#allocation2] sm:$0xf] %v1717_v0  ;;  %1720 = vst [vmem:[#allocation2 + $0x8] sm:$0xf] %v1718_v7  ;;  %v1742_v14 = vpop.permute.xlu1 %1741 }
 0x3e6   : > { %v1743_v15 = vsel %vm293_vm3, %v1740_v8, %v1742_v14  ;;  %v1744_v16 = vsel %vm293_vm3, %v1742_v14, %v1740_v8 }
 0x3e7   : > { %v1747_v17 = vmul.f32 %v8062_v9, %v1744_v16  ;;  %v1748_v18 = vmul.f32 %v8063_v12, %v1743_v15 }
 0x3e8   : > { %v1772_v22 = vpop.permute.xlu0 %1771 }
 0x3e9   : > { %1749 = vst [vmem:[#allocation2 + $0x10] sm:$0xf] %v1747_v17  ;;  %1750 = vst [vmem:[#allocation2 + $0x18] sm:$0xf] %v1748_v18  ;;  %v1774_v28 = vpop.permute.xlu1 %1773 }
 0x3ea   : > { %v1775_v30 = vsel %vm329_vm4, %v1772_v22, %v1774_v28  ;;  %v1776_v31 = vsel %vm329_vm4, %v1774_v28, %v1772_v22  ;;  %v1934_v22 = vand.u32 4294901760, %v9633_v57 }
 0x3eb   : > { %v1779_v35 = vmul.f32 %v8066_v24, %v1775_v30  ;;  %v1780_v37 = vmul.f32 %v8067_v25, %v1776_v31 }
 0x3ec   : > { %v1802_v46 = vpop.permute.xlu0 %1801  ;;  %v1834_v39 = vld [vmem:[#allocation2 + $0x8] sm:$0xff]  ;;  %v1833_v11 = vld [vmem:[#allocation2] sm:$0xff] }
 0x3ed   : > { %v1783_v6 = vrot.slane %v1779_v35, 4  ;;  %v1784_v61 = vrot.slane %v1780_v37, 4  ;;  %v1804_v62 = vpop.permute.xlu1 %1803  ;;  %v1857_v52 = vand.u32 4294901760, %v1834_v39  ;;  %v1859_v36 = vand.u32 4294901760, %v1833_v11 }
 0x3ee   : > { %v1805_v5 = vsel %vm363_vm6, %v1802_v46, %v1804_v62  ;;  %v1806_v10 = vsel %vm363_vm6, %v1804_v62, %v1802_v46 }
 0x3ef   : > { %1787 = vst [vmem:[#allocation2 + $0x20] sm:$0xf0] %v1783_v6  ;;  %1788 = vst [vmem:[#allocation2 + $0x28] sm:$0xf0] %v1784_v61  ;;  %v1809_v21 = vmul.f32 %v8070_v49, %v1805_v5  ;;  %v1810_v27 = vmul.f32 %v8071_v50, %v1806_v10  ;;  %v9639_v0 = vsub.f32 %v1834_v39, %v1857_v52 }
 0x3f0   : > { %v1835_v43 = vld [vmem:[#allocation2 + $0x10] sm:$0xff]  ;;  %v1836_v44 = vld [vmem:[#allocation2 + $0x18] sm:$0xff]  ;;  %v1790_v13 = vpop.permute.xlu0 %1789  ;;  %v9644_v14 = vsub.f32 %v1833_v11, %v1859_v36  ;;  %v1935_v50 = vsub.f32 %v9633_v57, %v1934_v22 }
 0x3f1   : > { %v1813_v55 = vrot.slane %v1809_v21, 4  ;;  %v1814_v20 = vrot.slane %v1810_v27, 4  ;;  %v1792_v19 = vpop.permute.xlu1 %1791  ;;  %v1861_v26 = vand.u32 4294901760, %v1836_v44  ;;  %v1863_v23 = vand.u32 4294901760, %v1835_v43 }
 0x3f2   : > { %v1793_v29 = vsel %vm349_vm7, %v1790_v13, %v1792_v19  ;;  %v1794_v32 = vsel %vm349_vm7, %v1792_v19, %v1790_v13  ;;  %v1945_v18 = vand.u32 4294901760, %v9639_v0  ;;  %v1951_v33 = vand.u32 4294901760, %v9644_v14 }
 0x3f3   : > { %1817 = vst [vmem:[#allocation2 + $0x30] sm:$0xf0] %v1813_v55  ;;  %1818 = vst [vmem:[#allocation2 + $0x38] sm:$0xf0] %v1814_v20  ;;  %v1797_v38 = vmul.f32 %v8068_v34, %v1793_v29  ;;  %v1798_v40 = vmul.f32 %v8069_v51, %v1794_v32  ;;  %v9619_v41 = vpack.c.bf16 %v1861_v26, %v1857_v52 }
 0x3f4   : > { %v1820_v42 = vpop.permute.xlu0 %1819  ;;  %v9627_v48 = vsub.f32 %v1836_v44, %v1861_v26  ;;  %v9629_v54 = vpack.c.bf16 %v1863_v23, %v1859_v36  ;;  %v9642_v7 = vsub.f32 %v1835_v43, %v1863_v23  ;;  %v1946_v49 = vsub.f32 %v9639_v0, %v1945_v18 }
 0x3f5   : > { %1799 = vst [vmem:[#allocation2 + $0x30] sm:$0xf] %v1797_v38  ;;  %1800 = vst [vmem:[#allocation2 + $0x38] sm:$0xf] %v1798_v40  ;;  %v1822_v56 = vpop.permute.xlu1 %1821  ;;  %8300 = vmatprep.subr.bf16.mxu0 %v9619_v41  ;;  %v1952_v21 = vsub.f32 %v9644_v14, %v1951_v33  ;;  %v1936_v26 = vand.u32 4294901760, %v1935_v50 }
 0x3f6   : > { %v1837_v58 = vld [vmem:[#allocation2 + $0x20] sm:$0xff]  ;;  %v1838_v59 = vld [vmem:[#allocation2 + $0x28] sm:$0xff]  ;;  %v1823_v60 = vsel %vm383_vm8, %v1820_v42, %v1822_v56  ;;  %v1824_v63 = vsel %vm383_vm8, %v1822_v56, %v1820_v42  ;;  %8302 = vmatpush1.bf16.msra.mxu0 %v9629_v54  ;;  %v1957_v16 = vand.u32 4294901760, %v9627_v48  ;;  %v1963_v24 = vand.u32 4294901760, %v9642_v7 }
 0x3f7   : > { %v1827_v8 = vmul.f32 %v8072_v45, %v1823_v60  ;;  %v1828_v9 = vmul.f32 %v8073_v47, %v1824_v63  ;;  %v1865_v12 = vand.u32 4294901760, %v1838_v59  ;;  %v1867_v15 = vand.u32 4294901760, %v1837_v58 }
 0x3f8   : > { %v1958_v31 = vsub.f32 %v9627_v48, %v1957_v16  ;;  %v1964_v39 = vsub.f32 %v9642_v7, %v1963_v24  ;;  %v1947_v19 = vand.u32 4294901760, %v1946_v49  ;;  %v1953_v36 = vand.u32 4294901760, %v1952_v21 }
 0x3f9   : > { %1829 = vst [vmem:[#allocation2 + $0x40] sm:$0xf] %v1827_v8  ;;  %1830 = vst [vmem:[#allocation2 + $0x48] sm:$0xf] %v1828_v9  ;;  %v9647_v17 = vsub.f32 %v1838_v59, %v1865_v12  ;;  %v9652_v30 = vsub.f32 %v1837_v58, %v1867_v15  ;;  %v8331_v50 = vpack.c.bf16 %v1957_v16, %v1945_v18  ;;  %v8076_v18 = vld [vmem:[%s12011_s5 + $0x20] sm:$0xf] }
 0x3fa   : > { %v1959_v11 = vand.u32 4294901760, %v1958_v31  ;;  %v1965_v20 = vand.u32 4294901760, %v1964_v39  ;;  %v8315_v31 = vpack.c.bf16 %v9627_v48, %v9639_v0  ;;  %v8333_v39 = vpack.c.bf16 %v1963_v24, %v1951_v33 }
 0x3fb   : > { %v1969_v35 = vand.u32 4294901760, %v9647_v17  ;;  %v1975_v34 = vand.u32 4294901760, %v9652_v30 }
 0x3fc   : > { %v1839_v25 = vld [vmem:[#allocation2 + $0x30] sm:$0xff]  ;;  %v1840_v28 = vld [vmem:[#allocation2 + $0x38] sm:$0xff]  ;;  %v8307_v42 = vpack.c.bf16 %v1959_v11, %v1947_v19  ;;  %v8309_v56 = vpack.c.bf16 %v1965_v20, %v1953_v36 }
 0x3fd   : > { %v1869_v37 = vand.u32 4294901760, %v1840_v28  ;;  %v1871_v46 = vand.u32 4294901760, %v1839_v25  ;;  %v1970_v27 = vsub.f32 %v9647_v17, %v1969_v35  ;;  %v1976_v38 = vsub.f32 %v9652_v30, %v1975_v34 }
 0x3ff   : > { %v9668_v6 = vpack.c.bf16 %v1869_v37, %v1865_v12  ;;  %v9670_v61 = vsub.f32 %v1840_v28, %v1869_v37  ;;  %v9672_v62 = vpack.c.bf16 %v1871_v46, %v1867_v15  ;;  %v9674_v1 = vsub.f32 %v1839_v25, %v1871_v46 }
 0x400   : > { %v1842_v5 = vld [vmem:[#allocation2 + $0x48] sm:$0xf]  ;;  %v1841_v10 = vld [vmem:[#allocation2 + $0x40] sm:$0xf]  ;;  %v1971_v45 = vand.u32 4294901760, %v1970_v27  ;;  %v1977_v8 = vand.u32 4294901760, %v1976_v38  ;;  %v8317_v37 = vpack.c.bf16 %v9642_v7, %v9644_v14 }
 0x401   : > { %8304 = vmatprep.subr.bf16.mxu0 %v9668_v6  ;;  %v1855_v43 = vsel %vm412_vm9, %v1842_v5, 0  ;;  %v1852_v44 = vsel %vm412_vm9, %v1841_v10, 0  ;;  %v1981_v13 = vand.u32 4294901760, %v9670_v61  ;;  %v1987_v51 = vand.u32 4294901760, %v9674_v1  ;;  %v8081_v5 = vld [vmem:[%s12011_s5 + $0x68] sm:$0xf] }
 0x402   : > { %8306 = vmatpush1.bf16.msra.mxu0 %v9672_v62  ;;  %v9689_v52 = vand.u32 4294901760, %v1855_v43  ;;  %v9691_v55 = vand.u32 4294901760, %v1852_v44  ;;  %v8319_v46 = vpack.c.bf16 %v9670_v61, %v9647_v17  ;;  %v8321_v49 = vpack.c.bf16 %v9674_v1, %v9652_v30  ;;  %v8078_v38 = vld [vmem:[%s12011_s5 + $0x40] sm:$0xf] }
 0x403   : > { %v1982_v23 = vsub.f32 %v9670_v61, %v1981_v13  ;;  %v1988_v29 = vsub.f32 %v9674_v1, %v1987_v51  ;;  %v8335_v61 = vpack.c.bf16 %v1981_v13, %v1969_v35  ;;  %v8337_v48 = vpack.c.bf16 %v1987_v51, %v1975_v34  ;;  %v8080_v1 = vld [vmem:[%s12011_s5 + $0x60] sm:$0xf] }
 0x404   : > { %1874 = vmatprep.subr.mxu0 %v9689_v52  ;;  %v1998_v32 = vsub.f32 %v1852_v44, %v9691_v55  ;;  %v1992_v40 = vsub.f32 %v1855_v43, %v9689_v52  ;;  %v2436_v51 = vld [vmem:[%s12011_s5] sm:$0xf] }
 0x405   : > { %v1983_v47 = vand.u32 4294901760, %v1982_v23  ;;  %v1989_v58 = vand.u32 4294901760, %v1988_v29 }
 0x406   : > { %1876 = vmatpush1.msra.mxu0 %v9691_v55  ;;  %v1993_v59 = vand.u32 4294901760, %v1992_v40  ;;  %v1999_v60 = vand.u32 4294901760, %v1998_v32 }
 0x407   : > { %8308 = vmatprep.subr.bf16.mxu0 %v8307_v42  ;;  %1937 = vmatmul.mubr.f32.vlgmr.msra.gmra.mrb[4].mxu0 %v1936_v26  ;;  %v8311_v63 = vpack.c.bf16 %v1983_v47, %v1971_v45  ;;  %v8313_v12 = vpack.c.bf16 %v1989_v58, %v1977_v8 }
 0x408   : > { %8310 = vmatpush1.bf16.msra.mxu0 %v8309_v56  ;;  %v1994_v9 = vsub.f32 %v1992_v40, %v1993_v59  ;;  %2057 = vmatprep.mubr.f32.mxu0 %v9015_v2  ;;  %v2000_v25 = vsub.f32 %v1998_v32, %v1999_v60 }
 0x409   : > { %8312 = vmatprep.subr.bf16.mxu0 %v8311_v63  ;;  %v8083_v63 = vld [vmem:[%s12011_s5 + $0xa8] sm:$0xf] }
 0x40a   : > { %v1995_v15 = vand.u32 4294901760, %v1994_v9  ;;  %v2001_v28 = vand.u32 4294901760, %v2000_v25 }
 0x40c   : > { %8314 = vmatpush1.bf16.msra.mxu0 %v8313_v12 }
 0x40d   : > { %1996 = vmatprep.subr.mxu0 %v1995_v15  ;;  %v8090_v15 = vld [vmem:[%s12007_s1 + $0xc] sm:$0xf] }
 0x410   : > { %2002 = vmatpush1.msra.mxu0 %v2001_v28 }
 0x411   : > { %8316 = vmatprep.subr.bf16.mxu0 %v8315_v31  ;;  %2059 = vmatmul.mubr.f32.vlgmr.msra.gmra.mrb[4].mxu0 %v9613_v53 }
 0x412   : > { %8318 = vmatpush1.bf16.msra.mxu0 %v8317_v37  ;;  %2149 = vmatprep.mubr.f32.mxu0 %v9015_v2  ;;  %v8086_v37 = vld [vmem:[%s12011_s5 + $0xe0] sm:$0xf] }
 0x413   : > { %8320 = vmatprep.subr.bf16.mxu0 %v8319_v46  ;;  %v8087_v46 = vld [vmem:[%s12011_s5 + $0xe8] sm:$0xf] }
 0x416   : > { %8322 = vmatpush1.bf16.msra.mxu0 %v8321_v49 }
 0x417   : > { %2091 = vmatprep.subr.mxu0 %v1992_v40  ;;  %v8079_v40 = vld [vmem:[%s12011_s5 + $0x48] sm:$0xf] }
 0x41a   : > { %2094 = vmatpush1.msra.mxu0 %v1998_v32 }
 0x41b   : > { %8324 = vmatprep.subr.bf16.mxu0 %v9619_v41  ;;  %2152 = vmatmul.mubr.f32.vlgmr.msra.gmra.mrb[4].mxu0 %v9633_v57 }
 0x41c   : > { %8326 = vmatpush1.bf16.msra.mxu0 %v9629_v54  ;;  %2232 = vmatprep.mubr.f32.mxu0 %v9015_v2 }
 0x41d   : > { %8328 = vmatprep.subr.bf16.mxu0 %v9668_v6 }
 0x420   : > { %8330 = vmatpush1.bf16.msra.mxu0 %v9672_v62 }
 0x421   : > { %2175 = vmatprep.subr.mxu0 %v9689_v52 }
 0x424   : > { %2177 = vmatpush1.msra.mxu0 %v9691_v55 }
 0x425   : > { %8332 = vmatprep.subr.bf16.mxu0 %v8331_v50  ;;  %2236 = vmatmul.mubr.f32.vlgmr.msra.gmra.mrb[4].mxu0 %v1934_v22  ;;  %v8077_v22 = vld [vmem:[%s12011_s5 + $0x28] sm:$0xf] }
 0x426   : > { %8334 = vmatpush1.bf16.msra.mxu0 %v8333_v39  ;;  %2336 = vmatprep.mubr.f32.mxu0 %v9015_v2 }
 0x427   : > { %8336 = vmatprep.subr.bf16.mxu0 %v8335_v61 }
 0x42a   : > { %8338 = vmatpush1.bf16.msra.mxu0 %v8337_v48  ;;  %v2570_v48 = vsel %vm408_vm5, %v8090_v15, 0 }
 0x42b   : > { %2277 = vmatprep.subr.mxu0 %v1993_v59 }
 0x42e   : > { %2281 = vmatpush1.msra.mxu0 %v1999_v60  ;;  %v8082_v60 = vld [vmem:[%s12011_s5 + $0xa0] sm:$0xf] }
 0x42f   : > { %8340 = vmatprep.subr.bf16.mxu0 %v9619_v41  ;;  %2338 = vmatmul.mubr.f32.vlgmr.msra.gmra.mrb[4].mxu0 %v9613_v53  ;;  %v8075_v41 = vld [vmem:[%s12008_s2 + $0x10] sm:$0xff] }
 0x430   : > { %8342 = vmatpush1.bf16.msra.mxu0 %v9629_v54  ;;  %2418 = vmatprep.mubr.f32.mxu0 %v9015_v2  ;;  %v1846_v57 = vcombine.high %v8075_v41, %v8075_v41 }
 0x431   : > { %8344 = vmatprep.subr.bf16.mxu0 %v9668_v6 }
 0x434   : > { %8346 = vmatpush1.bf16.msra.mxu0 %v9672_v62 }
 0x435   : > { %2361 = vmatprep.subr.mxu0 %v9689_v52  ;;  %v2437_v52 = vld [vmem:[%s12011_s5 + $0x8] sm:$0xf] }
 0x438   : > { %2363 = vmatpush1.msra.mxu0 %v9691_v55 }
 0x439   : > { %2420 = vmatmul.mubr.f32.vlgmr.msra.gmra.mrb[4].mxu0 %v9613_v53 }
 0x43a   : > { %3371 = vmatprep.mubr.f32.mxu0 %v9015_v2 }
 0x50c   : > { %v2421_v54 = vpop.f32.mrb[4].mxu0 }
 0x50d   : > { %v8857_v0 = vadd.f32 %v8075_v41, %v2421_v54  ;;  %v2423_v7 = vpop.f32.mrb[5].mxu0 }
 0x50e   : > { %v8858_v14 = vadd.f32 %v2423_v7, %v1846_v57  ;;  %v8084_v7 = vld [vmem:[%s12011_s5 + $0xc0] sm:$0xf] }
 0x50f   : > { %v2426_v16 = vmax.f32 %v8857_v0, 0.0 }
 0x510   : > { %v2427_v17 = vmax.f32 %v8858_v14, 0.0 }
 0x511   : > { %2428 = vst [vmem:[#allocation4] sm:$0xf] %v2426_v16  ;;  %2490 = vst [vmem:[#allocation2 + $0x20] sm:$0xf] %v2426_v16  ;;  %2442 = vrot.lane.b32.xlu0 %v2426_v16, %s9008_s28 }
 0x512   : > { %2429 = vst [vmem:[#allocation4 + $0x8] sm:$0xf] %v2427_v17  ;;  %2491 = vst [vmem:[#allocation2 + $0x28] sm:$0xf] %v2427_v17  ;;  %2444 = vrot.lane.b32.xlu1 %v2427_v17, %s9008_s28 }
 0x515   : > { %2472 = vrot.lane.b32.xlu0 %v2426_v16, %s9007_s27 }
 0x516   : > { %2474 = vrot.lane.b32.xlu1 %v2427_v17, %s9007_s27 }
 0x519   : > { %2430 = vrot.lane.b32.xlu0 %v2426_v16, %s9009_s29 }
 0x51a   : > { %2432 = vrot.lane.b32.xlu1 %v2427_v17, %s9009_s29 }
 0x51d   : > { %2460 = vrot.lane.b32.xlu0 %v2426_v16, %s9010_s30 }
 0x51e   : > { %2462 = vrot.lane.b32.xlu1 %v2427_v17, %s9010_s30 }
 0x521   : > { %2492 = vrot.lane.b32.xlu0 %v2426_v16, %s9011_s7 }
 0x522   : > { %2494 = vrot.lane.b32.xlu1 %v2427_v17, %s9011_s7 }
 0x525   : > { %2522 = vrot.lane.b32.xlu0 %v2426_v16, %s9012_s8 }
 0x526   : > { %2524 = vrot.lane.b32.xlu1 %v2427_v17, %s9012_s8 }
 0x529   : > { %2510 = vrot.lane.b32.xlu0 %v2426_v16, %s9013_s9 }
 0x52a   : > { %2512 = vrot.lane.b32.xlu1 %v2427_v17, %s9013_s9 }
 0x52d   : > { %2540 = vrot.lane.b32.xlu0 %v2426_v16, %s9014_s10 }
 0x52e   : > { %2542 = vrot.lane.b32.xlu1 %v2427_v17, %s9014_s10  ;;  %v8085_v17 = vld [vmem:[%s12011_s5 + $0xc8] sm:$0xf] }
 0x583   : > { %v2443_v53 = vpop.permute.xlu0 %2442 }
 0x584   : > { %v2445_v24 = vpop.permute.xlu1 %2444 }
 0x585   : > { %v2446_v30 = vsel %vm273_vm2, %v2443_v53, %v2445_v24  ;;  %v2447_v33 = vsel %vm273_vm2, %v2445_v24, %v2443_v53  ;;  %v9839_v24 = vand.u32 4294901760, %v2570_v48 }
 0x586   : > { %v2450_v35 = vmul.f32 %v8076_v18, %v2447_v33  ;;  %v2451_v6 = vmul.f32 %v8077_v22, %v2446_v30 }
 0x587   : > { %v2473_v62 = vpop.permute.xlu0 %2472 }
 0x588   : > { %v2454_v10 = vrot.slane %v2450_v35, 4  ;;  %v2455_v11 = vrot.slane %v2451_v6, 4  ;;  %v2475_v21 = vpop.permute.xlu1 %2474 }
 0x589   : > { %v2476_v27 = vsel %vm307_vm0, %v2473_v62, %v2475_v21  ;;  %v2477_v34 = vsel %vm307_vm0, %v2475_v21, %v2473_v62 }
 0x58a   : > { %2458 = vst [vmem:[#allocation2] sm:$0xf0] %v2454_v10  ;;  %2459 = vst [vmem:[#allocation2 + $0x8] sm:$0xf0] %v2455_v11  ;;  %v2480_v43 = vmul.f32 %v8080_v1, %v2477_v34  ;;  %v2481_v44 = vmul.f32 %v8081_v5, %v2476_v27 }
 0x58b   : > { %v2431_v13 = vpop.permute.xlu0 %2430 }
 0x58c   : > { %v2484_v55 = vrot.slane %v2480_v43, 4  ;;  %v2485_v20 = vrot.slane %v2481_v44, 4  ;;  %v2433_v19 = vpop.permute.xlu1 %2432  ;;  %v8088_v43 = vld [vmem:[%s12011_s5 + $0x100] sm:$0xf]  ;;  %v8089_v44 = vld [vmem:[%s12011_s5 + $0x108] sm:$0xf] }
 0x58d   : > { %v2434_v26 = vsel %vm260_vm1, %v2431_v13, %v2433_v19  ;;  %v2435_v23 = vsel %vm260_vm1, %v2433_v19, %v2431_v13 }
 0x58e   : > { %2488 = vst [vmem:[#allocation2 + $0x10] sm:$0xf0] %v2484_v55  ;;  %2489 = vst [vmem:[#allocation2 + $0x18] sm:$0xf0] %v2485_v20  ;;  %v2438_v29 = vmul.f32 %v2436_v51, %v2435_v23  ;;  %v2439_v32 = vmul.f32 %v2437_v52, %v2434_v26  ;;  %v9859_v55 = vsub.f32 %v2570_v48, %v9839_v24 }
 0x58f   : > { %v2461_v36 = vpop.permute.xlu0 %2460 }
 0x590   : > { %2440 = vst [vmem:[#allocation2] sm:$0xf] %v2438_v29  ;;  %2441 = vst [vmem:[#allocation2 + $0x8] sm:$0xf] %v2439_v32  ;;  %v2463_v42 = vpop.permute.xlu1 %2462 }
 0x591   : > { %v2464_v45 = vsel %vm293_vm3, %v2461_v36, %v2463_v42  ;;  %v2465_v47 = vsel %vm293_vm3, %v2463_v42, %v2461_v36 }
 0x592   : > { %v2468_v56 = vmul.f32 %v8078_v38, %v2465_v47  ;;  %v2469_v58 = vmul.f32 %v8079_v40, %v2464_v45 }
 0x593   : > { %v2493_v59 = vpop.permute.xlu0 %2492 }
 0x594   : > { %2470 = vst [vmem:[#allocation2 + $0x10] sm:$0xf] %v2468_v56  ;;  %2471 = vst [vmem:[#allocation2 + $0x18] sm:$0xf] %v2469_v58  ;;  %v2495_v8 = vpop.permute.xlu1 %2494 }
 0x595   : > { %v2496_v9 = vsel %vm329_vm4, %v2493_v59, %v2495_v8  ;;  %v2497_v12 = vsel %vm329_vm4, %v2495_v8, %v2493_v59  ;;  %v2655_v59 = vand.u32 4294901760, %v9859_v55 }
 0x596   : > { %v2500_v25 = vmul.f32 %v8082_v60, %v2496_v9  ;;  %v2501_v28 = vmul.f32 %v8083_v63, %v2497_v12 }
 0x597   : > { %v2523_v31 = vpop.permute.xlu0 %2522  ;;  %v2555_v61 = vld [vmem:[#allocation2 + $0x8] sm:$0xff]  ;;  %v2554_v14 = vld [vmem:[#allocation2] sm:$0xff] }
 0x598   : > { %v2504_v49 = vrot.slane %v2500_v25, 4  ;;  %v2505_v50 = vrot.slane %v2501_v28, 4  ;;  %v2525_v39 = vpop.permute.xlu1 %2524  ;;  %v2578_v18 = vand.u32 4294901760, %v2555_v61  ;;  %v2580_v10 = vand.u32 4294901760, %v2554_v14 }
 0x599   : > { %v2526_v41 = vsel %vm363_vm6, %v2523_v31, %v2525_v39  ;;  %v2527_v57 = vsel %vm363_vm6, %v2525_v39, %v2523_v31 }
 0x59a   : > { %2508 = vst [vmem:[#allocation2 + $0x20] sm:$0xf0] %v2504_v49  ;;  %2509 = vst [vmem:[#allocation2 + $0x28] sm:$0xf0] %v2505_v50  ;;  %v2530_v54 = vmul.f32 %v8086_v37, %v2526_v41  ;;  %v2531_v0 = vmul.f32 %v8087_v46, %v2527_v57  ;;  %v9865_v26 = vsub.f32 %v2555_v61, %v2578_v18 }
 0x59b   : > { %v2511_v16 = vpop.permute.xlu0 %2510  ;;  %v2557_v53 = vld [vmem:[#allocation2 + $0x18] sm:$0xff]  ;;  %v2556_v22 = vld [vmem:[#allocation2 + $0x10] sm:$0xff]  ;;  %v9870_v42 = vsub.f32 %v2554_v14, %v2580_v10  ;;  %v2656_v46 = vsub.f32 %v9859_v55, %v2655_v59 }
 0x59c   : > { %v2534_v30 = vrot.slane %v2530_v54, 4  ;;  %v2535_v33 = vrot.slane %v2531_v0, 4  ;;  %v2513_v35 = vpop.permute.xlu1 %2512  ;;  %v2582_v6 = vand.u32 4294901760, %v2557_v53  ;;  %v2584_v62 = vand.u32 4294901760, %v2556_v22 }
 0x59d   : > { %v2514_v1 = vsel %vm349_vm7, %v2511_v16, %v2513_v35  ;;  %v2515_v5 = vsel %vm349_vm7, %v2513_v35, %v2511_v16  ;;  %v2666_v58 = vand.u32 4294901760, %v9865_v26  ;;  %v2672_v15 = vand.u32 4294901760, %v9870_v42 }
 0x59e   : > { %2538 = vst [vmem:[#allocation2 + $0x30] sm:$0xf0] %v2534_v30  ;;  %2539 = vst [vmem:[#allocation2 + $0x38] sm:$0xf0] %v2535_v33  ;;  %v2518_v11 = vmul.f32 %v8084_v7, %v2514_v1  ;;  %v2519_v21 = vmul.f32 %v8085_v17, %v2515_v5  ;;  %v9845_v27 = vpack.c.bf16 %v2582_v6, %v2578_v18 }
 0x59f   : > { %v2541_v34 = vpop.permute.xlu0 %2540  ;;  %v9853_v13 = vsub.f32 %v2557_v53, %v2582_v6  ;;  %v9855_v51 = vpack.c.bf16 %v2584_v62, %v2580_v10  ;;  %v9868_v23 = vsub.f32 %v2556_v22, %v2584_v62  ;;  %v2667_v37 = vsub.f32 %v9865_v26, %v2666_v58 }
 0x5a0   : > { %2520 = vst [vmem:[#allocation2 + $0x30] sm:$0xf] %v2518_v11  ;;  %2521 = vst [vmem:[#allocation2 + $0x38] sm:$0xf] %v2519_v21  ;;  %v2543_v52 = vpop.permute.xlu1 %2542  ;;  %8348 = vmatprep.subr.bf16.mxu1 %v9845_v27  ;;  %v2673_v0 = vsub.f32 %v9870_v42, %v2672_v15  ;;  %v2657_v6 = vand.u32 4294901760, %v2656_v46 }
 0x5a1   : > { %v2544_v20 = vsel %vm383_vm8, %v2541_v34, %v2543_v52  ;;  %v2545_v19 = vsel %vm383_vm8, %v2543_v52, %v2541_v34  ;;  %8350 = vmatpush1.bf16.msra.mxu1 %v9855_v51  ;;  %v2559_v29 = vld [vmem:[#allocation2 + $0x28] sm:$0xff]  ;;  %v2558_v32 = vld [vmem:[#allocation2 + $0x20] sm:$0xff]  ;;  %v2678_v47 = vand.u32 4294901760, %v9853_v13  ;;  %v2684_v60 = vand.u32 4294901760, %v9868_v23 }
 0x5a2   : > { %v2548_v36 = vmul.f32 %v8088_v43, %v2544_v20  ;;  %v2549_v38 = vmul.f32 %v8089_v44, %v2545_v19  ;;  %v2586_v40 = vand.u32 4294901760, %v2559_v29  ;;  %v2588_v45 = vand.u32 4294901760, %v2558_v32 }
 0x5a3   : > { %v2679_v12 = vsub.f32 %v9853_v13, %v2678_v47  ;;  %v2685_v49 = vsub.f32 %v9868_v23, %v2684_v60  ;;  %v2668_v35 = vand.u32 4294901760, %v2667_v37  ;;  %v2674_v10 = vand.u32 4294901760, %v2673_v0 }
 0x5a4   : > { %2550 = vst [vmem:[#allocation2 + $0x40] sm:$0xf] %v2548_v36  ;;  %2551 = vst [vmem:[#allocation2 + $0x48] sm:$0xf] %v2549_v38  ;;  %v9873_v56 = vsub.f32 %v2559_v29, %v2586_v40  ;;  %v9878_v9 = vsub.f32 %v2558_v32, %v2588_v45  ;;  %v8379_v46 = vpack.c.bf16 %v2678_v47, %v2666_v58  ;;  %v8092_v58 = vld [vmem:[%s12011_s5 + $0x20] sm:$0xf] }
 0x5a5   : > { %v2680_v54 = vand.u32 4294901760, %v2679_v12  ;;  %v2686_v33 = vand.u32 4294901760, %v2685_v49  ;;  %v8363_v12 = vpack.c.bf16 %v9853_v13, %v9865_v26  ;;  %v8381_v49 = vpack.c.bf16 %v2684_v60, %v2672_v15 }
 0x5a6   : > { %v2690_v25 = vand.u32 4294901760, %v9873_v56  ;;  %v2696_v14 = vand.u32 4294901760, %v9878_v9 }
 0x5a7   : > { %v2561_v63 = vld [vmem:[#allocation2 + $0x38] sm:$0xff]  ;;  %v2560_v8 = vld [vmem:[#allocation2 + $0x30] sm:$0xff]  ;;  %v8355_v34 = vpack.c.bf16 %v2680_v54, %v2668_v35  ;;  %v8357_v52 = vpack.c.bf16 %v2686_v33, %v2674_v10 }
 0x5a8   : > { %v2590_v28 = vand.u32 4294901760, %v2561_v63  ;;  %v2592_v31 = vand.u32 4294901760, %v2560_v8  ;;  %v2691_v7 = vsub.f32 %v9873_v56, %v2690_v25  ;;  %v2697_v11 = vsub.f32 %v9878_v9, %v2696_v14 }
 0x5aa   : > { %v9894_v50 = vpack.c.bf16 %v2590_v28, %v2586_v40  ;;  %v9896_v39 = vsub.f32 %v2561_v63, %v2590_v28  ;;  %v9898_v61 = vpack.c.bf16 %v2592_v31, %v2588_v45  ;;  %v9900_v48 = vsub.f32 %v2560_v8, %v2592_v31 }
 0x5ab   : > { %v2563_v41 = vld [vmem:[#allocation2 + $0x48] sm:$0xf]  ;;  %v2562_v57 = vld [vmem:[#allocation2 + $0x40] sm:$0xf]  ;;  %v2692_v43 = vand.u32 4294901760, %v2691_v7  ;;  %v2698_v36 = vand.u32 4294901760, %v2697_v11  ;;  %v8365_v28 = vpack.c.bf16 %v9868_v23, %v9870_v42 }
 0x5ac   : > { %8352 = vmatprep.subr.bf16.mxu1 %v9894_v50  ;;  %v2576_v16 = vsel %vm412_vm9, %v2563_v41, 0  ;;  %v2573_v17 = vsel %vm412_vm9, %v2562_v57, 0  ;;  %v2702_v53 = vand.u32 4294901760, %v9896_v39  ;;  %v2708_v18 = vand.u32 4294901760, %v9900_v48  ;;  %v8097_v41 = vld [vmem:[%s12011_s5 + $0x68] sm:$0xf] }
 0x5ad   : > { %8354 = vmatpush1.bf16.msra.mxu1 %v9898_v61  ;;  %v9915_v22 = vand.u32 4294901760, %v2576_v16  ;;  %v9917_v30 = vand.u32 4294901760, %v2573_v17  ;;  %v8367_v31 = vpack.c.bf16 %v9896_v39, %v9873_v56  ;;  %v8369_v37 = vpack.c.bf16 %v9900_v48, %v9878_v9  ;;  %v8094_v11 = vld [vmem:[%s12011_s5 + $0x40] sm:$0xf] }
 0x5ae   : > { %v2703_v62 = vsub.f32 %v9896_v39, %v2702_v53  ;;  %v2709_v1 = vsub.f32 %v9900_v48, %v2708_v18  ;;  %v8383_v39 = vpack.c.bf16 %v2702_v53, %v2690_v25  ;;  %v8385_v13 = vpack.c.bf16 %v2708_v18, %v2696_v14  ;;  %v8096_v48 = vld [vmem:[%s12011_s5 + $0x60] sm:$0xf] }
 0x5af   : > { %2595 = vmatprep.subr.mxu1 %v9915_v22  ;;  %v2719_v5 = vsub.f32 %v2573_v17, %v9917_v30  ;;  %v2713_v21 = vsub.f32 %v2576_v16, %v9915_v22  ;;  %v3155_v18 = vld [vmem:[%s12011_s5] sm:$0xf] }
 0x5b0   : > { %v2704_v44 = vand.u32 4294901760, %v2703_v62  ;;  %v2710_v20 = vand.u32 4294901760, %v2709_v1 }
 0x5b1   : > { %2597 = vmatpush1.msra.mxu1 %v9917_v30  ;;  %v2714_v19 = vand.u32 4294901760, %v2713_v21  ;;  %v2720_v29 = vand.u32 4294901760, %v2719_v5 }
 0x5b2   : > { %8356 = vmatprep.subr.bf16.mxu1 %v8355_v34  ;;  %2658 = vmatmul.mubr.f32.vlgmr.msra.gmra.mrb[2].mxu1 %v2657_v6  ;;  %v8359_v32 = vpack.c.bf16 %v2704_v44, %v2692_v43  ;;  %v8361_v40 = vpack.c.bf16 %v2710_v20, %v2698_v36 }
 0x5b3   : > { %8358 = vmatpush1.bf16.msra.mxu1 %v8357_v52  ;;  %v2715_v38 = vsub.f32 %v2713_v21, %v2714_v19  ;;  %2778 = vmatprep.mubr.f32.mxu1 %v9015_v2  ;;  %v2721_v63 = vsub.f32 %v2719_v5, %v2720_v29 }
 0x5b4   : > { %8360 = vmatprep.subr.bf16.mxu1 %v8359_v32  ;;  %v8099_v32 = vld [vmem:[%s12011_s5 + $0xa8] sm:$0xf] }
 0x5b5   : > { %v2716_v45 = vand.u32 4294901760, %v2715_v38  ;;  %v2722_v8 = vand.u32 4294901760, %v2721_v63 }
 0x5b7   : > { %8362 = vmatpush1.bf16.msra.mxu1 %v8361_v40 }
 0x5b8   : > { %2717 = vmatprep.subr.mxu1 %v2716_v45  ;;  %v8106_v45 = vld [vmem:[%s12007_s1 + $0x10] sm:$0xf] }
 0x5bb   : > { %2723 = vmatpush1.msra.mxu1 %v2722_v8 }
 0x5bc   : > { %8364 = vmatprep.subr.bf16.mxu1 %v8363_v12  ;;  %2780 = vmatmul.mubr.f32.vlgmr.msra.gmra.mrb[2].mxu1 %v9839_v24 }
 0x5bd   : > { %8366 = vmatpush1.bf16.msra.mxu1 %v8365_v28  ;;  %2870 = vmatprep.mubr.f32.mxu1 %v9015_v2  ;;  %v8102_v28 = vld [vmem:[%s12011_s5 + $0xe0] sm:$0xf] }
 0x5be   : > { %8368 = vmatprep.subr.bf16.mxu1 %v8367_v31  ;;  %v8103_v31 = vld [vmem:[%s12011_s5 + $0xe8] sm:$0xf] }
 0x5c1   : > { %8370 = vmatpush1.bf16.msra.mxu1 %v8369_v37 }
 0x5c2   : > { %2812 = vmatprep.subr.mxu1 %v2713_v21  ;;  %v8095_v21 = vld [vmem:[%s12011_s5 + $0x48] sm:$0xf] }
 0x5c5   : > { %2815 = vmatpush1.msra.mxu1 %v2719_v5 }
 0x5c6   : > { %8372 = vmatprep.subr.bf16.mxu1 %v9845_v27  ;;  %2873 = vmatmul.mubr.f32.vlgmr.msra.gmra.mrb[2].mxu1 %v9859_v55 }
 0x5c7   : > { %8374 = vmatpush1.bf16.msra.mxu1 %v9855_v51  ;;  %2953 = vmatprep.mubr.f32.mxu1 %v9015_v2 }
 0x5c8   : > { %8376 = vmatprep.subr.bf16.mxu1 %v9894_v50 }
 0x5cb   : > { %8378 = vmatpush1.bf16.msra.mxu1 %v9898_v61 }
 0x5cc   : > { %2896 = vmatprep.subr.mxu1 %v9915_v22 }
 0x5cf   : > { %2898 = vmatpush1.msra.mxu1 %v9917_v30 }
 0x5d0   : > { %8380 = vmatprep.subr.bf16.mxu1 %v8379_v46  ;;  %2957 = vmatmul.mubr.f32.vlgmr.msra.gmra.mrb[2].mxu1 %v2655_v59  ;;  %v8093_v59 = vld [vmem:[%s12011_s5 + $0x28] sm:$0xf] }
 0x5d1   : > { %8382 = vmatpush1.bf16.msra.mxu1 %v8381_v49  ;;  %3057 = vmatprep.mubr.f32.mxu1 %v9015_v2 }
 0x5d2   : > { %8384 = vmatprep.subr.bf16.mxu1 %v8383_v39 }
 0x5d5   : > { %8386 = vmatpush1.bf16.msra.mxu1 %v8385_v13  ;;  %v3289_v13 = vsel %vm408_vm5, %v8106_v45, 0 }
 0x5d6   : > { %2998 = vmatprep.subr.mxu1 %v2714_v19 }
 0x5d9   : > { %3002 = vmatpush1.msra.mxu1 %v2720_v29  ;;  %v8098_v29 = vld [vmem:[%s12011_s5 + $0xa0] sm:$0xf] }
 0x5da   : > { %8388 = vmatprep.subr.bf16.mxu1 %v9845_v27  ;;  %3059 = vmatmul.mubr.f32.vlgmr.msra.gmra.mrb[2].mxu1 %v9839_v24  ;;  %v8091_v27 = vld [vmem:[%s12008_s2 + $0x18] sm:$0xff] }
 0x5db   : > { %8390 = vmatpush1.bf16.msra.mxu1 %v9855_v51  ;;  %3139 = vmatprep.mubr.f32.mxu1 %v9015_v2  ;;  %v2567_v55 = vcombine.high %v8091_v27, %v8091_v27 }
 0x5dc   : > { %8392 = vmatprep.subr.bf16.mxu1 %v9894_v50 }
 0x5df   : > { %8394 = vmatpush1.bf16.msra.mxu1 %v9898_v61 }
 0x5e0   : > { %3082 = vmatprep.subr.mxu1 %v9915_v22  ;;  %v3156_v22 = vld [vmem:[%s12011_s5 + $0x8] sm:$0xf] }
 0x5e3   : > { %3084 = vmatpush1.msra.mxu1 %v9917_v30 }
 0x5e4   : > { %3141 = vmatmul.mubr.f32.vlgmr.msra.gmra.mrb[2].mxu1 %v9839_v24 }
 0x5e5   : > { %4098 = vmatprep.mubr.f32.mxu1 %v9015_v2 }
 0x6b7   : > { %v3142_v51 = vpop.f32.mrb[2].mxu1 }
 0x6b8   : > { %v8859_v26 = vadd.f32 %v8091_v27, %v3142_v51  ;;  %v3144_v23 = vpop.f32.mrb[3].mxu1 }
 0x6b9   : > { %v8860_v42 = vadd.f32 %v3144_v23, %v2567_v55  ;;  %v8100_v23 = vld [vmem:[%s12011_s5 + $0xc0] sm:$0xf] }
 0x6ba   : > { %v3147_v47 = vmax.f32 %v8859_v26, 0.0 }
 0x6bb   : > { %v3148_v56 = vmax.f32 %v8860_v42, 0.0 }
 0x6bc   : > { %3209 = vst [vmem:[#allocation2 + $0x20] sm:$0xf] %v3147_v47  ;;  %3161 = vrot.lane.b32.xlu0 %v3147_v47, %s9008_s28 }
 0x6bd   : > { %3210 = vst [vmem:[#allocation2 + $0x28] sm:$0xf] %v3148_v56  ;;  %3163 = vrot.lane.b32.xlu1 %v3148_v56, %s9008_s28 }
 0x6c0   : > { %3191 = vrot.lane.b32.xlu0 %v3147_v47, %s9007_s27 }
 0x6c1   : > { %3193 = vrot.lane.b32.xlu1 %v3148_v56, %s9007_s27 }
 0x6c4   : > { %3149 = vrot.lane.b32.xlu0 %v3147_v47, %s9009_s29 }
 0x6c5   : > { %3151 = vrot.lane.b32.xlu1 %v3148_v56, %s9009_s29 }
 0x6c8   : > { %3179 = vrot.lane.b32.xlu0 %v3147_v47, %s9010_s30 }
 0x6c9   : > { %3181 = vrot.lane.b32.xlu1 %v3148_v56, %s9010_s30 }
 0x6cc   : > { %3211 = vrot.lane.b32.xlu0 %v3147_v47, %s9011_s7 }
 0x6cd   : > { %3213 = vrot.lane.b32.xlu1 %v3148_v56, %s9011_s7 }
 0x6d0   : > { %3241 = vrot.lane.b32.xlu0 %v3147_v47, %s9012_s8 }
 0x6d1   : > { %3243 = vrot.lane.b32.xlu1 %v3148_v56, %s9012_s8 }
 0x6d4   : > { %3229 = vrot.lane.b32.xlu0 %v3147_v47, %s9013_s9 }
 0x6d5   : > { %3231 = vrot.lane.b32.xlu1 %v3148_v56, %s9013_s9 }
 0x6d8   : > { %3259 = vrot.lane.b32.xlu0 %v3147_v47, %s9014_s10 }
 0x6d9   : > { %3261 = vrot.lane.b32.xlu1 %v3148_v56, %s9014_s10  ;;  %v8101_v56 = vld [vmem:[%s12011_s5 + $0xc8] sm:$0xf] }
 0x72e   : > { %v3162_v24 = vpop.permute.xlu0 %3161 }
 0x72f   : > { %v3164_v60 = vpop.permute.xlu1 %3163 }
 0x730   : > { %v3165_v9 = vsel %vm273_vm2, %v3162_v24, %v3164_v60  ;;  %v3166_v15 = vsel %vm273_vm2, %v3164_v60, %v3162_v24  ;;  %v10065_v60 = vand.u32 4294901760, %v3289_v13 }
 0x731   : > { %v3169_v25 = vmul.f32 %v8092_v58, %v3166_v15  ;;  %v3170_v50 = vmul.f32 %v8093_v59, %v3165_v9 }
 0x732   : > { %v3192_v61 = vpop.permute.xlu0 %3191 }
 0x733   : > { %v3173_v57 = vrot.slane %v3169_v25, 4  ;;  %v3174_v54 = vrot.slane %v3170_v50, 4  ;;  %v3194_v0 = vpop.permute.xlu1 %3193 }
 0x734   : > { %v3195_v7 = vsel %vm307_vm0, %v3192_v61, %v3194_v0  ;;  %v3196_v14 = vsel %vm307_vm0, %v3194_v0, %v3192_v61 }
 0x735   : > { %3177 = vst [vmem:[#allocation2] sm:$0xf0] %v3173_v57  ;;  %3178 = vst [vmem:[#allocation2 + $0x8] sm:$0xf0] %v3174_v54  ;;  %v3199_v16 = vmul.f32 %v8096_v48, %v3196_v14  ;;  %v3200_v17 = vmul.f32 %v8097_v41, %v3195_v7 }
 0x736   : > { %v3150_v53 = vpop.permute.xlu0 %3149 }
 0x737   : > { %v3203_v30 = vrot.slane %v3199_v16, 4  ;;  %v3204_v33 = vrot.slane %v3200_v17, 4  ;;  %v3152_v35 = vpop.permute.xlu1 %3151  ;;  %v8104_v16 = vld [vmem:[%s12011_s5 + $0x100] sm:$0xf]  ;;  %v8105_v17 = vld [vmem:[%s12011_s5 + $0x108] sm:$0xf] }
 0x738   : > { %v3153_v6 = vsel %vm260_vm1, %v3150_v53, %v3152_v35  ;;  %v3154_v62 = vsel %vm260_vm1, %v3152_v35, %v3150_v53 }
 0x739   : > { %3207 = vst [vmem:[#allocation2 + $0x10] sm:$0xf0] %v3203_v30  ;;  %3208 = vst [vmem:[#allocation2 + $0x18] sm:$0xf0] %v3204_v33  ;;  %v3157_v1 = vmul.f32 %v3155_v18, %v3154_v62  ;;  %v3158_v5 = vmul.f32 %v3156_v22, %v3153_v6  ;;  %v10085_v30 = vsub.f32 %v3289_v13, %v10065_v60 }
 0x73a   : > { %v3180_v10 = vpop.permute.xlu0 %3179 }
 0x73b   : > { %3159 = vst [vmem:[#allocation2] sm:$0xf] %v3157_v1  ;;  %3160 = vst [vmem:[#allocation2 + $0x8] sm:$0xf] %v3158_v5  ;;  %v3182_v34 = vpop.permute.xlu1 %3181 }
 0x73c   : > { %v3183_v43 = vsel %vm293_vm3, %v3180_v10, %v3182_v34  ;;  %v3184_v44 = vsel %vm293_vm3, %v3182_v34, %v3180_v10 }
 0x73d   : > { %v3187_v52 = vmul.f32 %v8094_v11, %v3184_v44  ;;  %v3188_v20 = vmul.f32 %v8095_v21, %v3183_v43 }
 0x73e   : > { %v3212_v19 = vpop.permute.xlu0 %3211 }
 0x73f   : > { %3189 = vst [vmem:[#allocation2 + $0x10] sm:$0xf] %v3187_v52  ;;  %3190 = vst [vmem:[#allocation2 + $0x18] sm:$0xf] %v3188_v20  ;;  %v3214_v36 = vpop.permute.xlu1 %3213 }
 0x740   : > { %v3215_v38 = vsel %vm329_vm4, %v3212_v19, %v3214_v36  ;;  %v3216_v40 = vsel %vm329_vm4, %v3214_v36, %v3212_v19  ;;  %v3374_v19 = vand.u32 4294901760, %v10085_v30 }
 0x741   : > { %v3219_v63 = vmul.f32 %v8098_v29, %v3215_v38  ;;  %v3220_v8 = vmul.f32 %v8099_v32, %v3216_v40 }
 0x742   : > { %v3242_v12 = vpop.permute.xlu0 %3241  ;;  %v3274_v39 = vld [vmem:[#allocation2 + $0x8] sm:$0xff]  ;;  %v3273_v42 = vld [vmem:[#allocation2] sm:$0xff] }
 0x743   : > { %v3223_v37 = vrot.slane %v3219_v63, 4  ;;  %v3224_v46 = vrot.slane %v3220_v8, 4  ;;  %v3244_v49 = vpop.permute.xlu1 %3243  ;;  %v3297_v58 = vand.u32 4294901760, %v3274_v39  ;;  %v3299_v57 = vand.u32 4294901760, %v3273_v42 }
 0x744   : > { %v3245_v27 = vsel %vm363_vm6, %v3242_v12, %v3244_v49  ;;  %v3246_v55 = vsel %vm363_vm6, %v3244_v49, %v3242_v12 }
 0x745   : > { %3227 = vst [vmem:[#allocation2 + $0x20] sm:$0xf0] %v3223_v37  ;;  %3228 = vst [vmem:[#allocation2 + $0x28] sm:$0xf0] %v3224_v46  ;;  %v3249_v51 = vmul.f32 %v8102_v28, %v3245_v27  ;;  %v3250_v26 = vmul.f32 %v8103_v31, %v3246_v55  ;;  %v10091_v6 = vsub.f32 %v3274_v39, %v3297_v58 }
 0x746   : > { %v3230_v47 = vpop.permute.xlu0 %3229  ;;  %v3276_v24 = vld [vmem:[#allocation2 + $0x18] sm:$0xff]  ;;  %v3275_v59 = vld [vmem:[#allocation2 + $0x10] sm:$0xff]  ;;  %v10096_v34 = vsub.f32 %v3273_v42, %v3299_v57  ;;  %v3375_v31 = vsub.f32 %v10085_v30, %v3374_v19 }
 0x747   : > { %v3253_v9 = vrot.slane %v3249_v51, 4  ;;  %v3254_v15 = vrot.slane %v3250_v26, 4  ;;  %v3232_v25 = vpop.permute.xlu1 %3231  ;;  %v3301_v50 = vand.u32 4294901760, %v3276_v24  ;;  %v3303_v61 = vand.u32 4294901760, %v3275_v59 }
 0x748   : > { %v3233_v48 = vsel %vm349_vm7, %v3230_v47, %v3232_v25  ;;  %v3234_v41 = vsel %vm349_vm7, %v3232_v25, %v3230_v47  ;;  %v3385_v20 = vand.u32 4294901760, %v10091_v6  ;;  %v3391_v45 = vand.u32 4294901760, %v10096_v34 }
 0x749   : > { %3257 = vst [vmem:[#allocation2 + $0x30] sm:$0xf0] %v3253_v9  ;;  %3258 = vst [vmem:[#allocation2 + $0x38] sm:$0xf0] %v3254_v15  ;;  %v3237_v54 = vmul.f32 %v8100_v23, %v3233_v48  ;;  %v3238_v0 = vmul.f32 %v8101_v56, %v3234_v41  ;;  %v10071_v7 = vpack.c.bf16 %v3301_v50, %v3297_v58 }
 0x74a   : > { %v3260_v14 = vpop.permute.xlu0 %3259  ;;  %v10079_v53 = vsub.f32 %v3276_v24, %v3301_v50  ;;  %v10081_v18 = vpack.c.bf16 %v3303_v61, %v3299_v57  ;;  %v10094_v62 = vsub.f32 %v3275_v59, %v3303_v61  ;;  %v3386_v28 = vsub.f32 %v10091_v6, %v3385_v20 }
 0x74b   : > { %3239 = vst [vmem:[#allocation2 + $0x30] sm:$0xf] %v3237_v54  ;;  %3240 = vst [vmem:[#allocation2 + $0x38] sm:$0xf] %v3238_v0  ;;  %v3262_v22 = vpop.permute.xlu1 %3261  ;;  %8396 = vmatprep.subr.bf16.mxu0 %v10071_v7  ;;  %v3392_v26 = vsub.f32 %v10096_v34, %v3391_v45  ;;  %v3376_v50 = vand.u32 4294901760, %v3375_v31 }
 0x74c   : > { %v3263_v33 = vsel %vm383_vm8, %v3260_v14, %v3262_v22  ;;  %v3264_v35 = vsel %vm383_vm8, %v3262_v22, %v3260_v14  ;;  %8398 = vmatpush1.bf16.msra.mxu0 %v10081_v18  ;;  %v3278_v1 = vld [vmem:[#allocation2 + $0x28] sm:$0xff]  ;;  %v3277_v5 = vld [vmem:[#allocation2 + $0x20] sm:$0xff]  ;;  %v3397_v44 = vand.u32 4294901760, %v10079_v53  ;;  %v3403_v29 = vand.u32 4294901760, %v10094_v62 }
 0x74d   : > { %v3267_v10 = vmul.f32 %v8104_v16, %v3263_v33  ;;  %v3268_v11 = vmul.f32 %v8105_v17, %v3264_v35  ;;  %v3305_v21 = vand.u32 4294901760, %v3278_v1  ;;  %v3307_v43 = vand.u32 4294901760, %v3277_v5 }
 0x74e   : > { %v3398_v40 = vsub.f32 %v10079_v53, %v3397_v44  ;;  %v3404_v37 = vsub.f32 %v10094_v62, %v3403_v29  ;;  %v3387_v25 = vand.u32 4294901760, %v3386_v28  ;;  %v3393_v57 = vand.u32 4294901760, %v3392_v26 }
 0x74f   : > { %3269 = vst [vmem:[#allocation2 + $0x40] sm:$0xf] %v3267_v10  ;;  %3270 = vst [vmem:[#allocation2 + $0x48] sm:$0xf] %v3268_v11  ;;  %v10099_v52 = vsub.f32 %v3278_v1, %v3305_v21  ;;  %v10104_v38 = vsub.f32 %v3277_v5, %v3307_v43  ;;  %v8427_v31 = vpack.c.bf16 %v3397_v44, %v3385_v20 }
 0x750   : > { %v3399_v51 = vand.u32 4294901760, %v3398_v40  ;;  %v3405_v15 = vand.u32 4294901760, %v3404_v37  ;;  %v8411_v40 = vpack.c.bf16 %v10079_v53, %v10091_v6  ;;  %v8429_v37 = vpack.c.bf16 %v3403_v29, %v3391_v45  ;;  %v8108_v29 = vld [vmem:[%s12011_s5 + $0x20] sm:$0xf] }
 0x751   : > { %v3409_v63 = vand.u32 4294901760, %v10099_v52  ;;  %v3415_v42 = vand.u32 4294901760, %v10104_v38 }
 0x752   : > { %v3280_v32 = vld [vmem:[#allocation2 + $0x38] sm:$0xff]  ;;  %v3279_v36 = vld [vmem:[#allocation2 + $0x30] sm:$0xff]  ;;  %v8403_v14 = vpack.c.bf16 %v3399_v51, %v3387_v25  ;;  %v8405_v22 = vpack.c.bf16 %v3405_v15, %v3393_v57  ;;  %v8113_v51 = vld [vmem:[%s12011_s5 + $0x68] sm:$0xf] }
 0x753   : > { %v3309_v8 = vand.u32 4294901760, %v3280_v32  ;;  %v3311_v12 = vand.u32 4294901760, %v3279_v36  ;;  %v3410_v23 = vsub.f32 %v10099_v52, %v3409_v63  ;;  %v3416_v54 = vsub.f32 %v10104_v38, %v3415_v42  ;;  %v3883_v15 = vld [vmem:[%s12011_s5 + $0x8] sm:$0xf] }
 0x755   : > { %v10120_v46 = vpack.c.bf16 %v3309_v8, %v3305_v21  ;;  %v10122_v49 = vsub.f32 %v3280_v32, %v3309_v8  ;;  %v10124_v39 = vpack.c.bf16 %v3311_v12, %v3307_v43  ;;  %v10126_v13 = vsub.f32 %v3279_v36, %v3311_v12 }
 0x756   : > { %v3282_v27 = vld [vmem:[#allocation2 + $0x48] sm:$0xf]  ;;  %v3281_v55 = vld [vmem:[#allocation2 + $0x40] sm:$0xf]  ;;  %v3411_v16 = vand.u32 4294901760, %v3410_v23  ;;  %v3417_v10 = vand.u32 4294901760, %v3416_v54  ;;  %v8413_v8 = vpack.c.bf16 %v10094_v62, %v10096_v34 }
 0x757   : > { %8400 = vmatprep.subr.bf16.mxu0 %v10120_v46  ;;  %v3295_v47 = vsel %vm412_vm9, %v3282_v27, 0  ;;  %v3292_v56 = vsel %vm412_vm9, %v3281_v55, 0  ;;  %v3421_v24 = vand.u32 4294901760, %v10122_v49  ;;  %v3427_v58 = vand.u32 4294901760, %v10126_v13  ;;  %v8112_v55 = vld [vmem:[%s12011_s5 + $0x60] sm:$0xf] }
 0x758   : > { %8402 = vmatpush1.bf16.msra.mxu0 %v10124_v39  ;;  %v10141_v59 = vand.u32 4294901760, %v3295_v47  ;;  %v10143_v9 = vand.u32 4294901760, %v3292_v56  ;;  %v8415_v12 = vpack.c.bf16 %v10122_v49, %v10099_v52  ;;  %v8417_v28 = vpack.c.bf16 %v10126_v13, %v10104_v38  ;;  %v8109_v38 = vld [vmem:[%s12011_s5 + $0x28] sm:$0xf] }
 0x759   : > { %v3422_v61 = vsub.f32 %v10122_v49, %v3421_v24  ;;  %v3428_v48 = vsub.f32 %v10126_v13, %v3427_v58  ;;  %v8431_v49 = vpack.c.bf16 %v3421_v24, %v3409_v63  ;;  %v8433_v53 = vpack.c.bf16 %v3427_v58, %v3415_v42 }
 0x75a   : > { %3314 = vmatprep.subr.mxu0 %v10141_v59  ;;  %v3438_v41 = vsub.f32 %v3292_v56, %v10143_v9  ;;  %v3432_v0 = vsub.f32 %v3295_v47, %v10141_v59 }
 0x75b   : > { %v3423_v17 = vand.u32 4294901760, %v3422_v61  ;;  %v3429_v33 = vand.u32 4294901760, %v3428_v48 }
 0x75c   : > { %3316 = vmatpush1.msra.mxu0 %v10143_v9  ;;  %v3433_v35 = vand.u32 4294901760, %v3432_v0  ;;  %v3439_v1 = vand.u32 4294901760, %v3438_v41 }
 0x75d   : > { %8404 = vmatprep.subr.bf16.mxu0 %v8403_v14  ;;  %3377 = vmatmul.mubr.f32.vlgmr.msra.gmra.mrb[6].mxu0 %v3376_v50  ;;  %v8407_v5 = vpack.c.bf16 %v3423_v17, %v3411_v16  ;;  %v8409_v21 = vpack.c.bf16 %v3429_v33, %v3417_v10  ;;  %v8110_v14 = vld [vmem:[%s12011_s5 + $0x40] sm:$0xf]  ;;  %v8111_v16 = vld [vmem:[%s12011_s5 + $0x48] sm:$0xf] }
 0x75e   : > { %8406 = vmatpush1.bf16.msra.mxu0 %v8405_v22  ;;  %v3434_v11 = vsub.f32 %v3432_v0, %v3433_v35  ;;  %3497 = vmatprep.mubr.f32.mxu0 %v9015_v2  ;;  %v3440_v32 = vsub.f32 %v3438_v41, %v3439_v1  ;;  %v8114_v10 = vld [vmem:[%s12011_s5 + $0xa0] sm:$0xf] }
 0x75f   : > { %8408 = vmatprep.subr.bf16.mxu0 %v8407_v5 }
 0x760   : > { %v3435_v43 = vand.u32 4294901760, %v3434_v11  ;;  %v3441_v36 = vand.u32 4294901760, %v3440_v32  ;;  %v8115_v11 = vld [vmem:[%s12011_s5 + $0xa8] sm:$0xf] }
 0x762   : > { %8410 = vmatpush1.bf16.msra.mxu0 %v8409_v21 }
 0x763   : > { %3436 = vmatprep.subr.mxu0 %v3435_v43 }
 0x766   : > { %3442 = vmatpush1.msra.mxu0 %v3441_v36  ;;  %v8122_v36 = vld [vmem:[%s12007_s1 + $0x14] sm:$0xf] }
 0x767   : > { %8412 = vmatprep.subr.bf16.mxu0 %v8411_v40  ;;  %3499 = vmatmul.mubr.f32.vlgmr.msra.gmra.mrb[6].mxu0 %v10065_v60 }
 0x768   : > { %8414 = vmatpush1.bf16.msra.mxu0 %v8413_v8  ;;  %3589 = vmatprep.mubr.f32.mxu0 %v9015_v2 }
 0x769   : > { %8416 = vmatprep.subr.bf16.mxu0 %v8415_v12 }
 0x76c   : > { %8418 = vmatpush1.bf16.msra.mxu0 %v8417_v28  ;;  %v8118_v28 = vld [vmem:[%s12011_s5 + $0xe0] sm:$0xf] }
 0x76d   : > { %3531 = vmatprep.subr.mxu0 %v3432_v0 }
 0x770   : > { %3534 = vmatpush1.msra.mxu0 %v3438_v41 }
 0x771   : > { %8420 = vmatprep.subr.bf16.mxu0 %v10071_v7  ;;  %3592 = vmatmul.mubr.f32.vlgmr.msra.gmra.mrb[6].mxu0 %v10085_v30 }
 0x772   : > { %8422 = vmatpush1.bf16.msra.mxu0 %v10081_v18  ;;  %3672 = vmatprep.mubr.f32.mxu0 %v9015_v2 }
 0x773   : > { %8424 = vmatprep.subr.bf16.mxu0 %v10120_v46 }
 0x776   : > { %8426 = vmatpush1.bf16.msra.mxu0 %v10124_v39 }
 0x777   : > { %3615 = vmatprep.subr.mxu0 %v10141_v59 }
 0x77a   : > { %3617 = vmatpush1.msra.mxu0 %v10143_v9 }
 0x77b   : > { %8428 = vmatprep.subr.bf16.mxu0 %v8427_v31  ;;  %3676 = vmatmul.mubr.f32.vlgmr.msra.gmra.mrb[6].mxu0 %v3374_v19  ;;  %v8119_v31 = vld [vmem:[%s12011_s5 + $0xe8] sm:$0xf] }
 0x77c   : > { %8430 = vmatpush1.bf16.msra.mxu0 %v8429_v37  ;;  %3776 = vmatprep.mubr.f32.mxu0 %v9015_v2 }
 0x77d   : > { %8432 = vmatprep.subr.bf16.mxu0 %v8431_v49 }
 0x780   : > { %8434 = vmatpush1.bf16.msra.mxu0 %v8433_v53 }
 0x781   : > { %3717 = vmatprep.subr.mxu0 %v3433_v35 }
 0x784   : > { %3721 = vmatpush1.msra.mxu0 %v3439_v1 }
 0x785   : > { %8436 = vmatprep.subr.bf16.mxu0 %v10071_v7  ;;  %3778 = vmatmul.mubr.f32.vlgmr.msra.gmra.mrb[6].mxu0 %v10065_v60  ;;  %v8107_v7 = vld [vmem:[%s12008_s2 + $0x20] sm:$0xff] }
 0x786   : > { %8438 = vmatpush1.bf16.msra.mxu0 %v10081_v18  ;;  %3858 = vmatprep.mubr.f32.mxu0 %v9015_v2  ;;  %v3286_v30 = vcombine.high %v8107_v7, %v8107_v7 }
 0x787   : > { %8440 = vmatprep.subr.bf16.mxu0 %v10120_v46 }
 0x78a   : > { %8442 = vmatpush1.bf16.msra.mxu0 %v10124_v39 }
 0x78b   : > { %3801 = vmatprep.subr.mxu0 %v10141_v59 }
 0x78e   : > { %3803 = vmatpush1.msra.mxu0 %v10143_v9  ;;  %v3882_v9 = vld [vmem:[%s12011_s5] sm:$0xf] }
 0x78f   : > { %3860 = vmatmul.mubr.f32.vlgmr.msra.gmra.mrb[6].mxu0 %v10065_v60 }
 0x790   : > { %4817 = vmatprep.mubr.f32.mxu0 %v9015_v2 }
 0x862   : > { %v3861_v18 = vpop.f32.mrb[6].mxu0 }
 0x863   : > { %v8861_v6 = vadd.f32 %v8107_v7, %v3861_v18  ;;  %v3863_v62 = vpop.f32.mrb[7].mxu0 }
 0x864   : > { %v8862_v34 = vadd.f32 %v3863_v62, %v3286_v30  ;;  %v4016_v30 = vsel %vm408_vm5, %v8122_v36, 0 }
 0x865   : > { %v3866_v44 = vmax.f32 %v8861_v6, 0.0 }
 0x866   : > { %v3867_v52 = vmax.f32 %v8862_v34, 0.0 }
 0x867   : > { %v3870_v20 = vrot.slane %v3866_v44, 4  ;;  %3936 = vst [vmem:[#allocation2 + $0x20] sm:$0xf] %v3866_v44  ;;  %3888 = vrot.lane.b32.xlu0 %v3866_v44, %s9008_s28 }
 0x868   : > { %v3871_v19 = vrot.slane %v3867_v52, 4  ;;  %3937 = vst [vmem:[#allocation2 + $0x28] sm:$0xf] %v3867_v52  ;;  %3890 = vrot.lane.b32.xlu1 %v3867_v52, %s9008_s28 }
 0x869   : > { %3874 = vst [vmem:[#allocation4] sm:$0xf0] %v3870_v20 }
 0x86a   : > { %3875 = vst [vmem:[#allocation4 + $0x8] sm:$0xf0] %v3871_v19  ;;  %v8117_v19 = vld [vmem:[%s12011_s5 + $0xc8] sm:$0xf] }
 0x86b   : > { %3918 = vrot.lane.b32.xlu0 %v3866_v44, %s9007_s27 }
 0x86c   : > { %3920 = vrot.lane.b32.xlu1 %v3867_v52, %s9007_s27 }
 0x86f   : > { %3876 = vrot.lane.b32.xlu0 %v3866_v44, %s9009_s29 }
 0x870   : > { %3878 = vrot.lane.b32.xlu1 %v3867_v52, %s9009_s29 }
 0x873   : > { %3906 = vrot.lane.b32.xlu0 %v3866_v44, %s9010_s30 }
 0x874   : > { %3908 = vrot.lane.b32.xlu1 %v3867_v52, %s9010_s30 }
 0x877   : > { %3938 = vrot.lane.b32.xlu0 %v3866_v44, %s9011_s7 }
 0x878   : > { %3940 = vrot.lane.b32.xlu1 %v3867_v52, %s9011_s7 }
 0x87b   : > { %3968 = vrot.lane.b32.xlu0 %v3866_v44, %s9012_s8 }
 0x87c   : > { %3970 = vrot.lane.b32.xlu1 %v3867_v52, %s9012_s8 }
 0x87f   : > { %3956 = vrot.lane.b32.xlu0 %v3866_v44, %s9013_s9 }
 0x880   : > { %3958 = vrot.lane.b32.xlu1 %v3867_v52, %s9013_s9 }
 0x883   : > { %3986 = vrot.lane.b32.xlu0 %v3866_v44, %s9014_s10  ;;  %v8116_v44 = vld [vmem:[%s12011_s5 + $0xc0] sm:$0xf] }
 0x884   : > { %3988 = vrot.lane.b32.xlu1 %v3867_v52, %s9014_s10 }
 0x8d9   : > { %v3889_v60 = vpop.permute.xlu0 %3888 }
 0x8da   : > { %v3891_v45 = vpop.permute.xlu1 %3890 }
 0x8db   : > { %v3892_v63 = vsel %vm273_vm2, %v3889_v60, %v3891_v45  ;;  %v3893_v46 = vsel %vm273_vm2, %v3891_v45, %v3889_v60  ;;  %v10291_v45 = vand.u32 4294901760, %v4016_v30 }
 0x8dc   : > { %v3896_v39 = vmul.f32 %v8108_v29, %v3893_v46  ;;  %v3897_v13 = vmul.f32 %v8109_v38, %v3892_v63 }
 0x8dd   : > { %v3919_v27 = vpop.permute.xlu0 %3918 }
 0x8de   : > { %v3900_v26 = vrot.slane %v3896_v39, 4  ;;  %v3901_v23 = vrot.slane %v3897_v13, 4  ;;  %v3921_v42 = vpop.permute.xlu1 %3920 }
 0x8df   : > { %v3922_v47 = vsel %vm307_vm0, %v3919_v27, %v3921_v42  ;;  %v3923_v56 = vsel %vm307_vm0, %v3921_v42, %v3919_v27 }
 0x8e0   : > { %3904 = vst [vmem:[#allocation2] sm:$0xf0] %v3900_v26  ;;  %3905 = vst [vmem:[#allocation2 + $0x8] sm:$0xf0] %v3901_v23  ;;  %v3926_v24 = vmul.f32 %v8112_v55, %v3923_v56  ;;  %v3927_v58 = vmul.f32 %v8113_v51, %v3922_v47 }
 0x8e1   : > { %v3877_v59 = vpop.permute.xlu0 %3876 }
 0x8e2   : > { %v3930_v25 = vrot.slane %v3926_v24, 4  ;;  %v3931_v50 = vrot.slane %v3927_v58, 4  ;;  %v3879_v61 = vpop.permute.xlu1 %3878  ;;  %v8120_v24 = vld [vmem:[%s12011_s5 + $0x100] sm:$0xf]  ;;  %v8121_v58 = vld [vmem:[%s12011_s5 + $0x108] sm:$0xf] }
 0x8e3   : > { %v3880_v48 = vsel %vm260_vm1, %v3877_v59, %v3879_v61  ;;  %v3881_v41 = vsel %vm260_vm1, %v3879_v61, %v3877_v59 }
 0x8e4   : > { %3934 = vst [vmem:[#allocation2 + $0x10] sm:$0xf0] %v3930_v25  ;;  %3935 = vst [vmem:[#allocation2 + $0x18] sm:$0xf0] %v3931_v50  ;;  %v3884_v57 = vmul.f32 %v3882_v9, %v3881_v41  ;;  %v3885_v54 = vmul.f32 %v3883_v15, %v3880_v48  ;;  %v10311_v25 = vsub.f32 %v4016_v30, %v10291_v45 }
 0x8e5   : > { %v3907_v0 = vpop.permute.xlu0 %3906 }
 0x8e6   : > { %3886 = vst [vmem:[#allocation2] sm:$0xf] %v3884_v57  ;;  %3887 = vst [vmem:[#allocation2 + $0x8] sm:$0xf] %v3885_v54  ;;  %v3909_v17 = vpop.permute.xlu1 %3908 }
 0x8e7   : > { %v3910_v22 = vsel %vm293_vm3, %v3907_v0, %v3909_v17  ;;  %v3911_v33 = vsel %vm293_vm3, %v3909_v17, %v3907_v0 }
 0x8e8   : > { %v3914_v35 = vmul.f32 %v8110_v14, %v3911_v33  ;;  %v3915_v1 = vmul.f32 %v8111_v16, %v3910_v22 }
 0x8e9   : > { %v3939_v5 = vpop.permute.xlu0 %3938 }
 0x8ea   : > { %3916 = vst [vmem:[#allocation2 + $0x10] sm:$0xf] %v3914_v35  ;;  %3917 = vst [vmem:[#allocation2 + $0x18] sm:$0xf] %v3915_v1  ;;  %v3941_v21 = vpop.permute.xlu1 %3940 }
 0x8eb   : > { %v3942_v43 = vsel %vm329_vm4, %v3939_v5, %v3941_v21  ;;  %v3943_v32 = vsel %vm329_vm4, %v3941_v21, %v3939_v5  ;;  %v4101_v5 = vand.u32 4294901760, %v10311_v25 }
 0x8ec   : > { %v3946_v40 = vmul.f32 %v8114_v10, %v3942_v43  ;;  %v3947_v8 = vmul.f32 %v8115_v11, %v3943_v32 }
 0x8ed   : > { %v3969_v12 = vpop.permute.xlu0 %3968  ;;  %v4001_v7 = vld [vmem:[#allocation2 + $0x8] sm:$0xff]  ;;  %v4000_v52 = vld [vmem:[#allocation2] sm:$0xff] }
 0x8ee   : > { %v3950_v37 = vrot.slane %v3946_v40, 4  ;;  %v3951_v49 = vrot.slane %v3947_v8, 4  ;;  %v3971_v53 = vpop.permute.xlu1 %3970  ;;  %v4024_v29 = vand.u32 4294901760, %v4001_v7  ;;  %v4026_v26 = vand.u32 4294901760, %v4000_v52 }
 0x8ef   : > { %v3972_v18 = vsel %vm363_vm6, %v3969_v12, %v3971_v53  ;;  %v3973_v6 = vsel %vm363_vm6, %v3971_v53, %v3969_v12 }
 0x8f0   : > { %3954 = vst [vmem:[#allocation2 + $0x20] sm:$0xf0] %v3950_v37  ;;  %3955 = vst [vmem:[#allocation2 + $0x28] sm:$0xf0] %v3951_v49  ;;  %v3976_v62 = vmul.f32 %v8118_v28, %v3972_v18  ;;  %v3977_v34 = vmul.f32 %v8119_v31, %v3973_v6  ;;  %v10317_v48 = vsub.f32 %v4001_v7, %v4024_v29 }
 0x8f1   : > { %v3957_v20 = vpop.permute.xlu0 %3956  ;;  %v4003_v60 = vld [vmem:[#allocation2 + $0x18] sm:$0xff]  ;;  %v4002_v38 = vld [vmem:[#allocation2 + $0x10] sm:$0xff]  ;;  %v10322_v17 = vsub.f32 %v4000_v52, %v4026_v26  ;;  %v4102_v31 = vsub.f32 %v10311_v25, %v4101_v5 }
 0x8f2   : > { %v3980_v63 = vrot.slane %v3976_v62, 4  ;;  %v3981_v46 = vrot.slane %v3977_v34, 4  ;;  %v3959_v39 = vpop.permute.xlu1 %3958  ;;  %v4028_v13 = vand.u32 4294901760, %v4003_v60  ;;  %v4030_v27 = vand.u32 4294901760, %v4002_v38 }
 0x8f3   : > { %v3960_v55 = vsel %vm349_vm7, %v3957_v20, %v3959_v39  ;;  %v3961_v51 = vsel %vm349_vm7, %v3959_v39, %v3957_v20  ;;  %v4112_v1 = vand.u32 4294901760, %v10317_v48  ;;  %v4118_v36 = vand.u32 4294901760, %v10322_v17 }
 0x8f4   : > { %3984 = vst [vmem:[#allocation2 + $0x30] sm:$0xf0] %v3980_v63  ;;  %3985 = vst [vmem:[#allocation2 + $0x38] sm:$0xf0] %v3981_v46  ;;  %v3964_v23 = vmul.f32 %v8116_v44, %v3960_v55  ;;  %v3965_v42 = vmul.f32 %v8117_v19, %v3961_v51  ;;  %v10297_v47 = vpack.c.bf16 %v4028_v13, %v4024_v29 }
 0x8f5   : > { %v3987_v56 = vpop.permute.xlu0 %3986  ;;  %v10305_v59 = vsub.f32 %v4003_v60, %v4028_v13  ;;  %v10307_v9 = vpack.c.bf16 %v4030_v27, %v4026_v26  ;;  %v10320_v41 = vsub.f32 %v4002_v38, %v4030_v27  ;;  %v4113_v28 = vsub.f32 %v10317_v48, %v4112_v1 }
 0x8f6   : > { %3966 = vst [vmem:[#allocation2 + $0x30] sm:$0xf] %v3964_v23  ;;  %3967 = vst [vmem:[#allocation2 + $0x38] sm:$0xf] %v3965_v42  ;;  %v3989_v15 = vpop.permute.xlu1 %3988  ;;  %8444 = vmatprep.subr.bf16.mxu1 %v10297_v47  ;;  %v4119_v34 = vsub.f32 %v10322_v17, %v4118_v36  ;;  %v4103_v13 = vand.u32 4294901760, %v4102_v31 }
 0x8f7   : > { %v3990_v50 = vsel %vm383_vm8, %v3987_v56, %v3989_v15  ;;  %v3991_v61 = vsel %vm383_vm8, %v3989_v15, %v3987_v56  ;;  %8446 = vmatpush1.bf16.msra.mxu1 %v10307_v9  ;;  %v4005_v57 = vld [vmem:[#allocation2 + $0x28] sm:$0xff]  ;;  %v4004_v54 = vld [vmem:[#allocation2 + $0x20] sm:$0xff]  ;;  %v4124_v33 = vand.u32 4294901760, %v10305_v59  ;;  %v4130_v10 = vand.u32 4294901760, %v10320_v41 }
 0x8f8   : > { %v3994_v0 = vmul.f32 %v8120_v24, %v3990_v50  ;;  %v3995_v14 = vmul.f32 %v8121_v58, %v3991_v61  ;;  %v4032_v16 = vand.u32 4294901760, %v4005_v57  ;;  %v4034_v22 = vand.u32 4294901760, %v4004_v54 }
 0x8f9   : > { %v4125_v32 = vsub.f32 %v10305_v59, %v4124_v33  ;;  %v4131_v37 = vsub.f32 %v10320_v41, %v4130_v10  ;;  %v4114_v39 = vand.u32 4294901760, %v4113_v28  ;;  %v4120_v26 = vand.u32 4294901760, %v4119_v34 }
 0x8fa   : > { %3996 = vst [vmem:[#allocation2 + $0x40] sm:$0xf] %v3994_v0  ;;  %3997 = vst [vmem:[#allocation2 + $0x48] sm:$0xf] %v3995_v14  ;;  %v10325_v35 = vsub.f32 %v4005_v57, %v4032_v16  ;;  %v10330_v43 = vsub.f32 %v4004_v54, %v4034_v22  ;;  %v8475_v31 = vpack.c.bf16 %v4124_v33, %v4112_v1  ;;  %v8124_v1 = vld [vmem:[%s12011_s5 + $0x20] sm:$0xf] }
 0x8fb   : > { %v4126_v62 = vand.u32 4294901760, %v4125_v32  ;;  %v4132_v46 = vand.u32 4294901760, %v4131_v37  ;;  %v8459_v32 = vpack.c.bf16 %v10305_v59, %v10317_v48  ;;  %v8477_v37 = vpack.c.bf16 %v4130_v10, %v4118_v36 }
 0x8fc   : > { %v4136_v40 = vand.u32 4294901760, %v10325_v35  ;;  %v4142_v52 = vand.u32 4294901760, %v10330_v43 }
 0x8fd   : > { %v4007_v11 = vld [vmem:[#allocation2 + $0x38] sm:$0xff]  ;;  %v4006_v21 = vld [vmem:[#allocation2 + $0x30] sm:$0xff]  ;;  %v8451_v56 = vpack.c.bf16 %v4126_v62, %v4114_v39  ;;  %v8453_v15 = vpack.c.bf16 %v4132_v46, %v4120_v26 }
 0x8fe   : > { %v4036_v8 = vand.u32 4294901760, %v4007_v11  ;;  %v4038_v12 = vand.u32 4294901760, %v4006_v21  ;;  %v4137_v44 = vsub.f32 %v10325_v35, %v4136_v40  ;;  %v4143_v23 = vsub.f32 %v10330_v43, %v4142_v52 }
 0x900   : > { %v10346_v49 = vpack.c.bf16 %v4036_v8, %v4032_v16  ;;  %v10348_v53 = vsub.f32 %v4007_v11, %v4036_v8  ;;  %v10350_v7 = vpack.c.bf16 %v4038_v12, %v4034_v22  ;;  %v10352_v30 = vsub.f32 %v4006_v21, %v4038_v12 }
 0x901   : > { %v4009_v18 = vld [vmem:[#allocation2 + $0x48] sm:$0xf]  ;;  %v4008_v6 = vld [vmem:[#allocation2 + $0x40] sm:$0xf]  ;;  %v4138_v24 = vand.u32 4294901760, %v4137_v44  ;;  %v4144_v0 = vand.u32 4294901760, %v4143_v23  ;;  %v8461_v8 = vpack.c.bf16 %v10320_v41, %v10322_v17 }
 0x902   : > { %8448 = vmatprep.subr.bf16.mxu1 %v10346_v49  ;;  %v4022_v20 = vsel %vm412_vm9, %v4009_v18, 0  ;;  %v4019_v19 = vsel %vm412_vm9, %v4008_v6, 0  ;;  %v4148_v60 = vand.u32 4294901760, %v10348_v53  ;;  %v4154_v29 = vand.u32 4294901760, %v10352_v30  ;;  %v8129_v18 = vld [vmem:[%s12011_s5 + $0x68] sm:$0xf] }
 0x903   : > { %8450 = vmatpush1.bf16.msra.mxu1 %v10350_v7  ;;  %v10367_v38 = vand.u32 4294901760, %v4022_v20  ;;  %v10369_v63 = vand.u32 4294901760, %v4019_v19  ;;  %v8463_v12 = vpack.c.bf16 %v10348_v53, %v10325_v35  ;;  %v8465_v28 = vpack.c.bf16 %v10352_v30, %v10330_v43  ;;  %v8126_v23 = vld [vmem:[%s12011_s5 + $0x40] sm:$0xf] }
 0x904   : > { %v4149_v27 = vsub.f32 %v10348_v53, %v4148_v60  ;;  %v4155_v55 = vsub.f32 %v10352_v30, %v4154_v29  ;;  %v8479_v53 = vpack.c.bf16 %v4148_v60, %v4136_v40  ;;  %v8481_v59 = vpack.c.bf16 %v4154_v29, %v4142_v52  ;;  %v8128_v30 = vld [vmem:[%s12011_s5 + $0x60] sm:$0xf] }
 0x905   : > { %4041 = vmatprep.subr.mxu1 %v10367_v38  ;;  %v4165_v51 = vsub.f32 %v4019_v19, %v10369_v63  ;;  %v4159_v42 = vsub.f32 %v4022_v20, %v10367_v38  ;;  %v4601_v29 = vld [vmem:[%s12011_s5] sm:$0xf] }
 0x906   : > { %v4150_v58 = vand.u32 4294901760, %v4149_v27  ;;  %v4156_v50 = vand.u32 4294901760, %v4155_v55 }
 0x907   : > { %4043 = vmatpush1.msra.mxu1 %v10369_v63  ;;  %v4160_v61 = vand.u32 4294901760, %v4159_v42  ;;  %v4166_v57 = vand.u32 4294901760, %v4165_v51 }
 0x908   : > { %8452 = vmatprep.subr.bf16.mxu1 %v8451_v56  ;;  %4104 = vmatmul.mubr.f32.vlgmr.msra.gmra.mrb[4].mxu1 %v4103_v13  ;;  %v8455_v54 = vpack.c.bf16 %v4150_v58, %v4138_v24  ;;  %v8457_v16 = vpack.c.bf16 %v4156_v50, %v4144_v0 }
 0x909   : > { %8454 = vmatpush1.bf16.msra.mxu1 %v8453_v15  ;;  %v4161_v14 = vsub.f32 %v4159_v42, %v4160_v61  ;;  %4224 = vmatprep.mubr.f32.mxu1 %v9015_v2  ;;  %v4167_v11 = vsub.f32 %v4165_v51, %v4166_v57 }
 0x90a   : > { %8456 = vmatprep.subr.bf16.mxu1 %v8455_v54  ;;  %v8131_v54 = vld [vmem:[%s12011_s5 + $0xa8] sm:$0xf] }
 0x90b   : > { %v4162_v22 = vand.u32 4294901760, %v4161_v14  ;;  %v4168_v21 = vand.u32 4294901760, %v4167_v11 }
 0x90d   : > { %8458 = vmatpush1.bf16.msra.mxu1 %v8457_v16 }
 0x90e   : > { %4163 = vmatprep.subr.mxu1 %v4162_v22  ;;  %v8138_v22 = vld [vmem:[%s12007_s1 + $0x18] sm:$0xf] }
 0x911   : > { %4169 = vmatpush1.msra.mxu1 %v4168_v21 }
 0x912   : > { %8460 = vmatprep.subr.bf16.mxu1 %v8459_v32  ;;  %4226 = vmatmul.mubr.f32.vlgmr.msra.gmra.mrb[4].mxu1 %v10291_v45 }
 0x913   : > { %8462 = vmatpush1.bf16.msra.mxu1 %v8461_v8  ;;  %4316 = vmatprep.mubr.f32.mxu1 %v9015_v2  ;;  %v8134_v8 = vld [vmem:[%s12011_s5 + $0xe0] sm:$0xf] }
 0x914   : > { %8464 = vmatprep.subr.bf16.mxu1 %v8463_v12  ;;  %v8135_v12 = vld [vmem:[%s12011_s5 + $0xe8] sm:$0xf] }
 0x917   : > { %8466 = vmatpush1.bf16.msra.mxu1 %v8465_v28 }
 0x918   : > { %4258 = vmatprep.subr.mxu1 %v4159_v42  ;;  %v8127_v42 = vld [vmem:[%s12011_s5 + $0x48] sm:$0xf] }
 0x91b   : > { %4261 = vmatpush1.msra.mxu1 %v4165_v51 }
 0x91c   : > { %8468 = vmatprep.subr.bf16.mxu1 %v10297_v47  ;;  %4319 = vmatmul.mubr.f32.vlgmr.msra.gmra.mrb[4].mxu1 %v10311_v25 }
 0x91d   : > { %8470 = vmatpush1.bf16.msra.mxu1 %v10307_v9  ;;  %4399 = vmatprep.mubr.f32.mxu1 %v9015_v2 }
 0x91e   : > { %8472 = vmatprep.subr.bf16.mxu1 %v10346_v49 }
 0x921   : > { %8474 = vmatpush1.bf16.msra.mxu1 %v10350_v7 }
 0x922   : > { %4342 = vmatprep.subr.mxu1 %v10367_v38 }
 0x925   : > { %4344 = vmatpush1.msra.mxu1 %v10369_v63 }
 0x926   : > { %8476 = vmatprep.subr.bf16.mxu1 %v8475_v31  ;;  %4403 = vmatmul.mubr.f32.vlgmr.msra.gmra.mrb[4].mxu1 %v4101_v5  ;;  %v8125_v5 = vld [vmem:[%s12011_s5 + $0x28] sm:$0xf] }
 0x927   : > { %8478 = vmatpush1.bf16.msra.mxu1 %v8477_v37  ;;  %4503 = vmatprep.mubr.f32.mxu1 %v9015_v2 }
 0x928   : > { %8480 = vmatprep.subr.bf16.mxu1 %v8479_v53 }
 0x92b   : > { %8482 = vmatpush1.bf16.msra.mxu1 %v8481_v59  ;;  %v4735_v59 = vsel %vm408_vm5, %v8138_v22, 0 }
 0x92c   : > { %4444 = vmatprep.subr.mxu1 %v4160_v61 }
 0x92f   : > { %4448 = vmatpush1.msra.mxu1 %v4166_v57  ;;  %v8130_v57 = vld [vmem:[%s12011_s5 + $0xa0] sm:$0xf] }
 0x930   : > { %8484 = vmatprep.subr.bf16.mxu1 %v10297_v47  ;;  %4505 = vmatmul.mubr.f32.vlgmr.msra.gmra.mrb[4].mxu1 %v10291_v45  ;;  %v8123_v47 = vld [vmem:[%s12008_s2 + $0x28] sm:$0xff] }
 0x931   : > { %8486 = vmatpush1.bf16.msra.mxu1 %v10307_v9  ;;  %4585 = vmatprep.mubr.f32.mxu1 %v9015_v2  ;;  %v4013_v25 = vcombine.high %v8123_v47, %v8123_v47 }
 0x932   : > { %8488 = vmatprep.subr.bf16.mxu1 %v10346_v49 }
 0x935   : > { %8490 = vmatpush1.bf16.msra.mxu1 %v10350_v7 }
 0x936   : > { %4528 = vmatprep.subr.mxu1 %v10367_v38  ;;  %v4602_v38 = vld [vmem:[%s12011_s5 + $0x8] sm:$0xf] }
 0x939   : > { %4530 = vmatpush1.msra.mxu1 %v10369_v63 }
 0x93a   : > { %4587 = vmatmul.mubr.f32.vlgmr.msra.gmra.mrb[4].mxu1 %v10291_v45 }
 0x93b   : > { %5538 = vmatprep.mubr.f32.mxu1 %v9015_v2 }
 0xa0d   : > { %v4588_v9 = vpop.f32.mrb[4].mxu1 }
 0xa0e   : > { %v8863_v48 = vadd.f32 %v8123_v47, %v4588_v9  ;;  %v4590_v41 = vpop.f32.mrb[5].mxu1 }
 0xa0f   : > { %v8864_v17 = vadd.f32 %v4590_v41, %v4013_v25  ;;  %v8132_v41 = vld [vmem:[%s12011_s5 + $0xc0] sm:$0xf] }
 0xa10   : > { %v4593_v33 = vmax.f32 %v8863_v48, 0.0 }
 0xa11   : > { %v4594_v35 = vmax.f32 %v8864_v17, 0.0 }
 0xa12   : > { %4655 = vst [vmem:[#allocation2 + $0x20] sm:$0xf] %v4593_v33  ;;  %4607 = vrot.lane.b32.xlu0 %v4593_v33, %s9008_s28 }
 0xa13   : > { %4656 = vst [vmem:[#allocation2 + $0x28] sm:$0xf] %v4594_v35  ;;  %4609 = vrot.lane.b32.xlu1 %v4594_v35, %s9008_s28 }
 0xa16   : > { %4637 = vrot.lane.b32.xlu0 %v4593_v33, %s9007_s27 }
 0xa17   : > { %4639 = vrot.lane.b32.xlu1 %v4594_v35, %s9007_s27 }
 0xa1a   : > { %4595 = vrot.lane.b32.xlu0 %v4593_v33, %s9009_s29 }
 0xa1b   : > { %4597 = vrot.lane.b32.xlu1 %v4594_v35, %s9009_s29 }
 0xa1e   : > { %4625 = vrot.lane.b32.xlu0 %v4593_v33, %s9010_s30 }
 0xa1f   : > { %4627 = vrot.lane.b32.xlu1 %v4594_v35, %s9010_s30 }
 0xa22   : > { %4657 = vrot.lane.b32.xlu0 %v4593_v33, %s9011_s7 }
 0xa23   : > { %4659 = vrot.lane.b32.xlu1 %v4594_v35, %s9011_s7 }
 0xa26   : > { %4687 = vrot.lane.b32.xlu0 %v4593_v33, %s9012_s8 }
 0xa27   : > { %4689 = vrot.lane.b32.xlu1 %v4594_v35, %s9012_s8 }
 0xa2a   : > { %4675 = vrot.lane.b32.xlu0 %v4593_v33, %s9013_s9 }
 0xa2b   : > { %4677 = vrot.lane.b32.xlu1 %v4594_v35, %s9013_s9 }
 0xa2e   : > { %4705 = vrot.lane.b32.xlu0 %v4593_v33, %s9014_s10 }
 0xa2f   : > { %4707 = vrot.lane.b32.xlu1 %v4594_v35, %s9014_s10  ;;  %v8133_v35 = vld [vmem:[%s12011_s5 + $0xc8] sm:$0xf] }
 0xa84   : > { %v4608_v45 = vpop.permute.xlu0 %4607 }
 0xa85   : > { %v4610_v10 = vpop.permute.xlu1 %4609 }
 0xa86   : > { %v4611_v43 = vsel %vm273_vm2, %v4608_v45, %v4610_v10  ;;  %v4612_v36 = vsel %vm273_vm2, %v4610_v10, %v4608_v45  ;;  %v10517_v10 = vand.u32 4294901760, %v4735_v59 }
 0xa87   : > { %v4615_v40 = vmul.f32 %v8124_v1, %v4612_v36  ;;  %v4616_v49 = vmul.f32 %v8125_v5, %v4611_v43 }
 0xa88   : > { %v4638_v7 = vpop.permute.xlu0 %4637 }
 0xa89   : > { %v4619_v6 = vrot.slane %v4615_v40, 4  ;;  %v4620_v62 = vrot.slane %v4616_v49, 4  ;;  %v4640_v34 = vpop.permute.xlu1 %4639 }
 0xa8a   : > { %v4641_v44 = vsel %vm307_vm0, %v4638_v7, %v4640_v34  ;;  %v4642_v52 = vsel %vm307_vm0, %v4640_v34, %v4638_v7 }
 0xa8b   : > { %4623 = vst [vmem:[#allocation2] sm:$0xf0] %v4619_v6  ;;  %4624 = vst [vmem:[#allocation2 + $0x8] sm:$0xf0] %v4620_v62  ;;  %v4645_v20 = vmul.f32 %v8128_v30, %v4642_v52  ;;  %v4646_v19 = vmul.f32 %v8129_v18, %v4641_v44 }
 0xa8c   : > { %v4596_v60 = vpop.permute.xlu0 %4595 }
 0xa8d   : > { %v4649_v63 = vrot.slane %v4645_v20, 4  ;;  %v4650_v46 = vrot.slane %v4646_v19, 4  ;;  %v4598_v39 = vpop.permute.xlu1 %4597  ;;  %v8136_v20 = vld [vmem:[%s12011_s5 + $0x100] sm:$0xf]  ;;  %v8137_v19 = vld [vmem:[%s12011_s5 + $0x108] sm:$0xf] }
 0xa8e   : > { %v4599_v13 = vsel %vm260_vm1, %v4596_v60, %v4598_v39  ;;  %v4600_v27 = vsel %vm260_vm1, %v4598_v39, %v4596_v60 }
 0xa8f   : > { %4653 = vst [vmem:[#allocation2 + $0x10] sm:$0xf0] %v4649_v63  ;;  %4654 = vst [vmem:[#allocation2 + $0x18] sm:$0xf0] %v4650_v46  ;;  %v4603_v55 = vmul.f32 %v4601_v29, %v4600_v27  ;;  %v4604_v51 = vmul.f32 %v4602_v38, %v4599_v13  ;;  %v10537_v63 = vsub.f32 %v4735_v59, %v10517_v10 }
 0xa90   : > { %v4626_v26 = vpop.permute.xlu0 %4625 }
 0xa91   : > { %4605 = vst [vmem:[#allocation2] sm:$0xf] %v4603_v55  ;;  %4606 = vst [vmem:[#allocation2 + $0x8] sm:$0xf] %v4604_v51  ;;  %v4628_v56 = vpop.permute.xlu1 %4627 }
 0xa92   : > { %v4629_v24 = vsel %vm293_vm3, %v4626_v26, %v4628_v56  ;;  %v4630_v58 = vsel %vm293_vm3, %v4628_v56, %v4626_v26 }
 0xa93   : > { %v4633_v15 = vmul.f32 %v8126_v23, %v4630_v58  ;;  %v4634_v50 = vmul.f32 %v8127_v42, %v4629_v24 }
 0xa94   : > { %v4658_v61 = vpop.permute.xlu0 %4657 }
 0xa95   : > { %4635 = vst [vmem:[#allocation2 + $0x10] sm:$0xf] %v4633_v15  ;;  %4636 = vst [vmem:[#allocation2 + $0x18] sm:$0xf] %v4634_v50  ;;  %v4660_v0 = vpop.permute.xlu1 %4659 }
 0xa96   : > { %v4661_v14 = vsel %vm329_vm4, %v4658_v61, %v4660_v0  ;;  %v4662_v16 = vsel %vm329_vm4, %v4660_v0, %v4658_v61  ;;  %v4820_v61 = vand.u32 4294901760, %v10537_v63 }
 0xa97   : > { %v4665_v11 = vmul.f32 %v8130_v57, %v4661_v14  ;;  %v4666_v21 = vmul.f32 %v8131_v54, %v4662_v16 }
 0xa98   : > { %v4688_v32 = vpop.permute.xlu0 %4687  ;;  %v4720_v53 = vld [vmem:[#allocation2 + $0x8] sm:$0xff]  ;;  %v4719_v17 = vld [vmem:[#allocation2] sm:$0xff] }
 0xa99   : > { %v4669_v28 = vrot.slane %v4665_v11, 4  ;;  %v4670_v31 = vrot.slane %v4666_v21, 4  ;;  %v4690_v37 = vpop.permute.xlu1 %4689  ;;  %v4743_v1 = vand.u32 4294901760, %v4720_v53  ;;  %v4745_v6 = vand.u32 4294901760, %v4719_v17 }
 0xa9a   : > { %v4691_v47 = vsel %vm363_vm6, %v4688_v32, %v4690_v37  ;;  %v4692_v25 = vsel %vm363_vm6, %v4690_v37, %v4688_v32 }
 0xa9b   : > { %4673 = vst [vmem:[#allocation2 + $0x20] sm:$0xf0] %v4669_v28  ;;  %4674 = vst [vmem:[#allocation2 + $0x28] sm:$0xf0] %v4670_v31  ;;  %v4695_v9 = vmul.f32 %v8134_v8, %v4691_v47  ;;  %v4696_v48 = vmul.f32 %v8135_v12, %v4692_v25  ;;  %v10543_v13 = vsub.f32 %v4720_v53, %v4743_v1 }
 0xa9c   : > { %v4676_v33 = vpop.permute.xlu0 %4675  ;;  %v4722_v45 = vld [vmem:[#allocation2 + $0x18] sm:$0xff]  ;;  %v4721_v5 = vld [vmem:[#allocation2 + $0x10] sm:$0xff]  ;;  %v10548_v56 = vsub.f32 %v4719_v17, %v4745_v6  ;;  %v4821_v12 = vsub.f32 %v10537_v63, %v4820_v61 }
 0xa9d   : > { %v4699_v43 = vrot.slane %v4695_v9, 4  ;;  %v4700_v36 = vrot.slane %v4696_v48, 4  ;;  %v4678_v40 = vpop.permute.xlu1 %4677  ;;  %v4747_v49 = vand.u32 4294901760, %v4722_v45  ;;  %v4749_v7 = vand.u32 4294901760, %v4721_v5 }
 0xa9e   : > { %v4679_v30 = vsel %vm349_vm7, %v4676_v33, %v4678_v40  ;;  %v4680_v18 = vsel %vm349_vm7, %v4678_v40, %v4676_v33  ;;  %v4831_v50 = vand.u32 4294901760, %v10543_v13  ;;  %v4837_v22 = vand.u32 4294901760, %v10548_v56 }
 0xa9f   : > { %4703 = vst [vmem:[#allocation2 + $0x30] sm:$0xf0] %v4699_v43  ;;  %4704 = vst [vmem:[#allocation2 + $0x38] sm:$0xf0] %v4700_v36  ;;  %v4683_v62 = vmul.f32 %v8132_v41, %v4679_v30  ;;  %v4684_v34 = vmul.f32 %v8133_v35, %v4680_v18  ;;  %v10523_v44 = vpack.c.bf16 %v4747_v49, %v4743_v1 }
 0xaa0   : > { %v4706_v52 = vpop.permute.xlu0 %4705  ;;  %v10531_v60 = vsub.f32 %v4722_v45, %v4747_v49  ;;  %v10533_v29 = vpack.c.bf16 %v4749_v7, %v4745_v6  ;;  %v10546_v27 = vsub.f32 %v4721_v5, %v4749_v7  ;;  %v4832_v8 = vsub.f32 %v10543_v13, %v4831_v50 }
 0xaa1   : > { %4685 = vst [vmem:[#allocation2 + $0x30] sm:$0xf] %v4683_v62  ;;  %4686 = vst [vmem:[#allocation2 + $0x38] sm:$0xf] %v4684_v34  ;;  %v4708_v38 = vpop.permute.xlu1 %4707  ;;  %8492 = vmatprep.subr.bf16.mxu0 %v10523_v44  ;;  %v4838_v48 = vsub.f32 %v10548_v56, %v4837_v22  ;;  %v4822_v49 = vand.u32 4294901760, %v4821_v12 }
 0xaa2   : > { %v4709_v46 = vsel %vm383_vm8, %v4706_v52, %v4708_v38  ;;  %v4710_v39 = vsel %vm383_vm8, %v4708_v38, %v4706_v52  ;;  %8494 = vmatpush1.bf16.msra.mxu0 %v10533_v29  ;;  %v4724_v55 = vld [vmem:[#allocation2 + $0x28] sm:$0xff]  ;;  %v4723_v51 = vld [vmem:[#allocation2 + $0x20] sm:$0xff]  ;;  %v4843_v58 = vand.u32 4294901760, %v10531_v60  ;;  %v4849_v57 = vand.u32 4294901760, %v10546_v27 }
 0xaa3   : > { %v4713_v26 = vmul.f32 %v8136_v20, %v4709_v46  ;;  %v4714_v23 = vmul.f32 %v8137_v19, %v4710_v39  ;;  %v4751_v42 = vand.u32 4294901760, %v4724_v55  ;;  %v4753_v24 = vand.u32 4294901760, %v4723_v51 }
 0xaa4   : > { %v4844_v16 = vsub.f32 %v10531_v60, %v4843_v58  ;;  %v4850_v28 = vsub.f32 %v10546_v27, %v4849_v57  ;;  %v4833_v40 = vand.u32 4294901760, %v4832_v8  ;;  %v4839_v6 = vand.u32 4294901760, %v4838_v48 }
 0xaa5   : > { %4715 = vst [vmem:[#allocation2 + $0x40] sm:$0xf] %v4713_v26  ;;  %4716 = vst [vmem:[#allocation2 + $0x48] sm:$0xf] %v4714_v23  ;;  %v10551_v15 = vsub.f32 %v4724_v55, %v4751_v42  ;;  %v10556_v14 = vsub.f32 %v4723_v51, %v4753_v24  ;;  %v8523_v12 = vpack.c.bf16 %v4843_v58, %v4831_v50  ;;  %v8140_v50 = vld [vmem:[%s12011_s5 + $0x20] sm:$0xf] }
 0xaa6   : > { %v4845_v9 = vand.u32 4294901760, %v4844_v16  ;;  %v4851_v36 = vand.u32 4294901760, %v4850_v28  ;;  %v8507_v16 = vpack.c.bf16 %v10531_v60, %v10543_v13  ;;  %v8525_v28 = vpack.c.bf16 %v4849_v57, %v4837_v22 }
 0xaa7   : > { %v4855_v11 = vand.u32 4294901760, %v10551_v15  ;;  %v4861_v17 = vand.u32 4294901760, %v10556_v14 }
 0xaa8   : > { %v4726_v54 = vld [vmem:[#allocation2 + $0x38] sm:$0xff]  ;;  %v4725_v0 = vld [vmem:[#allocation2 + $0x30] sm:$0xff]  ;;  %v8499_v52 = vpack.c.bf16 %v4845_v9, %v4833_v40  ;;  %v8501_v38 = vpack.c.bf16 %v4851_v36, %v4839_v6 }
 0xaa9   : > { %v4755_v21 = vand.u32 4294901760, %v4726_v54  ;;  %v4757_v32 = vand.u32 4294901760, %v4725_v0  ;;  %v4856_v41 = vsub.f32 %v10551_v15, %v4855_v11  ;;  %v4862_v62 = vsub.f32 %v10556_v14, %v4861_v17 }
 0xaab   : > { %v10572_v31 = vpack.c.bf16 %v4755_v21, %v4751_v42  ;;  %v10574_v37 = vsub.f32 %v4726_v54, %v4755_v21  ;;  %v10576_v53 = vpack.c.bf16 %v4757_v32, %v4753_v24  ;;  %v10578_v59 = vsub.f32 %v4725_v0, %v4757_v32 }
 0xaac   : > { %v4728_v47 = vld [vmem:[#allocation2 + $0x48] sm:$0xf]  ;;  %v4727_v25 = vld [vmem:[#allocation2 + $0x40] sm:$0xf]  ;;  %v4857_v20 = vand.u32 4294901760, %v4856_v41  ;;  %v4863_v26 = vand.u32 4294901760, %v4862_v62  ;;  %v8509_v21 = vpack.c.bf16 %v10546_v27, %v10548_v56 }
 0xaad   : > { %8496 = vmatprep.subr.bf16.mxu0 %v10572_v31  ;;  %v4741_v33 = vsel %vm412_vm9, %v4728_v47, 0  ;;  %v4738_v35 = vsel %vm412_vm9, %v4727_v25, 0  ;;  %v4867_v45 = vand.u32 4294901760, %v10574_v37  ;;  %v4873_v1 = vand.u32 4294901760, %v10578_v59  ;;  %v8145_v47 = vld [vmem:[%s12011_s5 + $0x68] sm:$0xf] }
 0xaae   : > { %8498 = vmatpush1.bf16.msra.mxu0 %v10576_v53  ;;  %v10593_v5 = vand.u32 4294901760, %v4741_v33  ;;  %v10595_v43 = vand.u32 4294901760, %v4738_v35  ;;  %v8511_v32 = vpack.c.bf16 %v10574_v37, %v10551_v15  ;;  %v8513_v8 = vpack.c.bf16 %v10578_v59, %v10556_v14  ;;  %v8142_v62 = vld [vmem:[%s12011_s5 + $0x40] sm:$0xf] }
 0xaaf   : > { %v4868_v7 = vsub.f32 %v10574_v37, %v4867_v45  ;;  %v4874_v30 = vsub.f32 %v10578_v59, %v4873_v1  ;;  %v8527_v37 = vpack.c.bf16 %v4867_v45, %v4855_v11  ;;  %v8529_v60 = vpack.c.bf16 %v4873_v1, %v4861_v17  ;;  %v8144_v59 = vld [vmem:[%s12011_s5 + $0x60] sm:$0xf] }
 0xab0   : > { %4760 = vmatprep.subr.mxu0 %v10593_v5  ;;  %v4884_v18 = vsub.f32 %v4738_v35, %v10595_v43  ;;  %v4878_v34 = vsub.f32 %v4741_v33, %v10593_v5  ;;  %v5322_v1 = vld [vmem:[%s12011_s5] sm:$0xf] }
 0xab1   : > { %v4869_v19 = vand.u32 4294901760, %v4868_v7  ;;  %v4875_v46 = vand.u32 4294901760, %v4874_v30 }
 0xab2   : > { %4762 = vmatpush1.msra.mxu0 %v10595_v43  ;;  %v4879_v39 = vand.u32 4294901760, %v4878_v34  ;;  %v4885_v55 = vand.u32 4294901760, %v4884_v18 }
 0xab3   : > { %8500 = vmatprep.subr.bf16.mxu0 %v8499_v52  ;;  %4823 = vmatmul.mubr.f32.vlgmr.msra.gmra.mrb[8].mxu0 %v4822_v49  ;;  %v8503_v51 = vpack.c.bf16 %v4869_v19, %v4857_v20  ;;  %v8505_v42 = vpack.c.bf16 %v4875_v46, %v4863_v26 }
 0xab4   : > { %8502 = vmatpush1.bf16.msra.mxu0 %v8501_v38  ;;  %v4880_v23 = vsub.f32 %v4878_v34, %v4879_v39  ;;  %4943 = vmatprep.mubr.f32.mxu0 %v9015_v2  ;;  %v4886_v54 = vsub.f32 %v4884_v18, %v4885_v55 }
 0xab5   : > { %8504 = vmatprep.subr.bf16.mxu0 %v8503_v51  ;;  %v8147_v51 = vld [vmem:[%s12011_s5 + $0xa8] sm:$0xf] }
 0xab6   : > { %v4881_v24 = vand.u32 4294901760, %v4880_v23  ;;  %v4887_v0 = vand.u32 4294901760, %v4886_v54 }
 0xab8   : > { %8506 = vmatpush1.bf16.msra.mxu0 %v8505_v42 }
 0xab9   : > { %4882 = vmatprep.subr.mxu0 %v4881_v24  ;;  %v8154_v24 = vld [vmem:[%s12007_s1 + $0x1c] sm:$0xf] }
 0xabc   : > { %4888 = vmatpush1.msra.mxu0 %v4887_v0 }
 0xabd   : > { %8508 = vmatprep.subr.bf16.mxu0 %v8507_v16  ;;  %4945 = vmatmul.mubr.f32.vlgmr.msra.gmra.mrb[8].mxu0 %v10517_v10 }
 0xabe   : > { %8510 = vmatpush1.bf16.msra.mxu0 %v8509_v21  ;;  %5035 = vmatprep.mubr.f32.mxu0 %v9015_v2  ;;  %v8150_v21 = vld [vmem:[%s12011_s5 + $0xe0] sm:$0xf] }
 0xabf   : > { %8512 = vmatprep.subr.bf16.mxu0 %v8511_v32  ;;  %v8151_v32 = vld [vmem:[%s12011_s5 + $0xe8] sm:$0xf] }
 0xac2   : > { %8514 = vmatpush1.bf16.msra.mxu0 %v8513_v8 }
 0xac3   : > { %4977 = vmatprep.subr.mxu0 %v4878_v34  ;;  %v8143_v34 = vld [vmem:[%s12011_s5 + $0x48] sm:$0xf] }
 0xac6   : > { %4980 = vmatpush1.msra.mxu0 %v4884_v18 }
 0xac7   : > { %8516 = vmatprep.subr.bf16.mxu0 %v10523_v44  ;;  %5038 = vmatmul.mubr.f32.vlgmr.msra.gmra.mrb[8].mxu0 %v10537_v63 }
 0xac8   : > { %8518 = vmatpush1.bf16.msra.mxu0 %v10533_v29  ;;  %5118 = vmatprep.mubr.f32.mxu0 %v9015_v2 }
 0xac9   : > { %8520 = vmatprep.subr.bf16.mxu0 %v10572_v31 }
 0xacc   : > { %8522 = vmatpush1.bf16.msra.mxu0 %v10576_v53 }
 0xacd   : > { %5061 = vmatprep.subr.mxu0 %v10593_v5 }
 0xad0   : > { %5063 = vmatpush1.msra.mxu0 %v10595_v43 }
 0xad1   : > { %8524 = vmatprep.subr.bf16.mxu0 %v8523_v12  ;;  %5122 = vmatmul.mubr.f32.vlgmr.msra.gmra.mrb[8].mxu0 %v4820_v61  ;;  %v8141_v61 = vld [vmem:[%s12011_s5 + $0x28] sm:$0xf] }
 0xad2   : > { %8526 = vmatpush1.bf16.msra.mxu0 %v8525_v28  ;;  %5222 = vmatprep.mubr.f32.mxu0 %v9015_v2 }
 0xad3   : > { %8528 = vmatprep.subr.bf16.mxu0 %v8527_v37 }
 0xad6   : > { %8530 = vmatpush1.bf16.msra.mxu0 %v8529_v60  ;;  %v5456_v60 = vsel %vm408_vm5, %v8154_v24, 0 }
 0xad7   : > { %5163 = vmatprep.subr.mxu0 %v4879_v39 }
 0xada   : > { %5167 = vmatpush1.msra.mxu0 %v4885_v55  ;;  %v8146_v55 = vld [vmem:[%s12011_s5 + $0xa0] sm:$0xf] }
 0xadb   : > { %8532 = vmatprep.subr.bf16.mxu0 %v10523_v44  ;;  %5224 = vmatmul.mubr.f32.vlgmr.msra.gmra.mrb[8].mxu0 %v10517_v10  ;;  %v8139_v44 = vld [vmem:[%s12008_s2 + $0x30] sm:$0xff] }
 0xadc   : > { %8534 = vmatpush1.bf16.msra.mxu0 %v10533_v29  ;;  %5304 = vmatprep.mubr.f32.mxu0 %v9015_v2  ;;  %v4732_v63 = vcombine.high %v8139_v44, %v8139_v44 }
 0xadd   : > { %8536 = vmatprep.subr.bf16.mxu0 %v10572_v31 }
 0xae0   : > { %8538 = vmatpush1.bf16.msra.mxu0 %v10576_v53 }
 0xae1   : > { %5247 = vmatprep.subr.mxu0 %v10593_v5  ;;  %v5323_v5 = vld [vmem:[%s12011_s5 + $0x8] sm:$0xf] }
 0xae4   : > { %5249 = vmatpush1.msra.mxu0 %v10595_v43 }
 0xae5   : > { %5306 = vmatmul.mubr.f32.vlgmr.msra.gmra.mrb[8].mxu0 %v10517_v10 }
 0xae6   : > { %6257 = vmatprep.mubr.f32.mxu0 %v9015_v2 }
 0xbb8   : > { %v5307_v29 = vpop.f32.mrb[8].mxu0 }
 0xbb9   : > { %v8865_v13 = vadd.f32 %v8139_v44, %v5307_v29  ;;  %v5309_v27 = vpop.f32.mrb[9].mxu0 }
 0xbba   : > { %v8866_v56 = vadd.f32 %v5309_v27, %v4732_v63  ;;  %v8148_v27 = vld [vmem:[%s12011_s5 + $0xc0] sm:$0xf] }
 0xbbb   : > { %v5312_v58 = vmax.f32 %v8865_v13, 0.0 }
 0xbbc   : > { %v5313_v15 = vmax.f32 %v8866_v56, 0.0 }
 0xbbd   : > { %5314 = vst [vmem:[#allocation4 + $0x10] sm:$0xf] %v5312_v58  ;;  %5376 = vst [vmem:[#allocation2 + $0x20] sm:$0xf] %v5312_v58  ;;  %5328 = vrot.lane.b32.xlu0 %v5312_v58, %s9008_s28 }
 0xbbe   : > { %5315 = vst [vmem:[#allocation4 + $0x18] sm:$0xf] %v5313_v15  ;;  %5377 = vst [vmem:[#allocation2 + $0x28] sm:$0xf] %v5313_v15  ;;  %5330 = vrot.lane.b32.xlu1 %v5313_v15, %s9008_s28 }
 0xbc1   : > { %5358 = vrot.lane.b32.xlu0 %v5312_v58, %s9007_s27 }
 0xbc2   : > { %5360 = vrot.lane.b32.xlu1 %v5313_v15, %s9007_s27 }
 0xbc5   : > { %5316 = vrot.lane.b32.xlu0 %v5312_v58, %s9009_s29 }
 0xbc6   : > { %5318 = vrot.lane.b32.xlu1 %v5313_v15, %s9009_s29 }
 0xbc9   : > { %5346 = vrot.lane.b32.xlu0 %v5312_v58, %s9010_s30 }
 0xbca   : > { %5348 = vrot.lane.b32.xlu1 %v5313_v15, %s9010_s30 }
 0xbcd   : > { %5378 = vrot.lane.b32.xlu0 %v5312_v58, %s9011_s7 }
 0xbce   : > { %5380 = vrot.lane.b32.xlu1 %v5313_v15, %s9011_s7 }
 0xbd1   : > { %5408 = vrot.lane.b32.xlu0 %v5312_v58, %s9012_s8 }
 0xbd2   : > { %5410 = vrot.lane.b32.xlu1 %v5313_v15, %s9012_s8 }
 0xbd5   : > { %5396 = vrot.lane.b32.xlu0 %v5312_v58, %s9013_s9 }
 0xbd6   : > { %5398 = vrot.lane.b32.xlu1 %v5313_v15, %s9013_s9 }
 0xbd9   : > { %5426 = vrot.lane.b32.xlu0 %v5312_v58, %s9014_s10 }
 0xbda   : > { %5428 = vrot.lane.b32.xlu1 %v5313_v15, %s9014_s10  ;;  %v8149_v15 = vld [vmem:[%s12011_s5 + $0xc8] sm:$0xf] }
 0xc2f   : > { %v5329_v10 = vpop.permute.xlu0 %5328 }
 0xc30   : > { %v5331_v57 = vpop.permute.xlu1 %5330 }
 0xc31   : > { %v5332_v14 = vsel %vm273_vm2, %v5329_v10, %v5331_v57  ;;  %v5333_v22 = vsel %vm273_vm2, %v5331_v57, %v5329_v10  ;;  %v10743_v57 = vand.u32 4294901760, %v5456_v60 }
 0xc32   : > { %v5336_v11 = vmul.f32 %v8140_v50, %v5333_v22  ;;  %v5337_v31 = vmul.f32 %v8141_v61, %v5332_v14 }
 0xc33   : > { %v5359_v53 = vpop.permute.xlu0 %5358 }
 0xc34   : > { %v5340_v25 = vrot.slane %v5336_v11, 4  ;;  %v5341_v9 = vrot.slane %v5337_v31, 4  ;;  %v5361_v48 = vpop.permute.xlu1 %5360 }
 0xc35   : > { %v5362_v41 = vsel %vm307_vm0, %v5359_v53, %v5361_v48  ;;  %v5363_v17 = vsel %vm307_vm0, %v5361_v48, %v5359_v53 }
 0xc36   : > { %5344 = vst [vmem:[#allocation2] sm:$0xf0] %v5340_v25  ;;  %5345 = vst [vmem:[#allocation2 + $0x8] sm:$0xf0] %v5341_v9  ;;  %v5366_v33 = vmul.f32 %v8144_v59, %v5363_v17  ;;  %v5367_v35 = vmul.f32 %v8145_v47, %v5362_v41 }
 0xc37   : > { %v5317_v45 = vpop.permute.xlu0 %5316 }
 0xc38   : > { %v5370_v43 = vrot.slane %v5366_v33, 4  ;;  %v5371_v36 = vrot.slane %v5367_v35, 4  ;;  %v5319_v40 = vpop.permute.xlu1 %5318  ;;  %v8152_v33 = vld [vmem:[%s12011_s5 + $0x100] sm:$0xf]  ;;  %v8153_v35 = vld [vmem:[%s12011_s5 + $0x108] sm:$0xf] }
 0xc39   : > { %v5320_v49 = vsel %vm260_vm1, %v5317_v45, %v5319_v40  ;;  %v5321_v7 = vsel %vm260_vm1, %v5319_v40, %v5317_v45 }
 0xc3a   : > { %5374 = vst [vmem:[#allocation2 + $0x10] sm:$0xf0] %v5370_v43  ;;  %5375 = vst [vmem:[#allocation2 + $0x18] sm:$0xf0] %v5371_v36  ;;  %v5324_v30 = vmul.f32 %v5322_v1, %v5321_v7  ;;  %v5325_v18 = vmul.f32 %v5323_v5, %v5320_v49  ;;  %v10763_v43 = vsub.f32 %v5456_v60, %v10743_v57 }
 0xc3b   : > { %v5347_v6 = vpop.permute.xlu0 %5346 }
 0xc3c   : > { %5326 = vst [vmem:[#allocation2] sm:$0xf] %v5324_v30  ;;  %5327 = vst [vmem:[#allocation2 + $0x8] sm:$0xf] %v5325_v18  ;;  %v5349_v52 = vpop.permute.xlu1 %5348 }
 0xc3d   : > { %v5350_v20 = vsel %vm293_vm3, %v5347_v6, %v5349_v52  ;;  %v5351_v19 = vsel %vm293_vm3, %v5349_v52, %v5347_v6 }
 0xc3e   : > { %v5354_v38 = vmul.f32 %v8142_v62, %v5351_v19  ;;  %v5355_v46 = vmul.f32 %v8143_v34, %v5350_v20 }
 0xc3f   : > { %v5379_v39 = vpop.permute.xlu0 %5378 }
 0xc40   : > { %5356 = vst [vmem:[#allocation2 + $0x10] sm:$0xf] %v5354_v38  ;;  %5357 = vst [vmem:[#allocation2 + $0x18] sm:$0xf] %v5355_v46  ;;  %v5381_v26 = vpop.permute.xlu1 %5380 }
 0xc41   : > { %v5382_v23 = vsel %vm329_vm4, %v5379_v39, %v5381_v26  ;;  %v5383_v42 = vsel %vm329_vm4, %v5381_v26, %v5379_v39  ;;  %v5541_v39 = vand.u32 4294901760, %v10763_v43 }
 0xc42   : > { %v5386_v54 = vmul.f32 %v8146_v55, %v5382_v23  ;;  %v5387_v0 = vmul.f32 %v8147_v51, %v5383_v42 }
 0xc43   : > { %v5409_v16 = vpop.permute.xlu0 %5408  ;;  %v5441_v37 = vld [vmem:[#allocation2 + $0x8] sm:$0xff]  ;;  %v5440_v56 = vld [vmem:[#allocation2] sm:$0xff] }
 0xc44   : > { %v5390_v8 = vrot.slane %v5386_v54, 4  ;;  %v5391_v12 = vrot.slane %v5387_v0, 4  ;;  %v5411_v28 = vpop.permute.xlu1 %5410  ;;  %v5464_v50 = vand.u32 4294901760, %v5441_v37  ;;  %v5466_v25 = vand.u32 4294901760, %v5440_v56 }
 0xc45   : > { %v5412_v44 = vsel %vm363_vm6, %v5409_v16, %v5411_v28  ;;  %v5413_v63 = vsel %vm363_vm6, %v5411_v28, %v5409_v16 }
 0xc46   : > { %5394 = vst [vmem:[#allocation2 + $0x20] sm:$0xf0] %v5390_v8  ;;  %5395 = vst [vmem:[#allocation2 + $0x28] sm:$0xf0] %v5391_v12  ;;  %v5416_v29 = vmul.f32 %v8150_v21, %v5412_v44  ;;  %v5417_v13 = vmul.f32 %v8151_v32, %v5413_v63  ;;  %v10769_v49 = vsub.f32 %v5441_v37, %v5464_v50 }
 0xc47   : > { %v5397_v58 = vpop.permute.xlu0 %5396  ;;  %v5443_v10 = vld [vmem:[#allocation2 + $0x18] sm:$0xff]  ;;  %v5442_v61 = vld [vmem:[#allocation2 + $0x10] sm:$0xff]  ;;  %v10774_v52 = vsub.f32 %v5440_v56, %v5466_v25  ;;  %v5542_v32 = vsub.f32 %v10763_v43, %v5541_v39 }
 0xc48   : > { %v5420_v14 = vrot.slane %v5416_v29, 4  ;;  %v5421_v22 = vrot.slane %v5417_v13, 4  ;;  %v5399_v11 = vpop.permute.xlu1 %5398  ;;  %v5468_v31 = vand.u32 4294901760, %v5443_v10  ;;  %v5470_v53 = vand.u32 4294901760, %v5442_v61 }
 0xc49   : > { %v5400_v59 = vsel %vm349_vm7, %v5397_v58, %v5399_v11  ;;  %v5401_v47 = vsel %vm349_vm7, %v5399_v11, %v5397_v58  ;;  %v5552_v46 = vand.u32 4294901760, %v10769_v49  ;;  %v5558_v24 = vand.u32 4294901760, %v10774_v52 }
 0xc4a   : > { %5424 = vst [vmem:[#allocation2 + $0x30] sm:$0xf0] %v5420_v14  ;;  %5425 = vst [vmem:[#allocation2 + $0x38] sm:$0xf0] %v5421_v22  ;;  %v5404_v9 = vmul.f32 %v8148_v27, %v5400_v59  ;;  %v5405_v48 = vmul.f32 %v8149_v15, %v5401_v47  ;;  %v10749_v41 = vpack.c.bf16 %v5468_v31, %v5464_v50 }
 0xc4b   : > { %v5427_v17 = vpop.permute.xlu0 %5426  ;;  %v10757_v45 = vsub.f32 %v5443_v10, %v5468_v31  ;;  %v10759_v1 = vpack.c.bf16 %v5470_v53, %v5466_v25  ;;  %v10772_v7 = vsub.f32 %v5442_v61, %v5470_v53  ;;  %v5553_v21 = vsub.f32 %v10769_v49, %v5552_v46 }
 0xc4c   : > { %5406 = vst [vmem:[#allocation2 + $0x30] sm:$0xf] %v5404_v9  ;;  %5407 = vst [vmem:[#allocation2 + $0x38] sm:$0xf] %v5405_v48  ;;  %v5429_v5 = vpop.permute.xlu1 %5428  ;;  %8540 = vmatprep.subr.bf16.mxu1 %v10749_v41  ;;  %v5559_v13 = vsub.f32 %v10774_v52, %v5558_v24  ;;  %v5543_v31 = vand.u32 4294901760, %v5542_v32 }
 0xc4d   : > { %v5430_v36 = vsel %vm383_vm8, %v5427_v17, %v5429_v5  ;;  %v5431_v40 = vsel %vm383_vm8, %v5429_v5, %v5427_v17  ;;  %8542 = vmatpush1.bf16.msra.mxu1 %v10759_v1  ;;  %v5445_v30 = vld [vmem:[#allocation2 + $0x28] sm:$0xff]  ;;  %v5444_v18 = vld [vmem:[#allocation2 + $0x20] sm:$0xff]  ;;  %v5564_v19 = vand.u32 4294901760, %v10757_v45  ;;  %v5570_v55 = vand.u32 4294901760, %v10772_v7 }
 0xc4e   : > { %v5434_v6 = vmul.f32 %v8152_v33, %v5430_v36  ;;  %v5435_v62 = vmul.f32 %v8153_v35, %v5431_v40  ;;  %v5472_v34 = vand.u32 4294901760, %v5445_v30  ;;  %v5474_v20 = vand.u32 4294901760, %v5444_v18 }
 0xc4f   : > { %v5565_v42 = vsub.f32 %v10757_v45, %v5564_v19  ;;  %v5571_v8 = vsub.f32 %v10772_v7, %v5570_v55  ;;  %v5554_v11 = vand.u32 4294901760, %v5553_v21  ;;  %v5560_v25 = vand.u32 4294901760, %v5559_v13 }
 0xc50   : > { %5436 = vst [vmem:[#allocation2 + $0x40] sm:$0xf] %v5434_v6  ;;  %5437 = vst [vmem:[#allocation2 + $0x48] sm:$0xf] %v5435_v62  ;;  %v10777_v38 = vsub.f32 %v5445_v30, %v5472_v34  ;;  %v10782_v23 = vsub.f32 %v5444_v18, %v5474_v20  ;;  %v8571_v32 = vpack.c.bf16 %v5564_v19, %v5552_v46  ;;  %v10902_v46 = vld [vmem:[#allocation4 + $0x8] sm:$0xff] }
 0xc51   : > { %v5566_v29 = vand.u32 4294901760, %v5565_v42  ;;  %v5572_v22 = vand.u32 4294901760, %v5571_v8  ;;  %v8555_v42 = vpack.c.bf16 %v10757_v45, %v10769_v49  ;;  %v8573_v8 = vpack.c.bf16 %v5570_v55, %v5558_v24  ;;  %v8156_v55 = vld [vmem:[%s12011_s5 + $0x20] sm:$0xf] }
 0xc52   : > { %v5576_v54 = vand.u32 4294901760, %v10777_v38  ;;  %v5582_v56 = vand.u32 4294901760, %v10782_v23 }
 0xc53   : > { %v5447_v51 = vld [vmem:[#allocation2 + $0x38] sm:$0xff]  ;;  %v5446_v26 = vld [vmem:[#allocation2 + $0x30] sm:$0xff]  ;;  %v8547_v17 = vpack.c.bf16 %v5566_v29, %v5554_v11  ;;  %v8549_v5 = vpack.c.bf16 %v5572_v22, %v5560_v25  ;;  %v8161_v29 = vld [vmem:[%s12011_s5 + $0x68] sm:$0xf] }
 0xc54   : > { %v5476_v0 = vand.u32 4294901760, %v5447_v51  ;;  %v5478_v16 = vand.u32 4294901760, %v5446_v26  ;;  %v5577_v27 = vsub.f32 %v10777_v38, %v5576_v54  ;;  %v5583_v9 = vsub.f32 %v10782_v23, %v5582_v56  ;;  %v6042_v22 = vld [vmem:[%s12011_s5 + $0x8] sm:$0xf] }
 0xc56   : > { %v10798_v12 = vpack.c.bf16 %v5476_v0, %v5472_v34  ;;  %v10800_v28 = vsub.f32 %v5447_v51, %v5476_v0  ;;  %v10802_v37 = vpack.c.bf16 %v5478_v16, %v5474_v20  ;;  %v10804_v60 = vsub.f32 %v5446_v26, %v5478_v16 }
 0xc57   : > { %v5449_v44 = vld [vmem:[#allocation2 + $0x48] sm:$0xf]  ;;  %v5448_v63 = vld [vmem:[#allocation2 + $0x40] sm:$0xf]  ;;  %v5578_v33 = vand.u32 4294901760, %v5577_v27  ;;  %v5584_v6 = vand.u32 4294901760, %v5583_v9  ;;  %v8557_v0 = vpack.c.bf16 %v10772_v7, %v10774_v52 }
 0xc58   : > { %8544 = vmatprep.subr.bf16.mxu1 %v10798_v12  ;;  %v5462_v58 = vsel %vm412_vm9, %v5449_v44, 0  ;;  %v5459_v15 = vsel %vm412_vm9, %v5448_v63, 0  ;;  %v5588_v10 = vand.u32 4294901760, %v10800_v28  ;;  %v5594_v50 = vand.u32 4294901760, %v10804_v60  ;;  %v8160_v63 = vld [vmem:[%s12011_s5 + $0x60] sm:$0xf] }
 0xc59   : > { %8546 = vmatpush1.bf16.msra.mxu1 %v10802_v37  ;;  %v10819_v61 = vand.u32 4294901760, %v5462_v58  ;;  %v10821_v14 = vand.u32 4294901760, %v5459_v15  ;;  %v8559_v16 = vpack.c.bf16 %v10800_v28, %v10777_v38  ;;  %v8561_v21 = vpack.c.bf16 %v10804_v60, %v10782_v23  ;;  %v8157_v23 = vld [vmem:[%s12011_s5 + $0x28] sm:$0xf] }
 0xc5a   : > { %v5589_v53 = vsub.f32 %v10800_v28, %v5588_v10  ;;  %v5595_v59 = vsub.f32 %v10804_v60, %v5594_v50  ;;  %v8575_v28 = vpack.c.bf16 %v5588_v10, %v5576_v54  ;;  %v8577_v45 = vpack.c.bf16 %v5594_v50, %v5582_v56 }
 0xc5b   : > { %5481 = vmatprep.subr.mxu1 %v10819_v61  ;;  %v5605_v47 = vsub.f32 %v5459_v15, %v10821_v14  ;;  %v5599_v48 = vsub.f32 %v5462_v58, %v10819_v61 }
 0xc5c   : > { %v5590_v35 = vand.u32 4294901760, %v5589_v53  ;;  %v5596_v36 = vand.u32 4294901760, %v5595_v59 }
 0xc5d   : > { %5483 = vmatpush1.msra.mxu1 %v10821_v14  ;;  %v5600_v40 = vand.u32 4294901760, %v5599_v48  ;;  %v5606_v30 = vand.u32 4294901760, %v5605_v47 }
 0xc5e   : > { %8548 = vmatprep.subr.bf16.mxu1 %v8547_v17  ;;  %5544 = vmatmul.mubr.f32.vlgmr.msra.gmra.mrb[6].mxu1 %v5543_v31  ;;  %v8551_v18 = vpack.c.bf16 %v5590_v35, %v5578_v33  ;;  %v8553_v34 = vpack.c.bf16 %v5596_v36, %v5584_v6  ;;  %v8158_v17 = vld [vmem:[%s12011_s5 + $0x40] sm:$0xf]  ;;  %v8159_v33 = vld [vmem:[%s12011_s5 + $0x48] sm:$0xf] }
 0xc5f   : > { %8550 = vmatpush1.bf16.msra.mxu1 %v8549_v5  ;;  %v5601_v62 = vsub.f32 %v5599_v48, %v5600_v40  ;;  %5664 = vmatprep.mubr.f32.mxu1 %v9015_v2  ;;  %v5607_v51 = vsub.f32 %v5605_v47, %v5606_v30  ;;  %v8162_v6 = vld [vmem:[%s12011_s5 + $0xa0] sm:$0xf] }
 0xc60   : > { %8552 = vmatprep.subr.bf16.mxu1 %v8551_v18 }
 0xc61   : > { %v5602_v20 = vand.u32 4294901760, %v5601_v62  ;;  %v5608_v26 = vand.u32 4294901760, %v5607_v51  ;;  %v8163_v62 = vld [vmem:[%s12011_s5 + $0xa8] sm:$0xf] }
 0xc63   : > { %8554 = vmatpush1.bf16.msra.mxu1 %v8553_v34 }
 0xc64   : > { %5603 = vmatprep.subr.mxu1 %v5602_v20 }
 0xc67   : > { %5609 = vmatpush1.msra.mxu1 %v5608_v26  ;;  %v8170_v26 = vld [vmem:[%s12007_s1 + $0x20] sm:$0xf] }
 0xc68   : > { %8556 = vmatprep.subr.bf16.mxu1 %v8555_v42  ;;  %5666 = vmatmul.mubr.f32.vlgmr.msra.gmra.mrb[6].mxu1 %v10743_v57 }
 0xc69   : > { %8558 = vmatpush1.bf16.msra.mxu1 %v8557_v0  ;;  %5756 = vmatprep.mubr.f32.mxu1 %v9015_v2 }
 0xc6a   : > { %8560 = vmatprep.subr.bf16.mxu1 %v8559_v16 }
 0xc6d   : > { %8562 = vmatpush1.bf16.msra.mxu1 %v8561_v21  ;;  %v8166_v21 = vld [vmem:[%s12011_s5 + $0xe0] sm:$0xf] }
 0xc6e   : > { %5698 = vmatprep.subr.mxu1 %v5599_v48 }
 0xc71   : > { %5701 = vmatpush1.msra.mxu1 %v5605_v47 }
 0xc72   : > { %8564 = vmatprep.subr.bf16.mxu1 %v10749_v41  ;;  %5759 = vmatmul.mubr.f32.vlgmr.msra.gmra.mrb[6].mxu1 %v10763_v43 }
 0xc73   : > { %8566 = vmatpush1.bf16.msra.mxu1 %v10759_v1  ;;  %5839 = vmatprep.mubr.f32.mxu1 %v9015_v2 }
 0xc74   : > { %8568 = vmatprep.subr.bf16.mxu1 %v10798_v12 }
 0xc77   : > { %8570 = vmatpush1.bf16.msra.mxu1 %v10802_v37 }
 0xc78   : > { %5782 = vmatprep.subr.mxu1 %v10819_v61 }
 0xc7b   : > { %5784 = vmatpush1.msra.mxu1 %v10821_v14 }
 0xc7c   : > { %8572 = vmatprep.subr.bf16.mxu1 %v8571_v32  ;;  %5843 = vmatmul.mubr.f32.vlgmr.msra.gmra.mrb[6].mxu1 %v5541_v39  ;;  %v8167_v32 = vld [vmem:[%s12011_s5 + $0xe8] sm:$0xf] }
 0xc7d   : > { %8574 = vmatpush1.bf16.msra.mxu1 %v8573_v8  ;;  %5943 = vmatprep.mubr.f32.mxu1 %v9015_v2 }
 0xc7e   : > { %8576 = vmatprep.subr.bf16.mxu1 %v8575_v28 }
 0xc81   : > { %8578 = vmatpush1.bf16.msra.mxu1 %v8577_v45 }
 0xc82   : > { %5884 = vmatprep.subr.mxu1 %v5600_v40 }
 0xc85   : > { %5888 = vmatpush1.msra.mxu1 %v5606_v30 }
 0xc86   : > { %8580 = vmatprep.subr.bf16.mxu1 %v10749_v41  ;;  %5945 = vmatmul.mubr.f32.vlgmr.msra.gmra.mrb[6].mxu1 %v10743_v57  ;;  %v8155_v41 = vld [vmem:[%s12008_s2 + $0x38] sm:$0xff] }
 0xc87   : > { %8582 = vmatpush1.bf16.msra.mxu1 %v10759_v1  ;;  %6025 = vmatprep.mubr.f32.mxu1 %v9015_v2  ;;  %v5453_v43 = vcombine.high %v8155_v41, %v8155_v41 }
 0xc88   : > { %8584 = vmatprep.subr.bf16.mxu1 %v10798_v12 }
 0xc8b   : > { %8586 = vmatpush1.bf16.msra.mxu1 %v10802_v37 }
 0xc8c   : > { %5968 = vmatprep.subr.mxu1 %v10819_v61 }
 0xc8f   : > { %5970 = vmatpush1.msra.mxu1 %v10821_v14  ;;  %v6041_v14 = vld [vmem:[%s12011_s5] sm:$0xf] }
 0xc90   : > { %6027 = vmatmul.mubr.f32.vlgmr.msra.gmra.mrb[6].mxu1 %v10743_v57  ;;  %v10898_v57 = vld [vmem:[#allocation4] sm:$0xff] }
 0xd63   : > { %v6028_v49 = vpop.f32.mrb[6].mxu1 }
 0xd64   : > { %v8867_v7 = vadd.f32 %v8155_v41, %v6028_v49  ;;  %v6030_v1 = vpop.f32.mrb[7].mxu1 }
 0xd65   : > { %v8868_v52 = vadd.f32 %v6030_v1, %v5453_v43  ;;  %v6175_v43 = vsel %vm408_vm5, %v8170_v26, 0 }
 0xd66   : > { %v6033_v19 = vmax.f32 %v8867_v7, 0.0 }
 0xd67   : > { %v6034_v38 = vmax.f32 %v8868_v52, 0.0 }
 0xd68   : > { %6095 = vst [vmem:[#allocation2 + $0x20] sm:$0xf] %v6033_v19  ;;  %6047 = vrot.lane.b32.xlu0 %v6033_v19, %s9008_s28 }
 0xd69   : > { %6096 = vst [vmem:[#allocation2 + $0x28] sm:$0xf] %v6034_v38  ;;  %6049 = vrot.lane.b32.xlu1 %v6034_v38, %s9008_s28 }
 0xd6c   : > { %6077 = vrot.lane.b32.xlu0 %v6033_v19, %s9007_s27 }
 0xd6d   : > { %6079 = vrot.lane.b32.xlu1 %v6034_v38, %s9007_s27 }
 0xd70   : > { %6035 = vrot.lane.b32.xlu0 %v6033_v19, %s9009_s29 }
 0xd71   : > { %6037 = vrot.lane.b32.xlu1 %v6034_v38, %s9009_s29 }
 0xd74   : > { %6065 = vrot.lane.b32.xlu0 %v6033_v19, %s9010_s30 }
 0xd75   : > { %6067 = vrot.lane.b32.xlu1 %v6034_v38, %s9010_s30 }
 0xd78   : > { %6097 = vrot.lane.b32.xlu0 %v6033_v19, %s9011_s7 }
 0xd79   : > { %6099 = vrot.lane.b32.xlu1 %v6034_v38, %s9011_s7 }
 0xd7c   : > { %6127 = vrot.lane.b32.xlu0 %v6033_v19, %s9012_s8 }
 0xd7d   : > { %6129 = vrot.lane.b32.xlu1 %v6034_v38, %s9012_s8 }
 0xd80   : > { %6115 = vrot.lane.b32.xlu0 %v6033_v19, %s9013_s9 }
 0xd81   : > { %6117 = vrot.lane.b32.xlu1 %v6034_v38, %s9013_s9 }
 0xd84   : > { %6145 = vrot.lane.b32.xlu0 %v6033_v19, %s9014_s10  ;;  %v8164_v19 = vld [vmem:[%s12011_s5 + $0xc0] sm:$0xf] }
 0xd85   : > { %6147 = vrot.lane.b32.xlu1 %v6034_v38, %s9014_s10 }
 0xd88   : > { %6766 = vrot.lane.b32.xlu0 %v10898_v57, %s9009_s29 }
 0xd8c   : > { %6770 = vrot.lane.b32.xlu0 %v10902_v46, %s9009_s29 }
 0xd90   : > { %6790 = vrot.lane.b32.xlu0 %v10898_v57, %s9008_s28 }
 0xd94   : > { %6794 = vrot.lane.b32.xlu0 %v10902_v46, %s9008_s28 }
 0xd98   : > { %6814 = vrot.lane.b32.xlu0 %v10898_v57, %s9010_s30 }
 0xd9c   : > { %6818 = vrot.lane.b32.xlu0 %v10902_v46, %s9010_s30 }
 0xda0   : > { %6838 = vrot.lane.b32.xlu0 %v10898_v57, %s9007_s27 }
 0xda4   : > { %6842 = vrot.lane.b32.xlu0 %v10902_v46, %s9007_s27 }
 0xda8   : > { %6866 = vrot.lane.b32.xlu0 %v10898_v57, %s9011_s7 }
 0xdac   : > { %6870 = vrot.lane.b32.xlu0 %v10902_v46, %s9011_s7 }
 0xdb0   : > { %6890 = vrot.lane.b32.xlu0 %v10898_v57, %s9013_s9 }
 0xdb4   : > { %6894 = vrot.lane.b32.xlu0 %v10902_v46, %s9013_s9 }
 0xdb8   : > { %6914 = vrot.lane.b32.xlu0 %v10898_v57, %s9012_s8 }
 0xdbc   : > { %6918 = vrot.lane.b32.xlu0 %v10902_v46, %s9012_s8 }
 0xdc0   : > { %6938 = vrot.lane.b32.xlu0 %v10898_v57, %s9014_s10 }
 0xdc4   : > { %6942 = vrot.lane.b32.xlu0 %v10902_v46, %s9014_s10 }
 0xdda   : > { %v6048_v39 = vpop.permute.xlu0 %6047 }
 0xddb   : > { %v6050_v24 = vpop.permute.xlu1 %6049 }
 0xddc   : > { %v6051_v54 = vsel %vm273_vm2, %v6048_v39, %v6050_v24  ;;  %v6052_v12 = vsel %vm273_vm2, %v6050_v24, %v6048_v39 }
 0xddd   : > { %v6055_v37 = vmul.f32 %v8156_v55, %v6052_v12  ;;  %v6056_v60 = vmul.f32 %v8157_v23, %v6051_v54  ;;  %v8165_v55 = vld [vmem:[%s12011_s5 + $0xc8] sm:$0xf]  ;;  %v11004_v12 = vand.u32 4294901760, %v6175_v43 }
 0xdde   : > { %v6078_v44 = vpop.permute.xlu0 %6077 }
 0xddf   : > { %v6059_v13 = vrot.slane %v6055_v37, 4  ;;  %v6060_v27 = vrot.slane %v6056_v60, 4  ;;  %v6080_v56 = vpop.permute.xlu1 %6079 }
 0xde0   : > { %v6081_v58 = vsel %vm307_vm0, %v6078_v44, %v6080_v56  ;;  %v6082_v15 = vsel %vm307_vm0, %v6080_v56, %v6078_v44 }
 0xde1   : > { %6063 = vst [vmem:[#allocation2] sm:$0xf0] %v6059_v13  ;;  %6064 = vst [vmem:[#allocation2 + $0x8] sm:$0xf0] %v6060_v27  ;;  %v6085_v10 = vmul.f32 %v8160_v63, %v6082_v15  ;;  %v6086_v50 = vmul.f32 %v8161_v29, %v6081_v58 }
 0xde2   : > { %v6036_v61 = vpop.permute.xlu0 %6035 }
 0xde3   : > { %v6089_v11 = vrot.slane %v6085_v10, 4  ;;  %v6090_v31 = vrot.slane %v6086_v50, 4  ;;  %v6038_v53 = vpop.permute.xlu1 %6037 }
 0xde4   : > { %v6039_v59 = vsel %vm260_vm1, %v6036_v61, %v6038_v53  ;;  %v6040_v47 = vsel %vm260_vm1, %v6038_v53, %v6036_v61  ;;  %v8168_v61 = vld [vmem:[%s12011_s5 + $0x100] sm:$0xf]  ;;  %v11024_v53 = vsub.f32 %v6175_v43, %v11004_v12 }
 0xde5   : > { %6093 = vst [vmem:[#allocation2 + $0x10] sm:$0xf0] %v6089_v11  ;;  %6094 = vst [vmem:[#allocation2 + $0x18] sm:$0xf0] %v6090_v31  ;;  %v6043_v25 = vmul.f32 %v6041_v14, %v6040_v47  ;;  %v6044_v9 = vmul.f32 %v6042_v22, %v6039_v59  ;;  %v8169_v14 = vld [vmem:[%s12011_s5 + $0x108] sm:$0xf] }
 0xde6   : > { %v6066_v48 = vpop.permute.xlu0 %6065 }
 0xde7   : > { %6045 = vst [vmem:[#allocation2] sm:$0xf] %v6043_v25  ;;  %6046 = vst [vmem:[#allocation2 + $0x8] sm:$0xf] %v6044_v9  ;;  %v6068_v35 = vpop.permute.xlu1 %6067 }
 0xde8   : > { %v6069_v5 = vsel %vm293_vm3, %v6066_v48, %v6068_v35  ;;  %v6070_v36 = vsel %vm293_vm3, %v6068_v35, %v6066_v48 }
 0xde9   : > { %v6073_v40 = vmul.f32 %v8158_v17, %v6070_v36  ;;  %v6074_v30 = vmul.f32 %v8159_v33, %v6069_v5 }
 0xdea   : > { %v6098_v18 = vpop.permute.xlu0 %6097 }
 0xdeb   : > { %6075 = vst [vmem:[#allocation2 + $0x10] sm:$0xf] %v6073_v40  ;;  %6076 = vst [vmem:[#allocation2 + $0x18] sm:$0xf] %v6074_v30  ;;  %v6100_v34 = vpop.permute.xlu1 %6099 }
 0xdec   : > { %v6101_v20 = vsel %vm329_vm4, %v6098_v18, %v6100_v34  ;;  %v6102_v51 = vsel %vm329_vm4, %v6100_v34, %v6098_v18 }
 0xded   : > { %v6105_v42 = vmul.f32 %v8162_v6, %v6101_v20  ;;  %v6106_v0 = vmul.f32 %v8163_v62, %v6102_v51  ;;  %v6260_v62 = vand.u32 4294901760, %v11024_v53 }
 0xdee   : > { %v6128_v16 = vpop.permute.xlu0 %6127  ;;  %v6160_v41 = vld [vmem:[#allocation2 + $0x8] sm:$0xff]  ;;  %v6159_v38 = vld [vmem:[#allocation2] sm:$0xff] }
 0xdef   : > { %v6109_v8 = vrot.slane %v6105_v42, 4  ;;  %v6110_v28 = vrot.slane %v6106_v0, 4  ;;  %v6130_v45 = vpop.permute.xlu1 %6129  ;;  %v6183_v24 = vand.u32 4294901760, %v6160_v41  ;;  %v6185_v56 = vand.u32 4294901760, %v6159_v38 }
 0xdf0   : > { %v6131_v49 = vsel %vm363_vm6, %v6128_v16, %v6130_v45  ;;  %v6132_v7 = vsel %vm363_vm6, %v6130_v45, %v6128_v16 }
 0xdf1   : > { %6113 = vst [vmem:[#allocation2 + $0x20] sm:$0xf0] %v6109_v8  ;;  %6114 = vst [vmem:[#allocation2 + $0x28] sm:$0xf0] %v6110_v28  ;;  %v6135_v1 = vmul.f32 %v8166_v21, %v6131_v49  ;;  %v6136_v52 = vmul.f32 %v8167_v32, %v6132_v7  ;;  %v11030_v25 = vsub.f32 %v6160_v41, %v6183_v24 }
 0xdf2   : > { %v6116_v39 = vpop.permute.xlu0 %6115  ;;  %v6162_v23 = vld [vmem:[#allocation2 + $0x18] sm:$0xff]  ;;  %v6161_v54 = vld [vmem:[#allocation2 + $0x10] sm:$0xff]  ;;  %v11035_v36 = vsub.f32 %v6159_v38, %v6185_v56  ;;  %v6261_v28 = vsub.f32 %v11024_v53, %v6260_v62 }
 0xdf3   : > { %v6139_v37 = vrot.slane %v6135_v1, 4  ;;  %v6140_v60 = vrot.slane %v6136_v52, 4  ;;  %v6118_v44 = vpop.permute.xlu1 %6117  ;;  %v6187_v63 = vand.u32 4294901760, %v6162_v23  ;;  %v6189_v29 = vand.u32 4294901760, %v6161_v54 }
 0xdf4   : > { %v6119_v13 = vsel %vm349_vm7, %v6116_v39, %v6118_v44  ;;  %v6120_v27 = vsel %vm349_vm7, %v6118_v44, %v6116_v39  ;;  %v6271_v6 = vand.u32 4294901760, %v11030_v25  ;;  %v6277_v0 = vand.u32 4294901760, %v11035_v36 }
 0xdf5   : > { %6143 = vst [vmem:[#allocation2 + $0x30] sm:$0xf0] %v6139_v37  ;;  %6144 = vst [vmem:[#allocation2 + $0x38] sm:$0xf0] %v6140_v60  ;;  %v6123_v58 = vmul.f32 %v8164_v19, %v6119_v13  ;;  %v6124_v15 = vmul.f32 %v8165_v55, %v6120_v27  ;;  %v11010_v10 = vpack.c.bf16 %v6187_v63, %v6183_v24 }
 0xdf6   : > { %v6146_v50 = vpop.permute.xlu0 %6145  ;;  %v11018_v22 = vsub.f32 %v6162_v23, %v6187_v63  ;;  %v11020_v11 = vpack.c.bf16 %v6189_v29, %v6185_v56  ;;  %v11033_v9 = vsub.f32 %v6161_v54, %v6189_v29  ;;  %v6272_v8 = vsub.f32 %v11030_v25, %v6271_v6 }
 0xdf7   : > { %6125 = vst [vmem:[#allocation2 + $0x30] sm:$0xf] %v6123_v58  ;;  %6126 = vst [vmem:[#allocation2 + $0x38] sm:$0xf] %v6124_v15  ;;  %v6148_v31 = vpop.permute.xlu1 %6147  ;;  %8588 = vmatprep.subr.bf16.mxu0 %v11010_v10  ;;  %v6278_v38 = vsub.f32 %v11035_v36, %v6277_v0  ;;  %v6262_v29 = vand.u32 4294901760, %v6261_v28 }
 0xdf8   : > { %v6149_v59 = vsel %vm383_vm8, %v6146_v50, %v6148_v31  ;;  %v6150_v47 = vsel %vm383_vm8, %v6148_v31, %v6146_v50  ;;  %8590 = vmatpush1.bf16.msra.mxu0 %v11020_v11  ;;  %v6164_v48 = vld [vmem:[#allocation2 + $0x28] sm:$0xff]  ;;  %v6163_v17 = vld [vmem:[#allocation2 + $0x20] sm:$0xff]  ;;  %v6283_v30 = vand.u32 4294901760, %v11018_v22  ;;  %v6289_v34 = vand.u32 4294901760, %v11033_v9 }
 0xdf9   : > { %v6153_v33 = vmul.f32 %v8168_v61, %v6149_v59  ;;  %v6154_v35 = vmul.f32 %v8169_v14, %v6150_v47  ;;  %v6191_v5 = vand.u32 4294901760, %v6164_v48  ;;  %v6193_v40 = vand.u32 4294901760, %v6163_v17 }
 0xdfa   : > { %v6284_v42 = vsub.f32 %v11018_v22, %v6283_v30  ;;  %v6290_v45 = vsub.f32 %v11033_v9, %v6289_v34  ;;  %v6273_v63 = vand.u32 4294901760, %v6272_v8  ;;  %v6279_v58 = vand.u32 4294901760, %v6278_v38 }
 0xdfb   : > { %6155 = vst [vmem:[#allocation2 + $0x40] sm:$0xf] %v6153_v33  ;;  %6156 = vst [vmem:[#allocation2 + $0x48] sm:$0xf] %v6154_v35  ;;  %v11038_v18 = vsub.f32 %v6164_v48, %v6191_v5  ;;  %v11043_v26 = vsub.f32 %v6163_v17, %v6193_v40  ;;  %v8605_v8 = vpack.c.bf16 %v11033_v9, %v11035_v36 }
 0xdfc   : > { %v6285_v19 = vand.u32 4294901760, %v6284_v42  ;;  %v6291_v44 = vand.u32 4294901760, %v6290_v45 }
 0xdfd   : > { %v6295_v32 = vand.u32 4294901760, %v11038_v18  ;;  %v6301_v39 = vand.u32 4294901760, %v11043_v26 }
 0xdfe   : > { %v6166_v20 = vld [vmem:[#allocation2 + $0x38] sm:$0xff]  ;;  %v6165_v51 = vld [vmem:[#allocation2 + $0x30] sm:$0xff]  ;;  %v8595_v61 = vpack.c.bf16 %v6285_v19, %v6273_v63  ;;  %v8597_v47 = vpack.c.bf16 %v6291_v44, %v6279_v58 }
 0xdff   : > { %v6195_v16 = vand.u32 4294901760, %v6166_v20  ;;  %v6197_v21 = vand.u32 4294901760, %v6165_v51  ;;  %v6296_v24 = vsub.f32 %v11038_v18, %v6295_v32  ;;  %v6302_v15 = vsub.f32 %v11043_v26, %v6301_v39 }
 0xe01   : > { %v11059_v41 = vpack.c.bf16 %v6195_v16, %v6191_v5  ;;  %v11061_v43 = vsub.f32 %v6166_v20, %v6195_v16  ;;  %v11063_v49 = vpack.c.bf16 %v6197_v21, %v6193_v40  ;;  %v11065_v7 = vsub.f32 %v6165_v51, %v6197_v21 }
 0xe02   : > { %v6168_v1 = vld [vmem:[#allocation2 + $0x48] sm:$0xf]  ;;  %v6167_v52 = vld [vmem:[#allocation2 + $0x40] sm:$0xf]  ;;  %v6297_v14 = vand.u32 4294901760, %v6296_v24  ;;  %v6303_v5 = vand.u32 4294901760, %v6302_v15  ;;  %v8603_v21 = vpack.c.bf16 %v11018_v22, %v11030_v25 }
 0xe03   : > { %8592 = vmatprep.subr.bf16.mxu0 %v11059_v41  ;;  %v6181_v55 = vsel %vm412_vm9, %v6168_v1, 0  ;;  %v6178_v23 = vsel %vm412_vm9, %v6167_v52, 0  ;;  %v6307_v54 = vand.u32 4294901760, %v11061_v43  ;;  %v6313_v27 = vand.u32 4294901760, %v11065_v7 }
 0xe04   : > { %8594 = vmatpush1.bf16.msra.mxu0 %v11063_v49  ;;  %v11079_v37 = vand.u32 4294901760, %v6181_v55  ;;  %v11081_v60 = vand.u32 4294901760, %v6178_v23  ;;  %v8607_v28 = vpack.c.bf16 %v11061_v43, %v11038_v18  ;;  %v8609_v45 = vpack.c.bf16 %v11065_v7, %v11043_v26 }
 0xe05   : > { %v6308_v13 = vsub.f32 %v11061_v43, %v6307_v54  ;;  %v6314_v59 = vsub.f32 %v11065_v7, %v6313_v27  ;;  %v8619_v43 = vpack.c.bf16 %v6283_v30, %v6271_v6  ;;  %v8621_v7 = vpack.c.bf16 %v6289_v34, %v6277_v0  ;;  %v11176_v0 = vld [vmem:[%s12009_s3] sm:$0x3] }
 0xe06   : > { %6200 = vmatprep.subr.mxu0 %v11079_v37  ;;  %v6324_v56 = vsub.f32 %v6178_v23, %v11081_v60  ;;  %v6318_v50 = vsub.f32 %v6181_v55, %v11079_v37  ;;  %v8623_v1 = vpack.c.bf16 %v6307_v54, %v6295_v32  ;;  %v8625_v22 = vpack.c.bf16 %v6313_v27, %v6301_v39  ;;  %v6767_v55 = vpop.permute.xlu0 %6766 }
 0xe07   : > { %v6309_v31 = vand.u32 4294901760, %v6308_v13  ;;  %v6315_v33 = vand.u32 4294901760, %v6314_v59  ;;  %v11168_v34 = vshrl.u32 %v12013_v3, 7  ;;  %v8173_v59 = vld [vmem:[%s12011_s5 + $0x28] sm:$0xff] }
 0xe08   : > { %6202 = vmatpush1.msra.mxu0 %v11081_v60  ;;  %v6319_v48 = vand.u32 4294901760, %v6318_v50  ;;  %v6325_v35 = vand.u32 4294901760, %v6324_v56 }
 0xe09   : > { %8596 = vmatprep.subr.bf16.mxu0 %v8595_v61  ;;  %6263 = vmatmul.mubr.f32.vlgmr.msra.gmra.mrb[10].mxu0 %v6262_v29  ;;  %v8599_v17 = vpack.c.bf16 %v6309_v31, %v6297_v14  ;;  %v8601_v20 = vpack.c.bf16 %v6315_v33, %v6303_v5  ;;  %12061 = vst [vmem:[#allocation5_spill] sm:$0xff] %v11168_v34  ;;  %v12014_v26 = vsub.s32 1, %v11168_v34  ;;  %v6778_v61 = vld [vmem:[%s12011_s5] sm:$0xff] }
 0xe0a   : > { %8598 = vmatpush1.bf16.msra.mxu0 %v8597_v47  ;;  %v6320_v40 = vsub.f32 %v6318_v50, %v6319_v48  ;;  %6383 = vmatprep.mubr.f32.mxu0 %v9015_v2  ;;  %v6326_v42 = vsub.f32 %v6324_v56, %v6325_v35  ;;  %v6771_v23 = vpop.permute.xlu0 %6770  ;;  %v8172_v5 = vld [vmem:[%s12011_s5 + $0x20] sm:$0xff] }
 0xe0b   : > { %8600 = vmatprep.subr.bf16.mxu0 %v8599_v17  ;;  %v7008_v32 = vrot.slane %v11176_v0, %v12014_v26  ;;  %v6774_v58 = vsel %vm260_vm1, %v6767_v55, %v6771_v23  ;;  %v6776_v14 = vsel %vm260_vm1, %v6771_v23, %v6767_v55  ;;  %v12020_v23 = vand.u32 4294901760, %v10902_v46  ;;  %v8174_v26 = vld [vmem:[%s12011_s5 + $0x30] sm:$0xff] }
 0xe0c   : > { %v6321_v51 = vand.u32 4294901760, %v6320_v40  ;;  %v6327_v16 = vand.u32 4294901760, %v6326_v42  ;;  %v11222_v17 = vmul.f32 %v6778_v61, %v6776_v14 }
 0xe0e   : > { %8602 = vmatpush1.bf16.msra.mxu0 %v8601_v20  ;;  %v6791_v24 = vpop.permute.xlu0 %6790 }
 0xe0f   : > { %6322 = vmatprep.subr.mxu0 %v6321_v51  ;;  %v8177_v51 = vld [vmem:[%s12011_s5 + $0x48] sm:$0xff] }
 0xe12   : > { %6328 = vmatpush1.msra.mxu0 %v6327_v16  ;;  %v6795_v54 = vpop.permute.xlu0 %6794 }
 0xe13   : > { %8604 = vmatprep.subr.bf16.mxu0 %v8603_v21  ;;  %6385 = vmatmul.mubr.f32.vlgmr.msra.gmra.mrb[10].mxu0 %v11004_v12  ;;  %v6798_v47 = vsel %vm273_vm2, %v6791_v24, %v6795_v54  ;;  %v6800_v40 = vsel %vm273_vm2, %v6795_v54, %v6791_v24  ;;  %v7026_v21 = vand.u32 4294901760, %v11222_v17  ;;  %v12019_v24 = vand.u32 4294901760, %v10898_v57 }
 0xe14   : > { %8606 = vmatpush1.bf16.msra.mxu0 %v8605_v8  ;;  %6475 = vmatprep.mubr.f32.mxu0 %v9015_v2  ;;  %v11232_v20 = vmul.f32 %v8173_v59, %v6798_v47  ;;  %v6781_v59 = vld [vmem:[%s12011_s5 + $0x18] sm:$0xff] }
 0xe15   : > { %8608 = vmatprep.subr.bf16.mxu0 %v8607_v28  ;;  %v11247_v28 = vmul.f32 %v8172_v5, %v6800_v40 }
 0xe18   : > { %8610 = vmatpush1.bf16.msra.mxu0 %v8609_v45  ;;  %v12027_v45 = vand.u32 4294901760, %v11232_v20 }
 0xe19   : > { %6417 = vmatprep.subr.mxu0 %v6318_v50 }
 0xe1c   : > { %6420 = vmatpush1.msra.mxu0 %v6324_v56  ;;  %v6779_v56 = vld [vmem:[%s12011_s5 + $0x8] sm:$0xff] }
 0xe1d   : > { %8612 = vmatprep.subr.bf16.mxu0 %v11010_v10  ;;  %6478 = vmatmul.mubr.f32.vlgmr.msra.gmra.mrb[10].mxu0 %v11024_v53  ;;  %v11213_v31 = vmul.f32 %v6779_v56, %v6774_v58 }
 0xe1e   : > { %8614 = vmatpush1.bf16.msra.mxu0 %v11020_v11  ;;  %6558 = vmatprep.mubr.f32.mxu0 %v9015_v2 }
 0xe1f   : > { %8616 = vmatprep.subr.bf16.mxu0 %v11059_v41  ;;  %v7024_v33 = vand.u32 4294901760, %v11213_v31 }
 0xe21   : > { %v11245_v8 = vsub.f32 %v11213_v31, %v7024_v33 }
 0xe22   : > { %8618 = vmatpush1.bf16.msra.mxu0 %v11063_v49 }
 0xe23   : > { %6501 = vmatprep.subr.mxu0 %v11079_v37  ;;  %12062 = vst [vmem:[#allocation6_spill] sm:$0xff] %v11245_v8 }
 0xe26   : > { %6503 = vmatpush1.msra.mxu0 %v11081_v60 }
 0xe27   : > { %8620 = vmatprep.subr.bf16.mxu0 %v8619_v43  ;;  %6562 = vmatmul.mubr.f32.vlgmr.msra.gmra.mrb[10].mxu0 %v6260_v62 }
 0xe28   : > { %8622 = vmatpush1.bf16.msra.mxu0 %v8621_v7  ;;  %6662 = vmatprep.mubr.f32.mxu0 %v9015_v2  ;;  %v8176_v7 = vld [vmem:[%s12011_s5 + $0x40] sm:$0xff] }
 0xe29   : > { %8624 = vmatprep.subr.bf16.mxu0 %v8623_v1 }
 0xe2c   : > { %8626 = vmatpush1.bf16.msra.mxu0 %v8625_v22 }
 0xe2d   : > { %6603 = vmatprep.subr.mxu0 %v6319_v48 }
 0xe30   : > { %6607 = vmatpush1.msra.mxu0 %v6325_v35 }
 0xe31   : > { %8628 = vmatprep.subr.bf16.mxu0 %v11010_v10  ;;  %6664 = vmatmul.mubr.f32.vlgmr.msra.gmra.mrb[10].mxu0 %v11004_v12  ;;  %v8171_v10 = vld [vmem:[%s12008_s2 + $0x40] sm:$0xff] }
 0xe32   : > { %8630 = vmatpush1.bf16.msra.mxu0 %v11020_v11  ;;  %6744 = vmatprep.mubr.f32.mxu0 %v9015_v2  ;;  %v6172_v53 = vcombine.high %v8171_v10, %v8171_v10 }
 0xe33   : > { %8632 = vmatprep.subr.bf16.mxu0 %v11059_v41  ;;  %v7022_v41 = vsel %vm7021_vm10, %v7008_v32, 0 }
 0xe36   : > { %8634 = vmatpush1.bf16.msra.mxu0 %v11063_v49  ;;  %v11183_v49 = vand.u32 4294901760, %v7022_v41 }
 0xe37   : > { %6687 = vmatprep.subr.mxu0 %v11079_v37  ;;  %v6815_v37 = vpop.permute.xlu0 %6814 }
 0xe38   : > { %v11186_v52 = vsub.f32 %v7022_v41, %v11183_v49 }
 0xe3a   : > { %6689 = vmatpush1.msra.mxu0 %v11081_v60  ;;  %v12017_v19 = vand.u32 4294901760, %v11186_v52  ;;  %7532 = vmatprep.mubr.f32.mxu1 %v11186_v52 }
 0xe3b   : > { %6746 = vmatmul.mubr.f32.vlgmr.msra.gmra.mrb[10].mxu0 %v11004_v12  ;;  %v6819_v60 = vpop.permute.xlu0 %6818 }
 0xe3c   : > { %v7127_v38 = vsub.f32 %v11186_v52, %v12017_v19  ;;  %v6822_v42 = vsel %vm293_vm3, %v6815_v37, %v6819_v60  ;;  %v6824_v1 = vsel %vm293_vm3, %v6819_v60, %v6815_v37  ;;  %v8184_v60 = vld [vmem:[%s12011_s5 + $0xa0] sm:$0xff] }
 0xe3d   : > { %v11250_v43 = vmul.f32 %v8177_v51, %v6822_v42  ;;  %v11338_v42 = vsub.f32 %v10902_v46, %v12020_v23 }
 0xe3e   : > { %v7128_v39 = vand.u32 4294901760, %v7127_v38  ;;  %v8185_v38 = vld [vmem:[%s12011_s5 + $0xa8] sm:$0xff] }
 0xe3f   : > { %v6839_v44 = vpop.permute.xlu0 %6838  ;;  %v12023_v32 = vand.u32 4294901760, %v11250_v43 }
 0xe40   : > { %7129 = vmatprep.mubr.f32.mxu0 %v7128_v39 }
 0xe41   : > { %v11321_v14 = vsub.f32 %v11250_v43, %v12023_v32 }
 0xe43   : > { %v6843_v63 = vpop.permute.xlu0 %6842 }
 0xe47   : > { %v6867_v13 = vpop.permute.xlu0 %6866 }
 0xe4b   : > { %v6871_v15 = vpop.permute.xlu0 %6870 }
 0xe4c   : > { %v6876_v39 = vsel %vm329_vm4, %v6871_v15, %v6867_v13 }
 0xe4f   : > { %v11225_v35 = vpop.permute.xlu0 %6890 }
 0xe53   : > { %v11257_v22 = vpop.permute.xlu0 %6894 }
 0xe57   : > { %v11310_v56 = vpop.permute.xlu0 %6914 }
 0xf0e   : > { %v6747_v25 = vpop.f32.mrb[10].mxu0 }
 0xf0f   : > { %v8869_v9 = vadd.f32 %v8171_v10, %v6747_v25  ;;  %v6749_v11 = vpop.f32.mrb[11].mxu0  ;;  %v8181_v25 = vld [vmem:[%s12011_s5 + $0x68] sm:$0xff] }
 0xf10   : > { %v8870_v36 = vadd.f32 %v6749_v11, %v6172_v53  ;;  %v11264_v53 = vsub.f32 %v11222_v17, %v7026_v21  ;;  %v7034_v11 = vand.u32 4294901760, %v11247_v28 }
 0xf11   : > { %v6752_v2 = vmax.f32 %v8869_v9, 0.0  ;;  %v6846_v9 = vsel %vm307_vm0, %v6839_v44, %v6843_v63 }
 0xf12   : > { %v6753_v30 = vmax.f32 %v8870_v36, 0.0  ;;  %12063 = vst [vmem:[#allocation7_spill] sm:$0xff] %v11264_v53  ;;  %v8180_v36 = vld [vmem:[%s12011_s5 + $0x60] sm:$0xff]  ;;  %v11286_v41 = vmul.f32 %v8181_v25, %v6846_v9  ;;  %v12015_v54 = vand.u32 4294901760, %v11264_v53 }
 0xf13   : > { %v6756_v18 = vrot.slane %v6752_v2, 4  ;;  %v6848_v2 = vsel %vm307_vm0, %v6843_v63, %v6839_v44  ;;  %v6874_v44 = vsel %vm329_vm4, %v6867_v13, %v6871_v15  ;;  %v11308_v63 = vsub.f32 %v11247_v28, %v7034_v11  ;;  %v6780_v15 = vld [vmem:[%s12011_s5 + $0x10] sm:$0xff] }
 0xf14   : > { %v6757_v6 = vrot.slane %v6753_v30, 4  ;;  %v12016_v30 = vand.u32 4294901760, %v11245_v8  ;;  %v11298_v37 = vmul.f32 %v8180_v36, %v6848_v2  ;;  %v11323_v13 = vmul.f32 %v8185_v38, %v6876_v39  ;;  %v8182_v28 = vld [vmem:[%s12011_s5 + $0x70] sm:$0xff] }
 0xf15   : > { %6760 = vst [vmem:[#allocation4 + $0x10] sm:$0xf0] %v6756_v18  ;;  %v11281_v18 = vsub.f32 %v11232_v20, %v12027_v45  ;;  %v12021_v5 = vand.u32 4294901760, %v11286_v41  ;;  %v11333_v40 = vmul.f32 %v8184_v60, %v6874_v44  ;;  %v8193_v45 = vld [vmem:[%s12011_s5 + $0xe8] sm:$0xff] }
 0xf16   : > { %6761 = vst [vmem:[#allocation4 + $0x18] sm:$0xf0] %v6757_v6  ;;  %v11283_v6 = vmul.f32 %v8176_v7, %v6824_v1  ;;  %v11315_v58 = vsub.f32 %v11245_v8, %v12016_v30  ;;  %v11343_v7 = vsub.f32 %v10898_v57, %v12019_v24  ;;  %v11348_v1 = vsub.f32 %v11264_v53, %v12015_v54  ;;  %v8175_v30 = vld [vmem:[%s12011_s5 + $0x38] sm:$0xff]  ;;  %v8188_v24 = vld [vmem:[%s12011_s5 + $0xc0] sm:$0xff] }
 0xf17   : > { %12064 = vst [vmem:[#allocation8_spill] sm:$0xff] %v11281_v18  ;;  %v12018_v47 = vand.u32 4294901760, %v11281_v18  ;;  %v12022_v25 = vand.u32 4294901760, %v11298_v37  ;;  %v12025_v3 = vand.u32 4294901760, %v11323_v13 }
 0xf18   : > { %v12024_v61 = vand.u32 4294901760, %v11283_v6 }
 0xf1a   : > { %v11362_v44 = vsub.f32 %v11283_v6, %v12024_v61  ;;  %v11412_v61 = vsub.f32 %v11323_v13, %v12025_v3 }
 0xf1c   : > { %v11139_v62 = vld [vmem:[#allocation4 + $0x10] sm:$0xff] }
 0xf1d   : > { %6768 = vrot.lane.b32.xlu1 %v11139_v62, %s9009_s29  ;;  %v11155_v12 = vld [vmem:[#allocation4 + $0x18] sm:$0xff] }
 0xf21   : > { %6792 = vrot.lane.b32.xlu1 %v11139_v62, %s9008_s28 }
 0xf25   : > { %6816 = vrot.lane.b32.xlu1 %v11139_v62, %s9010_s30 }
 0xf29   : > { %6840 = vrot.lane.b32.xlu1 %v11139_v62, %s9007_s27 }
 0xf2d   : > { %6868 = vrot.lane.b32.xlu1 %v11139_v62, %s9011_s7 }
 0xf31   : > { %6892 = vrot.lane.b32.xlu1 %v11139_v62, %s9013_s9 }
 0xf35   : > { %6916 = vrot.lane.b32.xlu1 %v11139_v62, %s9012_s8 }
 0xf39   : > { %6772 = vrot.lane.b32.xlu1 %v11155_v12, %s9009_s29 }
 0xf3d   : > { %6796 = vrot.lane.b32.xlu1 %v11155_v12, %s9008_s28 }
 0xf41   : > { %6820 = vrot.lane.b32.xlu1 %v11155_v12, %s9010_s30 }
 0xf45   : > { %6844 = vrot.lane.b32.xlu1 %v11155_v12, %s9007_s27  ;;  %s8029_s27 = sshll.u32 %s12187_s22, 1 }
 0xf49   : > { %6940 = vrot.lane.b32.xlu1 %v11139_v62, %s9014_s10 }
 0xf4d   : > { %6872 = vrot.lane.b32.xlu1 %v11155_v12, %s9011_s7  ;;  %s249_s7 = scalar_lea.vmem %s12012_s6, %s8029_s27 }
 0xf51   : > { %6896 = vrot.lane.b32.xlu1 %v11155_v12, %s9013_s9 }
 0xf55   : > { %6920 = vrot.lane.b32.xlu1 %v11155_v12, %s9012_s8 }
 0xf59   : > { %6944 = vrot.lane.b32.xlu1 %v11155_v12, %s9014_s10 }
 0xf8f   : > { %v11197_v29 = vpop.permute.xlu1 %6768 }
 0xf93   : > { %v11199_v27 = vpop.permute.xlu1 %6792 }
 0xf97   : > { %v11206_v50 = vpop.permute.xlu1 %6816 }
 0xf9b   : > { %v11220_v48 = vpop.permute.xlu1 %6840 }
 0xf9f   : > { %v11239_v16 = vpop.permute.xlu1 %6868 }
 0xfa3   : > { %v11259_v10 = vpop.permute.xlu1 %6892 }
 0xfa7   : > { %v11293_v55 = vpop.permute.xlu1 %6916 }
 0xfab   : > { %v6773_v51 = vpop.permute.xlu1 %6772 }
 0xfac   : > { %v6775_v9 = vsel %vm260_vm1, %v11197_v29, %v6773_v51  ;;  %v6777_v36 = vsel %vm260_vm1, %v6773_v51, %v11197_v29  ;;  %v11371_v29 = vsub.f32 %v11281_v18, %v12018_v47  ;;  %v12026_v51 = vand.u32 4294901760, %v11333_v40 }
 0xfad   : > { %v6784_v38 = vmul.f32 %v6780_v15, %v6777_v36  ;;  %v6785_v39 = vmul.f32 %v6781_v59, %v6775_v9  ;;  %v11377_v59 = vsub.f32 %v11286_v41, %v12021_v5  ;;  %v6919_v9 = vpop.permute.xlu0 %6918  ;;  %v11386_v47 = vsub.f32 %v11298_v37, %v12022_v25 }
 0xfae   : > { %v6898_v15 = vsel %vm349_vm7, %v11225_v35, %v11257_v22 }
 0xfaf   : > { %v7028_v36 = vand.u32 4294901760, %v6785_v39  ;;  %v7030_v54 = vand.u32 4294901760, %v6784_v38  ;;  %v6797_v19 = vpop.permute.xlu1 %6796  ;;  %v11440_v31 = vmul.f32 %v8188_v24, %v6898_v15 }
 0xfb0   : > { %v6799_v2 = vsel %vm273_vm2, %v11199_v27, %v6797_v19  ;;  %v6801_v60 = vsel %vm273_vm2, %v6797_v19, %v11199_v27  ;;  %v8189_v19 = vld [vmem:[%s12011_s5 + $0xc8] sm:$0xff]  ;;  %v6900_v27 = vsel %vm349_vm7, %v11257_v22, %v11225_v35 }
 0xfb1   : > { %v11403_v23 = vpack.c.bf16 %v7030_v54, %v7026_v21  ;;  %v11405_v5 = vsub.f32 %v6785_v39, %v7028_v36  ;;  %v11407_v25 = vsub.f32 %v6784_v38, %v7030_v54  ;;  %v6808_v32 = vmul.f32 %v8174_v26, %v6801_v60  ;;  %v8178_v21 = vld [vmem:[%s12011_s5 + $0x50] sm:$0xff]  ;;  %v8179_v39 = vld [vmem:[%s12011_s5 + $0x58] sm:$0xff]  ;;  %v6939_v3 = vpop.permute.xlu0 %6938 }
 0xfb2   : > { %v6809_v17 = vmul.f32 %v8175_v30, %v6799_v2  ;;  %v11426_v26 = vpack.c.bf16 %v7028_v36, %v7024_v33  ;;  %v11431_v54 = vsub.f32 %v11333_v40, %v12026_v51  ;;  %v11449_v36 = vmul.f32 %v8189_v19, %v6900_v27 }
 0xfb3   : > { %12065 = vst [vmem:[#allocation9_spill] sm:$0xff] %v11405_v5  ;;  %v7038_v38 = vand.u32 4294901760, %v6808_v32  ;;  %v6821_v35 = vpop.permute.xlu1 %6820  ;;  %v8707_v22 = vpack.c.bf16 %v11405_v5, %v11245_v8  ;;  %v8709_v30 = vpack.c.bf16 %v11407_v25, %v11264_v53  ;;  %v12095_v4 = vand.u32 4294901760, %v11407_v25 }
 0xfb4   : > { %12066 = vst [vmem:[#allocation10_spill] sm:$0xff] %v11431_v54  ;;  %v7036_v33 = vand.u32 4294901760, %v6809_v17  ;;  %v6823_v2 = vsel %vm293_vm3, %v11206_v50, %v6821_v35  ;;  %v6825_v60 = vsel %vm293_vm3, %v6821_v35, %v11206_v50  ;;  %8636 = vmatprep.subr.bf16.mxu0 %v11426_v26  ;;  %v6924_v50 = vsel %vm363_vm6, %v6919_v9, %v11310_v56 }
 0xfb5   : > { %v11453_v51 = vpack.c.bf16 %v7038_v38, %v7034_v11  ;;  %v11455_v24 = vsub.f32 %v6808_v32, %v7038_v38  ;;  %v6832_v15 = vmul.f32 %v8178_v21, %v6825_v60  ;;  %8638 = vmatpush1.bf16.msra.mxu0 %v11403_v23  ;;  %v6833_v27 = vmul.f32 %v8179_v39, %v6823_v2 }
 0xfb6   : > { %v11464_v19 = vsub.f32 %v6809_v17, %v7036_v33  ;;  %8708 = vmatprep.subr.bf16.mxu1 %v8707_v22  ;;  %v12069_v11 = vand.u32 4294901760, %v11232_v20  ;;  %v6922_v21 = vsel %vm363_vm6, %v11310_v56, %v6919_v9  ;;  %v8183_v17 = vld [vmem:[%s12011_s5 + $0x78] sm:$0xff] }
 0xfb7   : > { %12067 = vst [vmem:[#allocation11_spill] sm:$0xff] %v11453_v51  ;;  %v7046_v38 = vand.u32 4294901760, %v6832_v15  ;;  %8710 = vmatpush1.bf16.msra.mxu1 %v8709_v30  ;;  %v6845_v39 = vpop.permute.xlu1 %6844  ;;  %v8713_v35 = vpack.c.bf16 %v11455_v24, %v11308_v63  ;;  %v7044_v2 = vand.u32 4294901760, %v6833_v27  ;;  %v11491_v30 = vmul.f32 %v8193_v45, %v6924_v50 }
 0xfb8   : > { %12068 = vst [vmem:[#allocation12_spill] sm:$0xff] %v11464_v19  ;;  %v11471_v32 = vpack.c.bf16 %v7036_v33, %v12069_v11  ;;  %v6847_v20 = vsel %vm307_vm0, %v11220_v48, %v6845_v39  ;;  %v6849_v56 = vsel %vm307_vm0, %v6845_v39, %v11220_v48  ;;  %v8711_v9 = vpack.c.bf16 %v11464_v19, %v11281_v18  ;;  %v8192_v48 = vld [vmem:[%s12011_s5 + $0xe0] sm:$0xff] }
 0xfb9   : > { %v12070_v33 = vand.u32 4294901760, %v11283_v6  ;;  %v11497_v11 = vsub.f32 %v6832_v15, %v7046_v38  ;;  %v6856_v22 = vmul.f32 %v8182_v28, %v6849_v56  ;;  %v11503_v39 = vsub.f32 %v6833_v27, %v7044_v2 }
 0xfba   : > { %8640 = vmatprep.subr.bf16.mxu0 %v11471_v32  ;;  %v6857_v53 = vmul.f32 %v8183_v17, %v6847_v20  ;;  %8712 = vmatprep.subr.bf16.mxu1 %v8711_v9  ;;  %v12073_v45 = vand.u32 4294901760, %v11250_v43  ;;  %v7060_v6 = vand.u32 4294901760, %v11155_v12  ;;  %v7062_v27 = vand.u32 4294901760, %v11139_v62 }
 0xfbb   : > { %v11495_v60 = vpack.c.bf16 %v7046_v38, %v12070_v33  ;;  %8642 = vmatpush1.bf16.msra.mxu0 %v11453_v51  ;;  %12072 = vst [vmem:[#allocation14_spill] sm:$0xff] %v11503_v39  ;;  %v6943_v38 = vpop.permute.xlu0 %6942  ;;  %v7054_v28 = vand.u32 4294901760, %v6856_v22  ;;  %8714 = vmatpush1.bf16.msra.mxu1 %v8713_v35  ;;  %v11511_v56 = vpop.permute.xlu1 %6940  ;;  %v8717_v33 = vpack.c.bf16 %v11497_v11, %v11362_v44  ;;  %v12076_v15 = vand.u32 4294901760, %v11298_v37  ;;  %v8187_v37 = vld [vmem:[%s12011_s5 + $0xb8] sm:$0xff] }
 0xfbc   : > { %v11507_v50 = vpack.c.bf16 %v7044_v2, %v12073_v45  ;;  %v7052_v20 = vand.u32 4294901760, %v6857_v53  ;;  %v8715_v43 = vpack.c.bf16 %v11503_v39, %v11321_v14  ;;  %v12075_v2 = vsub.s32 0, %v11168_v34 }
 0xfbd   : > { %12071 = vst [vmem:[#allocation13_spill] sm:$0xff] %v11495_v60  ;;  %v11523_v35 = vmul.f32 %v8192_v48, %v6922_v21  ;;  %v11528_v18 = vpack.c.bf16 %v7054_v28, %v12076_v15  ;;  %v11530_v8 = vsub.f32 %v6856_v22, %v7054_v28  ;;  %v6946_v17 = vsel %vm383_vm8, %v6939_v3, %v6943_v38 }
 0xfbe   : > { %12074 = vst [vmem:[#allocation15_spill] sm:$0xff] %v11507_v50  ;;  %8644 = vmatprep.subr.bf16.mxu0 %v11507_v50  ;;  %v7004_v9 = vrot.slane %v11176_v0, %v12075_v2  ;;  %v11535_v50 = vsub.f32 %v6857_v53, %v7052_v20  ;;  %8716 = vmatprep.subr.bf16.mxu1 %v8715_v43  ;;  %v8186_v0 = vld [vmem:[%s12011_s5 + $0xb0] sm:$0xff]  ;;  %v12078_v21 = vand.u32 4294901760, %v11286_v41  ;;  %v8197_v53 = vld [vmem:[%s12011_s5 + $0x108] sm:$0xff]  ;;  %v12080_v43 = vand.u32 4294901760, %v10902_v46 }
 0xfbf   : > { %12077 = vst [vmem:[#allocation16_spill] sm:$0xff] %v11528_v18  ;;  %8646 = vmatpush1.bf16.msra.mxu0 %v11495_v60  ;;  %v11548_v48 = vsub.f32 %v11155_v12, %v7060_v6  ;;  %v6948_v15 = vsel %vm383_vm8, %v6943_v38, %v6939_v3  ;;  %8718 = vmatpush1.bf16.msra.mxu1 %v8717_v33  ;;  %v6873_v28 = vpop.permute.xlu1 %6872  ;;  %v8196_v12 = vld [vmem:[%s12011_s5 + $0x100] sm:$0xff] }
 0xfc0   : > { %v11545_v22 = vpack.c.bf16 %v7052_v20, %v12078_v21  ;;  %v11557_v2 = vpack.c.bf16 %v7060_v6, %v12080_v43  ;;  %v8721_v41 = vpack.c.bf16 %v11530_v8, %v11386_v47  ;;  %v11562_v20 = vsub.f32 %v11139_v62, %v7062_v27 }
 0xfc1   : > { %v6875_v3 = vsel %vm329_vm4, %v11239_v16, %v6873_v28  ;;  %v6877_v46 = vsel %vm329_vm4, %v6873_v28, %v11239_v16  ;;  %v8719_v6 = vpack.c.bf16 %v11535_v50, %v11377_v59  ;;  %v11576_v38 = vand.u32 4294901760, %v7004_v9 }
 0xfc2   : > { %12079 = vst [vmem:[#allocation17_spill] sm:$0xff] %v11545_v22  ;;  %12081 = vst [vmem:[#allocation18_spill] sm:$0xff] %v11557_v2  ;;  %8648 = vmatprep.subr.bf16.mxu0 %v11545_v22  ;;  %v12083_v62 = vand.u32 4294901760, %v11449_v36  ;;  %v12084_v21 = vand.u32 4294901760, %v11440_v31  ;;  %v6884_v45 = vmul.f32 %v8186_v0, %v6875_v3  ;;  %v6885_v34 = vmul.f32 %v8187_v37, %v6877_v46 }
 0xfc3   : > { %12082 = vst [vmem:[#allocation19_spill] sm:$0xff] %v11576_v38  ;;  %8650 = vmatpush1.bf16.msra.mxu0 %v11528_v18  ;;  %v12085_v28 = vand.u32 4294901760, %v11491_v30  ;;  %v11595_v60 = vmul.f32 %v8197_v53, %v6948_v15  ;;  %8720 = vmatprep.subr.bf16.mxu1 %v8719_v6  ;;  %v8723_v0 = vpack.c.bf16 %v11548_v48, %v11338_v42  ;;  %v8191_v53 = vld [vmem:[%s12011_s5 + $0xd8] sm:$0xff]  ;;  %v6897_v15 = vpop.permute.xlu1 %6896  ;;  %v12088_v16 = vand.u32 4294901760, %v11333_v40  ;;  %v8194_v40 = vld [vmem:[%s12011_s5 + $0xf0] sm:$0xff] }
 0xfc4   : > { %v11581_v33 = vsub.f32 %v11449_v36, %v12083_v62  ;;  %v11586_v43 = vsub.f32 %v11440_v31, %v12084_v21  ;;  %8652 = vmatprep.subr.bf16.mxu0 %v11557_v2  ;;  %v8190_v62 = vld [vmem:[%s12011_s5 + $0xd0] sm:$0xff]  ;;  %v11603_v37 = vmul.f32 %v8196_v12, %v6946_v17  ;;  %v7068_v3 = vand.u32 4294901760, %v6885_v34  ;;  %8722 = vmatpush1.bf16.msra.mxu1 %v8721_v41 }
 0xfc5   : > { %v11593_v22 = vsub.f32 %v11491_v30, %v12085_v28  ;;  %v7070_v46 = vand.u32 4294901760, %v6884_v45  ;;  %v12086_v21 = vand.u32 4294901760, %v10898_v57  ;;  %v6899_v28 = vsel %vm349_vm7, %v11259_v10, %v6897_v15  ;;  %8724 = vmatprep.subr.bf16.mxu1 %v8723_v0 }
 0xfc6   : > { %v6901_v17 = vsel %vm349_vm7, %v6897_v15, %v11259_v10  ;;  %v8725_v41 = vpack.c.bf16 %v11562_v20, %v11343_v7  ;;  %v11621_v12 = vsub.f32 %v7004_v9, %v11576_v38  ;;  %v6908_v2 = vmul.f32 %v8190_v62, %v6899_v28  ;;  %v8195_v62 = vld [vmem:[%s12011_s5 + $0xf8] sm:$0xff] }
 0xfc7   : > { %v11610_v6 = vpack.c.bf16 %v7062_v27, %v12086_v21  ;;  %v11625_v57 = vpack.c.bf16 %v7070_v46, %v12088_v16  ;;  %v11627_v27 = vsub.f32 %v6885_v34, %v7068_v3  ;;  %v11629_v21 = vsub.f32 %v6884_v45, %v7070_v46  ;;  %v6921_v46 = vpop.permute.xlu1 %6920 }
 0xfc8   : > { %v12089_v10 = vand.u32 4294901760, %v11523_v35  ;;  %v6909_v9 = vmul.f32 %v8191_v53, %v6901_v17  ;;  %v12090_v34 = vand.u32 4294901760, %v11323_v13  ;;  %v7078_v45 = vand.u32 4294901760, %v6908_v2  ;;  %8726 = vmatpush1.bf16.msra.mxu1 %v8725_v41 }
 0xfc9   : > { %12087 = vst [vmem:[#allocation20_spill] sm:$0xff] %v11610_v6  ;;  %8654 = vmatpush1.bf16.msra.mxu0 %v11610_v6  ;;  %v8727_v28 = vpack.c.bf16 %v11627_v27, %v11412_v61  ;;  %v8729_v53 = vpack.c.bf16 %v11629_v21, %v11431_v54  ;;  %v6925_v41 = vsel %vm363_vm6, %v6921_v46, %v11293_v55  ;;  %v12052_v6 = vand.u32 4294901760, %v11621_v12 }
 0xfca   : > { %v11635_v0 = vsub.f32 %v11523_v35, %v12089_v10  ;;  %v11643_v16 = vpack.c.bf16 %v7068_v3, %v12090_v34  ;;  %v7090_v10 = vand.u32 4294901760, %v11603_v37  ;;  %v7076_v13 = vand.u32 4294901760, %v6909_v9 }
 0xfcb   : > { %v6923_v3 = vsel %vm363_vm6, %v11293_v55, %v6921_v46  ;;  %v12091_v34 = vand.u32 4294901760, %v11440_v31  ;;  %v11665_v38 = vsub.f32 %v6908_v2, %v7078_v45  ;;  %v6933_v51 = vmul.f32 %v8195_v62, %v6925_v41  ;;  %8728 = vmatprep.subr.bf16.mxu1 %v8727_v28  ;;  %v8198_v55 = vld [vmem:[%s12011_s5 + $0x110] sm:$0xff] }
 0xfcc   : > { %8656 = vmatprep.subr.bf16.mxu0 %v11643_v16  ;;  %v6932_v17 = vmul.f32 %v8194_v40, %v6923_v3  ;;  %v11670_v54 = vsub.f32 %v6909_v9, %v7076_v13  ;;  %v12092_v31 = vand.u32 4294901760, %v11449_v36  ;;  %8730 = vmatpush1.bf16.msra.mxu1 %v8729_v53  ;;  %v8199_v40 = vld [vmem:[%s12011_s5 + $0x118] sm:$0xff]  ;;  %v12093_v62 = vand.u32 4294901760, %v11405_v5 }
 0xfcd   : > { %v11663_v15 = vpack.c.bf16 %v7078_v45, %v12091_v34  ;;  %8658 = vmatpush1.bf16.msra.mxu0 %v11625_v57  ;;  %v6945_v45 = vpop.permute.xlu1 %6944  ;;  %v8733_v9 = vpack.c.bf16 %v11665_v38, %v11586_v43  ;;  %v7084_v41 = vand.u32 4294901760, %v6933_v51  ;;  %v12094_v34 = vand.u32 4294901760, %v11523_v35 }
 0xfce   : > { %v11677_v46 = vpack.c.bf16 %v7076_v13, %v12092_v31  ;;  %v7086_v2 = vand.u32 4294901760, %v6932_v17  ;;  %v7156_v28 = vsub.f32 %v11405_v5, %v12093_v62  ;;  %v6947_v36 = vsel %vm383_vm8, %v11511_v56, %v6945_v45 }
 0xfcf   : > { %v6949_v53 = vsel %vm383_vm8, %v6945_v45, %v11511_v56  ;;  %v8731_v13 = vpack.c.bf16 %v11670_v54, %v11581_v33  ;;  %v6956_v3 = vmul.f32 %v8198_v55, %v6947_v36  ;;  %v7133_v18 = vsub.f32 %v11621_v12, %v12052_v6 }
 0xfd0   : > { %8660 = vmatprep.subr.bf16.mxu0 %v11677_v46  ;;  %v11699_v31 = vpack.c.bf16 %v7086_v2, %v12094_v34  ;;  %v11701_v62 = vsub.f32 %v6932_v17, %v7086_v2  ;;  %v7162_v56 = vsub.f32 %v11407_v25, %v12095_v4  ;;  %v11710_v45 = vsub.f32 %v6933_v51, %v7084_v41 }
 0xfd1   : > { %8662 = vmatpush1.bf16.msra.mxu0 %v11663_v15  ;;  %v6957_v5 = vmul.f32 %v8199_v40, %v6949_v53  ;;  %8732 = vmatprep.subr.bf16.mxu1 %v8731_v13  ;;  %v12096_v35 = vand.u32 4294901760, %v11491_v30  ;;  %v7094_v55 = vand.u32 4294901760, %v6956_v3  ;;  %v7157_v36 = vand.u32 4294901760, %v7156_v28 }
 0xfd2   : > { %8734 = vmatpush1.bf16.msra.mxu1 %v8733_v9  ;;  %v8737_v2 = vpack.c.bf16 %v11701_v62, %v11635_v0  ;;  %v8735_v51 = vpack.c.bf16 %v11710_v45, %v11593_v22  ;;  %v12097_v40 = vand.u32 4294901760, %v11464_v19  ;;  %v12098_v53 = vand.u32 4294901760, %v11595_v60 }
 0xfd3   : > { %v11714_v34 = vpack.c.bf16 %v7084_v41, %v12096_v35  ;;  %v7092_v6 = vand.u32 4294901760, %v6957_v5  ;;  %v11732_v13 = vsub.f32 %v11603_v37, %v7090_v10  ;;  %v11734_v28 = vpack.c.bf16 %v7094_v55, %v7090_v10 }
 0xfd4   : > { %v7180_v30 = vsub.f32 %v11464_v19, %v12097_v40  ;;  %v11729_v9 = vsub.f32 %v11595_v60, %v12098_v53  ;;  %v11736_v4 = vsub.f32 %v6956_v3, %v7094_v55  ;;  %8736 = vmatprep.subr.bf16.mxu1 %v8735_v51  ;;  %v12099_v40 = vmov %v12098_v53 }
 0xfd5   : > { %8664 = vmatprep.subr.bf16.mxu0 %v11714_v34  ;;  %v11739_v35 = vsub.f32 %v6957_v5, %v7092_v6  ;;  %v11743_v41 = vpack.c.bf16 %v7092_v6, %v12099_v40  ;;  %v7134_v17 = vand.u32 4294901760, %v7133_v18  ;;  %v7163_v19 = vand.u32 4294901760, %v7162_v56 }
 0xfd6   : > { %8666 = vmatpush1.bf16.msra.mxu0 %v11699_v31  ;;  %v12100_v53 = vand.u32 4294901760, %v11455_v24  ;;  %v12055_v10 = vand.u32 4294901760, %v11497_v11  ;;  %8738 = vmatpush1.bf16.msra.mxu1 %v8737_v2  ;;  %v12101_v3 = vand.u32 4294901760, %v11315_v58  ;;  %v8741_v5 = vpack.c.bf16 %v11736_v4, %v11732_v13 }
 0xfd7   : > { %8668 = vmatprep.subr.bf16.mxu0 %v11743_v41  ;;  %v8739_v60 = vpack.c.bf16 %v11739_v35, %v11729_v9  ;;  %v7181_v18 = vand.u32 4294901760, %v7180_v30  ;;  %v12102_v6 = vand.u32 4294901760, %v11503_v39  ;;  %v12103_v2 = vand.u32 4294901760, %v11308_v63 }
 0xfd8   : > { %v7186_v37 = vsub.f32 %v11455_v24, %v12100_v53  ;;  %v8671_v55 = vpack.c.bf16 %v7157_v36, %v12101_v3  ;;  %v7151_v40 = vand.u32 4294901760, %v11348_v1  ;;  %v7169_v30 = vand.u32 4294901760, %v11371_v29 }
 0xfd9   : > { %v7204_v56 = vsub.f32 %v11503_v39, %v12102_v6  ;;  %v7174_v58 = vsub.f32 %v11308_v63, %v12103_v2  ;;  %8740 = vmatprep.subr.bf16.mxu1 %v8739_v60  ;;  %v12104_v53 = vand.u32 4294901760, %v11321_v14  ;;  %v7210_v2 = vsub.f32 %v11497_v11, %v12055_v10 }
 0xfda   : > { %8670 = vmatpush1.bf16.msra.mxu0 %v11734_v28  ;;  %8742 = vmatpush1.bf16.msra.mxu1 %v8741_v5  ;;  %v8673_v51 = vpack.c.bf16 %v7163_v19, %v7151_v40  ;;  %v7187_v39 = vand.u32 4294901760, %v7186_v37  ;;  %v8675_v1 = vpack.c.bf16 %v7181_v18, %v7169_v30  ;;  %v12106_v6 = vand.u32 4294901760, %v11362_v44 }
 0xfdb   : > { %8672 = vmatprep.subr.bf16.mxu0 %v8671_v55  ;;  %v7192_v3 = vsub.f32 %v11321_v14, %v12104_v53  ;;  %8744 = vmatprep.subr.bf16.mxu1 %v11426_v26  ;;  %v7205_v29 = vand.u32 4294901760, %v7204_v56  ;;  %v12105_v55 = vand.u32 4294901760, %v11535_v50  ;;  %v12056_v53 = vand.u32 4294901760, %v11548_v48 }
 0xfdc   : > { %v7198_v10 = vsub.f32 %v11362_v44, %v12106_v6  ;;  %v12058_v36 = vand.u32 4294901760, %v11386_v47  ;;  %v7175_v19 = vand.u32 4294901760, %v7174_v58  ;;  %v12107_v37 = vand.u32 4294901760, %v11377_v59 }
 0xfdd   : > { %7135 = vmatmul.mubr.f32.vlgmr.msra.gmra.mrb[12].mxu0 %v7134_v17  ;;  %v7228_v60 = vsub.f32 %v11535_v50, %v12105_v55  ;;  %7535 = vmatmul.mubr.f32.vlgmr.msra.gmra.mrb[8].mxu1 %v11621_v12  ;;  %v7193_v17 = vand.u32 4294901760, %v7192_v3  ;;  %v12057_v18 = vand.u32 4294901760, %v11338_v42  ;;  %v12108_v56 = vand.u32 4294901760, %v11530_v8 }
 0xfde   : > { %8674 = vmatpush1.bf16.msra.mxu0 %v8673_v51  ;;  %v7216_v5 = vsub.f32 %v11377_v59, %v12107_v37  ;;  %8746 = vmatpush1.bf16.msra.mxu1 %v11403_v23  ;;  %v8677_v30 = vpack.c.bf16 %v7187_v39, %v7175_v19  ;;  %v7211_v6 = vand.u32 4294901760, %v7210_v2  ;;  %v12059_v51 = vand.u32 4294901760, %v11562_v20 }
 0xfdf   : > { %8676 = vmatprep.subr.bf16.mxu0 %v8675_v1  ;;  %v7234_v40 = vsub.f32 %v11530_v8, %v12108_v56  ;;  %v12109_v58 = vand.u32 4294901760, %v11186_v52  ;;  %8748 = vmatprep.subr.bf16.mxu1 %v11471_v32  ;;  %v8679_v3 = vpack.c.bf16 %v7205_v29, %v7193_v17  ;;  %v7229_v1 = vand.u32 4294901760, %v7228_v60  ;;  %v12110_v56 = vld [vmem:[#allocation11_spill] sm:$0xff]  ;;  %v12112_v60 = vld [vmem:[#allocation10_spill] sm:$0xff] }
 0xfe0   : > { %v7252_v55 = vsub.f32 %v11548_v48, %v12056_v53  ;;  %v12060_v37 = vand.u32 4294901760, %v11627_v27  ;;  %7386 = vmatprep.mubr.f32.mxu0 %v11183_v49  ;;  %v7222_v39 = vsub.f32 %v11386_v47, %v12058_v36  ;;  %v7199_v2 = vand.u32 4294901760, %v7198_v10 }
 0xfe1   : > { %7644 = vmatprep.mubr.f32.mxu1 %v12109_v58  ;;  %v7217_v19 = vand.u32 4294901760, %v7216_v5  ;;  %v7240_v29 = vsub.f32 %v11338_v42, %v12057_v18  ;;  %v7235_v53 = vand.u32 4294901760, %v7234_v40  ;;  %v7258_v10 = vsub.f32 %v11562_v20, %v12059_v51 }
 0xfe2   : > { %8678 = vmatpush1.bf16.msra.mxu0 %v8677_v30  ;;  %8750 = vmatpush1.bf16.msra.mxu1 %v12110_v56  ;;  %v8681_v58 = vpack.c.bf16 %v7211_v6, %v7199_v2  ;;  %v12111_v30 = vld [vmem:[#allocation15_spill] sm:$0xff]  ;;  %v7253_v5 = vand.u32 4294901760, %v7252_v55  ;;  %v7276_v18 = vsub.f32 %v11627_v27, %v12060_v37  ;;  %v7223_v52 = vand.u32 4294901760, %v7222_v39  ;;  %v12122_v55 = vld [vmem:[#allocation16_spill] sm:$0xff] }
 0xfe3   : > { %8680 = vmatprep.subr.bf16.mxu0 %v8679_v3  ;;  %8752 = vmatprep.subr.bf16.mxu1 %v12111_v30  ;;  %v8683_v3 = vpack.c.bf16 %v7229_v1, %v7217_v19  ;;  %v12113_v40 = vand.u32 4294901760, %v11343_v7  ;;  %v7241_v2 = vand.u32 4294901760, %v7240_v29  ;;  %v12114_v51 = vand.u32 4294901760, %v11412_v61  ;;  %v12117_v30 = vld [vmem:[#allocation17_spill] sm:$0xff] }
 0xfe4   : > { %v12115_v19 = vand.u32 4294901760, %v11629_v21  ;;  %v8685_v39 = vpack.c.bf16 %v7235_v53, %v7223_v52  ;;  %v7259_v36 = vand.u32 4294901760, %v7258_v10  ;;  %v7277_v29 = vand.u32 4294901760, %v7276_v18  ;;  %v12128_v10 = vld [vmem:[#allocation20_spill] sm:$0xff] }
 0xfe5   : > { %v7246_v6 = vsub.f32 %v11343_v7, %v12113_v40  ;;  %v7264_v1 = vsub.f32 %v11412_v61, %v12114_v51  ;;  %v12118_v40 = vand.u32 4294901760, %v11670_v54  ;;  %v12119_v56 = vand.u32 4294901760, %v12112_v60 }
 0xfe6   : > { %8682 = vmatpush1.bf16.msra.mxu0 %v8681_v58  ;;  %v7282_v37 = vsub.f32 %v11629_v21, %v12115_v19  ;;  %v12116_v58 = vld [vmem:[#allocation13_spill] sm:$0xff]  ;;  %v12120_v52 = vand.u32 4294901760, %v11581_v33 }
 0xfe7   : > { %8684 = vmatprep.subr.bf16.mxu0 %v8683_v3  ;;  %8754 = vmatpush1.bf16.msra.mxu1 %v12116_v58  ;;  %v8687_v3 = vpack.c.bf16 %v7253_v5, %v7241_v2  ;;  %v7300_v51 = vsub.f32 %v11670_v54, %v12118_v40  ;;  %v7270_v19 = vsub.f32 %v12112_v60, %v12119_v56  ;;  %v7247_v58 = vand.u32 4294901760, %v7246_v6 }
 0xfe8   : > { %8756 = vmatprep.subr.bf16.mxu1 %v12117_v30  ;;  %v7265_v53 = vand.u32 4294901760, %v7264_v1  ;;  %v7288_v18 = vsub.f32 %v11581_v33, %v12120_v52  ;;  %v12121_v5 = vand.u32 4294901760, %v11665_v38  ;;  %v7283_v17 = vand.u32 4294901760, %v7282_v37 }
 0xfe9   : > { %v8689_v56 = vpack.c.bf16 %v7259_v36, %v7247_v58  ;;  %v7301_v1 = vand.u32 4294901760, %v7300_v51  ;;  %v12125_v30 = vand.u32 4294901760, %v11586_v43  ;;  %v12126_v37 = vand.u32 4294901760, %v11593_v22 }
 0xfea   : > { %8686 = vmatpush1.bf16.msra.mxu0 %v8685_v39  ;;  %v7306_v2 = vsub.f32 %v11665_v38, %v12121_v5  ;;  %v12123_v39 = vld [vmem:[#allocation18_spill] sm:$0xff]  ;;  %v8691_v6 = vpack.c.bf16 %v7277_v29, %v7265_v53  ;;  %v7289_v36 = vand.u32 4294901760, %v7288_v18  ;;  %v12127_v51 = vand.u32 4294901760, %v11701_v62 }
 0xfeb   : > { %8688 = vmatprep.subr.bf16.mxu0 %v8687_v3  ;;  %8758 = vmatpush1.bf16.msra.mxu1 %v12122_v55  ;;  %v12124_v3 = vand.u32 4294901760, %v11710_v45  ;;  %v7294_v5 = vsub.f32 %v11586_v43, %v12125_v30  ;;  %v7271_v55 = vand.u32 4294901760, %v7270_v19  ;;  %v7312_v58 = vsub.f32 %v11593_v22, %v12126_v37 }
 0xfec   : > { %8760 = vmatprep.subr.bf16.mxu1 %v12123_v39  ;;  %v7330_v53 = vsub.f32 %v11701_v62, %v12127_v51  ;;  %v7307_v40 = vand.u32 4294901760, %v7306_v2  ;;  %v8695_v19 = vpack.c.bf16 %v7301_v1, %v7289_v36  ;;  %v12130_v37 = vand.u32 4294901760, %v11635_v0 }
 0xfed   : > { %v7324_v52 = vsub.f32 %v11710_v45, %v12124_v3  ;;  %v8693_v30 = vpack.c.bf16 %v7283_v17, %v7271_v55  ;;  %v7341_v51 = vand.u32 4294901760, %v11732_v13  ;;  %v7295_v3 = vand.u32 4294901760, %v7294_v5 }
 0xfee   : > { %8690 = vmatpush1.bf16.msra.mxu0 %v8689_v56  ;;  %v12129_v56 = vand.u32 4294901760, %v11739_v35  ;;  %v7318_v29 = vsub.f32 %v11635_v0, %v12130_v37  ;;  %v12131_v17 = vand.u32 4294901760, %v11729_v9  ;;  %v12132_v2 = vand.u32 4294901760, %v11736_v4 }
 0xfef   : > { %8692 = vmatprep.subr.bf16.mxu0 %v8691_v6  ;;  %8762 = vmatpush1.bf16.msra.mxu1 %v12128_v10  ;;  %v7325_v18 = vand.u32 4294901760, %v7324_v52  ;;  %v7313_v10 = vand.u32 4294901760, %v7312_v58  ;;  %v8697_v52 = vpack.c.bf16 %v7307_v40, %v7295_v3  ;;  %v7331_v36 = vand.u32 4294901760, %v7330_v53  ;;  %v12133_v3 = vld [vmem:[#allocation6_spill] sm:$0xff] }
 0xff0   : > { %8764 = vmatprep.subr.bf16.mxu1 %v11643_v16  ;;  %v7348_v6 = vsub.f32 %v11739_v35, %v12129_v56  ;;  %v7336_v55 = vsub.f32 %v11729_v9, %v12131_v17  ;;  %v7354_v1 = vsub.f32 %v11736_v4, %v12132_v2  ;;  %v7342_v5 = vsub.f32 %v11732_v13, %v7341_v51  ;;  %v12137_v2 = vld [vmem:[#allocation19_spill] sm:$0xff]  ;;  %v12180_v13 = vld [vmem:[#allocation16_spill] sm:$0xff] }
 0xff1   : > { %v8699_v56 = vpack.c.bf16 %v7325_v18, %v7313_v10  ;;  %v7319_v58 = vand.u32 4294901760, %v7318_v29  ;;  %v12134_v29 = vand.u32 4294901760, %v12133_v3  ;;  %v12135_v18 = vld [vmem:[#allocation9_spill] sm:$0xff]  ;;  %v12149_v3 = vld [vmem:[#allocation14_spill] sm:$0xff] }
 0xff2   : > { %8694 = vmatpush1.bf16.msra.mxu0 %v8693_v30  ;;  %v7349_v37 = vand.u32 4294901760, %v7348_v6  ;;  %v7337_v30 = vand.u32 4294901760, %v7336_v55  ;;  %v7355_v17 = vand.u32 4294901760, %v7354_v1  ;;  %v7343_v53 = vand.u32 4294901760, %v7342_v5  ;;  %v12138_v1 = vld [vmem:[#allocation7_spill] sm:$0xff]  ;;  %v12142_v5 = vld [vmem:[#allocation8_spill] sm:$0xff] }
 0xff3   : > { %8696 = vmatprep.subr.bf16.mxu0 %v8695_v19  ;;  %8766 = vmatpush1.bf16.msra.mxu1 %v11625_v57  ;;  %v8701_v19 = vpack.c.bf16 %v7331_v36, %v7319_v58  ;;  %v12136_v6 = vand.u32 4294901760, %v12135_v18  ;;  %v12140_v36 = vand.u32 4294901760, %v11407_v25  ;;  %v12143_v58 = vand.u32 4294901760, %v12142_v5 }
 0xff4   : > { %8768 = vmatprep.subr.bf16.mxu1 %v11677_v46  ;;  %v8703_v40 = vpack.c.bf16 %v7349_v37, %v7337_v30  ;;  %v8705_v10 = vpack.c.bf16 %v7355_v17, %v7343_v53  ;;  %v12141_v37 = vand.u32 4294901760, %v11621_v12  ;;  %v12144_v30 = vld [vmem:[#allocation12_spill] sm:$0xff]  ;;  %v12147_v53 = vand.u32 4294901760, %v11455_v24 }
 0xff5   : > { %v8779_v55 = vpack.c.bf16 %v12136_v6, %v12134_v29  ;;  %v12148_v25 = vand.u32 4294901760, %v11321_v14  ;;  %v12150_v29 = vand.u32 4294901760, %v12149_v3  ;;  %v12151_v18 = vand.u32 4294901760, %v11362_v44 }
 0xff6   : > { %8698 = vmatpush1.bf16.msra.mxu0 %v8697_v52  ;;  %v12139_v52 = vand.u32 4294901760, %v12138_v1  ;;  %v12152_v6 = vand.u32 4294901760, %v11497_v11  ;;  %v12153_v1 = vand.u32 4294901760, %v11377_v59  ;;  %v12155_v24 = vand.u32 4294901760, %v11386_v47 }
 0xff7   : > { %8700 = vmatprep.subr.bf16.mxu0 %v8699_v56  ;;  %8770 = vmatpush1.bf16.msra.mxu1 %v11663_v15  ;;  %v8787_v12 = vpack.c.bf16 %v12150_v29, %v12148_v25  ;;  %v12156_v14 = vand.u32 4294901760, %v11530_v8  ;;  %v12159_v11 = vand.u32 4294901760, %v11343_v7  ;;  %v12160_v59 = vand.u32 4294901760, %v11562_v20 }
 0xff8   : > { %8772 = vmatprep.subr.bf16.mxu1 %v11714_v34  ;;  %v8781_v56 = vpack.c.bf16 %v12140_v36, %v12139_v52  ;;  %v12154_v52 = vand.u32 4294901760, %v11535_v50  ;;  %v12161_v5 = vand.u32 4294901760, %v11412_v61  ;;  %v12163_v8 = vand.u32 4294901760, %v12112_v60 }
 0xff9   : > { %v8793_v36 = vpack.c.bf16 %v12156_v14, %v12155_v24  ;;  %v8797_v50 = vpack.c.bf16 %v12160_v59, %v12159_v11  ;;  %v12167_v20 = vand.u32 4294901760, %v11586_v43  ;;  %v12168_v61 = vand.u32 4294901760, %v11665_v38 }
 0xffa   : > { %8702 = vmatpush1.bf16.msra.mxu0 %v8701_v19  ;;  %v12145_v19 = vand.u32 4294901760, %v12144_v30  ;;  %v12165_v30 = vand.u32 4294901760, %v11581_v33  ;;  %v12172_v33 = vand.u32 4294901760, %v11701_v62  ;;  %v12177_v62 = vld [vmem:[#allocation15_spill] sm:$0xff] }
 0xffb   : > { %8704 = vmatprep.subr.bf16.mxu0 %v8703_v40  ;;  %8774 = vmatpush1.bf16.msra.mxu1 %v11699_v31  ;;  %v12146_v40 = vand.u32 4294901760, %v11308_v63  ;;  %v8791_v63 = vpack.c.bf16 %v12154_v52, %v12153_v1 }
 0xffc   : > { %8776 = vmatprep.subr.bf16.mxu1 %v11743_v41  ;;  %v8783_v17 = vpack.c.bf16 %v12145_v19, %v12143_v58  ;;  %v12162_v58 = vand.u32 4294901760, %v11627_v27  ;;  %v12166_v19 = vand.u32 4294901760, %v11670_v54  ;;  %v8805_v27 = vpack.c.bf16 %v12168_v61, %v12167_v20 }
 0xffe   : > { %8706 = vmatpush1.bf16.msra.mxu0 %v8705_v10  ;;  %v8785_v10 = vpack.c.bf16 %v12147_v53, %v12146_v40  ;;  %v8799_v47 = vpack.c.bf16 %v12162_v58, %v12161_v5  ;;  %v8803_v7 = vpack.c.bf16 %v12166_v19, %v12165_v30  ;;  %v12170_v40 = vand.u32 4294901760, %v11710_v45  ;;  %v12178_v45 = vld [vmem:[#allocation13_spill] sm:$0xff] }
 0xfff   : > { %8778 = vmatpush1.bf16.msra.mxu1 %v11734_v28  ;;  %v12173_v53 = vand.u32 4294901760, %v11729_v9  ;;  %v12179_v9 = vld [vmem:[#allocation17_spill] sm:$0xff] }
0x1000   : > { %8780 = vmatprep.subr.bf16.mxu1 %v8779_v55  ;;  %v8789_v55 = vpack.c.bf16 %v12152_v6, %v12151_v18 }
0x1001   : > { %7388 = vmatmul.mubr.f32.vlgmr.msra.gmra.mrb[12].mxu0 %v12137_v2 }
0x1002   : > { %7648 = vmatmul.mubr.f32.vlgmr.msra.gmra.mrb[8].mxu1 %v12141_v37  ;;  %v12158_v37 = vand.u32 4294901760, %v11548_v48 }
0x1003   : > { %8782 = vmatpush1.bf16.msra.mxu1 %v8781_v56  ;;  %7827 = vmatprep.mubr.f32.mxu1 %v11183_v49  ;;  %v12157_v56 = vand.u32 4294901760, %v11338_v42  ;;  %v12164_v42 = vand.u32 4294901760, %v11629_v21  ;;  %v12171_v21 = vand.u32 4294901760, %v11635_v0  ;;  %v12176_v0 = vld [vmem:[#allocation11_spill] sm:$0xff] }
0x1004   : > { %8784 = vmatprep.subr.bf16.mxu1 %v8783_v17  ;;  %v12169_v17 = vand.u32 4294901760, %v11593_v22  ;;  %v12175_v22 = vand.u32 4294901760, %v11736_v4 }
0x1005   : > { %v8795_v44 = vpack.c.bf16 %v12158_v37, %v12157_v56  ;;  %v8801_v48 = vpack.c.bf16 %v12164_v42, %v12163_v8  ;;  %v8809_v54 = vpack.c.bf16 %v12172_v33, %v12171_v21 }
0x1006   : > { %v8807_v60 = vpack.c.bf16 %v12170_v40, %v12169_v17  ;;  %v8813_v38 = vpack.c.bf16 %v12175_v22, %v7341_v51 }
0x1007   : > { %8786 = vmatpush1.bf16.msra.mxu1 %v8785_v10  ;;  %v12174_v10 = vand.u32 4294901760, %v11739_v35 }
0x1008   : > { %8788 = vmatprep.subr.bf16.mxu1 %v8787_v12 }
0x1009   : > { %v8811_v43 = vpack.c.bf16 %v12174_v10, %v12173_v53 }
0x100b   : > { %8790 = vmatpush1.bf16.msra.mxu1 %v8789_v55  ;;  %v12185_v55 = vlaneseq }
0x100c   : > { %8792 = vmatprep.subr.bf16.mxu1 %v8791_v63 }
0x100d   : > { %vm7966_vm11 = vcmp.lt.s32.totalorder %v12185_v55, 256 }
0x100f   : > { %8794 = vmatpush1.bf16.msra.mxu1 %v8793_v36 }
0x1010   : > { %8796 = vmatprep.subr.bf16.mxu1 %v8795_v44 }
0x1013   : > { %8798 = vmatpush1.bf16.msra.mxu1 %v8797_v50 }
0x1014   : > { %8800 = vmatprep.subr.bf16.mxu1 %v8799_v47 }
0x1017   : > { %8802 = vmatpush1.bf16.msra.mxu1 %v8801_v48 }
0x1018   : > { %8804 = vmatprep.subr.bf16.mxu1 %v8803_v7 }
0x101b   : > { %8806 = vmatpush1.bf16.msra.mxu1 %v8805_v27 }
0x101c   : > { %8808 = vmatprep.subr.bf16.mxu1 %v8807_v60 }
0x101f   : > { %8810 = vmatpush1.bf16.msra.mxu1 %v8809_v54 }
0x1020   : > { %8812 = vmatprep.subr.bf16.mxu1 %v8811_v43 }
0x1023   : > { %8814 = vmatpush1.bf16.msra.mxu1 %v8813_v38 }
0x1024   : > { %8816 = vmatprep.subr.bf16.mxu1 %v11426_v26  ;;  %v12181_v26 = vld [vmem:[#allocation20_spill] sm:$0xff] }
0x1026   : > { %7829 = vmatmul.mubr.f32.vlgmr.msra.gmra.mrb[8].mxu1 %v12137_v2 }
0x1027   : > { %8818 = vmatpush1.bf16.msra.mxu1 %v11403_v23  ;;  %7936 = vmatprep.mubr.f32.mxu1 %v11183_v49 }
0x1028   : > { %8820 = vmatprep.subr.bf16.mxu1 %v11471_v32  ;;  %v6999_v32 = vld [vmem:[%s12010_s4] sm:$0x3] }
0x102b   : > { %8822 = vmatpush1.bf16.msra.mxu1 %v12176_v0 }
0x102c   : > { %8824 = vmatprep.subr.bf16.mxu1 %v12177_v62 }
0x102f   : > { %8826 = vmatpush1.bf16.msra.mxu1 %v12178_v45 }
0x1030   : > { %8828 = vmatprep.subr.bf16.mxu1 %v12179_v9 }
0x1033   : > { %8830 = vmatpush1.bf16.msra.mxu1 %v12180_v13 }
0x1034   : > { %8832 = vmatprep.subr.bf16.mxu1 %v12123_v39 }
0x1037   : > { %8834 = vmatpush1.bf16.msra.mxu1 %v12181_v26 }
0x1038   : > { %8836 = vmatprep.subr.bf16.mxu1 %v11643_v16 }
0x103b   : > { %8838 = vmatpush1.bf16.msra.mxu1 %v11625_v57  ;;  %v12182_v57 = vld [vmem:[#allocation5_spill] sm:$0xff] }
0x103c   : > { %8840 = vmatprep.subr.bf16.mxu1 %v11677_v46  ;;  %v12183_v16 = vsub.s32 0, %v12182_v57  ;;  %v12184_v46 = vsub.s32 1, %v12182_v57 }
0x103f   : > { %8842 = vmatpush1.bf16.msra.mxu1 %v11663_v15  ;;  %v7014_v15 = vrot.slane %v6999_v32, %v12183_v16 }
0x1040   : > { %8844 = vmatprep.subr.bf16.mxu1 %v11714_v34  ;;  %v7018_v34 = vrot.slane %v6999_v32, %v12184_v46 }
0x1043   : > { %8846 = vmatpush1.bf16.msra.mxu1 %v11699_v31  ;;  %v9016_v31 = vmov 1966171168  }
0x1044   : > { %8848 = vmatprep.subr.bf16.mxu1 %v11743_v41  ;;  %v7950_v4 = vunpack.c.l.s4 %v9016_v31 }
0x1046   : > { %v7951_v39 = vunpack.c.0.s8 %v7950_v4 }
0x1047   : > { %8850 = vmatpush1.bf16.msra.mxu1 %v11734_v28 }
0x1048   : > { %v7954_v12 = vsub.s32 %v7951_v39, %v12182_v57 }
0x104a   : > { %7938 = vmatmul.mubr.f32.vlgmr.msra.gmra.mrb[8].mxu1 %v12137_v2 }
0x10d4   : > { %v7389_v49 = vpop.f32.mrb[12].mxu0 }
0x10d5   : > { %v7391_v23 = vpop.f32.mrb[13].mxu0  ;;  %v8871_v41 = vadd.f32 %v7389_v49, %v7014_v15 }
0x10d6   : > { %v8873_v35 = vadd.f32 %v7391_v23, %v7018_v34 }
0x111d   : > { %v7939_v28 = vpop.f32.mrb[8].mxu1 }
0x111e   : > { %v8872_v51 = vadd.f32 %v8871_v41, %v7939_v28  ;;  %v7941_v2 = vpop.f32.mrb[9].mxu1 }
0x111f   : > { %v8874_v25 = vadd.f32 %v8873_v35, %v7941_v2 }
0x1120   : > { %v7944_v3 = vmax.f32 %v8872_v51, 0.0 }
0x1121   : > { %v7945_v29 = vmax.f32 %v8874_v25, 0.0 }
0x1123   : > { %v7948_v18 = vcombine.low %v7944_v3, %v7945_v29 }
0x1125   : > { %v7955_v6 = vrot.slane %v7948_v18, %v7954_v12 }
0x1127   : > { %v7962_v1 = vrot.slane %v7955_v6, %v7954_v12 }
0x1129   : > { %7968 = vst.msk [vmem:[%s249_s7] sm:$0x3] %vm7966_vm11, %v7962_v1 }
0x112a PF: > { %s16_s21 = sadd.s32 1, %s9005_s21  }
0x112b   : > { %p13_p4 = scmp.ge.s32.totalorder %s16_s21, 4  }
0x112d   :  { %15 = sbr.rel (!%p13_p4) target bundleno = 1 (0x1), region = 97 }

</bundles_post_ra>
